<compile_context>
chip_gen: v7x
topology: tpu7x:2x2x1
jax: 0.10.0
libtpu: 0.0.40
codegen_flags: <defaults>
</compile_context>

<pallas_src>
import math

import jax
import jax.numpy as jnp
import numpy as np
from jax.experimental import pallas as pl
from jax.experimental.pallas import tpu as pltpu

ANCHORS = [[10, 13, 16, 30, 33, 23],
           [30, 61, 62, 45, 59, 119],
           [116, 90, 156, 198, 373, 326]]
STRIDES = [8.0, 16.0, 32.0]
NC = 4
NA = 3
NO = NC + 5
N_DET = 3

BACKBONE_CH = [(3, 8), (8, 16), (16, 16), (16, 32), (32, 32)]   # 5 stride-2 convs
DET_CH = [16, 32, 32]                                           # P3 / P4 / P5


def _layer_dims(H, W):
    """Per backbone layer: (Cin, Cout, Ho, Wo)."""
    dims = []
    h, w = H, W
    for cin, cout in BACKBONE_CH:
        ho, wo = h // 2, w // 2
        dims.append((cin, cout, ho, wo))
        h, w = ho, wo
    return tuple(dims)


# ---------------------------------------------------------------------------
# Trace-time constant tables (depend only on the image size).
# ---------------------------------------------------------------------------
def _build_reorder_matrix(ho, wo):
    """(Mo, 4*Tp') 0/1 matrix mapping a layer's dense conv output
    (row pitch Wp = wo+1, incl. junk column) to the NEXT layer's zero-padded
    4-phase-plane layout.  One MXU matmul = crop + pad + 2x2 phase split."""
    wp = wo + 1
    mo = ho * wp
    ho2, wo2 = ho // 2, wo // 2
    hp2, wp2 = ho2 + 2, wo2 + 1
    tp2 = hp2 * wp2
    d = np.zeros((mo, 4 * tp2), np.float32)
    for oy in range(ho):
        for ox in range(wo):
            m = oy * wp + ox
            ph = ((oy + 1) % 2) * 2 + (ox + 1) % 2
            i, j = (oy + 1) // 2, (ox + 1) // 2
            d[m, ph * tp2 + i * wp2 + j] = 1.0
    return d


def _build_decode_maps(det_dims):
    """(3, NA*NO, TD) f32: [Q, A, B] such that decoded = Q*s^2 + A*s + B,
    s = sigmoid(logit).  Laid out over the dense (ho, wo+1) token pitch of
    each level, levels concatenated along lanes."""
    td = sum(ho * (wo + 1) for ho, wo in det_dims)
    Q = np.zeros((NA * NO, td), np.float32)
    A = np.zeros((NA * NO, td), np.float32)
    B = np.zeros((NA * NO, td), np.float32)
    off = 0
    for (ho, wo), stride, anch in zip(det_dims, STRIDES, ANCHORS):
        wp = wo + 1
        mo = ho * wp
        gy, gx = np.meshgrid(np.arange(ho, dtype=np.float32),
                             np.arange(wp, dtype=np.float32), indexing="ij")
        gx = gx.reshape(-1)
        gy = gy.reshape(-1)
        for a in range(NA):
            aw, ah = float(anch[2 * a]), float(anch[2 * a + 1])
            base = a * NO
            A[base + 0, off:off + mo] = 2.0 * stride          # x
            B[base + 0, off:off + mo] = (gx - 0.5) * stride
            A[base + 1, off:off + mo] = 2.0 * stride          # y
            B[base + 1, off:off + mo] = (gy - 0.5) * stride
            Q[base + 2, off:off + mo] = 4.0 * aw              # w  (raw pixel anchors)
            Q[base + 3, off:off + mo] = 4.0 * ah              # h
            A[base + 4:base + NO, off:off + mo] = 1.0         # obj + cls: pass sigmoid
        off += mo
    return np.stack([Q, A, B], axis=0)


# ---------------------------------------------------------------------------
# Parameter construction (deterministic, synthetic) -- kernel-ready layouts.
# ---------------------------------------------------------------------------
def init_params(key, img_hw=(64, 64)):
    H, W = img_hw
    dims = _layer_dims(H, W)
    params = {"backbone": [], "detect": []}
    for cin, cout in BACKBONE_CH:
        key, kw, kb = jax.random.split(key, 3)
        w = jax.random.normal(kw, (3, 3, cin, cout), jnp.float32) / math.sqrt(9 * cin)
        b = jax.random.normal(kb, (cout,), jnp.float32) * 0.01
        # (Cout, 9*Cin), tap-major (t = ky*3 + kx): matches the in-kernel patch
        # stacking order so the conv is one (Cout, 9C) @ (9C, Mo) contraction.
        w9 = jnp.transpose(w, (3, 0, 1, 2)).reshape(cout, 9 * cin).astype(jnp.bfloat16)
        params["backbone"].append((w9, b.reshape(cout, 1)))
    for c, s in zip(DET_CH, STRIDES):
        key, kw, kb = jax.random.split(key, 3)
        w = jax.random.normal(kw, (NA * NO, c), jnp.float32) / math.sqrt(c)
        b = jax.random.normal(kb, (NA * NO,), jnp.float32) * 0.01
        # Model._initialize_biases (Detect branch)
        b = b.reshape(NA, NO)
        b = b.at[:, 4].add(math.log(8.0 / (640.0 / s) ** 2))
        b = b.at[:, 5:].add(math.log(0.6 / (NC - 0.99)))
        params["detect"].append((w.astype(jnp.bfloat16), b.reshape(NA * NO, 1)))
    # Constant relayout / decode tables.
    params["reorder"] = [jnp.asarray(_build_reorder_matrix(ho, wo), jnp.bfloat16)
                         for (_, _, ho, wo) in dims[:-1]]
    det_dims = [(ho, wo) for (_, _, ho, wo) in dims[-N_DET:]]
    params["dec_maps"] = jnp.asarray(_build_decode_maps(det_dims), jnp.float32)
    return params


# ---------------------------------------------------------------------------
# The single fused kernel: whole backbone + Detect head, one image per step.
# ---------------------------------------------------------------------------
def _make_kernel(dims):
    n_layers = len(dims)

    def kernel(*refs):
        x_ref = refs[0]
        i0 = 1
        conv_wb = refs[i0:i0 + 2 * n_layers]
        i1 = i0 + 2 * n_layers
        d_refs = refs[i1:i1 + n_layers - 1]
        i2 = i1 + n_layers - 1
        det_wb = refs[i2:i2 + 2 * N_DET]
        i3 = i2 + 2 * N_DET
        dm_ref = refs[i3]          # (3, NA*NO, TD) f32 decode maps [Q, A, B]
        raw_ref = refs[i3 + 1]     # (1, NA*NO, TD) f32  -- pre-sigmoid logits
        dec_ref = refs[i3 + 2]     # (1, NA*NO, TD) f32  -- decoded predictions
        patch_ref = refs[i3 + 3]   # VMEM scratch (9*Cmax, Mo_max) bf16

        # Layer-1 input planes come straight from the (one-time) host phase split.
        planes = x_ref[0]                                     # (C0, 4*Tp0) bf16
        feats = []
        for li, (cin, cout, ho, wo) in enumerate(dims):
            w_ref, b_ref = conv_wb[2 * li], conv_wb[2 * li + 1]
            wp, hp = wo + 1, ho + 2
            tp, mo = hp * wp, ho * wp
            # In-kernel im2col: stage the 9 shifted phase-plane slices channel-
            # major into scratch -> ONE (Cout, 9C) @ (9C, Mo) MXU contraction.
            for ky in range(3):
                for kx in range(3):
                    ph = (ky % 2) * 2 + (kx % 2)
                    st = ph * tp + (ky // 2) * wp + (kx // 2)
                    t = ky * 3 + kx
                    patch_ref[t * cin:(t + 1) * cin, 0:mo] = planes[:, st:st + mo]
            y = jnp.dot(w_ref[...], patch_ref[0:9 * cin, 0:mo],
                        preferred_element_type=jnp.float32) + b_ref[...]
            act = (y * jax.nn.sigmoid(y)).astype(jnp.bfloat16)   # SiLU, (Cout, Mo)
            if li >= n_layers - N_DET:                           # P3, P4, P5
                feats.append((act, ho, wo))
            if li < n_layers - 1:
                # One 0/1 matmul = crop junk column + zero pad + 2x2 phase split
                # for the next layer; activations stay in VMEM (no XLA glue).
                planes = jnp.dot(act, d_refs[li][...],
                                 preferred_element_type=jnp.float32
                                 ).astype(jnp.bfloat16)

        # Fused Detect head: 1x1 conv + bias + sigmoid + affine decode, all
        # three levels written lane-contiguously into two outputs.
        # (raw_ref is the x[i] branch; keep it f32 -- drop/bf16 it if the
        #  caller does not consume xs, to halve store traffic on v5e.)
        off = 0
        for i, (act, ho, wo) in enumerate(feats):
            mo = ho * (wo + 1)
            wd_ref, bd_ref = det_wb[2 * i], det_wb[2 * i + 1]
            r = jnp.dot(wd_ref[...], act,
                        preferred_element_type=jnp.float32) + bd_ref[...]
            raw_ref[0, :, off:off + mo] = r
            s = jax.nn.sigmoid(r)
            qv = dm_ref[0, :, off:off + mo]
            av = dm_ref[1, :, off:off + mo]
            bv = dm_ref[2, :, off:off + mo]
            dec_ref[0, :, off:off + mo] = (s * s) * qv + s * av + bv
            off += mo

    return kernel


# ---------------------------------------------------------------------------
# Model forward (eval mode of Detect: returns (cat(z, 1), x_list))
# ---------------------------------------------------------------------------
def model_forward(params, x_nchw):
    N, cin, H, W = x_nchw.shape
    dims = _layer_dims(H, W)
    det_dims = [(ho, wo) for (_, _, ho, wo) in dims[-N_DET:]]
    td = sum(ho * (wo + 1) for ho, wo in det_dims)

    # One-time phase split of the NETWORK INPUT only (single small XLA fusion);
    # every later layer's relayout happens inside the kernel.
    ho1, wo1 = H // 2, W // 2
    hp1, wp1 = ho1 + 2, wo1 + 1
    tp1 = hp1 * wp1
    xb = x_nchw.astype(jnp.bfloat16)
    xp = jnp.pad(xb, ((0, 0), (0, 0), (1, 3), (1, 1)))
    xp = xp.reshape(N, cin, hp1, 2, wp1, 2)
    xp = jnp.transpose(xp, (0, 1, 3, 5, 2, 4)).reshape(N, cin, 4 * tp1)

    def const_spec(arr):
        nd = arr.ndim
        return pl.BlockSpec(arr.shape, lambda n, _nd=nd: (0,) * _nd)

    operands = [xp]
    in_specs = [pl.BlockSpec((1, cin, 4 * tp1), lambda n: (n, 0, 0))]
    for w9, b in params["backbone"]:
        operands += [w9, b]
        in_specs += [const_spec(w9), const_spec(b)]
    for d in params["reorder"]:
        operands.append(d)
        in_specs.append(const_spec(d))
    for w, b in params["detect"]:
        operands += [w, b]
        in_specs += [const_spec(w), const_spec(b)]
    operands.append(params["dec_maps"])
    in_specs.append(const_spec(params["dec_maps"]))

    max_k = max(9 * c for (c, _, _, _) in dims)
    max_mo = max(ho * (wo + 1) for (_, _, ho, wo) in dims)

    raw, dec = pl.pallas_call(
        _make_kernel(dims),
        out_shape=(jax.ShapeDtypeStruct((N, NA * NO, td), jnp.float32),
                   jax.ShapeDtypeStruct((N, NA * NO, td), jnp.float32)),
        grid_spec=pltpu.PrefetchScalarGridSpec(
            num_scalar_prefetch=0,
            grid=(N,),
            in_specs=in_specs,
            out_specs=(pl.BlockSpec((1, NA * NO, td), lambda n: (n, 0, 0)),
                       pl.BlockSpec((1, NA * NO, td), lambda n: (n, 0, 0))),
            scratch_shapes=[pltpu.VMEM((max_k, max_mo), jnp.bfloat16)]),
        compiler_params=pltpu.CompilerParams(
            dimension_semantics=("parallel",),
            vmem_limit_bytes=32 * 1024 * 1024),
    )(*operands)

    # Tiny XLA tail: split per level, drop the junk pitch column, and permute to
    # the PyTorch output formats (few tens of KB total).
    zs, xs = [], []
    off = 0
    for ho, wo in det_dims:
        wp = wo + 1
        mo = ho * wp
        r = raw[:, :, off:off + mo].reshape(N, NA, NO, ho, wp)[..., :wo]
        d = dec[:, :, off:off + mo].reshape(N, NA, NO, ho, wp)[..., :wo]
        xs.append(jnp.transpose(r, (0, 1, 3, 4, 2)))                       # x[i]
        zs.append(jnp.transpose(d, (0, 1, 3, 4, 2)).reshape(N, NA * ho * wo, NO))
        off += mo
    return jnp.concatenate(zs, axis=1), xs


if __name__ == "__main__":
    key = jax.random.PRNGKey(0)
    kp, kx = jax.random.split(key)
    params = init_params(kp, img_hw=(64, 64))
    x = jax.random.normal(kx, (2, 3, 64, 64), jnp.float32)   # NCHW like PyTorch

    fwd = jax.jit(model_forward)
    z, xs = fwd(params, x)
    jax.block_until_ready(z)
    for xi in xs:
        jax.block_until_ready(xi)

    assert z.shape == (2, NA * (8 * 8 + 4 * 4 + 2 * 2), NO)   # (2, 252, 9)
    assert z.dtype == jnp.float32
    assert xs[0].shape == (2, NA, 8, 8, NO)
    assert xs[1].shape == (2, NA, 4, 4, NO)
    assert xs[2].shape == (2, NA, 2, 2, NO)
    assert bool(jnp.all(jnp.isfinite(z)))
    print("KERNEL_OK")
</pallas_src>

<mosaic_0001>
module attributes {stable_mosaic.version = 11 : i64} {
  func.func @kernel(%arg0: i32, %arg1: memref<1x3x4488xbf16, #tpu.memory_space<vmem>>, %arg2: memref<8x27xbf16, #tpu.memory_space<vmem>>, %arg3: memref<8x1xf32, #tpu.memory_space<vmem>>, %arg4: memref<16x72xbf16, #tpu.memory_space<vmem>>, %arg5: memref<16x1xf32, #tpu.memory_space<vmem>>, %arg6: memref<16x144xbf16, #tpu.memory_space<vmem>>, %arg7: memref<16x1xf32, #tpu.memory_space<vmem>>, %arg8: memref<32x144xbf16, #tpu.memory_space<vmem>>, %arg9: memref<32x1xf32, #tpu.memory_space<vmem>>, %arg10: memref<32x288xbf16, #tpu.memory_space<vmem>>, %arg11: memref<32x1xf32, #tpu.memory_space<vmem>>, %arg12: memref<1056x1224xbf16, #tpu.memory_space<vmem>>, %arg13: memref<272x360xbf16, #tpu.memory_space<vmem>>, %arg14: memref<72x120xbf16, #tpu.memory_space<vmem>>, %arg15: memref<20x48xbf16, #tpu.memory_space<vmem>>, %arg16: memref<27x16xbf16, #tpu.memory_space<vmem>>, %arg17: memref<27x1xf32, #tpu.memory_space<vmem>>, %arg18: memref<27x32xbf16, #tpu.memory_space<vmem>>, %arg19: memref<27x1xf32, #tpu.memory_space<vmem>>, %arg20: memref<27x32xbf16, #tpu.memory_space<vmem>>, %arg21: memref<27x1xf32, #tpu.memory_space<vmem>>, %arg22: memref<3x27x98xf32, #tpu.memory_space<vmem>>, %arg23: memref<1x27x98xf32, #tpu.memory_space<vmem>>, %arg24: memref<1x27x98xf32, #tpu.memory_space<vmem>>, %arg25: memref<288x1056xbf16, #tpu.memory_space<vmem>>) attributes {dimension_semantics = [#tpu.dimension_semantics<parallel>], iteration_bounds = array<i64: 2>, scalar_prefetch = 0 : i64, scratch_operands = 1 : i64, tpu.core_type = #tpu.core_type<tc>, window_params = [{transform_indices = @transform_0, window_bounds = array<i64: 1, 3, 4488>}, {pipeline_mode = #tpu.pipeline_mode<synchronous>, transform_indices = @transform_1, window_bounds = array<i64: 8, 27>}, {pipeline_mode = #tpu.pipeline_mode<synchronous>, transform_indices = @transform_2, window_bounds = array<i64: 8, 1>}, {pipeline_mode = #tpu.pipeline_mode<synchronous>, transform_indices = @transform_3, window_bounds = array<i64: 16, 72>}, {pipeline_mode = #tpu.pipeline_mode<synchronous>, transform_indices = @transform_4, window_bounds = array<i64: 16, 1>}, {pipeline_mode = #tpu.pipeline_mode<synchronous>, transform_indices = @transform_5, window_bounds = array<i64: 16, 144>}, {pipeline_mode = #tpu.pipeline_mode<synchronous>, transform_indices = @transform_6, window_bounds = array<i64: 16, 1>}, {pipeline_mode = #tpu.pipeline_mode<synchronous>, transform_indices = @transform_7, window_bounds = array<i64: 32, 144>}, {pipeline_mode = #tpu.pipeline_mode<synchronous>, transform_indices = @transform_8, window_bounds = array<i64: 32, 1>}, {pipeline_mode = #tpu.pipeline_mode<synchronous>, transform_indices = @transform_9, window_bounds = array<i64: 32, 288>}, {pipeline_mode = #tpu.pipeline_mode<synchronous>, transform_indices = @transform_10, window_bounds = array<i64: 32, 1>}, {pipeline_mode = #tpu.pipeline_mode<synchronous>, transform_indices = @transform_11, window_bounds = array<i64: 1056, 1224>}, {pipeline_mode = #tpu.pipeline_mode<synchronous>, transform_indices = @transform_12, window_bounds = array<i64: 272, 360>}, {pipeline_mode = #tpu.pipeline_mode<synchronous>, transform_indices = @transform_13, window_bounds = array<i64: 72, 120>}, {pipeline_mode = #tpu.pipeline_mode<synchronous>, transform_indices = @transform_14, window_bounds = array<i64: 20, 48>}, {pipeline_mode = #tpu.pipeline_mode<synchronous>, transform_indices = @transform_15, window_bounds = array<i64: 27, 16>}, {pipeline_mode = #tpu.pipeline_mode<synchronous>, transform_indices = @transform_16, window_bounds = array<i64: 27, 1>}, {pipeline_mode = #tpu.pipeline_mode<synchronous>, transform_indices = @transform_17, window_bounds = array<i64: 27, 32>}, {pipeline_mode = #tpu.pipeline_mode<synchronous>, transform_indices = @transform_18, window_bounds = array<i64: 27, 1>}, {pipeline_mode = #tpu.pipeline_mode<synchronous>, transform_indices = @transform_19, window_bounds = array<i64: 27, 32>}, {pipeline_mode = #tpu.pipeline_mode<synchronous>, transform_indices = @transform_20, window_bounds = array<i64: 27, 1>}, {pipeline_mode = #tpu.pipeline_mode<synchronous>, transform_indices = @transform_21, window_bounds = array<i64: 3, 27, 98>}, {transform_indices = @transform_22, window_bounds = array<i64: 1, 27, 98>}, {transform_indices = @transform_23, window_bounds = array<i64: 1, 27, 98>}]} {
    %c0 = arith.constant 0 : index
    %c0_0 = arith.constant 0 : index
    %c0_1 = arith.constant 0 : index
    %0 = vector.load %arg1[%c0, %c0_0, %c0_1] : memref<1x3x4488xbf16, #tpu.memory_space<vmem>>, vector<1x3x4488xbf16>
    %1 = vector.shape_cast %0 : vector<1x3x4488xbf16> to vector<3x4488xbf16>
    %2 = vector.extract_strided_slice %1 {offsets = [0, 0], sizes = [3, 1056], strides = [1, 1]} : vector<3x4488xbf16> to vector<3x1056xbf16>
    %c0_2 = arith.constant 0 : index
    %c0_3 = arith.constant 0 : index
    %3 = vector.load %arg25[%c0_2, %c0_3] : memref<288x1056xbf16, #tpu.memory_space<vmem>>, vector<3x1056xbf16>
    tpu.vector_store %arg25[%c0_2, %c0_3], %2 {strides = array<i32>} : memref<288x1056xbf16, #tpu.memory_space<vmem>>, vector<3x1056xbf16>,
    %4 = vector.extract_strided_slice %1 {offsets = [0, 1122], sizes = [3, 1056], strides = [1, 1]} : vector<3x4488xbf16> to vector<3x1056xbf16>
    %c3 = arith.constant 3 : index
    %c0_4 = arith.constant 0 : index
    %5 = vector.load %arg25[%c3, %c0_4] : memref<288x1056xbf16, #tpu.memory_space<vmem>>, vector<3x1056xbf16>
    tpu.vector_store %arg25[%c3, %c0_4], %4 {strides = array<i32>} : memref<288x1056xbf16, #tpu.memory_space<vmem>>, vector<3x1056xbf16>,
    %6 = vector.extract_strided_slice %1 {offsets = [0, 1], sizes = [3, 1056], strides = [1, 1]} : vector<3x4488xbf16> to vector<3x1056xbf16>
    %c6 = arith.constant 6 : index
    %c0_5 = arith.constant 0 : index
    %7 = vector.load %arg25[%c6, %c0_5] : memref<288x1056xbf16, #tpu.memory_space<vmem>>, vector<3x1056xbf16>
    tpu.vector_store %arg25[%c6, %c0_5], %6 {strides = array<i32>} : memref<288x1056xbf16, #tpu.memory_space<vmem>>, vector<3x1056xbf16>,
    %8 = vector.extract_strided_slice %1 {offsets = [0, 2244], sizes = [3, 1056], strides = [1, 1]} : vector<3x4488xbf16> to vector<3x1056xbf16>
    %c9 = arith.constant 9 : index
    %c0_6 = arith.constant 0 : index
    %9 = vector.load %arg25[%c9, %c0_6] : memref<288x1056xbf16, #tpu.memory_space<vmem>>, vector<3x1056xbf16>
    tpu.vector_store %arg25[%c9, %c0_6], %8 {strides = array<i32>} : memref<288x1056xbf16, #tpu.memory_space<vmem>>, vector<3x1056xbf16>,
    %10 = vector.extract_strided_slice %1 {offsets = [0, 3366], sizes = [3, 1056], strides = [1, 1]} : vector<3x4488xbf16> to vector<3x1056xbf16>
    %c12 = arith.constant 12 : index
    %c0_7 = arith.constant 0 : index
    %11 = vector.load %arg25[%c12, %c0_7] : memref<288x1056xbf16, #tpu.memory_space<vmem>>, vector<3x1056xbf16>
    tpu.vector_store %arg25[%c12, %c0_7], %10 {strides = array<i32>} : memref<288x1056xbf16, #tpu.memory_space<vmem>>, vector<3x1056xbf16>,
    %12 = vector.extract_strided_slice %1 {offsets = [0, 2245], sizes = [3, 1056], strides = [1, 1]} : vector<3x4488xbf16> to vector<3x1056xbf16>
    %c15 = arith.constant 15 : index
    %c0_8 = arith.constant 0 : index
    %13 = vector.load %arg25[%c15, %c0_8] : memref<288x1056xbf16, #tpu.memory_space<vmem>>, vector<3x1056xbf16>
    tpu.vector_store %arg25[%c15, %c0_8], %12 {strides = array<i32>} : memref<288x1056xbf16, #tpu.memory_space<vmem>>, vector<3x1056xbf16>,
    %14 = vector.extract_strided_slice %1 {offsets = [0, 33], sizes = [3, 1056], strides = [1, 1]} : vector<3x4488xbf16> to vector<3x1056xbf16>
    %c18 = arith.constant 18 : index
    %c0_9 = arith.constant 0 : index
    %15 = vector.load %arg25[%c18, %c0_9] : memref<288x1056xbf16, #tpu.memory_space<vmem>>, vector<3x1056xbf16>
    tpu.vector_store %arg25[%c18, %c0_9], %14 {strides = array<i32>} : memref<288x1056xbf16, #tpu.memory_space<vmem>>, vector<3x1056xbf16>,
    %16 = vector.extract_strided_slice %1 {offsets = [0, 1155], sizes = [3, 1056], strides = [1, 1]} : vector<3x4488xbf16> to vector<3x1056xbf16>
    %c21 = arith.constant 21 : index
    %c0_10 = arith.constant 0 : index
    %17 = vector.load %arg25[%c21, %c0_10] : memref<288x1056xbf16, #tpu.memory_space<vmem>>, vector<3x1056xbf16>
    tpu.vector_store %arg25[%c21, %c0_10], %16 {strides = array<i32>} : memref<288x1056xbf16, #tpu.memory_space<vmem>>, vector<3x1056xbf16>,
    %18 = vector.extract_strided_slice %1 {offsets = [0, 34], sizes = [3, 1056], strides = [1, 1]} : vector<3x4488xbf16> to vector<3x1056xbf16>
    %c24 = arith.constant 24 : index
    %c0_11 = arith.constant 0 : index
    %19 = vector.load %arg25[%c24, %c0_11] : memref<288x1056xbf16, #tpu.memory_space<vmem>>, vector<3x1056xbf16>
    tpu.vector_store %arg25[%c24, %c0_11], %18 {strides = array<i32>} : memref<288x1056xbf16, #tpu.memory_space<vmem>>, vector<3x1056xbf16>,
    %c0_12 = arith.constant 0 : index
    %c0_13 = arith.constant 0 : index
    %20 = vector.load %arg2[%c0_12, %c0_13] : memref<8x27xbf16, #tpu.memory_space<vmem>>, vector<8x27xbf16>
    %c0_14 = arith.constant 0 : index
    %c0_15 = arith.constant 0 : index
    %21 = vector.load %arg25[%c0_14, %c0_15] : memref<288x1056xbf16, #tpu.memory_space<vmem>>, vector<27x1056xbf16>
    %cst = arith.constant dense<0.000000e+00> : vector<8x1056xf32>
    %22 = tpu.matmul %20, %21, %cst {dimension_numbers = #tpu.dot_dimension_numbers<[1], [0], [0], [1], [0, 0, 1, 1], [], []>} : vector<8x27xbf16>, vector<27x1056xbf16>, vector<8x1056xf32> -> vector<8x1056xf32>
    %c0_16 = arith.constant 0 : index
    %c0_17 = arith.constant 0 : index
    %23 = vector.load %arg3[%c0_16, %c0_17] : memref<8x1xf32, #tpu.memory_space<vmem>>, vector<8x1xf32>
    %24 = vector.broadcast %23 : vector<8x1xf32> to vector<8x1056xf32>
    %25 = arith.addf %22, %24 : vector<8x1056xf32>
    %26 = arith.negf %25 : vector<8x1056xf32>
    %27 = math.exp %26 : vector<8x1056xf32>
    %cst_18 = arith.constant 1.000000e+00 : f32
    %28 = vector.broadcast %cst_18 : f32 to vector<8x1056xf32>
    %29 = arith.addf %28, %27 : vector<8x1056xf32>
    %30 = arith.divf %28, %29 : vector<8x1056xf32>
    %31 = arith.mulf %25, %30 : vector<8x1056xf32>
    %32 = arith.truncf %31 : vector<8x1056xf32> to vector<8x1056xbf16>
    %c0_19 = arith.constant 0 : index
    %c0_20 = arith.constant 0 : index
    %33 = vector.load %arg12[%c0_19, %c0_20] : memref<1056x1224xbf16, #tpu.memory_space<vmem>>, vector<1056x1224xbf16>
    %cst_21 = arith.constant dense<0.000000e+00> : vector<8x1224xf32>
    %34 = tpu.matmul %32, %33, %cst_21 {dimension_numbers = #tpu.dot_dimension_numbers<[1], [0], [0], [1], [0, 0, 1, 1], [], []>} : vector<8x1056xbf16>, vector<1056x1224xbf16>, vector<8x1224xf32> -> vector<8x1224xf32>
    %35 = arith.truncf %34 : vector<8x1224xf32> to vector<8x1224xbf16>
    %36 = vector.extract_strided_slice %35 {offsets = [0, 0], sizes = [8, 272], strides = [1, 1]} : vector<8x1224xbf16> to vector<8x272xbf16>
    %c0_22 = arith.constant 0 : index
    %c0_23 = arith.constant 0 : index
    %37 = vector.load %arg25[%c0_22, %c0_23] : memref<288x1056xbf16, #tpu.memory_space<vmem>>, vector<8x272xbf16>
    tpu.vector_store %arg25[%c0_22, %c0_23], %36 {strides = array<i32>} : memref<288x1056xbf16, #tpu.memory_space<vmem>>, vector<8x272xbf16>,
    %38 = vector.extract_strided_slice %35 {offsets = [0, 306], sizes = [8, 272], strides = [1, 1]} : vector<8x1224xbf16> to vector<8x272xbf16>
    %c8 = arith.constant 8 : index
    %c0_24 = arith.constant 0 : index
    %39 = vector.load %arg25[%c8, %c0_24] : memref<288x1056xbf16, #tpu.memory_space<vmem>>, vector<8x272xbf16>
    tpu.vector_store %arg25[%c8, %c0_24], %38 {strides = array<i32>} : memref<288x1056xbf16, #tpu.memory_space<vmem>>, vector<8x272xbf16>,
    %40 = vector.extract_strided_slice %35 {offsets = [0, 1], sizes = [8, 272], strides = [1, 1]} : vector<8x1224xbf16> to vector<8x272xbf16>
    %c16 = arith.constant 16 : index
    %c0_25 = arith.constant 0 : index
    %41 = vector.load %arg25[%c16, %c0_25] : memref<288x1056xbf16, #tpu.memory_space<vmem>>, vector<8x272xbf16>
    tpu.vector_store %arg25[%c16, %c0_25], %40 {strides = array<i32>} : memref<288x1056xbf16, #tpu.memory_space<vmem>>, vector<8x272xbf16>,
    %42 = vector.extract_strided_slice %35 {offsets = [0, 612], sizes = [8, 272], strides = [1, 1]} : vector<8x1224xbf16> to vector<8x272xbf16>
    %c24_26 = arith.constant 24 : index
    %c0_27 = arith.constant 0 : index
    %43 = vector.load %arg25[%c24_26, %c0_27] : memref<288x1056xbf16, #tpu.memory_space<vmem>>, vector<8x272xbf16>
    tpu.vector_store %arg25[%c24_26, %c0_27], %42 {strides = array<i32>} : memref<288x1056xbf16, #tpu.memory_space<vmem>>, vector<8x272xbf16>,
    %44 = vector.extract_strided_slice %35 {offsets = [0, 918], sizes = [8, 272], strides = [1, 1]} : vector<8x1224xbf16> to vector<8x272xbf16>
    %c32 = arith.constant 32 : index
    %c0_28 = arith.constant 0 : index
    %45 = vector.load %arg25[%c32, %c0_28] : memref<288x1056xbf16, #tpu.memory_space<vmem>>, vector<8x272xbf16>
    tpu.vector_store %arg25[%c32, %c0_28], %44 {strides = array<i32>} : memref<288x1056xbf16, #tpu.memory_space<vmem>>, vector<8x272xbf16>,
    %46 = vector.extract_strided_slice %35 {offsets = [0, 613], sizes = [8, 272], strides = [1, 1]} : vector<8x1224xbf16> to vector<8x272xbf16>
    %c40 = arith.constant 40 : index
    %c0_29 = arith.constant 0 : index
    %47 = vector.load %arg25[%c40, %c0_29] : memref<288x1056xbf16, #tpu.memory_space<vmem>>, vector<8x272xbf16>
    tpu.vector_store %arg25[%c40, %c0_29], %46 {strides = array<i32>} : memref<288x1056xbf16, #tpu.memory_space<vmem>>, vector<8x272xbf16>,
    %48 = vector.extract_strided_slice %35 {offsets = [0, 17], sizes = [8, 272], strides = [1, 1]} : vector<8x1224xbf16> to vector<8x272xbf16>
    %c48 = arith.constant 48 : index
    %c0_30 = arith.constant 0 : index
    %49 = vector.load %arg25[%c48, %c0_30] : memref<288x1056xbf16, #tpu.memory_space<vmem>>, vector<8x272xbf16>
    tpu.vector_store %arg25[%c48, %c0_30], %48 {strides = array<i32>} : memref<288x1056xbf16, #tpu.memory_space<vmem>>, vector<8x272xbf16>,
    %50 = vector.extract_strided_slice %35 {offsets = [0, 323], sizes = [8, 272], strides = [1, 1]} : vector<8x1224xbf16> to vector<8x272xbf16>
    %c56 = arith.constant 56 : index
    %c0_31 = arith.constant 0 : index
    %51 = vector.load %arg25[%c56, %c0_31] : memref<288x1056xbf16, #tpu.memory_space<vmem>>, vector<8x272xbf16>
    tpu.vector_store %arg25[%c56, %c0_31], %50 {strides = array<i32>} : memref<288x1056xbf16, #tpu.memory_space<vmem>>, vector<8x272xbf16>,
    %52 = vector.extract_strided_slice %35 {offsets = [0, 18], sizes = [8, 272], strides = [1, 1]} : vector<8x1224xbf16> to vector<8x272xbf16>
    %c64 = arith.constant 64 : index
    %c0_32 = arith.constant 0 : index
    %53 = vector.load %arg25[%c64, %c0_32] : memref<288x1056xbf16, #tpu.memory_space<vmem>>, vector<8x272xbf16>
    tpu.vector_store %arg25[%c64, %c0_32], %52 {strides = array<i32>} : memref<288x1056xbf16, #tpu.memory_space<vmem>>, vector<8x272xbf16>,
    %c0_33 = arith.constant 0 : index
    %c0_34 = arith.constant 0 : index
    %54 = vector.load %arg4[%c0_33, %c0_34] : memref<16x72xbf16, #tpu.memory_space<vmem>>, vector<16x72xbf16>
    %c0_35 = arith.constant 0 : index
    %c0_36 = arith.constant 0 : index
    %55 = vector.load %arg25[%c0_35, %c0_36] : memref<288x1056xbf16, #tpu.memory_space<vmem>>, vector<72x272xbf16>
    %cst_37 = arith.constant dense<0.000000e+00> : vector<16x272xf32>
    %56 = tpu.matmul %54, %55, %cst_37 {dimension_numbers = #tpu.dot_dimension_numbers<[1], [0], [0], [1], [0, 0, 1, 1], [], []>} : vector<16x72xbf16>, vector<72x272xbf16>, vector<16x272xf32> -> vector<16x272xf32>
    %c0_38 = arith.constant 0 : index
    %c0_39 = arith.constant 0 : index
    %57 = vector.load %arg5[%c0_38, %c0_39] : memref<16x1xf32, #tpu.memory_space<vmem>>, vector<16x1xf32>
    %58 = vector.broadcast %57 : vector<16x1xf32> to vector<16x272xf32>
    %59 = arith.addf %56, %58 : vector<16x272xf32>
    %60 = arith.negf %59 : vector<16x272xf32>
    %61 = math.exp %60 : vector<16x272xf32>
    %cst_40 = arith.constant 1.000000e+00 : f32
    %62 = vector.broadcast %cst_40 : f32 to vector<16x272xf32>
    %63 = arith.addf %62, %61 : vector<16x272xf32>
    %64 = arith.divf %62, %63 : vector<16x272xf32>
    %65 = arith.mulf %59, %64 : vector<16x272xf32>
    %66 = arith.truncf %65 : vector<16x272xf32> to vector<16x272xbf16>
    %c0_41 = arith.constant 0 : index
    %c0_42 = arith.constant 0 : index
    %67 = vector.load %arg13[%c0_41, %c0_42] : memref<272x360xbf16, #tpu.memory_space<vmem>>, vector<272x360xbf16>
    %cst_43 = arith.constant dense<0.000000e+00> : vector<16x360xf32>
    %68 = tpu.matmul %66, %67, %cst_43 {dimension_numbers = #tpu.dot_dimension_numbers<[1], [0], [0], [1], [0, 0, 1, 1], [], []>} : vector<16x272xbf16>, vector<272x360xbf16>, vector<16x360xf32> -> vector<16x360xf32>
    %69 = arith.truncf %68 : vector<16x360xf32> to vector<16x360xbf16>
    %70 = vector.extract_strided_slice %69 {offsets = [0, 0], sizes = [16, 72], strides = [1, 1]} : vector<16x360xbf16> to vector<16x72xbf16>
    %c0_44 = arith.constant 0 : index
    %c0_45 = arith.constant 0 : index
    %71 = vector.load %arg25[%c0_44, %c0_45] : memref<288x1056xbf16, #tpu.memory_space<vmem>>, vector<16x72xbf16>
    tpu.vector_store %arg25[%c0_44, %c0_45], %70 {strides = array<i32>} : memref<288x1056xbf16, #tpu.memory_space<vmem>>, vector<16x72xbf16>,
    %72 = vector.extract_strided_slice %69 {offsets = [0, 90], sizes = [16, 72], strides = [1, 1]} : vector<16x360xbf16> to vector<16x72xbf16>
    %c16_46 = arith.constant 16 : index
    %c0_47 = arith.constant 0 : index
    %73 = vector.load %arg25[%c16_46, %c0_47] : memref<288x1056xbf16, #tpu.memory_space<vmem>>, vector<16x72xbf16>
    tpu.vector_store %arg25[%c16_46, %c0_47], %72 {strides = array<i32>} : memref<288x1056xbf16, #tpu.memory_space<vmem>>, vector<16x72xbf16>,
    %74 = vector.extract_strided_slice %69 {offsets = [0, 1], sizes = [16, 72], strides = [1, 1]} : vector<16x360xbf16> to vector<16x72xbf16>
    %c32_48 = arith.constant 32 : index
    %c0_49 = arith.constant 0 : index
    %75 = vector.load %arg25[%c32_48, %c0_49] : memref<288x1056xbf16, #tpu.memory_space<vmem>>, vector<16x72xbf16>
    tpu.vector_store %arg25[%c32_48, %c0_49], %74 {strides = array<i32>} : memref<288x1056xbf16, #tpu.memory_space<vmem>>, vector<16x72xbf16>,
    %76 = vector.extract_strided_slice %69 {offsets = [0, 180], sizes = [16, 72], strides = [1, 1]} : vector<16x360xbf16> to vector<16x72xbf16>
    %c48_50 = arith.constant 48 : index
    %c0_51 = arith.constant 0 : index
    %77 = vector.load %arg25[%c48_50, %c0_51] : memref<288x1056xbf16, #tpu.memory_space<vmem>>, vector<16x72xbf16>
    tpu.vector_store %arg25[%c48_50, %c0_51], %76 {strides = array<i32>} : memref<288x1056xbf16, #tpu.memory_space<vmem>>, vector<16x72xbf16>,
    %78 = vector.extract_strided_slice %69 {offsets = [0, 270], sizes = [16, 72], strides = [1, 1]} : vector<16x360xbf16> to vector<16x72xbf16>
    %c64_52 = arith.constant 64 : index
    %c0_53 = arith.constant 0 : index
    %79 = vector.load %arg25[%c64_52, %c0_53] : memref<288x1056xbf16, #tpu.memory_space<vmem>>, vector<16x72xbf16>
    tpu.vector_store %arg25[%c64_52, %c0_53], %78 {strides = array<i32>} : memref<288x1056xbf16, #tpu.memory_space<vmem>>, vector<16x72xbf16>,
    %80 = vector.extract_strided_slice %69 {offsets = [0, 181], sizes = [16, 72], strides = [1, 1]} : vector<16x360xbf16> to vector<16x72xbf16>
    %c80 = arith.constant 80 : index
    %c0_54 = arith.constant 0 : index
    %81 = vector.load %arg25[%c80, %c0_54] : memref<288x1056xbf16, #tpu.memory_space<vmem>>, vector<16x72xbf16>
    tpu.vector_store %arg25[%c80, %c0_54], %80 {strides = array<i32>} : memref<288x1056xbf16, #tpu.memory_space<vmem>>, vector<16x72xbf16>,
    %82 = vector.extract_strided_slice %69 {offsets = [0, 9], sizes = [16, 72], strides = [1, 1]} : vector<16x360xbf16> to vector<16x72xbf16>
    %c96 = arith.constant 96 : index
    %c0_55 = arith.constant 0 : index
    %83 = vector.load %arg25[%c96, %c0_55] : memref<288x1056xbf16, #tpu.memory_space<vmem>>, vector<16x72xbf16>
    tpu.vector_store %arg25[%c96, %c0_55], %82 {strides = array<i32>} : memref<288x1056xbf16, #tpu.memory_space<vmem>>, vector<16x72xbf16>,
    %84 = vector.extract_strided_slice %69 {offsets = [0, 99], sizes = [16, 72], strides = [1, 1]} : vector<16x360xbf16> to vector<16x72xbf16>
    %c112 = arith.constant 112 : index
    %c0_56 = arith.constant 0 : index
    %85 = vector.load %arg25[%c112, %c0_56] : memref<288x1056xbf16, #tpu.memory_space<vmem>>, vector<16x72xbf16>
    tpu.vector_store %arg25[%c112, %c0_56], %84 {strides = array<i32>} : memref<288x1056xbf16, #tpu.memory_space<vmem>>, vector<16x72xbf16>,
    %86 = vector.extract_strided_slice %69 {offsets = [0, 10], sizes = [16, 72], strides = [1, 1]} : vector<16x360xbf16> to vector<16x72xbf16>
    %c128 = arith.constant 128 : index
    %c0_57 = arith.constant 0 : index
    %87 = vector.load %arg25[%c128, %c0_57] : memref<288x1056xbf16, #tpu.memory_space<vmem>>, vector<16x72xbf16>
    tpu.vector_store %arg25[%c128, %c0_57], %86 {strides = array<i32>} : memref<288x1056xbf16, #tpu.memory_space<vmem>>, vector<16x72xbf16>,
    %c0_58 = arith.constant 0 : index
    %c0_59 = arith.constant 0 : index
    %88 = vector.load %arg6[%c0_58, %c0_59] : memref<16x144xbf16, #tpu.memory_space<vmem>>, vector<16x144xbf16>
    %c0_60 = arith.constant 0 : index
    %c0_61 = arith.constant 0 : index
    %89 = vector.load %arg25[%c0_60, %c0_61] : memref<288x1056xbf16, #tpu.memory_space<vmem>>, vector<144x72xbf16>
    %cst_62 = arith.constant dense<0.000000e+00> : vector<16x72xf32>
    %90 = tpu.matmul %88, %89, %cst_62 {dimension_numbers = #tpu.dot_dimension_numbers<[1], [0], [0], [1], [0, 0, 1, 1], [], []>} : vector<16x144xbf16>, vector<144x72xbf16>, vector<16x72xf32> -> vector<16x72xf32>
    %c0_63 = arith.constant 0 : index
    %c0_64 = arith.constant 0 : index
    %91 = vector.load %arg7[%c0_63, %c0_64] : memref<16x1xf32, #tpu.memory_space<vmem>>, vector<16x1xf32>
    %92 = vector.broadcast %91 : vector<16x1xf32> to vector<16x72xf32>
    %93 = arith.addf %90, %92 : vector<16x72xf32>
    %94 = arith.negf %93 : vector<16x72xf32>
    %95 = math.exp %94 : vector<16x72xf32>
    %cst_65 = arith.constant 1.000000e+00 : f32
    %96 = vector.broadcast %cst_65 : f32 to vector<16x72xf32>
    %97 = arith.addf %96, %95 : vector<16x72xf32>
    %98 = arith.divf %96, %97 : vector<16x72xf32>
    %99 = arith.mulf %93, %98 : vector<16x72xf32>
    %100 = arith.truncf %99 : vector<16x72xf32> to vector<16x72xbf16>
    %c0_66 = arith.constant 0 : index
    %c0_67 = arith.constant 0 : index
    %101 = vector.load %arg14[%c0_66, %c0_67] : memref<72x120xbf16, #tpu.memory_space<vmem>>, vector<72x120xbf16>
    %cst_68 = arith.constant dense<0.000000e+00> : vector<16x120xf32>
    %102 = tpu.matmul %100, %101, %cst_68 {dimension_numbers = #tpu.dot_dimension_numbers<[1], [0], [0], [1], [0, 0, 1, 1], [], []>} : vector<16x72xbf16>, vector<72x120xbf16>, vector<16x120xf32> -> vector<16x120xf32>
    %103 = arith.truncf %102 : vector<16x120xf32> to vector<16x120xbf16>
    %104 = vector.extract_strided_slice %103 {offsets = [0, 0], sizes = [16, 20], strides = [1, 1]} : vector<16x120xbf16> to vector<16x20xbf16>
    %c0_69 = arith.constant 0 : index
    %c0_70 = arith.constant 0 : index
    %105 = vector.load %arg25[%c0_69, %c0_70] : memref<288x1056xbf16, #tpu.memory_space<vmem>>, vector<16x20xbf16>
    tpu.vector_store %arg25[%c0_69, %c0_70], %104 {strides = array<i32>} : memref<288x1056xbf16, #tpu.memory_space<vmem>>, vector<16x20xbf16>,
    %106 = vector.extract_strided_slice %103 {offsets = [0, 30], sizes = [16, 20], strides = [1, 1]} : vector<16x120xbf16> to vector<16x20xbf16>
    %c16_71 = arith.constant 16 : index
    %c0_72 = arith.constant 0 : index
    %107 = vector.load %arg25[%c16_71, %c0_72] : memref<288x1056xbf16, #tpu.memory_space<vmem>>, vector<16x20xbf16>
    tpu.vector_store %arg25[%c16_71, %c0_72], %106 {strides = array<i32>} : memref<288x1056xbf16, #tpu.memory_space<vmem>>, vector<16x20xbf16>,
    %108 = vector.extract_strided_slice %103 {offsets = [0, 1], sizes = [16, 20], strides = [1, 1]} : vector<16x120xbf16> to vector<16x20xbf16>
    %c32_73 = arith.constant 32 : index
    %c0_74 = arith.constant 0 : index
    %109 = vector.load %arg25[%c32_73, %c0_74] : memref<288x1056xbf16, #tpu.memory_space<vmem>>, vector<16x20xbf16>
    tpu.vector_store %arg25[%c32_73, %c0_74], %108 {strides = array<i32>} : memref<288x1056xbf16, #tpu.memory_space<vmem>>, vector<16x20xbf16>,
    %110 = vector.extract_strided_slice %103 {offsets = [0, 60], sizes = [16, 20], strides = [1, 1]} : vector<16x120xbf16> to vector<16x20xbf16>
    %c48_75 = arith.constant 48 : index
    %c0_76 = arith.constant 0 : index
    %111 = vector.load %arg25[%c48_75, %c0_76] : memref<288x1056xbf16, #tpu.memory_space<vmem>>, vector<16x20xbf16>
    tpu.vector_store %arg25[%c48_75, %c0_76], %110 {strides = array<i32>} : memref<288x1056xbf16, #tpu.memory_space<vmem>>, vector<16x20xbf16>,
    %112 = vector.extract_strided_slice %103 {offsets = [0, 90], sizes = [16, 20], strides = [1, 1]} : vector<16x120xbf16> to vector<16x20xbf16>
    %c64_77 = arith.constant 64 : index
    %c0_78 = arith.constant 0 : index
    %113 = vector.load %arg25[%c64_77, %c0_78] : memref<288x1056xbf16, #tpu.memory_space<vmem>>, vector<16x20xbf16>
    tpu.vector_store %arg25[%c64_77, %c0_78], %112 {strides = array<i32>} : memref<288x1056xbf16, #tpu.memory_space<vmem>>, vector<16x20xbf16>,
    %114 = vector.extract_strided_slice %103 {offsets = [0, 61], sizes = [16, 20], strides = [1, 1]} : vector<16x120xbf16> to vector<16x20xbf16>
    %c80_79 = arith.constant 80 : index
    %c0_80 = arith.constant 0 : index
    %115 = vector.load %arg25[%c80_79, %c0_80] : memref<288x1056xbf16, #tpu.memory_space<vmem>>, vector<16x20xbf16>
    tpu.vector_store %arg25[%c80_79, %c0_80], %114 {strides = array<i32>} : memref<288x1056xbf16, #tpu.memory_space<vmem>>, vector<16x20xbf16>,
    %116 = vector.extract_strided_slice %103 {offsets = [0, 5], sizes = [16, 20], strides = [1, 1]} : vector<16x120xbf16> to vector<16x20xbf16>
    %c96_81 = arith.constant 96 : index
    %c0_82 = arith.constant 0 : index
    %117 = vector.load %arg25[%c96_81, %c0_82] : memref<288x1056xbf16, #tpu.memory_space<vmem>>, vector<16x20xbf16>
    tpu.vector_store %arg25[%c96_81, %c0_82], %116 {strides = array<i32>} : memref<288x1056xbf16, #tpu.memory_space<vmem>>, vector<16x20xbf16>,
    %118 = vector.extract_strided_slice %103 {offsets = [0, 35], sizes = [16, 20], strides = [1, 1]} : vector<16x120xbf16> to vector<16x20xbf16>
    %c112_83 = arith.constant 112 : index
    %c0_84 = arith.constant 0 : index
    %119 = vector.load %arg25[%c112_83, %c0_84] : memref<288x1056xbf16, #tpu.memory_space<vmem>>, vector<16x20xbf16>
    tpu.vector_store %arg25[%c112_83, %c0_84], %118 {strides = array<i32>} : memref<288x1056xbf16, #tpu.memory_space<vmem>>, vector<16x20xbf16>,
    %120 = vector.extract_strided_slice %103 {offsets = [0, 6], sizes = [16, 20], strides = [1, 1]} : vector<16x120xbf16> to vector<16x20xbf16>
    %c128_85 = arith.constant 128 : index
    %c0_86 = arith.constant 0 : index
    %121 = vector.load %arg25[%c128_85, %c0_86] : memref<288x1056xbf16, #tpu.memory_space<vmem>>, vector<16x20xbf16>
    tpu.vector_store %arg25[%c128_85, %c0_86], %120 {strides = array<i32>} : memref<288x1056xbf16, #tpu.memory_space<vmem>>, vector<16x20xbf16>,
    %c0_87 = arith.constant 0 : index
    %c0_88 = arith.constant 0 : index
    %122 = vector.load %arg8[%c0_87, %c0_88] : memref<32x144xbf16, #tpu.memory_space<vmem>>, vector<32x144xbf16>
    %c0_89 = arith.constant 0 : index
    %c0_90 = arith.constant 0 : index
    %123 = vector.load %arg25[%c0_89, %c0_90] : memref<288x1056xbf16, #tpu.memory_space<vmem>>, vector<144x20xbf16>
    %cst_91 = arith.constant dense<0.000000e+00> : vector<32x20xf32>
    %124 = tpu.matmul %122, %123, %cst_91 {dimension_numbers = #tpu.dot_dimension_numbers<[1], [0], [0], [1], [0, 0, 1, 1], [], []>} : vector<32x144xbf16>, vector<144x20xbf16>, vector<32x20xf32> -> vector<32x20xf32>
    %c0_92 = arith.constant 0 : index
    %c0_93 = arith.constant 0 : index
    %125 = vector.load %arg9[%c0_92, %c0_93] : memref<32x1xf32, #tpu.memory_space<vmem>>, vector<32x1xf32>
    %126 = vector.broadcast %125 : vector<32x1xf32> to vector<32x20xf32>
    %127 = arith.addf %124, %126 : vector<32x20xf32>
    %128 = arith.negf %127 : vector<32x20xf32>
    %129 = math.exp %128 : vector<32x20xf32>
    %cst_94 = arith.constant 1.000000e+00 : f32
    %130 = vector.broadcast %cst_94 : f32 to vector<32x20xf32>
    %131 = arith.addf %130, %129 : vector<32x20xf32>
    %132 = arith.divf %130, %131 : vector<32x20xf32>
    %133 = arith.mulf %127, %132 : vector<32x20xf32>
    %134 = arith.truncf %133 : vector<32x20xf32> to vector<32x20xbf16>
    %c0_95 = arith.constant 0 : index
    %c0_96 = arith.constant 0 : index
    %135 = vector.load %arg15[%c0_95, %c0_96] : memref<20x48xbf16, #tpu.memory_space<vmem>>, vector<20x48xbf16>
    %cst_97 = arith.constant dense<0.000000e+00> : vector<32x48xf32>
    %136 = tpu.matmul %134, %135, %cst_97 {dimension_numbers = #tpu.dot_dimension_numbers<[1], [0], [0], [1], [0, 0, 1, 1], [], []>} : vector<32x20xbf16>, vector<20x48xbf16>, vector<32x48xf32> -> vector<32x48xf32>
    %137 = arith.truncf %136 : vector<32x48xf32> to vector<32x48xbf16>
    %138 = vector.extract_strided_slice %137 {offsets = [0, 0], sizes = [32, 6], strides = [1, 1]} : vector<32x48xbf16> to vector<32x6xbf16>
    %c0_98 = arith.constant 0 : index
    %c0_99 = arith.constant 0 : index
    %139 = vector.load %arg25[%c0_98, %c0_99] : memref<288x1056xbf16, #tpu.memory_space<vmem>>, vector<32x6xbf16>
    tpu.vector_store %arg25[%c0_98, %c0_99], %138 {strides = array<i32>} : memref<288x1056xbf16, #tpu.memory_space<vmem>>, vector<32x6xbf16>,
    %140 = vector.extract_strided_slice %137 {offsets = [0, 12], sizes = [32, 6], strides = [1, 1]} : vector<32x48xbf16> to vector<32x6xbf16>
    %c32_100 = arith.constant 32 : index
    %c0_101 = arith.constant 0 : index
    %141 = vector.load %arg25[%c32_100, %c0_101] : memref<288x1056xbf16, #tpu.memory_space<vmem>>, vector<32x6xbf16>
    tpu.vector_store %arg25[%c32_100, %c0_101], %140 {strides = array<i32>} : memref<288x1056xbf16, #tpu.memory_space<vmem>>, vector<32x6xbf16>,
    %142 = vector.extract_strided_slice %137 {offsets = [0, 1], sizes = [32, 6], strides = [1, 1]} : vector<32x48xbf16> to vector<32x6xbf16>
    %c64_102 = arith.constant 64 : index
    %c0_103 = arith.constant 0 : index
    %143 = vector.load %arg25[%c64_102, %c0_103] : memref<288x1056xbf16, #tpu.memory_space<vmem>>, vector<32x6xbf16>
    tpu.vector_store %arg25[%c64_102, %c0_103], %142 {strides = array<i32>} : memref<288x1056xbf16, #tpu.memory_space<vmem>>, vector<32x6xbf16>,
    %144 = vector.extract_strided_slice %137 {offsets = [0, 24], sizes = [32, 6], strides = [1, 1]} : vector<32x48xbf16> to vector<32x6xbf16>
    %c96_104 = arith.constant 96 : index
    %c0_105 = arith.constant 0 : index
    %145 = vector.load %arg25[%c96_104, %c0_105] : memref<288x1056xbf16, #tpu.memory_space<vmem>>, vector<32x6xbf16>
    tpu.vector_store %arg25[%c96_104, %c0_105], %144 {strides = array<i32>} : memref<288x1056xbf16, #tpu.memory_space<vmem>>, vector<32x6xbf16>,
    %146 = vector.extract_strided_slice %137 {offsets = [0, 36], sizes = [32, 6], strides = [1, 1]} : vector<32x48xbf16> to vector<32x6xbf16>
    %c128_106 = arith.constant 128 : index
    %c0_107 = arith.constant 0 : index
    %147 = vector.load %arg25[%c128_106, %c0_107] : memref<288x1056xbf16, #tpu.memory_space<vmem>>, vector<32x6xbf16>
    tpu.vector_store %arg25[%c128_106, %c0_107], %146 {strides = array<i32>} : memref<288x1056xbf16, #tpu.memory_space<vmem>>, vector<32x6xbf16>,
    %148 = vector.extract_strided_slice %137 {offsets = [0, 25], sizes = [32, 6], strides = [1, 1]} : vector<32x48xbf16> to vector<32x6xbf16>
    %c160 = arith.constant 160 : index
    %c0_108 = arith.constant 0 : index
    %149 = vector.load %arg25[%c160, %c0_108] : memref<288x1056xbf16, #tpu.memory_space<vmem>>, vector<32x6xbf16>
    tpu.vector_store %arg25[%c160, %c0_108], %148 {strides = array<i32>} : memref<288x1056xbf16, #tpu.memory_space<vmem>>, vector<32x6xbf16>,
    %150 = vector.extract_strided_slice %137 {offsets = [0, 3], sizes = [32, 6], strides = [1, 1]} : vector<32x48xbf16> to vector<32x6xbf16>
    %c192 = arith.constant 192 : index
    %c0_109 = arith.constant 0 : index
    %151 = vector.load %arg25[%c192, %c0_109] : memref<288x1056xbf16, #tpu.memory_space<vmem>>, vector<32x6xbf16>
    tpu.vector_store %arg25[%c192, %c0_109], %150 {strides = array<i32>} : memref<288x1056xbf16, #tpu.memory_space<vmem>>, vector<32x6xbf16>,
    %152 = vector.extract_strided_slice %137 {offsets = [0, 15], sizes = [32, 6], strides = [1, 1]} : vector<32x48xbf16> to vector<32x6xbf16>
    %c224 = arith.constant 224 : index
    %c0_110 = arith.constant 0 : index
    %153 = vector.load %arg25[%c224, %c0_110] : memref<288x1056xbf16, #tpu.memory_space<vmem>>, vector<32x6xbf16>
    tpu.vector_store %arg25[%c224, %c0_110], %152 {strides = array<i32>} : memref<288x1056xbf16, #tpu.memory_space<vmem>>, vector<32x6xbf16>,
    %154 = vector.extract_strided_slice %137 {offsets = [0, 4], sizes = [32, 6], strides = [1, 1]} : vector<32x48xbf16> to vector<32x6xbf16>
    %c256 = arith.constant 256 : index
    %c0_111 = arith.constant 0 : index
    %155 = vector.load %arg25[%c256, %c0_111] : memref<288x1056xbf16, #tpu.memory_space<vmem>>, vector<32x6xbf16>
    tpu.vector_store %arg25[%c256, %c0_111], %154 {strides = array<i32>} : memref<288x1056xbf16, #tpu.memory_space<vmem>>, vector<32x6xbf16>,
    %c0_112 = arith.constant 0 : index
    %c0_113 = arith.constant 0 : index
    %156 = vector.load %arg10[%c0_112, %c0_113] : memref<32x288xbf16, #tpu.memory_space<vmem>>, vector<32x288xbf16>
    %c0_114 = arith.constant 0 : index
    %c0_115 = arith.constant 0 : index
    %157 = vector.load %arg25[%c0_114, %c0_115] : memref<288x1056xbf16, #tpu.memory_space<vmem>>, vector<288x6xbf16>
    %cst_116 = arith.constant dense<0.000000e+00> : vector<32x6xf32>
    %158 = tpu.matmul %156, %157, %cst_116 {dimension_numbers = #tpu.dot_dimension_numbers<[1], [0], [0], [1], [0, 0, 1, 1], [], []>} : vector<32x288xbf16>, vector<288x6xbf16>, vector<32x6xf32> -> vector<32x6xf32>
    %c0_117 = arith.constant 0 : index
    %c0_118 = arith.constant 0 : index
    %159 = vector.load %arg11[%c0_117, %c0_118] : memref<32x1xf32, #tpu.memory_space<vmem>>, vector<32x1xf32>
    %160 = vector.broadcast %159 : vector<32x1xf32> to vector<32x6xf32>
    %161 = arith.addf %158, %160 : vector<32x6xf32>
    %162 = arith.negf %161 : vector<32x6xf32>
    %163 = math.exp %162 : vector<32x6xf32>
    %cst_119 = arith.constant 1.000000e+00 : f32
    %164 = vector.broadcast %cst_119 : f32 to vector<32x6xf32>
    %165 = arith.addf %164, %163 : vector<32x6xf32>
    %166 = arith.divf %164, %165 : vector<32x6xf32>
    %167 = arith.mulf %161, %166 : vector<32x6xf32>
    %168 = arith.truncf %167 : vector<32x6xf32> to vector<32x6xbf16>
    %c0_120 = arith.constant 0 : index
    %c0_121 = arith.constant 0 : index
    %169 = vector.load %arg16[%c0_120, %c0_121] : memref<27x16xbf16, #tpu.memory_space<vmem>>, vector<27x16xbf16>
    %cst_122 = arith.constant dense<0.000000e+00> : vector<27x72xf32>
    %170 = tpu.matmul %169, %100, %cst_122 {dimension_numbers = #tpu.dot_dimension_numbers<[1], [0], [0], [1], [0, 0, 1, 1], [], []>} : vector<27x16xbf16>, vector<16x72xbf16>, vector<27x72xf32> -> vector<27x72xf32>
    %c0_123 = arith.constant 0 : index
    %c0_124 = arith.constant 0 : index
    %171 = vector.load %arg17[%c0_123, %c0_124] : memref<27x1xf32, #tpu.memory_space<vmem>>, vector<27x1xf32>
    %172 = vector.broadcast %171 : vector<27x1xf32> to vector<27x72xf32>
    %173 = arith.addf %170, %172 : vector<27x72xf32>
    %c0_125 = arith.constant 0 : index
    %c0_126 = arith.constant 0 : index
    %c0_127 = arith.constant 0 : index
    %174 = vector.load %arg23[%c0_125, %c0_126, %c0_127] : memref<1x27x98xf32, #tpu.memory_space<vmem>>, vector<1x27x72xf32>
    %175 = vector.shape_cast %174 : vector<1x27x72xf32> to vector<27x72xf32>
    %176 = vector.shape_cast %173 : vector<27x72xf32> to vector<1x27x72xf32>
    tpu.vector_store %arg23[%c0_125, %c0_126, %c0_127], %176 {strides = array<i32>} : memref<1x27x98xf32, #tpu.memory_space<vmem>>, vector<1x27x72xf32>,
    %177 = arith.negf %173 : vector<27x72xf32>
    %178 = math.exp %177 : vector<27x72xf32>
    %cst_128 = arith.constant 1.000000e+00 : f32
    %179 = vector.broadcast %cst_128 : f32 to vector<27x72xf32>
    %180 = arith.addf %179, %178 : vector<27x72xf32>
    %181 = arith.divf %179, %180 : vector<27x72xf32>
    %c0_129 = arith.constant 0 : index
    %c0_130 = arith.constant 0 : index
    %c0_131 = arith.constant 0 : index
    %182 = vector.load %arg22[%c0_129, %c0_130, %c0_131] : memref<3x27x98xf32, #tpu.memory_space<vmem>>, vector<1x27x72xf32>
    %183 = vector.shape_cast %182 : vector<1x27x72xf32> to vector<27x72xf32>
    %c1 = arith.constant 1 : index
    %c0_132 = arith.constant 0 : index
    %c0_133 = arith.constant 0 : index
    %184 = vector.load %arg22[%c1, %c0_132, %c0_133] : memref<3x27x98xf32, #tpu.memory_space<vmem>>, vector<1x27x72xf32>
    %185 = vector.shape_cast %184 : vector<1x27x72xf32> to vector<27x72xf32>
    %c2 = arith.constant 2 : index
    %c0_134 = arith.constant 0 : index
    %c0_135 = arith.constant 0 : index
    %186 = vector.load %arg22[%c2, %c0_134, %c0_135] : memref<3x27x98xf32, #tpu.memory_space<vmem>>, vector<1x27x72xf32>
    %187 = vector.shape_cast %186 : vector<1x27x72xf32> to vector<27x72xf32>
    %188 = arith.mulf %181, %181 : vector<27x72xf32>
    %189 = arith.mulf %188, %183 : vector<27x72xf32>
    %190 = arith.mulf %181, %185 : vector<27x72xf32>
    %191 = arith.addf %189, %190 : vector<27x72xf32>
    %192 = arith.addf %191, %187 : vector<27x72xf32>
    %c0_136 = arith.constant 0 : index
    %c0_137 = arith.constant 0 : index
    %c0_138 = arith.constant 0 : index
    %193 = vector.load %arg24[%c0_136, %c0_137, %c0_138] : memref<1x27x98xf32, #tpu.memory_space<vmem>>, vector<1x27x72xf32>
    %194 = vector.shape_cast %193 : vector<1x27x72xf32> to vector<27x72xf32>
    %195 = vector.shape_cast %192 : vector<27x72xf32> to vector<1x27x72xf32>
    tpu.vector_store %arg24[%c0_136, %c0_137, %c0_138], %195 {strides = array<i32>} : memref<1x27x98xf32, #tpu.memory_space<vmem>>, vector<1x27x72xf32>,
    %c0_139 = arith.constant 0 : index
    %c0_140 = arith.constant 0 : index
    %196 = vector.load %arg18[%c0_139, %c0_140] : memref<27x32xbf16, #tpu.memory_space<vmem>>, vector<27x32xbf16>
    %cst_141 = arith.constant dense<0.000000e+00> : vector<27x20xf32>
    %197 = tpu.matmul %196, %134, %cst_141 {dimension_numbers = #tpu.dot_dimension_numbers<[1], [0], [0], [1], [0, 0, 1, 1], [], []>} : vector<27x32xbf16>, vector<32x20xbf16>, vector<27x20xf32> -> vector<27x20xf32>
    %c0_142 = arith.constant 0 : index
    %c0_143 = arith.constant 0 : index
    %198 = vector.load %arg19[%c0_142, %c0_143] : memref<27x1xf32, #tpu.memory_space<vmem>>, vector<27x1xf32>
    %199 = vector.broadcast %198 : vector<27x1xf32> to vector<27x20xf32>
    %200 = arith.addf %197, %199 : vector<27x20xf32>
    %c0_144 = arith.constant 0 : index
    %c0_145 = arith.constant 0 : index
    %c72 = arith.constant 72 : index
    %201 = vector.load %arg23[%c0_144, %c0_145, %c72] : memref<1x27x98xf32, #tpu.memory_space<vmem>>, vector<1x27x20xf32>
    %202 = vector.shape_cast %201 : vector<1x27x20xf32> to vector<27x20xf32>
    %203 = vector.shape_cast %200 : vector<27x20xf32> to vector<1x27x20xf32>
    tpu.vector_store %arg23[%c0_144, %c0_145, %c72], %203 {strides = array<i32>} : memref<1x27x98xf32, #tpu.memory_space<vmem>>, vector<1x27x20xf32>,
    %204 = arith.negf %200 : vector<27x20xf32>
    %205 = math.exp %204 : vector<27x20xf32>
    %cst_146 = arith.constant 1.000000e+00 : f32
    %206 = vector.broadcast %cst_146 : f32 to vector<27x20xf32>
    %207 = arith.addf %206, %205 : vector<27x20xf32>
    %208 = arith.divf %206, %207 : vector<27x20xf32>
    %c0_147 = arith.constant 0 : index
    %c0_148 = arith.constant 0 : index
    %c72_149 = arith.constant 72 : index
    %209 = vector.load %arg22[%c0_147, %c0_148, %c72_149] : memref<3x27x98xf32, #tpu.memory_space<vmem>>, vector<1x27x20xf32>
    %210 = vector.shape_cast %209 : vector<1x27x20xf32> to vector<27x20xf32>
    %c1_150 = arith.constant 1 : index
    %c0_151 = arith.constant 0 : index
    %c72_152 = arith.constant 72 : index
    %211 = vector.load %arg22[%c1_150, %c0_151, %c72_152] : memref<3x27x98xf32, #tpu.memory_space<vmem>>, vector<1x27x20xf32>
    %212 = vector.shape_cast %211 : vector<1x27x20xf32> to vector<27x20xf32>
    %c2_153 = arith.constant 2 : index
    %c0_154 = arith.constant 0 : index
    %c72_155 = arith.constant 72 : index
    %213 = vector.load %arg22[%c2_153, %c0_154, %c72_155] : memref<3x27x98xf32, #tpu.memory_space<vmem>>, vector<1x27x20xf32>
    %214 = vector.shape_cast %213 : vector<1x27x20xf32> to vector<27x20xf32>
    %215 = arith.mulf %208, %208 : vector<27x20xf32>
    %216 = arith.mulf %215, %210 : vector<27x20xf32>
    %217 = arith.mulf %208, %212 : vector<27x20xf32>
    %218 = arith.addf %216, %217 : vector<27x20xf32>
    %219 = arith.addf %218, %214 : vector<27x20xf32>
    %c0_156 = arith.constant 0 : index
    %c0_157 = arith.constant 0 : index
    %c72_158 = arith.constant 72 : index
    %220 = vector.load %arg24[%c0_156, %c0_157, %c72_158] : memref<1x27x98xf32, #tpu.memory_space<vmem>>, vector<1x27x20xf32>
    %221 = vector.shape_cast %220 : vector<1x27x20xf32> to vector<27x20xf32>
    %222 = vector.shape_cast %219 : vector<27x20xf32> to vector<1x27x20xf32>
    tpu.vector_store %arg24[%c0_156, %c0_157, %c72_158], %222 {strides = array<i32>} : memref<1x27x98xf32, #tpu.memory_space<vmem>>, vector<1x27x20xf32>,
    %c0_159 = arith.constant 0 : index
    %c0_160 = arith.constant 0 : index
    %223 = vector.load %arg20[%c0_159, %c0_160] : memref<27x32xbf16, #tpu.memory_space<vmem>>, vector<27x32xbf16>
    %cst_161 = arith.constant dense<0.000000e+00> : vector<27x6xf32>
    %224 = tpu.matmul %223, %168, %cst_161 {dimension_numbers = #tpu.dot_dimension_numbers<[1], [0], [0], [1], [0, 0, 1, 1], [], []>} : vector<27x32xbf16>, vector<32x6xbf16>, vector<27x6xf32> -> vector<27x6xf32>
    %c0_162 = arith.constant 0 : index
    %c0_163 = arith.constant 0 : index
    %225 = vector.load %arg21[%c0_162, %c0_163] : memref<27x1xf32, #tpu.memory_space<vmem>>, vector<27x1xf32>
    %226 = vector.broadcast %225 : vector<27x1xf32> to vector<27x6xf32>
    %227 = arith.addf %224, %226 : vector<27x6xf32>
    %c0_164 = arith.constant 0 : index
    %c0_165 = arith.constant 0 : index
    %c92 = arith.constant 92 : index
    %228 = vector.load %arg23[%c0_164, %c0_165, %c92] : memref<1x27x98xf32, #tpu.memory_space<vmem>>, vector<1x27x6xf32>
    %229 = vector.shape_cast %228 : vector<1x27x6xf32> to vector<27x6xf32>
    %230 = vector.shape_cast %227 : vector<27x6xf32> to vector<1x27x6xf32>
    tpu.vector_store %arg23[%c0_164, %c0_165, %c92], %230 {strides = array<i32>} : memref<1x27x98xf32, #tpu.memory_space<vmem>>, vector<1x27x6xf32>,
    %231 = arith.negf %227 : vector<27x6xf32>
    %232 = math.exp %231 : vector<27x6xf32>
    %cst_166 = arith.constant 1.000000e+00 : f32
    %233 = vector.broadcast %cst_166 : f32 to vector<27x6xf32>
    %234 = arith.addf %233, %232 : vector<27x6xf32>
    %235 = arith.divf %233, %234 : vector<27x6xf32>
    %c0_167 = arith.constant 0 : index
    %c0_168 = arith.constant 0 : index
    %c92_169 = arith.constant 92 : index
    %236 = vector.load %arg22[%c0_167, %c0_168, %c92_169] : memref<3x27x98xf32, #tpu.memory_space<vmem>>, vector<1x27x6xf32>
    %237 = vector.shape_cast %236 : vector<1x27x6xf32> to vector<27x6xf32>
    %c1_170 = arith.constant 1 : index
    %c0_171 = arith.constant 0 : index
    %c92_172 = arith.constant 92 : index
    %238 = vector.load %arg22[%c1_170, %c0_171, %c92_172] : memref<3x27x98xf32, #tpu.memory_space<vmem>>, vector<1x27x6xf32>
    %239 = vector.shape_cast %238 : vector<1x27x6xf32> to vector<27x6xf32>
    %c2_173 = arith.constant 2 : index
    %c0_174 = arith.constant 0 : index
    %c92_175 = arith.constant 92 : index
    %240 = vector.load %arg22[%c2_173, %c0_174, %c92_175] : memref<3x27x98xf32, #tpu.memory_space<vmem>>, vector<1x27x6xf32>
    %241 = vector.shape_cast %240 : vector<1x27x6xf32> to vector<27x6xf32>
    %242 = arith.mulf %235, %235 : vector<27x6xf32>
    %243 = arith.mulf %242, %237 : vector<27x6xf32>
    %244 = arith.mulf %235, %239 : vector<27x6xf32>
    %245 = arith.addf %243, %244 : vector<27x6xf32>
    %246 = arith.addf %245, %241 : vector<27x6xf32>
    %c0_176 = arith.constant 0 : index
    %c0_177 = arith.constant 0 : index
    %c92_178 = arith.constant 92 : index
    %247 = vector.load %arg24[%c0_176, %c0_177, %c92_178] : memref<1x27x98xf32, #tpu.memory_space<vmem>>, vector<1x27x6xf32>
    %248 = vector.shape_cast %247 : vector<1x27x6xf32> to vector<27x6xf32>
    %249 = vector.shape_cast %246 : vector<27x6xf32> to vector<1x27x6xf32>
    tpu.vector_store %arg24[%c0_176, %c0_177, %c92_178], %249 {strides = array<i32>} : memref<1x27x98xf32, #tpu.memory_space<vmem>>, vector<1x27x6xf32>,
    return
  }
  func.func @transform_0(%arg0: i32) -> (i32, i32, i32) {
    %c0_i32 = arith.constant 0 : i32
    %c0_i32_0 = arith.constant 0 : i32
    %c0_i32_1 = arith.constant 0 : i32
    return %arg0, %c0_i32, %c0_i32_0 : i32, i32, i32
  }
  func.func @transform_1(%arg0: i32) -> (i32, i32) {
    %c0_i32 = arith.constant 0 : i32
    %c0_i32_0 = arith.constant 0 : i32
    %c0_i32_1 = arith.constant 0 : i32
    return %c0_i32, %c0_i32_0 : i32, i32
  }
  func.func @transform_2(%arg0: i32) -> (i32, i32) {
    %c0_i32 = arith.constant 0 : i32
    %c0_i32_0 = arith.constant 0 : i32
    %c0_i32_1 = arith.constant 0 : i32
    return %c0_i32, %c0_i32_0 : i32, i32
  }
  func.func @transform_3(%arg0: i32) -> (i32, i32) {
    %c0_i32 = arith.constant 0 : i32
    %c0_i32_0 = arith.constant 0 : i32
    %c0_i32_1 = arith.constant 0 : i32
    return %c0_i32, %c0_i32_0 : i32, i32
  }
  func.func @transform_4(%arg0: i32) -> (i32, i32) {
    %c0_i32 = arith.constant 0 : i32
    %c0_i32_0 = arith.constant 0 : i32
    %c0_i32_1 = arith.constant 0 : i32
    return %c0_i32, %c0_i32_0 : i32, i32
  }
  func.func @transform_5(%arg0: i32) -> (i32, i32) {
    %c0_i32 = arith.constant 0 : i32
    %c0_i32_0 = arith.constant 0 : i32
    %c0_i32_1 = arith.constant 0 : i32
    return %c0_i32, %c0_i32_0 : i32, i32
  }
  func.func @transform_6(%arg0: i32) -> (i32, i32) {
    %c0_i32 = arith.constant 0 : i32
    %c0_i32_0 = arith.constant 0 : i32
    %c0_i32_1 = arith.constant 0 : i32
    return %c0_i32, %c0_i32_0 : i32, i32
  }
  func.func @transform_7(%arg0: i32) -> (i32, i32) {
    %c0_i32 = arith.constant 0 : i32
    %c0_i32_0 = arith.constant 0 : i32
    %c0_i32_1 = arith.constant 0 : i32
    return %c0_i32, %c0_i32_0 : i32, i32
  }
  func.func @transform_8(%arg0: i32) -> (i32, i32) {
    %c0_i32 = arith.constant 0 : i32
    %c0_i32_0 = arith.constant 0 : i32
    %c0_i32_1 = arith.constant 0 : i32
    return %c0_i32, %c0_i32_0 : i32, i32
  }
  func.func @transform_9(%arg0: i32) -> (i32, i32) {
    %c0_i32 = arith.constant 0 : i32
    %c0_i32_0 = arith.constant 0 : i32
    %c0_i32_1 = arith.constant 0 : i32
    return %c0_i32, %c0_i32_0 : i32, i32
  }
  func.func @transform_10(%arg0: i32) -> (i32, i32) {
    %c0_i32 = arith.constant 0 : i32
    %c0_i32_0 = arith.constant 0 : i32
    %c0_i32_1 = arith.constant 0 : i32
    return %c0_i32, %c0_i32_0 : i32, i32
  }
  func.func @transform_11(%arg0: i32) -> (i32, i32) {
    %c0_i32 = arith.constant 0 : i32
    %c0_i32_0 = arith.constant 0 : i32
    %c0_i32_1 = arith.constant 0 : i32
    return %c0_i32, %c0_i32_0 : i32, i32
  }
  func.func @transform_12(%arg0: i32) -> (i32, i32) {
    %c0_i32 = arith.constant 0 : i32
    %c0_i32_0 = arith.constant 0 : i32
    %c0_i32_1 = arith.constant 0 : i32
    return %c0_i32, %c0_i32_0 : i32, i32
  }
  func.func @transform_13(%arg0: i32) -> (i32, i32) {
    %c0_i32 = arith.constant 0 : i32
    %c0_i32_0 = arith.constant 0 : i32
    %c0_i32_1 = arith.constant 0 : i32
    return %c0_i32, %c0_i32_0 : i32, i32
  }
  func.func @transform_14(%arg0: i32) -> (i32, i32) {
    %c0_i32 = arith.constant 0 : i32
    %c0_i32_0 = arith.constant 0 : i32
    %c0_i32_1 = arith.constant 0 : i32
    return %c0_i32, %c0_i32_0 : i32, i32
  }
  func.func @transform_15(%arg0: i32) -> (i32, i32) {
    %c0_i32 = arith.constant 0 : i32
    %c0_i32_0 = arith.constant 0 : i32
    %c0_i32_1 = arith.constant 0 : i32
    return %c0_i32, %c0_i32_0 : i32, i32
  }
  func.func @transform_16(%arg0: i32) -> (i32, i32) {
    %c0_i32 = arith.constant 0 : i32
    %c0_i32_0 = arith.constant 0 : i32
    %c0_i32_1 = arith.constant 0 : i32
    return %c0_i32, %c0_i32_0 : i32, i32
  }
  func.func @transform_17(%arg0: i32) -> (i32, i32) {
    %c0_i32 = arith.constant 0 : i32
    %c0_i32_0 = arith.constant 0 : i32
    %c0_i32_1 = arith.constant 0 : i32
    return %c0_i32, %c0_i32_0 : i32, i32
  }
  func.func @transform_18(%arg0: i32) -> (i32, i32) {
    %c0_i32 = arith.constant 0 : i32
    %c0_i32_0 = arith.constant 0 : i32
    %c0_i32_1 = arith.constant 0 : i32
    return %c0_i32, %c0_i32_0 : i32, i32
  }
  func.func @transform_19(%arg0: i32) -> (i32, i32) {
    %c0_i32 = arith.constant 0 : i32
    %c0_i32_0 = arith.constant 0 : i32
    %c0_i32_1 = arith.constant 0 : i32
    return %c0_i32, %c0_i32_0 : i32, i32
  }
  func.func @transform_20(%arg0: i32) -> (i32, i32) {
    %c0_i32 = arith.constant 0 : i32
    %c0_i32_0 = arith.constant 0 : i32
    %c0_i32_1 = arith.constant 0 : i32
    return %c0_i32, %c0_i32_0 : i32, i32
  }
  func.func @transform_21(%arg0: i32) -> (i32, i32, i32) {
    %c0_i32 = arith.constant 0 : i32
    %c0_i32_0 = arith.constant 0 : i32
    %c0_i32_1 = arith.constant 0 : i32
    %c0_i32_2 = arith.constant 0 : i32
    return %c0_i32, %c0_i32_0, %c0_i32_1 : i32, i32, i32
  }
  func.func @transform_22(%arg0: i32) -> (i32, i32, i32) {
    %c0_i32 = arith.constant 0 : i32
    %c0_i32_0 = arith.constant 0 : i32
    %c0_i32_1 = arith.constant 0 : i32
    return %arg0, %c0_i32, %c0_i32_0 : i32, i32, i32
  }
  func.func @transform_23(%arg0: i32) -> (i32, i32, i32) {
    %c0_i32 = arith.constant 0 : i32
    %c0_i32_0 = arith.constant 0 : i32
    %c0_i32_1 = arith.constant 0 : i32
    return %arg0, %c0_i32, %c0_i32_0 : i32, i32, i32
  }
}

</mosaic_0001>

<bundles_post_ra>
// kernel: model_forward.1
= control target key start
LH: loop header
LB: loop body
LE: loop exit
PB: predicated region body
PF: predicated region fallthrough
CT: control target
= control target key end

     0   :  { %s15682_s0 = inlined_call_operand.vmem [shape: bf16[2,3,4488], index: 0, kind: input, shape index: {}]   ;;  %s15683_s1 = inlined_call_operand.vmem [shape: bf16[8,27], index: 1, kind: input, shape index: {}]   ;;  %s15684_s2 = inlined_call_operand.vmem [shape: f32[8,1], index: 2, kind: input, shape index: {}]   ;;  %s15685_s3 = inlined_call_operand.vmem [shape: bf16[16,72], index: 3, kind: input, shape index: {}]   ;;  %s15686_s4 = inlined_call_operand.vmem [shape: f32[16,1], index: 4, kind: input, shape index: {}]   ;;  %s15687_s5 = inlined_call_operand.vmem [shape: bf16[16,144], index: 5, kind: input, shape index: {}]   ;;  %s15688_s6 = inlined_call_operand.vmem [shape: f32[16,1], index: 6, kind: input, shape index: {}]   ;;  %s15689_s7 = inlined_call_operand.vmem [shape: bf16[32,144], index: 7, kind: input, shape index: {}]   ;;  %s15690_s8 = inlined_call_operand.vmem [shape: f32[32,1], index: 8, kind: input, shape index: {}]   ;;  %s15691_s9 = inlined_call_operand.vmem [shape: bf16[32,288], index: 9, kind: input, shape index: {}]   ;;  %s15692_s10 = inlined_call_operand.vmem [shape: f32[32,1], index: 10, kind: input, shape index: {}]   ;;  %s15693_s11 = inlined_call_operand.vmem [shape: bf16[1056,1224], index: 11, kind: input, shape index: {}]   ;;  %s15694_s12 = inlined_call_operand.vmem [shape: bf16[272,360], index: 12, kind: input, shape index: {}]   ;;  %s15695_s13 = inlined_call_operand.vmem [shape: bf16[72,120], index: 13, kind: input, shape index: {}]   ;;  %s15696_s14 = inlined_call_operand.vmem [shape: bf16[20,48], index: 14, kind: input, shape index: {}]   ;;  %s15697_s15 = inlined_call_operand.vmem [shape: bf16[27,16], index: 15, kind: input, shape index: {}]   ;;  %s15698_s16 = inlined_call_operand.vmem [shape: f32[27,1], index: 16, kind: input, shape index: {}]   ;;  %s15699_s17 = inlined_call_operand.vmem [shape: bf16[27,32], index: 17, kind: input, shape index: {}]   ;;  %s15700_s18 = inlined_call_operand.vmem [shape: f32[27,1], index: 18, kind: input, shape index: {}]   ;;  %s15701_s19 = inlined_call_operand.vmem [shape: bf16[27,32], index: 19, kind: input, shape index: {}]   ;;  %s15702_s20 = inlined_call_operand.vmem [shape: f32[27,1], index: 20, kind: input, shape index: {}]   ;;  %s15703_s21 = inlined_call_operand.vmem [shape: f32[3,27,98], index: 21, kind: input, shape index: {}]   ;;  %s15704_s22 = inlined_call_operand.vmem [shape: f32[2,27,98], index: 22, kind: output, shape index: {0}]   ;;  %s15705_s23 = inlined_call_operand.vmem [shape: f32[2,27,98], index: 23, kind: output, shape index: {1}]  }
   0x1   :  { %15738 = sst [smem:[#allocation4_spill]] %s15682_s0 }
   0x2   :  { %15739 = sst [smem:[#allocation5_spill]] %s15683_s1 }
   0x3   :  { %15740 = sst [smem:[#allocation6_spill]] %s15684_s2 }
   0x4   :  { %15741 = sst [smem:[#allocation7_spill]] %s15685_s3 }
   0x5   :  { %15742 = sst [smem:[#allocation8_spill]] %s15686_s4  ;;  %s11957_s4 = smov 0  }
   0x6   :  { %15743 = sst [smem:[#allocation9_spill]] %s15687_s5 }
   0x7   :  { %15744 = sst [smem:[#allocation10_spill]] %s15688_s6 }
   0x8   :  { %15745 = sst [smem:[#allocation11_spill]] %s15689_s7 }
   0x9 LB: > { %s9374_s30 = sadd.s32 4294967295, %s11793_s4   ;;  %p9378_p0 = scmp.ge.s32.totalorder %s11793_s4, 1  ;;  %s11793_s4 = sphi %s11957_s4, %s34_s4  }
   0xa   : > { %p640_p1 = scmp.lt.s32.totalorder %s11793_s4, 3 }
   0xc   : > { %p641_p2 = pnand %p9378_p0, %p640_p1 }
   0xe   : > { %644 = sbr.rel (%p641_p2) target bundleno = 4090 (0xffa), region = 108 }
  0x15   : > { %p709_p3 = scmp.lt.s32.totalorder %s9374_s30, 1  ;;  %v741_v0 = vlaneseq  ;;  %v11795_v1 = vmov 1983009808   ;;  %s15746_s1 = sld [smem:[#allocation4_spill]]  ;;  %vm15711_vm0 = vcmask 1041408   ;;  %vm1328_vm3 = vcmask 1047558  }
  0x16   : > { %v739_v2 = vunpack.c.l.s4 %v11795_v1  ;;  %vm788_vm1 = vsmask.f32 1280  ;;  %s11796_s2 = smov 90   ;;  %v793_v16 = vld [vmem:[#allocation2 + $0x8] sm:$0x3]  ;;  %s15731_s6 = smov 127  }
  0x17   : > { %s15839_s30 = smov (!%p709_p3, %s9374_s30), 1  ;;  %v742_v3 = vshrl.u32 %v741_v0, 7  ;;  %vm11990_vm2 = vmand %vm15711_vm0, %vm788_vm1  ;;  %s11798_s27 = smov 95   ;;  %v799_v57 = vld [vmem:[#allocation2 + $0x18] sm:$0x3]  ;;  %vm15724_vm5 = vcmask 736256  }
  0x18   : > { %v740_v4 = vunpack.c.0.s8 %v739_v2  ;;  %s10467_s24 = smul.u32 72, %s15839_s30  ;;  %s11799_s7 = smov 30   ;;  %vm15713_vm4 = vsmask.f32 7424  ;;  %vm1052_vm7 = vcmask 1044483   ;;  %vm15725_vm9 = vcmask 1039360  }
  0x19   : > { %s11800_s28 = smov 60   ;;  %s11801_s29 = smov 59   ;;  %vm12262_vm6 = vmand %vm1328_vm3, %vm15713_vm4  ;;  %vm15714_vm8 = vsmask.f32 4352  ;;  %vm975_vm11 = vcmask 1042433   ;;  %vm15722_vm13 = vcmask 777216  }
  0x1a   : > { %v11968_v5 = vsub.s32 %v740_v4, %v742_v3  ;;  %s15729_s3 = smov 125   ;;  %s11803_s0 = smov 94   ;;  %vm12283_vm10 = vmand %vm1052_vm7, %vm15714_vm8  ;;  %vm15712_vm12 = vsmask.f32 2304  ;;  %vm814_vm15 = vcmask 254976   ;;  %vm1223_vm0 = vcmask 1045508  }
  0x1b   : > { %s11973_s26 = scalar_lea.vmem %s15746_s1, %s10467_s24  ;;  %vm12327_vm14 = vmand %vm975_vm11, %vm15712_vm12  ;;  %vm15715_vm3 = vsmask.f32 7942  ;;  %vm15716_vm7 = vsmask.f32 7966  ;;  %vm15717_vm12 = vsmask.f32 7954 }
  0x1c   : > { %v9384_v6 = vld.sshfl [vmem:[%s11973_s26 + $0x30] sm:$0xff pattern:$0x76325410]  ;;  %v725_v7 = vld [vmem:[%s11973_s26] sm:$0xff]  ;;  %v11978_v8 = vld [vmem:[%s11973_s26 + $0x38] sm:$0xff]  ;;  %vm15727_vm4 = vcmask 482304  }
  0x1d   : > { %1294 = vrot.lane.b32.xlu1 %v9384_v6, %s11796_s2  ;;  %v1257_v9 = vcombine.low %v9384_v6, %v9384_v6  ;;  %v11982_v10 = vrot.slane %v725_v7, %v11968_v5  ;;  %v737_v11 = vcombine.high %v725_v7, %v725_v7  ;;  %v1258_v12 = vcombine.low %v11978_v8, %v11978_v8  ;;  %v727_v13 = vld [vmem:[%s11973_s26 + $0x10] sm:$0xff]  ;;  %v729_v14 = vld [vmem:[%s11973_s26 + $0x20] sm:$0xff]  ;;  %v726_v62 = vld [vmem:[%s11973_s26 + $0x8] sm:$0xff]  ;;  %s15765_s5 = sld [smem:[#allocation6_spill]]  ;;  %s11808_s25 = smov 111  }
  0x1e   : > { %v11995_v17 = vrot.slane %v727_v13, %v11968_v5  ;;  %v1086_v18 = vcombine.high %v729_v14, %v729_v14  ;;  %v821_v25 = vcombine.high %v727_v13, %v727_v13  ;;  %v12022_v31 = vrot.slane %v729_v14, %v11968_v5  ;;  %s11809_s1 = smov 78   ;;  %s15826_s24 = sld [smem:[#allocation8_spill]] }
  0x1f   : > { %v1007_v19 = vrot.slane %v11982_v10, 5  ;;  %v11999_v20 = vrot.slane %v1258_v12, %v11968_v5  ;;  %v752_v21 = vcombine.high %v11982_v10, %v11982_v10  ;;  %v12004_v22 = vrot.slane %v737_v11, %v11968_v5 }
  0x20   : > { %v12008_v23 = vcombine.high %v11995_v17, %v11995_v17  ;;  %v12011_v24 = vrot.slane %v1086_v18, %v11968_v5  ;;  %v828_v35 = vrot.slane %v821_v25, %v11968_v5  ;;  %v855_v40 = vcombine.high %v12022_v31, %v12022_v31  ;;  %v805_v18 = vld [vmem:[#allocation2 + $0x28] sm:$0x3]  ;;  %v733_v25 = vld [vmem:[%s11973_s26 + $0x40] sm:$0xff] }
  0x21   : > { %1292 = vrot.lane.b32.xlu1 %v1257_v9, %s11796_s2  ;;  %1016 = vrot.lane.b32.xlu0 %v1007_v19, %s15731_s6  ;;  %v1273_v26 = vcombine.low %v11999_v20, %v11999_v20  ;;  %v1008_v27 = vrot.slane %v752_v21, 5  ;;  %v794_v28 = vsel %vm11990_vm2, %v752_v21, %v793_v16  ;;  %v1493_v32 = vrot.slane %v12004_v22, 7 }
  0x22   : > { %795 = vst [vmem:[#allocation2 + $0x8] sm:$0x3] %v794_v28  ;;  %v865_v29 = vshrl.u32 %v12008_v23, 16  ;;  %v868_v30 = vshll.u32 %v12008_v23, 16  ;;  %v1009_v33 = vrot.slane %v12004_v22, 5  ;;  %v1124_v34 = vshrl.u32 %v12011_v24, 16 }
  0x23   : > { %v1127_v38 = vshll.u32 %v12011_v24, 16  ;;  %v12037_v39 = vcombine.high %v12011_v24, %v12011_v24  ;;  %v1492_v41 = vrot.slane %v752_v21, 7  ;;  %v873_v42 = vshrl.u32 %v828_v35, 16  ;;  %v12126_v23 = vld [vmem:[%s11973_s26 + $0x18] sm:$0xff] }
  0x24   : > { %v867_v36 = vrot.slane %v865_v29, 6  ;;  %v870_v37 = vrot.slane %v868_v30, 7  ;;  %v876_v43 = vshll.u32 %v828_v35, 16  ;;  %v1126_v45 = vrot.slane %v1124_v34, 3 }
  0x25   : > { %1296 = vrot.lane.b32.xlu1 %v1273_v26, %s11796_s2  ;;  %1018 = vrot.lane.b32.xlu0 %v1008_v27, %s15731_s6  ;;  %v1129_v46 = vrot.slane %v1127_v38, 4  ;;  %v1135_v47 = vshll.u32 %v12037_v39, 16  ;;  %v12046_v48 = vshrl.u32 %v855_v40, 16  ;;  %v1491_v49 = vrot.slane %v11982_v10, 7 }
  0x26   : > { %v871_v44 = vor.u32 %v870_v37, %v867_v36  ;;  %v1361_v50 = vrot.slane %v1127_v38, 1  ;;  %v12049_v51 = vshll.u32 %v855_v40, 16  ;;  %v1132_v52 = vshrl.u32 %v12037_v39, 16 }
  0x27   : > { %v1130_v53 = vor.u32 %v1129_v46, %v1126_v45  ;;  %v12054_v54 = vrot.slane %v1135_v47, 1  ;;  %v875_v55 = vrot.slane %v873_v42, 6  ;;  %v878_v56 = vrot.slane %v876_v43, 7 }
  0x28   : > { %v1120_v58 = vrot.slane %v12046_v48, 3  ;;  %v1121_v59 = vrot.slane %v12049_v51, 4  ;;  %v1134_v60 = vrot.slane %v1132_v52, 3  ;;  %v1137_v61 = vrot.slane %v1135_v47, 4  ;;  %v811_v47 = vld [vmem:[#allocation2 + $0x38] sm:$0x3] }
  0x29   : > { %1504 = vrot.lane.b32.xlu1 %v1493_v32, %s11798_s27  ;;  %1020 = vrot.lane.b32.xlu0 %v1009_v33, %s15731_s6  ;;  %v12063_v63 = vcombine.high %v12004_v22, %v12004_v22  ;;  %v10518_v0 = vpack.i.bf16 %v12054_v54, %v1361_v50  ;;  %v879_v1 = vor.u32 %v878_v56, %v875_v55  ;;  %v857_v2 = vshrl.u32 %v11995_v17, 16 }
  0x2a   : > { %v860_v3 = vshll.u32 %v11995_v17, 16  ;;  %v1122_v6 = vor.u32 %v1121_v59, %v1120_v58  ;;  %v1138_v7 = vor.u32 %v1137_v61, %v1134_v60  ;;  %v1569_v9 = vrot.slane %v873_v42, 5 }
  0x2b   : > { %v800_v4 = vsel %vm11990_vm2, %v12063_v63, %v799_v57  ;;  %v1570_v11 = vrot.slane %v876_v43, 6  ;;  %v859_v12 = vrot.slane %v857_v2, 6  ;;  %v12075_v14 = vcombine.high %v828_v35, %v828_v35  ;;  %v790_v57 = vld [vmem:[#allocation2] sm:$0x3] }
  0x2c   : > { %801 = vst [vmem:[#allocation2 + $0x18] sm:$0x3] %v800_v4  ;;  %v862_v13 = vrot.slane %v860_v3, 7  ;;  %v12078_v16 = vrot.slane %v726_v62, %v11968_v5  ;;  %v1275_v33 = vcombine.low %v733_v25, %v733_v25  ;;  %v1360_v35 = vrot.slane %v12049_v51, 1  ;;  %v796_v4 = vld [vmem:[#allocation2 + $0x10] sm:$0x3] }
  0x2d   : > { %938 = vrot.lane.b32.xlu1 %v871_v44, %s11799_s7  ;;  %1502 = vrot.lane.b32.xlu0 %v1492_v41, %s11798_s27  ;;  %v1571_v21 = vor.u32 %v1570_v11, %v1569_v9  ;;  %v881_v27 = vshrl.u32 %v12075_v14, 16  ;;  %v884_v28 = vshll.u32 %v12075_v14, 16  ;;  %v12103_v40 = vrot.slane %v733_v25, %v11968_v5 }
  0x2e   : > { %v12082_v19 = vcombine.high %v12078_v16, %v12078_v16  ;;  %v863_v26 = vor.u32 %v862_v13, %v859_v12  ;;  %v12100_v38 = vrot.slane %v1275_v33, %v11968_v5  ;;  %v1370_v41 = vor.u32 %v1361_v50, %v1124_v34 }
  0x2f   : > { %v1572_v36 = vrot.slane %v881_v27, 5  ;;  %v1573_v37 = vrot.slane %v884_v28, 6  ;;  %v1566_v43 = vrot.slane %v865_v29, 5  ;;  %v1567_v44 = vrot.slane %v868_v30, 6 }
  0x30   : > { %v806_v32 = vsel %vm11990_vm2, %v12082_v19, %v805_v18  ;;  %v754_v45 = vcombine.high %v726_v62, %v726_v62  ;;  %v1662_v34 = vcombine.low %v12004_v22, %v12004_v22  ;;  %v1369_v30 = vor.u32 %v1360_v35, %v12046_v48 }
  0x31   : > { %1189 = vrot.lane.b32.xlu1 %v1130_v53, %s11800_s28  ;;  %1500 = vrot.lane.b32.xlu0 %v1491_v49, %s11798_s27  ;;  %807 = vst [vmem:[#allocation2 + $0x28] sm:$0x3] %v806_v32  ;;  %v1574_v42 = vor.u32 %v1573_v37, %v1572_v36  ;;  %v1568_v24 = vor.u32 %v1567_v44, %v1566_v43  ;;  %v12138_v53 = vld [vmem:[%s11973_s26 + $0x28] sm:$0xff]  ;;  %v1011_v56 = vrot.slane %v12078_v16, 5  ;;  %v1010_v58 = vrot.slane %v12063_v63, 5 }
  0x32   : > { %v12119_v46 = vrot.slane %v754_v45, %v11968_v5  ;;  %v1371_v49 = vor.u32 %v12054_v54, %v1132_v52  ;;  %v12142_v55 = vrot.slane %v11978_v8, %v11968_v5  ;;  %v1661_v39 = vcombine.low %v11982_v10, %v11982_v10 }
  0x33   : > { %v838_v52 = vrot.slane %v12126_v23, %v11968_v5  ;;  %v12153_v54 = vrot.slane %v12138_v53, %v11968_v5  ;;  %v791_v62 = vsel %vm11990_vm2, %v11982_v10, %v790_v57  ;;  %v931_v2 = vrot.slane %v12046_v48, 6 }
  0x34   : > { %v12123_v29 = vcombine.high %v12119_v46, %v12119_v46  ;;  %v1274_v8 = vcombine.low %v12142_v55, %v12142_v55  ;;  %792 = vst [vmem:[#allocation2] sm:$0x3] %v791_v62  ;;  %v934_v3 = vrot.slane %v12049_v51, 7  ;;  %v797_v18 = vsel %vm11990_vm2, %v12004_v22, %v796_v4 }
  0x35   : > { %10519 = vrot.lane.b32.xlu1 %v10518_v0, %s11801_s29  ;;  %940 = vrot.lane.b32.xlu0 %v879_v1, %s11799_s7  ;;  %v889_v59 = vshrl.u32 %v838_v52, 16  ;;  %v892_v60 = vshll.u32 %v838_v52, 16  ;;  %v12162_v61 = vcombine.high %v12153_v54, %v12153_v54  ;;  %v1590_v0 = vrot.slane %v12046_v48, 5  ;;  %798 = vst [vmem:[#allocation2 + $0x10] sm:$0x3] %v797_v18 }
  0x36   : > { %v812_v50 = vsel %vm11990_vm2, %v12123_v29, %v811_v47  ;;  %v1591_v1 = vrot.slane %v12049_v51, 6  ;;  %v12174_v9 = vor.u32 %v934_v3, %v931_v2  ;;  %v883_v48 = vrot.slane %v881_v27, 6 }
  0x37   : > { %813 = vst [vmem:[#allocation2 + $0x38] sm:$0x3] %v812_v50  ;;  %v894_v11 = vrot.slane %v892_v60, 7  ;;  %v1148_v12 = vshrl.u32 %v12162_v61, 16  ;;  %v1151_v13 = vshll.u32 %v12162_v61, 16  ;;  %v11804_v51 = vmov 0  }
  0x38   : > { %1824 = vmatprep.mubr.bf16.mxu0 %v11804_v51  ;;  %1865 = vmatprep.mubr.bf16.mxu1 %v11804_v51  ;;  %v886_v25 = vrot.slane %v884_v28, 7  ;;  %v1575_v14 = vrot.slane %v889_v59, 5  ;;  %v1576_v28 = vrot.slane %v892_v60, 6  ;;  %v1663_v57 = vcombine.low %v12078_v16, %v12078_v16 }
  0x39   : > { %1187 = vrot.lane.b32.xlu1 %v1122_v6, %s11800_s28  ;;  %1191 = vrot.lane.b32.xlu0 %v1138_v7, %s11800_s28  ;;  %v1495_v6 = vrot.slane %v12078_v16, 7  ;;  %v12172_v7 = vor.u32 %v1591_v1, %v1590_v0  ;;  %v1150_v32 = vrot.slane %v1148_v12, 3  ;;  %v1153_v33 = vrot.slane %v1151_v13, 4 }
  0x3a   : > { %10538 = vset.pattern.permute.xlu0 %v11804_v51  ;;  %10539 = vset.pattern.permute.xlu1 %v11804_v51  ;;  %v1577_v43 = vor.u32 %v1576_v28, %v1575_v14  ;;  %v1364_v44 = vrot.slane %v1151_v13, 1  ;;  %v1496_v60 = vrot.slane %v12082_v19, 7  ;;  %v1498_v15 = vrot.slane %v12123_v29, 7 }
  0x3b   : > { %v1154_v36 = vor.u32 %v1153_v33, %v1150_v32 }
  0x3d   : > { %1595 = vrot.lane.b32.xlu1 %v1571_v21, %s15729_s3  ;;  %936 = vrot.lane.b32.xlu0 %v863_v26, %s11799_s7  ;;  %v1494_v21 = vrot.slane %v12063_v63, 7  ;;  %v1140_v26 = vshrl.u32 %v12153_v54, 16  ;;  %v1143_v63 = vshll.u32 %v12153_v54, 16  ;;  %v1012_v54 = vrot.slane %v12082_v19, 5 }
  0x3f   : > { %v1142_v37 = vrot.slane %v1140_v26, 3  ;;  %v1363_v45 = vrot.slane %v1143_v63, 1 }
  0x41   : > { %1668 = vrot.lane.b32.xlu1 %v11982_v10, %s11803_s0  ;;  %1378 = vrot.lane.b32.xlu0 %v1360_v35, %s11801_s29  ;;  %v891_v10 = vrot.slane %v889_v59, 6  ;;  %v887_v35 = vor.u32 %v886_v25, %v883_v48  ;;  %v10523_v47 = vpack.i.bf16 %v1364_v44, %v1363_v45  ;;  %v1372_v50 = vor.u32 %v1363_v45, %v1140_v26 }
  0x43   : > { %v895_v27 = vor.u32 %v894_v11, %v891_v10 }
  0x45   : > { %1398 = vrot.lane.b32.xlu1 %v1370_v41, %s11801_s29  ;;  %1597 = vrot.lane.b32.xlu0 %v1574_v42, %s15729_s3  ;;  %v1145_v41 = vrot.slane %v1143_v63, 4  ;;  %v846_v42 = vcombine.high %v838_v52, %v838_v52 }
  0x49   : > { %1593 = vrot.lane.b32.xlu1 %v1568_v24, %s15729_s3  ;;  %1670 = vrot.lane.b32.xlu0 %v1662_v34, %s11803_s0  ;;  %v897_v24 = vshrl.u32 %v846_v42, 16  ;;  %v900_v34 = vshll.u32 %v846_v42, 16 }
  0x4b   : > { %v899_v61 = vrot.slane %v897_v24, 6  ;;  %v902_v62 = vrot.slane %v900_v34, 7 }
  0x4d   : > { %1396 = vrot.lane.b32.xlu1 %v1369_v30, %s11801_s29  ;;  %1400 = vrot.lane.b32.xlu0 %v1371_v49, %s11801_s29  ;;  %v1578_v30 = vrot.slane %v897_v24, 5  ;;  %v1579_v49 = vrot.slane %v900_v34, 6  ;;  %v903_v3 = vor.u32 %v902_v62, %v899_v61  ;;  %v999_v34 = vld [vmem:[#allocation2 + $0x38] sm:$0x6] }
  0x51   : > { %1024 = vrot.lane.b32.xlu1 %v1011_v56, %s15731_s6  ;;  %1666 = vrot.lane.b32.xlu0 %v1661_v39, %s11803_s0  ;;  %v1580_v56 = vor.u32 %v1579_v49, %v1578_v30  ;;  %v802_v39 = vld [vmem:[#allocation2 + $0x20] sm:$0x3]  ;;  %v1015_v30 = vrot.slane %v11995_v17, 5 }
  0x52   : > { %v803_v52 = vsel %vm11990_vm2, %v12078_v16, %v802_v39  ;;  %v921_v39 = vshrl.u32 %v12022_v31, 16 }
  0x53   : > { %804 = vst [vmem:[#allocation2 + $0x20] sm:$0x3] %v803_v52 }
  0x55   : > { %1300 = vrot.lane.b32.xlu1 %v1274_v8, %s11796_s2  ;;  %1022 = vrot.lane.b32.xlu0 %v1010_v58, %s15731_s6  ;;  %v831_v8 = vcombine.high %v12126_v23, %v12126_v23  ;;  %v1373_v58 = vor.u32 %v1364_v44, %v1148_v12  ;;  %v1013_v23 = vrot.slane %v12119_v46, 5  ;;  %v1497_v12 = vrot.slane %v12119_v46, 7 }
  0x56   : > { %v1664_v44 = vcombine.low %v12119_v46, %v12119_v46 }
  0x57   : > { %v845_v0 = vrot.slane %v831_v8, %v11968_v5 }
  0x59   : > { %1508 = vrot.lane.b32.xlu1 %v1495_v6, %s11798_s27  ;;  %1298 = vrot.lane.b32.xlu0 %v11999_v20, %s11796_s2  ;;  %v1146_v20 = vor.u32 %v1145_v41, %v1142_v37  ;;  %v905_v19 = vshrl.u32 %v845_v0, 16  ;;  %v908_v4 = vshll.u32 %v845_v0, 16  ;;  %v12233_v6 = vcombine.high %v845_v0, %v845_v0 }
  0x5a   : > { %v923_v0 = vrot.slane %v921_v39, 6 }
  0x5b   : > { %v907_v48 = vrot.slane %v905_v19, 6  ;;  %v910_v18 = vrot.slane %v908_v4, 7  ;;  %v1581_v42 = vrot.slane %v905_v19, 5 }
  0x5d   : > { %944 = vrot.lane.b32.xlu1 %v895_v27, %s11799_s7  ;;  %1506 = vrot.lane.b32.xlu0 %v1494_v21, %s11798_s27  ;;  %v913_v21 = vshrl.u32 %v12233_v6, 16  ;;  %v916_v27 = vshll.u32 %v12233_v6, 16  ;;  %v911_v33 = vor.u32 %v910_v18, %v907_v48 }
  0x5f   : > { %v1584_v14 = vrot.slane %v913_v21, 5  ;;  %v1585_v28 = vrot.slane %v916_v27, 6  ;;  %v918_v48 = vrot.slane %v916_v27, 7 }
  0x61   : > { %1195 = vrot.lane.b32.xlu1 %v1154_v36, %s11800_s28  ;;  %942 = vrot.lane.b32.xlu0 %v887_v35, %s11799_s7  ;;  %v1586_v37 = vor.u32 %v1585_v28, %v1584_v14 }
  0x65   : > { %1599 = vrot.lane.b32.xlu1 %v1577_v43, %s15729_s3  ;;  %1193 = vrot.lane.b32.xlu0 %v1146_v20, %s11800_s28  ;;  %v1582_v43 = vrot.slane %v908_v4, 6  ;;  %v1499_v4 = vrot.slane %v11995_v17, 7 }
  0x67   : > { %v1583_v20 = vor.u32 %v1582_v43, %v1581_v42 }
  0x69   : > { %1672 = vrot.lane.b32.xlu1 %v12004_v22, %s11803_s0  ;;  %10524 = vrot.lane.b32.xlu0 %v10523_v47, %s11801_s29  ;;  %v1095_v22 = vcombine.high %v12138_v53, %v12138_v53  ;;  %v1331_v47 = vld [vmem:[#allocation2] sm:$0xc0] }
  0x6b   : > { %v12221_v59 = vrot.slane %v1095_v22, %v11968_v5  ;;  %v1290_v5 = vcombine.low %v12100_v38, %v12100_v38  ;;  %v12271_v22 = vld.sshfl [vmem:[%s11973_s26 + $0x30] sm:$0xff pattern:$0x76325410]  ;;  %s11813_s26 = smov 27  }
  0x6c   : > { %v12275_v8 = vcombine.high %v12271_v22, %v12271_v22  ;;  %v1175_v27 = vshll.u32 %v12271_v22, 16 }
  0x6d   : > { %1402 = vrot.lane.b32.xlu1 %v1372_v50, %s11801_s29  ;;  %1601 = vrot.lane.b32.xlu0 %v1580_v56, %s15729_s3  ;;  %v1156_v53 = vshrl.u32 %v12221_v59, 16  ;;  %v1159_v1 = vshll.u32 %v12221_v59, 16  ;;  %v1111_v2 = vcombine.high %v12221_v59, %v12221_v59 }
  0x6f   : > { %v1161_v10 = vrot.slane %v1159_v1, 4  ;;  %v1167_v11 = vshll.u32 %v1111_v2, 16  ;;  %v1365_v13 = vrot.slane %v1159_v1, 1  ;;  %v1164_v32 = vshrl.u32 %v1111_v2, 16  ;;  %v1058_v1 = vld [vmem:[#allocation2 + $0x8] sm:$0x18] }
  0x71   : > { %1026 = vrot.lane.b32.xlu1 %v1012_v54, %s15731_s6  ;;  %1674 = vrot.lane.b32.xlu0 %v1663_v57, %s11803_s0  ;;  %v1366_v26 = vrot.slane %v1167_v11, 1  ;;  %v1169_v63 = vrot.slane %v1167_v11, 4  ;;  %v1166_v36 = vrot.slane %v1164_v32, 3  ;;  %v1374_v49 = vor.u32 %v1365_v13, %v1156_v53  ;;  %v1334_v54 = vld [vmem:[#allocation2 + $0x8] sm:$0xc0] }
  0x72   : > { %v924_v57 = vshll.u32 %v12022_v31, 16  ;;  %v1291_v31 = vcombine.low %v12103_v40, %v12103_v40 }
  0x73   : > { %v10528_v35 = vpack.i.bf16 %v1366_v26, %v1365_v13  ;;  %v1170_v41 = vor.u32 %v1169_v63, %v1166_v36  ;;  %v1375_v45 = vor.u32 %v1366_v26, %v1164_v32  ;;  %v915_v13 = vrot.slane %v913_v21, 6 }
  0x74   : > { %v926_v2 = vrot.slane %v924_v57, 7  ;;  %v1587_v36 = vrot.slane %v921_v39, 5  ;;  %v1367_v39 = vrot.slane %v1175_v27, 1 }
  0x75   : > { %1302 = vrot.lane.b32.xlu1 %v12142_v55, %s11796_s2  ;;  %1404 = vrot.lane.b32.xlu0 %v1373_v58, %s11801_s29  ;;  %v1158_v55 = vrot.slane %v1156_v53, 3  ;;  %v919_v14 = vor.u32 %v918_v48, %v915_v13 }
  0x76   : > { %v927_v26 = vor.u32 %v926_v2, %v923_v0 }
  0x77   : > { %v1162_v25 = vor.u32 %v1161_v10, %v1158_v55  ;;  %v808_v55 = vld [vmem:[#allocation2 + $0x30] sm:$0x3] }
  0x78   : > { %v809_v10 = vsel %vm11990_vm2, %v12119_v46, %v808_v55  ;;  %vm815_vm2 = vmand %vm814_vm15, %vm788_vm1  ;;  %vm1449_vm1 = vcmask 1047559   ;;  %vm15719_vm15 = vcmask 244736  }
  0x79   : > { %1510 = vrot.lane.b32.xlu1 %v1496_v60, %s11798_s27  ;;  %1028 = vrot.lane.b32.xlu0 %v1013_v23, %s15731_s6  ;;  %v1014_v60 = vrot.slane %v12123_v29, 5  ;;  %810 = vst [vmem:[#allocation2 + $0x30] sm:$0x3] %v809_v10  ;;  %v1172_v29 = vshrl.u32 %v12271_v22, 16  ;;  %vm12362_vm8 = vmand %vm1449_vm1, %vm15716_vm7  ;;  %vm15721_vm7 = vsmask.f32 7946 }
  0x7a   : > { %vm12377_vm1 = vmand %vm1223_vm0, %vm15717_vm12  ;;  %vm15720_vm12 = vsmask.f32 5376 }
  0x7d   : > { %946 = vrot.lane.b32.xlu1 %v903_v3, %s11799_s7  ;;  %1304 = vrot.lane.b32.xlu0 %v1290_v5, %s11796_s2  ;;  %v1180_v3 = vshrl.u32 %v12275_v8, 16  ;;  %v1183_v5 = vshll.u32 %v12275_v8, 16 }
  0x7f   : > { %v1182_v32 = vrot.slane %v1180_v3, 3  ;;  %v1185_v21 = vrot.slane %v1183_v5, 4 }
  0x81   : > { %1197 = vrot.lane.b32.xlu1 %v1162_v25, %s11800_s28  ;;  %1512 = vrot.lane.b32.xlu0 %v1497_v12, %s11798_s27  ;;  %v1541_v25 = vld [vmem:[#allocation2 + $0x50] sm:$0x6]  ;;  %v1186_v43 = vor.u32 %v1185_v21, %v1182_v32 }
  0x85   : > { %10529 = vrot.lane.b32.xlu1 %v10528_v35, %s11801_s29  ;;  %948 = vrot.lane.b32.xlu0 %v911_v33, %s11799_s7 }
  0x89   : > { %1605 = vrot.lane.b32.xlu1 %v1586_v37, %s15729_s3  ;;  %1199 = vrot.lane.b32.xlu0 %v1170_v41, %s11800_s28  ;;  %v1588_v37 = vrot.slane %v924_v57, 6 }
  0x8d   : > { %1678 = vrot.lane.b32.xlu1 %v1664_v44, %s11803_s0  ;;  %1603 = vrot.lane.b32.xlu0 %v1583_v20, %s15729_s3  ;;  %v1174_v44 = vrot.slane %v1172_v29, 3  ;;  %v1177_v20 = vrot.slane %v1175_v27, 4 }
  0x8f   : > { %v1295_v24 = vpop.permute.xlu1 %1294 }
  0x91   : > { %1408 = vrot.lane.b32.xlu1 %v1375_v45, %s11801_s29  ;;  %1676 = vrot.lane.b32.xlu0 %v12078_v16, %s11803_s0  ;;  %v1055_v16 = vld [vmem:[#allocation2] sm:$0x18]  ;;  %v1538_v45 = vld [vmem:[#allocation2 + $0x48] sm:$0x6] }
  0x93   : > { %v1293_v50 = vpop.permute.xlu1 %1292  ;;  %v1017_v56 = vpop.permute.xlu0 %1016 }
  0x94   : > { %v1311_v52 = vsel %vm15724_vm5, %v1293_v50, %v1295_v24 }
  0x95   : > { %v1332_v58 = vsel %vm12262_vm6, %v1311_v52, %v1331_v47  ;;  %1032 = vrot.lane.b32.xlu1 %v1015_v30, %s15731_s6  ;;  %1406 = vrot.lane.b32.xlu0 %v1374_v49, %s11801_s29  ;;  %v1589_v49 = vor.u32 %v1588_v37, %v1587_v36  ;;  %v1368_v52 = vrot.slane %v1183_v5, 1 }
  0x96   : > { %1333 = vst [vmem:[#allocation2] sm:$0xc0] %v1332_v58 }
  0x97   : > { %v12290_v61 = vpop.permute.xlu1 %1296  ;;  %v1019_v62 = vpop.permute.xlu0 %1018 }
  0x98   : > { %v1312_v23 = vsel %vm15724_vm5, %v1295_v24, %v12290_v61  ;;  %v1035_v53 = vsel %vm15725_vm9, %v1017_v56, %v1019_v62  ;;  %v1178_v56 = vor.u32 %v1177_v20, %v1174_v44 }
  0x99   : > { %v1335_v19 = vsel %vm12262_vm6, %v1312_v23, %v1334_v54  ;;  %v1056_v40 = vsel %vm12283_vm10, %v1035_v53, %v1055_v16  ;;  %1308 = vrot.lane.b32.xlu1 %v1291_v31, %s11796_s2  ;;  %1030 = vrot.lane.b32.xlu0 %v1014_v60, %s15731_s6  ;;  %v981_v16 = vld [vmem:[#allocation2 + $0x8] sm:$0x6] }
  0x9a   : > { %1336 = vst [vmem:[#allocation2 + $0x8] sm:$0xc0] %v1335_v19  ;;  %1057 = vst [vmem:[#allocation2] sm:$0x18] %v1056_v40 }
  0x9b   : > { %v12307_v11 = vpop.permute.xlu1 %1504  ;;  %v12309_v12 = vpop.permute.xlu0 %1020 }
  0x9c   : > { %v1036_v18 = vsel %vm15725_vm9, %v1019_v62, %v12309_v12 }
  0x9d   : > { %v1059_v33 = vsel %vm12283_vm10, %v1036_v18, %v1058_v1  ;;  %1516 = vrot.lane.b32.xlu1 %v1499_v4, %s11798_s27  ;;  %1306 = vrot.lane.b32.xlu0 %v12100_v38, %s11796_s2  ;;  %v816_v38 = vld [vmem:[#allocation2 + $0x40] sm:$0x3]  ;;  %v10533_v1 = vpack.i.bf16 %v1368_v52, %v1367_v39  ;;  %s15766_s2 = sld [smem:[#allocation5_spill]] }
  0x9e   : > { %1060 = vst [vmem:[#allocation2 + $0x8] sm:$0x18] %v1059_v33  ;;  %v817_v41 = vsel %vm815_vm2, %v11995_v17, %v816_v38  ;;  %vm12352_vm2 = vmand %vm975_vm11, %vm15715_vm3  ;;  %vm15718_vm11 = vcmask 490496   ;;  %vm1629_vm3 = vcmask 1043458  }
  0x9f   : > { %v12333_v63 = vpop.permute.xlu1 %938  ;;  %v1503_v35 = vpop.permute.xlu0 %1502  ;;  %818 = vst [vmem:[#allocation2 + $0x40] sm:$0x3] %v817_v41 }
  0xa0   : > { %v1520_v28 = vsel %vm15722_vm13, %v1503_v35, %v12307_v11 }
  0xa1   : > { %v1542_v42 = vsel %vm12327_vm14, %v1520_v28, %v1541_v25  ;;  %952 = vrot.lane.b32.xlu1 %v927_v26, %s11799_s7  ;;  %1514 = vrot.lane.b32.xlu0 %v1498_v15, %s11798_s27  ;;  %v1455_v2 = vld [vmem:[#allocation2 + $0x8] sm:$0x80]  ;;  %v1226_v40 = vld [vmem:[#allocation2] sm:$0x30]  ;;  %v978_v26 = vld [vmem:[#allocation2] sm:$0x6]  ;;  %v1376_v15 = vor.u32 %v1367_v39, %v1172_v29  ;;  %v1377_v28 = vor.u32 %v1368_v52, %v1180_v3 }
  0xa2   : > { %1543 = vst [vmem:[#allocation2 + $0x50] sm:$0x6] %v1542_v42  ;;  %v1452_v29 = vld [vmem:[#allocation2] sm:$0x80]  ;;  %s11818_s27 = smov 29  }
  0xa3   : > { %v1190_v24 = vpop.permute.xlu1 %1189  ;;  %v1501_v47 = vpop.permute.xlu0 %1500 }
  0xa4   : > { %v1519_v30 = vsel %vm15722_vm13, %v1501_v47, %v1503_v35 }
  0xa5   : > { %v1539_v50 = vsel %vm12327_vm14, %v1519_v30, %v1538_v45  ;;  %1203 = vrot.lane.b32.xlu1 %v1186_v43, %s11800_s28  ;;  %950 = vrot.lane.b32.xlu0 %v919_v14, %s11799_s7  ;;  %v1229_v4 = vld [vmem:[#allocation2 + $0x8] sm:$0x30]  ;;  %v1707_v43 = vld [vmem:[#allocation2 + $0x50] sm:$0x30] }
  0xa6   : > { %1540 = vst [vmem:[#allocation2 + $0x48] sm:$0x6] %v1539_v50  ;;  %v1004_v31 = vld [vmem:[#allocation2 + $0x40] sm:$0x6] }
  0xa7   : > { %v12356_v57 = vpop.permute.xlu1 %10519  ;;  %v12358_v58 = vpop.permute.xlu0 %940 }
  0xa8   : > { %v10522_v60 = vunpack.i.h.bf16 %v12356_v57  ;;  %v10521_v62 = vunpack.i.l.bf16 %v12356_v57  ;;  %v958_v0 = vsel %vm15719_vm15, %v12333_v63, %v12358_v58 }
  0xa9   : > { %v982_v23 = vsel %vm12352_vm2, %v958_v0, %v981_v16  ;;  %1607 = vrot.lane.b32.xlu1 %v1589_v49, %s15729_s3  ;;  %1201 = vrot.lane.b32.xlu0 %v1178_v56, %s11800_s28  ;;  %v1635_v36 = vld [vmem:[#allocation2 + $0x50] sm:$0xc]  ;;  %v1704_v16 = vld [vmem:[#allocation2 + $0x48] sm:$0x30]  ;;  %s11821_s28 = smov 119  }
  0xaa   : > { %v1416_v19 = vsel %vm15727_vm4, %v10521_v62, %v10522_v60  ;;  %983 = vst [vmem:[#allocation2 + $0x8] sm:$0x6] %v982_v23  ;;  %v11805_v23 = vmov 65535  }
  0xab   : > { %v1456_v5 = vsel %vm12362_vm8, %v1416_v19, %v1455_v2  ;;  %v1188_v55 = vpop.permute.xlu1 %1187  ;;  %v12386_v10 = vpop.permute.xlu0 %1191 }
  0xac   : > { %1457 = vst [vmem:[#allocation2 + $0x8] sm:$0x80] %v1456_v5  ;;  %v1206_v13 = vsel %vm15718_vm11, %v1188_v55, %v1190_v24  ;;  %v1207_v48 = vsel %vm15718_vm11, %v1190_v24, %v12386_v10  ;;  %vm12410_vm11 = vmand %vm1629_vm3, %vm15721_vm7  ;;  %vm15726_vm3 = vcmask 1022976   ;;  %vm1762_vm7 = vcmask 1045504  }
  0xad   : > { %v1227_v18 = vsel %vm12377_vm1, %v1206_v13, %v1226_v40  ;;  %v1230_v25 = vsel %vm12377_vm1, %v1207_v48, %v1229_v4  ;;  %1680 = vrot.lane.b32.xlu1 %v12119_v46, %s11803_s0  ;;  %10534 = vrot.lane.b32.xlu0 %v10533_v1, %s11801_s29  ;;  %v1665_v46 = vcombine.low %v11995_v17, %v11995_v17  ;;  %v1632_v45 = vld [vmem:[#allocation2 + $0x48] sm:$0xc]  ;;  %v1061_v40 = vld [vmem:[#allocation2 + $0x10] sm:$0x18]  ;;  %v1064_v4 = vld [vmem:[#allocation2 + $0x18] sm:$0x18] }
  0xae   : > { %1228 = vst [vmem:[#allocation2] sm:$0x30] %v1227_v18  ;;  %1231 = vst [vmem:[#allocation2 + $0x8] sm:$0x30] %v1230_v25 }
  0xaf   : > { %v1596_v32 = vpop.permute.xlu1 %1595  ;;  %v937_v33 = vpop.permute.xlu0 %936 }
  0xb0   : > { %v957_v21 = vsel %vm15719_vm15, %v937_v33, %v12333_v63  ;;  %vm12416_vm15 = vmand %vm1223_vm0, %vm15720_vm12  ;;  %vm15728_vm0 = vcmask 769024   ;;  %vm1761_vm12 = vcmask 1044480   ;;  %v1337_v33 = vld [vmem:[#allocation2 + $0x10] sm:$0xc0] }
  0xb1   : > { %v979_v27 = vsel %vm12352_vm2, %v957_v21, %v978_v26  ;;  %1410 = vrot.lane.b32.xlu1 %v1376_v15, %s11801_s29  ;;  %1609 = vrot.lane.b32.xlu0 %v12172_v7, %s15729_s3  ;;  %v1763_v1 = vsel %vm1761_vm12, 4294967295, %v11805_v23  ;;  %v1340_v21 = vld [vmem:[#allocation2 + $0x18] sm:$0xc0]  ;;  %vm15723_vm12 = vcmask 220160   ;;  %s11817_s3 = smov 75  }
  0xb2   : > { %980 = vst [vmem:[#allocation2] sm:$0x6] %v979_v27  ;;  %v12457_v5 = vsel %vm1762_vm7, %v1763_v1, 0  ;;  %vm15767_vm7 = vcmask 244736  }
  0xb3   : > { %v1669_v35 = vpop.permute.xlu1 %1668  ;;  %v1379_v14 = vpop.permute.xlu0 %1378 }
  0xb4   : > { %v1415_v7 = vsel %vm15727_vm4, %v1379_v14, %v10521_v62 }
  0xb5   : > { %v1453_v17 = vsel %vm12362_vm8, %v1415_v7, %v1452_v29  ;;  %954 = vrot.lane.b32.xlu1 %v12174_v9, %s11799_s7  ;;  %1682 = vrot.lane.b32.xlu0 %v1665_v46, %s11803_s0  ;;  %v1734_v38 = vld [vmem:[#allocation2 + $0x8] sm:$0xff]  ;;  %v1751_v9 = vld [vmem:[%s15765_s5] sm:$0xff]  ;;  %v1544_v7 = vld [vmem:[#allocation2 + $0x58] sm:$0x6]  ;;  %s11810_s0 = smov 61   ;;  %s11812_s5 = smov 28  }
  0xb6   : > { %1454 = vst [vmem:[#allocation2] sm:$0x80] %v1453_v17  ;;  %1792 = vmatprep.subr.bf16.mxu0 %v1734_v38  ;;  %v1547_v17 = vld [vmem:[#allocation2 + $0x60] sm:$0x6]  ;;  %s15827_s7 = sld [smem:[#allocation7_spill]] }
  0xb7   : > { %v1399_v37 = vpop.permute.xlu1 %1398  ;;  %v12428_v41 = vpop.permute.xlu0 %1597 }
  0xb8   : > { %v1613_v42 = vsel %vm15726_vm3, %v1596_v32, %v12428_v41 }
  0xb9   : > { %v1636_v44 = vsel %vm12410_vm11, %v1613_v42, %v1635_v36  ;;  %1412 = vrot.lane.b32.xlu0 %v1377_v28, %s11801_s29  ;;  %s11814_s29 = smov 110  }
  0xba   : > { %1637 = vst [vmem:[#allocation2 + $0x50] sm:$0xc] %v1636_v44 }
  0xbb   : > { %v1594_v8 = vpop.permute.xlu1 %1593  ;;  %v12438_v3 = vpop.permute.xlu0 %1670 }
  0xbc   : > { %v1612_v20 = vsel %vm15726_vm3, %v1594_v8, %v1596_v32  ;;  %v1686_v24 = vsel %vm15728_vm0, %v1669_v35, %v12438_v3  ;;  %v987_v8 = vld [vmem:[#allocation2 + $0x18] sm:$0x6] }
  0xbd   : > { %v1633_v47 = vsel %vm12410_vm11, %v1612_v20, %v1632_v45  ;;  %v1708_v30 = vsel %vm12416_vm15, %v1686_v24, %v1707_v43  ;;  %v1733_v49 = vld [vmem:[#allocation2] sm:$0xff]  ;;  %1754 = vperm.xlu0 %10538, %v1751_v9  }
  0xbe   : > { %1634 = vst [vmem:[#allocation2 + $0x48] sm:$0xc] %v1633_v47  ;;  %1709 = vst [vmem:[#allocation2 + $0x50] sm:$0x30] %v1708_v30  ;;  %1793 = vmatpush1.bf16.msra.mxu0 %v1733_v49  ;;  %v12490_v43 = vld [vmem:[%s15766_s2] sm:$0xf] }
  0xbf   : > { %v1397_v50 = vpop.permute.xlu1 %1396  ;;  %v12447_v56 = vpop.permute.xlu0 %1400 }
  0xc0   : > { %v1423_v39 = vsel %vm15727_vm4, %v1397_v50, %v1399_v37  ;;  %v1424_v52 = vsel %vm15727_vm4, %v1399_v37, %v12447_v56 }
  0xc1   : > { %1481 = vst [vmem:[#allocation2 + $0x48] sm:$0x1] %v1423_v39  ;;  %1482 = vst [vmem:[#allocation2 + $0x50] sm:$0x1] %v1424_v52 }
  0xc3   : > { %v12452_v62 = vpop.permute.xlu1 %1024  ;;  %v1667_v0 = vpop.permute.xlu0 %1666 }
  0xc4   : > { %v1685_v2 = vsel %vm15728_vm0, %v1667_v0, %v1669_v35 }
  0xc5   : > { %v1705_v19 = vsel %vm12416_vm15, %v1685_v2, %v1704_v16 }
  0xc6   : > { %1706 = vst [vmem:[#allocation2 + $0x48] sm:$0x30] %v1705_v19 }
  0xc7   : > { %v12459_v55 = vpop.permute.xlu1 %1300  ;;  %v1023_v13 = vpop.permute.xlu0 %1022 }
  0xc8   : > { %v1037_v48 = vsel %vm15725_vm9, %v12309_v12, %v1023_v13  ;;  %v1038_v18 = vsel %vm15725_vm9, %v1023_v13, %v12452_v62  ;;  %v1743_v25 = vld [vmem:[#allocation2 + $0x50] sm:$0x3f] }
  0xc9   : > { %v1062_v26 = vsel %vm12283_vm10, %v1037_v48, %v1061_v40  ;;  %v1065_v15 = vsel %vm12283_vm10, %v1038_v18, %v1064_v4  ;;  %v1769_v32 = vand.u32 %v12457_v5, %v1743_v25  ;;  %v1710_v40 = vld [vmem:[#allocation2 + $0x58] sm:$0x30] }
  0xca   : > { %1063 = vst [vmem:[#allocation2 + $0x10] sm:$0x18] %v1062_v26  ;;  %1066 = vst [vmem:[#allocation2 + $0x18] sm:$0x18] %v1065_v15 }
  0xcb   : > { %v12470_v27 = vpop.permute.xlu1 %1508  ;;  %1794 = vmatprep.subr.bf16.mxu0 %v1769_v32  ;;  %v1299_v12 = vpop.permute.xlu0 %1298 }
  0xcc   : > { %v1313_v46 = vsel %vm15724_vm5, %v12290_v61, %v1299_v12  ;;  %v1314_v29 = vsel %vm15724_vm5, %v1299_v12, %v12459_v55 }
  0xcd   : > { %v1338_v35 = vsel %vm12262_vm6, %v1313_v46, %v1337_v33  ;;  %v1341_v14 = vsel %vm12262_vm6, %v1314_v29, %v1340_v21  ;;  %v1742_v38 = vld [vmem:[#allocation2 + $0x48] sm:$0x3f] }
  0xce   : > { %1339 = vst [vmem:[#allocation2 + $0x10] sm:$0xc0] %v1338_v35  ;;  %1342 = vst [vmem:[#allocation2 + $0x18] sm:$0xc0] %v1341_v14  ;;  %v1766_v28 = vand.u32 %v12457_v5, %v1742_v38  ;;  %v1067_v35 = vld [vmem:[#allocation2 + $0x20] sm:$0x18] }
  0xcf   : > { %v12481_v36 = vpop.permute.xlu1 %944  ;;  %v1507_v37 = vpop.permute.xlu0 %1506  ;;  %v1713_v14 = vld [vmem:[#allocation2 + $0x60] sm:$0x30] }
  0xd0   : > { %v1521_v61 = vsel %vm15722_vm13, %v12307_v11, %v1507_v37  ;;  %v1522_v42 = vsel %vm15722_vm13, %v1507_v37, %v12470_v27  ;;  %1795 = vmatpush1.bf16.msra.mxu0 %v1766_v28  ;;  %v984_v11 = vld [vmem:[#allocation2 + $0x10] sm:$0x6]  ;;  %vm15768_vm13 = vmmov %vm15767_vm7 }
  0xd1   : > { %v1545_v9 = vsel %vm12327_vm14, %v1521_v61, %v1544_v7  ;;  %v1548_v44 = vsel %vm12327_vm14, %v1522_v42, %v1547_v17  ;;  %v1232_v50 = vld [vmem:[#allocation2 + $0x10] sm:$0x30]  ;;  %v1235_v39 = vld [vmem:[#allocation2 + $0x18] sm:$0x30] }
  0xd2   : > { %1546 = vst [vmem:[#allocation2 + $0x58] sm:$0x6] %v1545_v9  ;;  %1549 = vst [vmem:[#allocation2 + $0x60] sm:$0x6] %v1548_v44 }
  0xd3   : > { %v12496_v20 = vpop.permute.xlu1 %1195  ;;  %9385 = vmatmul.mubr.msk.bf16.vlgmr.msra.gmra.mrb[0].mxu0 %vm15723_vm12, %v12490_v43  ;;  %v943_v45 = vpop.permute.xlu0 %942 }
  0xd4   : > { %v959_v24 = vsel %vm15767_vm7, %v12358_v58, %v943_v45  ;;  %v960_v47 = vsel %vm15768_vm13, %v943_v45, %v12481_v36  ;;  %1906 = vmatprep.mubr.bf16.mxu0 %v11804_v51  ;;  %vm15769_vm7 = vcmask 490496  }
  0xd5   : > { %v985_v30 = vsel %vm12352_vm2, %v959_v24, %v984_v11  ;;  %v988_v49 = vsel %vm12352_vm2, %v960_v47, %v987_v8  ;;  %vm15770_vm13 = vmmov %vm15769_vm7  ;;  %v1458_v18 = vld [vmem:[#allocation2 + $0x10] sm:$0x80]  ;;  %v1550_v24 = vld [vmem:[#allocation2 + $0x68] sm:$0x6] }
  0xd6   : > { %986 = vst [vmem:[#allocation2 + $0x10] sm:$0x6] %v985_v30  ;;  %989 = vst [vmem:[#allocation2 + $0x18] sm:$0x6] %v988_v49  ;;  %v1070_v47 = vld [vmem:[#allocation2 + $0x28] sm:$0x18] }
  0xd7   : > { %v1600_v52 = vpop.permute.xlu1 %1599  ;;  %v1194_v16 = vpop.permute.xlu0 %1193 }
  0xd8   : > { %v1614_v58 = vsel %vm15726_vm3, %v12428_v41, %v1600_v52  ;;  %v1208_v0 = vsel %vm15769_vm7, %v12386_v10, %v1194_v16  ;;  %v1209_v23 = vsel %vm15770_vm13, %v1194_v16, %v12496_v20  ;;  %v1461_v41 = vld [vmem:[#allocation2 + $0x18] sm:$0x80]  ;;  %vm15771_vm7 = vcmask 777216   ;;  %v1346_v16 = vld [vmem:[#allocation2 + $0x28] sm:$0xc0] }
  0xd9   : > { %v1638_v1 = vld [vmem:[#allocation2 + $0x58] sm:$0xc]  ;;  %v1233_v2 = vsel %vm12377_vm1, %v1208_v0, %v1232_v50  ;;  %v1236_v19 = vsel %vm12377_vm1, %v1209_v23, %v1235_v39  ;;  %v1641_v15 = vld [vmem:[#allocation2 + $0x60] sm:$0xc]  ;;  %vm15772_vm13 = vcmask 244736  }
  0xda   : > { %v1639_v4 = vsel %vm12410_vm11, %v1614_v58, %v1638_v1  ;;  %1234 = vst [vmem:[#allocation2 + $0x10] sm:$0x30] %v1233_v2  ;;  %1237 = vst [vmem:[#allocation2 + $0x18] sm:$0x30] %v1236_v19 }
  0xdb   : > { %1640 = vst [vmem:[#allocation2 + $0x58] sm:$0xc] %v1639_v4  ;;  %v1673_v13 = vpop.permute.xlu1 %1672  ;;  %v12521_v10 = vpop.permute.xlu0 %10524 }
  0xdc   : > { %v1687_v48 = vsel %vm15728_vm0, %v12438_v3, %v1673_v13  ;;  %v10527_v25 = vunpack.i.h.bf16 %v12521_v10  ;;  %v10526_v26 = vunpack.i.l.bf16 %v12521_v10 }
  0xdd   : > { %v1711_v32 = vsel %vm12416_vm15, %v1687_v48, %v1710_v40 }
  0xde   : > { %1712 = vst [vmem:[#allocation2 + $0x58] sm:$0x30] %v1711_v32  ;;  %v1417_v33 = vsel %vm15727_vm4, %v10522_v60, %v10526_v26  ;;  %v1418_v21 = vsel %vm15727_vm4, %v10526_v26, %v10527_v25 }
  0xdf   : > { %v1459_v3 = vsel %vm12362_vm8, %v1417_v33, %v1458_v18  ;;  %v1462_v12 = vsel %vm12362_vm8, %v1418_v21, %v1461_v41  ;;  %v1403_v46 = vpop.permute.xlu1 %1402  ;;  %v12539_v29 = vpop.permute.xlu0 %1601 }
  0xe0   : > { %1460 = vst [vmem:[#allocation2 + $0x10] sm:$0x80] %v1459_v3  ;;  %1463 = vst [vmem:[#allocation2 + $0x18] sm:$0x80] %v1462_v12  ;;  %v1425_v57 = vsel %vm15727_vm4, %v12447_v56, %v1403_v46  ;;  %v1615_v60 = vsel %vm15726_vm3, %v1600_v52, %v12539_v29  ;;  %v1343_v56 = vld [vmem:[#allocation2 + $0x20] sm:$0xc0] }
  0xe1   : > { %1483 = vst [vmem:[#allocation2 + $0x58] sm:$0x1] %v1425_v57  ;;  %v1642_v7 = vsel %vm12410_vm11, %v1615_v60, %v1641_v15  ;;  %v990_v52 = vld [vmem:[#allocation2 + $0x20] sm:$0x6]  ;;  %v993_v12 = vld [vmem:[#allocation2 + $0x28] sm:$0x6] }
  0xe2   : > { %1643 = vst [vmem:[#allocation2 + $0x60] sm:$0xc] %v1642_v7 }
  0xe3   : > { %v1027_v17 = vpop.permute.xlu1 %1026  ;;  %v12547_v38 = vpop.permute.xlu0 %1674 }
  0xe4   : > { %v1039_v28 = vsel %vm15725_vm9, %v12452_v62, %v1027_v17  ;;  %v1688_v37 = vsel %vm15728_vm0, %v1673_v13, %v12547_v38  ;;  %v1553_v13 = vld [vmem:[#allocation2 + $0x70] sm:$0x6] }
  0xe5   : > { %v1068_v61 = vsel %vm12283_vm10, %v1039_v28, %v1067_v35  ;;  %v1714_v42 = vsel %vm12416_vm15, %v1688_v37, %v1713_v14 }
  0xe6   : > { %1069 = vst [vmem:[#allocation2 + $0x20] sm:$0x18] %v1068_v61  ;;  %1715 = vst [vmem:[#allocation2 + $0x60] sm:$0x30] %v1714_v42 }
  0xe7   : > { %v1303_v9 = vpop.permute.xlu1 %1302  ;;  %v12557_v44 = vpop.permute.xlu0 %1404  ;;  %v1736_v8 = vld [vmem:[#allocation2 + $0x18] sm:$0xff]  ;;  %v1735_v11 = vld [vmem:[#allocation2 + $0x10] sm:$0xff] }
  0xe8   : > { %v1315_v62 = vsel %vm15724_vm5, %v12459_v55, %v1303_v9  ;;  %v1426_v45 = vsel %vm15727_vm4, %v1403_v46, %v12557_v44  ;;  %1833 = vmatprep.subr.bf16.mxu1 %v1736_v8  ;;  %v1744_v23 = vld [vmem:[#allocation2 + $0x58] sm:$0x3f] }
  0xe9   : > { %v1344_v30 = vsel %vm12262_vm6, %v1315_v62, %v1343_v56  ;;  %1484 = vst [vmem:[#allocation2 + $0x60] sm:$0x1] %v1426_v45  ;;  %1834 = vmatpush1.bf16.msra.mxu1 %v1735_v11  ;;  %v1772_v26 = vand.u32 %v12457_v5, %v1744_v23  ;;  %v1081_v23 = vld [vmem:[#allocation2 + $0x40] sm:$0x18] }
  0xea   : > { %1345 = vst [vmem:[#allocation2 + $0x20] sm:$0xc0] %v1344_v30 }
  0xeb   : > { %v1511_v49 = vpop.permute.xlu1 %1510  ;;  %v12565_v50 = vpop.permute.xlu0 %1028 }
  0xec   : > { %v1523_v39 = vsel %vm15771_vm7, %v12470_v27, %v1511_v49  ;;  %v1040_v55 = vsel %vm15725_vm9, %v1027_v17, %v12565_v50  ;;  %vm15773_vm7 = vcmask 490496  }
  0xed   : > { %v1551_v58 = vsel %vm12327_vm14, %v1523_v39, %v1550_v24  ;;  %v1071_v0 = vsel %vm12283_vm10, %v1040_v55, %v1070_v47  ;;  %v1238_v18 = vld [vmem:[#allocation2 + $0x20] sm:$0x30]  ;;  %v1716_v39 = vld [vmem:[#allocation2 + $0x68] sm:$0x30]  ;;  %v1719_v55 = vld [vmem:[#allocation2 + $0x70] sm:$0x30] }
  0xee   : > { %1552 = vst [vmem:[#allocation2 + $0x68] sm:$0x6] %v1551_v58  ;;  %1072 = vst [vmem:[#allocation2 + $0x28] sm:$0x18] %v1071_v0 }
  0xef   : > { %v947_v1 = vpop.permute.xlu1 %946  ;;  %v12575_v2 = vpop.permute.xlu0 %1304 }
  0xf0   : > { %v961_v27 = vsel %vm15772_vm13, %v12481_v36, %v947_v1  ;;  %v1316_v19 = vsel %vm15724_vm5, %v1303_v9, %v12575_v2  ;;  %v1745_v40 = vld [vmem:[#allocation2 + $0x60] sm:$0x3f]  ;;  %vm15774_vm13 = vcmask 777216  }
  0xf1   : > { %v991_v4 = vsel %vm12352_vm2, %v961_v27, %v990_v52  ;;  %v1347_v41 = vsel %vm12262_vm6, %v1316_v19, %v1346_v16  ;;  %v1775_v48 = vand.u32 %v12457_v5, %v1745_v40 }
  0xf2   : > { %992 = vst [vmem:[#allocation2 + $0x20] sm:$0x6] %v991_v4  ;;  %1348 = vst [vmem:[#allocation2 + $0x28] sm:$0xc0] %v1347_v41 }
  0xf3   : > { %v1198_v15 = vpop.permute.xlu1 %1197  ;;  %v12587_v36 = vpop.permute.xlu0 %1512  ;;  %1835 = vmatprep.subr.bf16.mxu1 %v1775_v48 }
  0xf4   : > { %v1210_v32 = vsel %vm15773_vm7, %v12496_v20, %v1198_v15  ;;  %v1524_v33 = vsel %vm15774_vm13, %v1511_v49, %v12587_v36  ;;  %1836 = vmatpush1.bf16.msra.mxu1 %v1772_v26  ;;  %v1464_v20 = vld [vmem:[#allocation2 + $0x20] sm:$0x80]  ;;  %vm15775_vm7 = vcmask 244736   ;;  %vm1079_vm13 = vcmask 258051  }
  0xf5   : > { %v1239_v21 = vsel %vm12377_vm1, %v1210_v32, %v1238_v18  ;;  %v1554_v3 = vsel %vm12327_vm14, %v1524_v33, %v1553_v13  ;;  %v1241_v7 = vld [vmem:[#allocation2 + $0x28] sm:$0x30]  ;;  %v1644_v45 = vld [vmem:[#allocation2 + $0x68] sm:$0xc]  ;;  %v1357_v18 = vld [vmem:[#allocation2 + $0x40] sm:$0xc0] }
  0xf6   : > { %1240 = vst [vmem:[#allocation2 + $0x20] sm:$0x30] %v1239_v21  ;;  %1555 = vst [vmem:[#allocation2 + $0x70] sm:$0x6] %v1554_v3  ;;  %v1073_v33 = vld [vmem:[#allocation2 + $0x30] sm:$0x18] }
  0xf7   : > { %v12597_v46 = vpop.permute.xlu1 %10529  ;;  %v12599_v57 = vpop.permute.xlu0 %948  ;;  %9386 = vmatmul.mubr.msk.bf16.vlgmr.msra.gmra.mrb[0].mxu1 %vm15723_vm12, %v12490_v43  ;;  %vm15777_vm12 = vsmask.f32 4352  ;;  %v1076_v21 = vld [vmem:[#allocation2 + $0x38] sm:$0x18] }
  0xf8   : > { %v10532_v60 = vunpack.i.h.bf16 %v12597_v46  ;;  %v10531_v35 = vunpack.i.l.bf16 %v12597_v46  ;;  %v962_v14 = vsel %vm15775_vm7, %v947_v1, %v12599_v57  ;;  %1947 = vmatprep.mubr.bf16.mxu1 %v11804_v51  ;;  %vm15776_vm7 = vcmask 490496   ;;  %vm12629_vm5 = vmand %vm1079_vm13, %vm15777_vm12 }
  0xf9   : > { %v1467_v17 = vld [vmem:[#allocation2 + $0x28] sm:$0x80]  ;;  %v994_v28 = vsel %vm12352_vm2, %v962_v14, %v993_v12  ;;  %vm1002_vm12 = vcmask 256001   ;;  %vm15780_vm13 = vsmask.f32 7424 }
  0xfa   : > { %v1419_v37 = vsel %vm15727_vm4, %v10527_v25, %v10531_v35  ;;  %v1420_v56 = vsel %vm15727_vm4, %v10531_v35, %v10532_v60  ;;  %995 = vst [vmem:[#allocation2 + $0x28] sm:$0x6] %v994_v28 }
  0xfb   : > { %v1465_v61 = vsel %vm12362_vm8, %v1419_v37, %v1464_v20  ;;  %v1468_v42 = vsel %vm12362_vm8, %v1420_v56, %v1467_v17  ;;  %v12620_v9 = vpop.permute.xlu1 %1605  ;;  %v12622_v8 = vpop.permute.xlu0 %1199  ;;  %v1563_v20 = vld [vmem:[#allocation2 + $0x88] sm:$0x6]  ;;  %v1352_v17 = vld [vmem:[#allocation2 + $0x38] sm:$0xc0] }
  0xfc   : > { %1466 = vst [vmem:[#allocation2 + $0x20] sm:$0x80] %v1465_v61  ;;  %1469 = vst [vmem:[#allocation2 + $0x28] sm:$0x80] %v1468_v42  ;;  %v1211_v10 = vsel %vm15776_vm7, %v1198_v15, %v12622_v8  ;;  %vm1355_vm7 = vcmask 261126  }
  0xfd   : > { %v1242_v25 = vsel %vm12377_vm1, %v1211_v10, %v1241_v7  ;;  %v1647_v11 = vld [vmem:[#allocation2 + $0x70] sm:$0xc]  ;;  %vm12646_vm9 = vmand %vm1355_vm7, %vm15780_vm13 }
  0xfe   : > { %1243 = vst [vmem:[#allocation2 + $0x28] sm:$0x30] %v1242_v25  ;;  %v1556_v25 = vld [vmem:[#allocation2 + $0x78] sm:$0x6] }
  0xff   : > { %v12633_v24 = vpop.permute.xlu1 %1678  ;;  %v1604_v47 = vpop.permute.xlu0 %1603 }
 0x100   : > { %v1616_v30 = vsel %vm15726_vm3, %v12539_v29, %v1604_v47  ;;  %v1617_v49 = vsel %vm15726_vm3, %v1604_v47, %v12620_v9  ;;  %vm15783_vm3 = vsmask.f32 2304 }
 0x101   : > { %v1645_v52 = vsel %vm12410_vm11, %v1616_v30, %v1644_v45  ;;  %v1648_v16 = vsel %vm12410_vm11, %v1617_v49, %v1647_v11  ;;  %vm12660_vm7 = vmand %vm1002_vm12, %vm15783_vm3  ;;  %vm15786_vm3 = vcmask 1039360   ;;  %v1559_v11 = vld [vmem:[#allocation2 + $0x80] sm:$0x6] }
 0x102   : > { %1646 = vst [vmem:[#allocation2 + $0x68] sm:$0xc] %v1645_v52  ;;  %1649 = vst [vmem:[#allocation2 + $0x70] sm:$0xc] %v1648_v16  ;;  %v996_v16 = vld [vmem:[#allocation2 + $0x30] sm:$0x6] }
 0x103   : > { %v12643_v58 = vpop.permute.xlu1 %1408  ;;  %v1677_v0 = vpop.permute.xlu0 %1676  ;;  %v1737_v19 = vld [vmem:[#allocation2 + $0x20] sm:$0xff] }
 0x104   : > { %v1689_v1 = vsel %vm15728_vm0, %v12547_v38, %v1677_v0  ;;  %v1690_v27 = vsel %vm15728_vm0, %v1677_v0, %v12633_v24  ;;  %vm11807_vm0 = vmmov 0  }
 0x105   : > { %v1717_v40 = vsel %vm12416_vm15, %v1689_v1, %v1716_v39  ;;  %v1720_v4 = vsel %vm12416_vm15, %v1690_v27, %v1719_v55  ;;  %v1738_v41 = vld [vmem:[#allocation2 + $0x28] sm:$0xff] }
 0x106   : > { %1718 = vst [vmem:[#allocation2 + $0x68] sm:$0x30] %v1717_v40  ;;  %1721 = vst [vmem:[#allocation2 + $0x70] sm:$0x30] %v1720_v4  ;;  %1874 = vmatprep.subr.bf16.mxu0 %v1738_v41 }
 0x107   : > { %v1033_v38 = vpop.permute.xlu1 %1032  ;;  %v1407_v48 = vpop.permute.xlu0 %1406  ;;  %1875 = vmatpush1.bf16.msra.mxu0 %v1737_v19 }
 0x108   : > { %v1082_v26 = vsel %vm12629_vm5, %v1033_v38, %v1081_v23  ;;  %v1427_v15 = vsel %vm15727_vm4, %v12557_v44, %v1407_v48  ;;  %v1428_v32 = vsel %vm15727_vm4, %v1407_v48, %v12643_v58  ;;  %vm15787_vm5 = vmmov %vm15786_vm3  ;;  %v1349_v44 = vld [vmem:[#allocation2 + $0x30] sm:$0xc0]  ;;  %v10559_v48 = vld [vmem:[%s15693_s11 + $0x5c] ss:$40 sps:$4 sm:$0xff]  }
 0x109   : > { %1083 = vst [vmem:[#allocation2 + $0x40] sm:$0x18] %v1082_v26  ;;  %1485 = vst [vmem:[#allocation2 + $0x68] sm:$0x1] %v1427_v15 }
 0x10a   : > { %1486 = vst [vmem:[#allocation2 + $0x70] sm:$0x1] %v1428_v32 }
 0x10b   : > { %v1309_v3 = vpop.permute.xlu1 %1308  ;;  %v1031_v12 = vpop.permute.xlu0 %1030 }
 0x10c   : > { %v1358_v35 = vsel %vm12646_vm9, %v1309_v3, %v1357_v18  ;;  %v1041_v14 = vsel %vm15786_vm3, %v12565_v50, %v1031_v12  ;;  %v1042_v7 = vsel %vm15787_vm5, %v1031_v12, %v1033_v38  ;;  %vm15788_vm9 = vcmask 736256  }
 0x10d   : > { %1359 = vst [vmem:[#allocation2 + $0x40] sm:$0xc0] %v1358_v35  ;;  %v1074_v28 = vsel %vm12283_vm10, %v1041_v14, %v1073_v33  ;;  %v1077_v37 = vsel %vm12283_vm10, %v1042_v7, %v1076_v21  ;;  %vm15789_vm13 = vmmov %vm15788_vm9  ;;  %vm1250_vm10 = vcmask 259076   ;;  %v1722_v33 = vld [vmem:[#allocation2 + $0x78] sm:$0x30] }
 0x10e   : > { %1075 = vst [vmem:[#allocation2 + $0x30] sm:$0x18] %v1074_v28  ;;  %1078 = vst [vmem:[#allocation2 + $0x38] sm:$0x18] %v1077_v37  ;;  %v10574_v35 = vld [vmem:[%s15693_s11 + $0x144] ss:$40 sps:$4 sm:$0xff]  }
 0x10f   : > { %v1517_v56 = vpop.permute.xlu1 %1516  ;;  %v1307_v61 = vpop.permute.xlu0 %1306  ;;  %v10580_v7 = vld [vmem:[%s15693_s11 + $0x194] ss:$40 sps:$4 sm:$0xff]  }
 0x110   : > { %v1564_v42 = vsel %vm12660_vm7, %v1517_v56, %v1563_v20  ;;  %v1317_v50 = vsel %vm15788_vm9, %v12575_v2, %v1307_v61  ;;  %v1318_v10 = vsel %vm15789_vm13, %v1307_v61, %v1309_v3  ;;  %v1746_v45 = vld [vmem:[#allocation2 + $0x68] sm:$0x3f]  ;;  %vm15790_vm7 = vcmask 777216   ;;  %v1252_v1 = vld [vmem:[#allocation2 + $0x40] sm:$0x30] }
 0x111   : > { %v1747_v62 = vld [vmem:[#allocation2 + $0x70] sm:$0x3f]  ;;  %1565 = vst [vmem:[#allocation2 + $0x88] sm:$0x6] %v1564_v42  ;;  %v1350_v59 = vsel %vm12262_vm6, %v1317_v50, %v1349_v44  ;;  %v1353_v47 = vsel %vm12262_vm6, %v1318_v10, %v1352_v17  ;;  %v1778_v49 = vand.u32 %v12457_v5, %v1746_v45  ;;  %vm15791_vm3 = vmmov %vm15790_vm7  ;;  %vm15792_vm6 = vsmask.f32 7954 }
 0x112   : > { %v1781_v30 = vand.u32 %v12457_v5, %v1747_v62  ;;  %1351 = vst [vmem:[#allocation2 + $0x30] sm:$0xc0] %v1350_v59  ;;  %1354 = vst [vmem:[#allocation2 + $0x38] sm:$0xc0] %v1353_v47  ;;  %vm1476_vm9 = vcmask 261127   ;;  %vm1656_vm13 = vcmask 257026  }
 0x113   : > { %v12690_v2 = vpop.permute.xlu1 %952  ;;  %v1515_v39 = vpop.permute.xlu0 %1514  ;;  %vm12701_vm5 = vmand %vm1250_vm10, %vm15792_vm6  ;;  %vm15798_vm6 = vsmask.f32 7966  ;;  %v1729_v59 = vld [vmem:[#allocation2 + $0x88] sm:$0x30] }
 0x114   : > { %1876 = vmatprep.subr.bf16.mxu0 %v1781_v30  ;;  %v1525_v55 = vsel %vm15790_vm7, %v12587_v36, %v1515_v39  ;;  %v1526_v52 = vsel %vm15791_vm3, %v1515_v39, %v1517_v56  ;;  %v11806_v36 = vmov 0.0   ;;  %vm15795_vm7 = vcmask 220160   ;;  %vm12715_vm4 = vmand %vm1476_vm9, %vm15798_vm6  ;;  %v1478_v20 = vld [vmem:[#allocation2 + $0x40] sm:$0x80] }
 0x115   : > { %1877 = vmatpush1.bf16.msra.mxu0 %v1778_v49  ;;  %v1557_v0 = vsel %vm12327_vm14, %v1525_v55, %v1556_v25  ;;  %v1560_v23 = vsel %vm12327_vm14, %v1526_v52, %v1559_v11  ;;  %vm15796_vm14 = vcmask 244736   ;;  %v1247_v38 = vld [vmem:[#allocation2 + $0x38] sm:$0x30]  ;;  %vm15804_vm9 = vcmask 1022976   ;;  %v1725_v49 = vld [vmem:[#allocation2 + $0x80] sm:$0x30] }
 0x116   : > { %10302 = vmatprep.subr.bf16.mxu0 %v11806_v36  ;;  %1558 = vst [vmem:[#allocation2 + $0x78] sm:$0x6] %v1557_v0  ;;  %1561 = vst [vmem:[#allocation2 + $0x80] sm:$0x6] %v1560_v23  ;;  %vm15810_vm6 = vsmask.f32 7942 }
 0x117   : > { %v1204_v27 = vpop.permute.xlu1 %1203  ;;  %v951_v19 = vpop.permute.xlu0 %950  ;;  %vm15797_vm3 = vmmov %vm15796_vm14 }
 0x118   : > { %9387 = vmatmul.mubr.msk.bf16.vlgmr.msra.gmra.mrb[4].mxu0 %vm15795_vm7, %v12490_v43  ;;  %v1253_v6 = vsel %vm12701_vm5, %v1204_v27, %v1252_v1  ;;  %v963_v40 = vsel %vm15796_vm14, %v12599_v57, %v951_v19  ;;  %v964_v4 = vsel %vm15797_vm3, %v951_v19, %v12690_v2  ;;  %v1244_v57 = vld [vmem:[#allocation2 + $0x30] sm:$0x30]  ;;  %vm15801_vm5 = vsmask.f32 7946  ;;  %v1658_v17 = vld [vmem:[#allocation2 + $0x88] sm:$0xc] }
 0x119   : > { %10306 = vmatprep.mubr.msk.bf16.mxu0 %vm11807_vm0, %v11806_v36  ;;  %1254 = vst [vmem:[#allocation2 + $0x40] sm:$0x30] %v1253_v6  ;;  %v997_v43 = vsel %vm12352_vm2, %v963_v40, %v996_v16  ;;  %v1000_v13 = vsel %vm12352_vm2, %v964_v4, %v999_v34  ;;  %vm12727_vm7 = vmand %vm1656_vm13, %vm15801_vm5  ;;  %vm15805_vm14 = vcmask 490496   ;;  %vm15807_vm2 = vsmask.f32 5376 }
 0x11a   : > { %998 = vst [vmem:[#allocation2 + $0x30] sm:$0x6] %v997_v43  ;;  %1001 = vst [vmem:[#allocation2 + $0x38] sm:$0x6] %v1000_v13  ;;  %v1473_v14 = vld [vmem:[#allocation2 + $0x38] sm:$0x80] }
 0x11b   : > { %v1608_v18 = vpop.permute.xlu1 %1607  ;;  %v1202_v26 = vpop.permute.xlu0 %1201  ;;  %vm15806_vm3 = vmmov %vm15805_vm14  ;;  %v10550_v19 = vld [vmem:[%s15693_s11 + $0x4] ss:$40 sps:$4 sm:$0xff]   ;;  %v10548_v13 = vld [vmem:[%s15693_s11] ss:$40 sps:$4 sm:$0xff]  }
 0x11c   : > { %v1618_v15 = vsel %vm15804_vm9, %v12620_v9, %v1608_v18  ;;  %v1212_v32 = vsel %vm15805_vm14, %v12622_v8, %v1202_v26  ;;  %v1213_v54 = vsel %vm15806_vm3, %v1202_v26, %v1204_v27  ;;  %vm12742_vm13 = vmand %vm1250_vm10, %vm15807_vm2  ;;  %v1470_v8 = vld [vmem:[#allocation2 + $0x30] sm:$0x80]  ;;  %v10557_v26 = vld [vmem:[%s15693_s11 + $0x58] ss:$40 sps:$4 sm:$0xff]   ;;  %vm6028_vm2 = vcmask 261120  }
 0x11d   : > { %v1650_v21 = vld [vmem:[#allocation2 + $0x78] sm:$0xc]  ;;  %v1245_v3 = vsel %vm12377_vm1, %v1212_v32, %v1244_v57  ;;  %v1248_v12 = vsel %vm12377_vm1, %v1213_v54, %v1247_v38  ;;  %vm12750_vm5 = vmand %vm1002_vm12, %vm15810_vm6  ;;  %vm15813_vm1 = vcmask 769024   ;;  %v1653_v61 = vld [vmem:[#allocation2 + $0x80] sm:$0xc]  ;;  %vm15814_vm12 = vcmask 482304  }
 0x11e   : > { %v1651_v9 = vsel %vm12410_vm11, %v1618_v15, %v1650_v21  ;;  %1246 = vst [vmem:[#allocation2 + $0x30] sm:$0x30] %v1245_v3  ;;  %1249 = vst [vmem:[#allocation2 + $0x38] sm:$0x30] %v1248_v12  ;;  %v10553_v6 = vld [vmem:[%s15693_s11 + $0xc] ss:$40 sps:$4 sm:$0xff]  }
 0x11f   : > { %1652 = vst [vmem:[#allocation2 + $0x78] sm:$0xc] %v1651_v9  ;;  %v1681_v53 = vpop.permute.xlu1 %1680  ;;  %v10535_v44 = vpop.permute.xlu0 %10534  ;;  %vm15815_vm10 = vmmov %vm15814_vm12  ;;  %v10551_v57 = vld [vmem:[%s15693_s11 + $0x8] ss:$40 sps:$4 sm:$0xff]   ;;  %v10556_v38 = vld [vmem:[%s15693_s11 + $0x54] ss:$40 sps:$4 sm:$0xff]  }
 0x120   : > { %v1691_v28 = vsel %vm15813_vm1, %v12633_v24, %v1681_v53  ;;  %v10537_v37 = vunpack.i.h.bf16 %v10535_v44  ;;  %v10536_v56 = vunpack.i.l.bf16 %v10535_v44  ;;  %vm15818_vm14 = vmmov %vm15813_vm1  ;;  %v10562_v15 = vld [vmem:[%s15693_s11 + $0xa4] ss:$40 sps:$4 sm:$0xff]   ;;  %v10560_v54 = vld [vmem:[%s15693_s11 + $0xa0] ss:$40 sps:$4 sm:$0xff]   ;;  %vm15822_vm6 = vcmask 1039360  }
 0x121   : > { %v1723_v42 = vsel %vm12416_vm15, %v1691_v28, %v1722_v33  ;;  %v10565_v32 = vld [vmem:[%s15693_s11 + $0xac] ss:$40 sps:$4 sm:$0xff]   ;;  %v10563_v33 = vld [vmem:[%s15693_s11 + $0xa8] ss:$40 sps:$4 sm:$0xff]   ;;  %v10571_v3 = vld [vmem:[%s15693_s11 + $0xfc] ss:$40 sps:$4 sm:$0xff]  }
 0x122   : > { %1724 = vst [vmem:[#allocation2 + $0x78] sm:$0x30] %v1723_v42  ;;  %v1479_v50 = vsel %vm12715_vm4, %v10537_v37, %v1478_v20  ;;  %v1421_v10 = vsel %vm15814_vm12, %v10532_v60, %v10536_v56  ;;  %v1422_v25 = vsel %vm15815_vm10, %v10536_v56, %v10537_v37  ;;  %vm15816_vm4 = vmmov %vm15815_vm10  ;;  %v10568_v21 = vld [vmem:[%s15693_s11 + $0xf4] ss:$40 sps:$4 sm:$0xff]   ;;  %v10566_v12 = vld [vmem:[%s15693_s11 + $0xf0] ss:$40 sps:$4 sm:$0xff]  }
 0x123   : > { %1480 = vst [vmem:[#allocation2 + $0x40] sm:$0x80] %v1479_v50  ;;  %v1471_v24 = vsel %vm12362_vm8, %v1421_v10, %v1470_v8  ;;  %v1474_v11 = vsel %vm12362_vm8, %v1422_v25, %v1473_v14  ;;  %v1411_v62 = vpop.permute.xlu1 %1410  ;;  %v1610_v45 = vpop.permute.xlu0 %1609  ;;  %vm15817_vm8 = vcmask 244736   ;;  %v10569_v20 = vld [vmem:[%s15693_s11 + $0xf8] ss:$40 sps:$4 sm:$0xff]   ;;  %vm7167_vm1 = vcmask 908288  }
 0x124   : > { %1472 = vst [vmem:[#allocation2 + $0x30] sm:$0x80] %v1471_v24  ;;  %1475 = vst [vmem:[#allocation2 + $0x38] sm:$0x80] %v1474_v11  ;;  %v1429_v47 = vsel %vm15816_vm4, %v12643_v58, %v1411_v62  ;;  %v1619_v46 = vsel %vm15804_vm9, %v1608_v18, %v1610_v45  ;;  %v1659_v60 = vsel %vm12727_vm7, %v1610_v45, %v1658_v17  ;;  %v10554_v18 = vld [vmem:[%s15693_s11 + $0x50] ss:$40 sps:$4 sm:$0xff]  }
 0x125   : > { %1487 = vst [vmem:[#allocation2 + $0x78] sm:$0x1] %v1429_v47  ;;  %v1654_v30 = vsel %vm12410_vm11, %v1619_v46, %v1653_v61  ;;  %1660 = vst [vmem:[#allocation2 + $0x88] sm:$0xc] %v1659_v60  ;;  %vm1489_vm11 = vcmask 253952   ;;  %vm7083_vm12 = vcmask 637952  }
 0x126   : > { %1655 = vst [vmem:[#allocation2 + $0x80] sm:$0xc] %v1654_v30  ;;  %vm15819_vm7 = vmmov %vm15816_vm4  ;;  %v10577_v9 = vld [vmem:[%s15693_s11 + $0x14c] ss:$40 sps:$4 sm:$0xff]   ;;  %v10572_v8 = vld [vmem:[%s15693_s11 + $0x140] ss:$40 sps:$4 sm:$0xff]  }
 0x127   : > { %v955_v39 = vpop.permute.xlu1 %954  ;;  %v1683_v55 = vpop.permute.xlu0 %1682  ;;  %v10575_v14 = vld [vmem:[%s15693_s11 + $0x148] ss:$40 sps:$4 sm:$0xff]   ;;  %v10581_v44 = vld [vmem:[%s15693_s11 + $0x198] ss:$40 sps:$4 sm:$0xff]   ;;  %v10589_v28 = vld [vmem:[%s15693_s11 + $0x1ec] ss:$40 sps:$4 sm:$0xff]  }
 0x128   : > { %v965_v52 = vsel %vm15817_vm8, %v12690_v2, %v955_v39  ;;  %v1692_v58 = vsel %vm15818_vm14, %v1681_v53, %v1683_v55  ;;  %v1730_v16 = vsel %vm12742_vm13, %v1683_v55, %v1729_v59  ;;  %v10583_v53 = vld [vmem:[%s15693_s11 + $0x19c] ss:$40 sps:$4 sm:$0xff]   ;;  %v10578_v17 = vld [vmem:[%s15693_s11 + $0x190] ss:$40 sps:$4 sm:$0xff]   ;;  %v10584_v61 = vld [vmem:[%s15693_s11 + $0x1e0] ss:$40 sps:$4 sm:$0xff]  }
 0x129   : > { %v1005_v34 = vsel %vm12750_vm5, %v965_v52, %v1004_v31  ;;  %v1726_v22 = vsel %vm12416_vm15, %v1692_v58, %v1725_v49  ;;  %1731 = vst [vmem:[#allocation2 + $0x88] sm:$0x30] %v1730_v16  ;;  %vm15820_vm15 = vcmask 220160   ;;  %v10586_v37 = vld [vmem:[%s15693_s11 + $0x1e4] ss:$40 sps:$4 sm:$0xff]   ;;  %vm7069_vm13 = vcmask 125952   ;;  %vm15823_vm5 = vmmov %vm15822_vm6 }
 0x12a   : > { %1006 = vst [vmem:[#allocation2 + $0x40] sm:$0x6] %v1005_v34  ;;  %1727 = vst [vmem:[#allocation2 + $0x80] sm:$0x30] %v1726_v22  ;;  %v10587_v56 = vld [vmem:[%s15693_s11 + $0x1e8] ss:$40 sps:$4 sm:$0xff]  }
 0x12b   : > { %v1413_v0 = vpop.permute.xlu0 %1412  ;;  %v1740_v23 = vld [vmem:[#allocation2 + $0x38] sm:$0xff]  ;;  %v1739_v29 = vld [vmem:[#allocation2 + $0x30] sm:$0xff]  ;;  %vm15821_vm3 = vmmov %vm15820_vm15  ;;  %vm7091_vm10 = vcmask 130052   ;;  %vm7119_vm4 = vcmask 228352   ;;  %vm7182_vm14 = vcmask 498688  }
 0x12c   : > { %v1430_v2 = vsel %vm15819_vm7, %v1411_v62, %v1413_v0  ;;  %1490 = vst.msk [vmem:[#allocation2 + $0x88] sm:$0x1] %vm1489_vm11, %v1413_v0  ;;  %1915 = vmatprep.subr.bf16.mxu1 %v1740_v23  ;;  %v1748_v1 = vld [vmem:[#allocation2 + $0x78] sm:$0x3f]  ;;  %v10601_v24 = vld [vmem:[%s15693_s11 + $0x28c] ss:$40 sps:$4 sm:$0xff]   ;;  %vm15824_vm9 = vmmov %vm15821_vm3 }
 0x12d   : > { %1488 = vst [vmem:[#allocation2 + $0x80] sm:$0x1] %v1430_v2  ;;  %1916 = vmatpush1.bf16.msra.mxu1 %v1739_v29  ;;  %v1784_v41 = vand.u32 %v12457_v5, %v1748_v1  ;;  %v10595_v42 = vld [vmem:[%s15693_s11 + $0x23c] ss:$40 sps:$4 sm:$0xff]   ;;  %v10593_v10 = vld [vmem:[%s15693_s11 + $0x238] ss:$40 sps:$4 sm:$0xff]   ;;  %vm15825_vm8 = vmmov %vm15821_vm3 }
 0x12e   : > { %v10592_v50 = vld [vmem:[%s15693_s11 + $0x234] ss:$40 sps:$4 sm:$0xff]   ;;  %v10590_v25 = vld [vmem:[%s15693_s11 + $0x230] ss:$40 sps:$4 sm:$0xff]   ;;  %v10598_v11 = vld [vmem:[%s15693_s11 + $0x284] ss:$40 sps:$4 sm:$0xff]  }
 0x12f   : > { %v10599_v62 = vld [vmem:[%s15693_s11 + $0x288] ss:$40 sps:$4 sm:$0xff]   ;;  %v10607_v59 = vld [vmem:[%s15693_s11 + $0x2dc] ss:$40 sps:$4 sm:$0xff]   ;;  %v10605_v46 = vld [vmem:[%s15693_s11 + $0x2d8] ss:$40 sps:$4 sm:$0xff]  }
 0x130   : > { %v10596_v45 = vld [vmem:[%s15693_s11 + $0x280] ss:$40 sps:$4 sm:$0xff]   ;;  %v10604_v47 = vld [vmem:[%s15693_s11 + $0x2d4] ss:$40 sps:$4 sm:$0xff]   ;;  %v10602_v60 = vld [vmem:[%s15693_s11 + $0x2d0] ss:$40 sps:$4 sm:$0xff]  }
 0x131   : > { %v1741_v27 = vld [vmem:[#allocation2 + $0x40] sm:$0xff]  ;;  %v10613_v30 = vld [vmem:[%s15693_s11 + $0x32c] ss:$40 sps:$4 sm:$0xff]   ;;  %v10611_v49 = vld [vmem:[%s15693_s11 + $0x328] ss:$40 sps:$4 sm:$0xff]   ;;  %vm7137_vm11 = vcmask 867328  }
 0x132   : > { %10303 = vmatpush3.bf16.msra.mxu0 %v1741_v27  ;;  %v10610_v31 = vld [vmem:[%s15693_s11 + $0x324] ss:$40 sps:$4 sm:$0xff]   ;;  %v10608_v39 = vld [vmem:[%s15693_s11 + $0x320] ss:$40 sps:$4 sm:$0xff]   ;;  %v10616_v52 = vld [vmem:[%s15693_s11 + $0x374] ss:$40 sps:$4 sm:$0xff]  }
 0x133   : > { %10304 = vmatprep.subr.bf16.mxu0 %v11806_v36  ;;  %v1750_v63 = vld [vmem:[#allocation2 + $0x88] sm:$0x3f]  ;;  %v10619_v55 = vld [vmem:[%s15693_s11 + $0x37c] ss:$40 sps:$4 sm:$0xff]   ;;  %v10617_v58 = vld [vmem:[%s15693_s11 + $0x378] ss:$40 sps:$4 sm:$0xff]  }
 0x134   : > { %v1790_v40 = vand.u32 %v12457_v5, %v1750_v63  ;;  %v1749_v4 = vld [vmem:[#allocation2 + $0x80] sm:$0x3f]  ;;  %v10614_v16 = vld [vmem:[%s15693_s11 + $0x370] ss:$40 sps:$4 sm:$0xff]   ;;  %v10625_v34 = vld [vmem:[%s15693_s11 + $0x3cc] ss:$40 sps:$4 sm:$0xff]  }
 0x135   : > { %v1787_v43 = vand.u32 %v12457_v5, %v1749_v4  ;;  %v11786_v5 = vld [vmem:[%s15766_s2] sm:$0xf]  ;;  %v10622_v22 = vld [vmem:[%s15693_s11 + $0x3c4] ss:$40 sps:$4 sm:$0xff]   ;;  %v10623_v0 = vld [vmem:[%s15693_s11 + $0x3c8] ss:$40 sps:$4 sm:$0xff]  }
 0x136   : > { %10305 = vmatpush3.bf16.msra.mxu0 %v1790_v40  ;;  %v10620_v23 = vld [vmem:[%s15693_s11 + $0x3c0] ss:$40 sps:$4 sm:$0xff]   ;;  %v10631_v29 = vld [vmem:[%s15693_s11 + $0x41c] ss:$40 sps:$4 sm:$0xff]   ;;  %v10626_v27 = vld [vmem:[%s15693_s11 + $0x410] ss:$40 sps:$4 sm:$0xff]  }
 0x137   : > { %1917 = vmatprep.subr.bf16.mxu1 %v1787_v43  ;;  %6237 = vmatprep.subr.bf16.mxu0 %v10553_v6  ;;  %v10628_v2 = vld [vmem:[%s15693_s11 + $0x414] ss:$40 sps:$4 sm:$0xff]   ;;  %v10629_v1 = vld [vmem:[%s15693_s11 + $0x418] ss:$40 sps:$4 sm:$0xff]   ;;  %v10635_v6 = vld [vmem:[%s15693_s11 + $0x468] ss:$40 sps:$4 sm:$0xff]  }
 0x138   : > { %1918 = vmatpush1.bf16.msra.mxu1 %v1784_v41  ;;  %v10637_v63 = vld [vmem:[%s15693_s11 + $0x46c] ss:$40 sps:$4 sm:$0xff]   ;;  %v10632_v40 = vld [vmem:[%s15693_s11 + $0x460] ss:$40 sps:$4 sm:$0xff]   ;;  %v10643_v4 = vld [vmem:[%s15693_s11 + $0x4bc] ss:$40 sps:$4 sm:$0xff]  }
 0x139   : > { %10307 = vmatmul.mubr.msk.bf16.vlgmr.msra.gmra.mrb[8].mxu0 %vm15820_vm15, %v11786_v5  ;;  %6032 = vmatprep.subr.bf16.mxu1 %v10550_v19  ;;  %v10634_v19 = vld [vmem:[%s15693_s11 + $0x464] ss:$40 sps:$4 sm:$0xff]   ;;  %v10640_v41 = vld [vmem:[%s15693_s11 + $0x4b4] ss:$40 sps:$4 sm:$0xff]   ;;  %v10641_v43 = vld [vmem:[%s15693_s11 + $0x4b8] ss:$40 sps:$4 sm:$0xff]  }
 0x13a   : > { %6238 = vmatpush1.bf16.msra.mxu0 %v10551_v57  ;;  %v10638_v57 = vld [vmem:[%s15693_s11 + $0x4b0] ss:$40 sps:$4 sm:$0xff]   ;;  %vm7197_vm7 = vcmask 900096   ;;  %vm7244_vm15 = vcmask 1043456   ;;  %s11833_s2 = smov 124  }
 0x13b   : > { %9388 = vmatmul.mubr.msk.bf16.vlgmr.msra.gmra.mrb[4].mxu1 %vm15821_vm3, %v11786_v5  ;;  %6239 = vmatprep.subr.bf16.mxu0 %v10559_v48  ;;  %vm7240_vm3 = vcmask 588800  }
 0x13c   : > { %6033 = vmatpush1.bf16.msra.mxu1 %v10548_v13  ;;  %v10649_v13 = vld [vmem:[%s15693_s11 + $0x50c] ss:$40 sps:$4 sm:$0xff]   ;;  %v12992_v48 = vpop.permute.xlu0 %1754 }
 0x13d   : > { %6034 = vmatprep.subr.bf16.mxu1 %v10556_v38  ;;  %v10646_v38 = vld [vmem:[%s15693_s11 + $0x504] ss:$40 sps:$4 sm:$0xff]  }
 0x13e   : > { %6240 = vmatpush1.bf16.msra.mxu0 %v10557_v26 }
 0x13f   : > { %6241 = vmatprep.subr.bf16.mxu0 %v10565_v32 }
 0x140   : > { %6035 = vmatpush1.bf16.msra.mxu1 %v10554_v18 }
 0x141   : > { %6036 = vmatprep.subr.bf16.mxu1 %v10562_v15 }
 0x142   : > { %6242 = vmatpush1.bf16.msra.mxu0 %v10563_v33 }
 0x143   : > { %6243 = vmatprep.subr.bf16.mxu0 %v10571_v3 }
 0x144   : > { %6037 = vmatpush1.bf16.msra.mxu1 %v10560_v54 }
 0x145   : > { %6038 = vmatprep.subr.bf16.mxu1 %v10568_v21 }
 0x146   : > { %6244 = vmatpush1.bf16.msra.mxu0 %v10569_v20 }
 0x147   : > { %6245 = vmatprep.subr.bf16.mxu0 %v10577_v9 }
 0x148   : > { %6039 = vmatpush1.bf16.msra.mxu1 %v10566_v12 }
 0x149   : > { %6040 = vmatprep.subr.bf16.mxu1 %v10574_v35 }
 0x14a   : > { %6246 = vmatpush1.bf16.msra.mxu0 %v10575_v14 }
 0x14b   : > { %6247 = vmatprep.subr.bf16.mxu0 %v10583_v53 }
 0x14c   : > { %6041 = vmatpush1.bf16.msra.mxu1 %v10572_v8 }
 0x14d   : > { %6042 = vmatprep.subr.bf16.mxu1 %v10580_v7 }
 0x14e   : > { %6248 = vmatpush1.bf16.msra.mxu0 %v10581_v44  ;;  %v10644_v44 = vld [vmem:[%s15693_s11 + $0x500] ss:$40 sps:$4 sm:$0xff]  }
 0x14f   : > { %6249 = vmatprep.subr.bf16.mxu0 %v10589_v28 }
 0x150   : > { %6043 = vmatpush1.bf16.msra.mxu1 %v10578_v17  ;;  %v10647_v17 = vld [vmem:[%s15693_s11 + $0x508] ss:$40 sps:$4 sm:$0xff]  }
 0x151   : > { %6044 = vmatprep.subr.bf16.mxu1 %v10586_v37  ;;  %v10652_v37 = vld [vmem:[%s15693_s11 + $0x554] ss:$40 sps:$4 sm:$0xff]  }
 0x152   : > { %6250 = vmatpush1.bf16.msra.mxu0 %v10587_v56  ;;  %v10655_v56 = vld [vmem:[%s15693_s11 + $0x55c] ss:$40 sps:$4 sm:$0xff]  }
 0x153   : > { %6251 = vmatprep.subr.bf16.mxu0 %v10595_v42  ;;  %v10650_v42 = vld [vmem:[%s15693_s11 + $0x550] ss:$40 sps:$4 sm:$0xff]  }
 0x154   : > { %6045 = vmatpush1.bf16.msra.mxu1 %v10584_v61 }
 0x155   : > { %6046 = vmatprep.subr.bf16.mxu1 %v10592_v50  ;;  %v10653_v50 = vld [vmem:[%s15693_s11 + $0x558] ss:$40 sps:$4 sm:$0xff]  }
 0x156   : > { %6252 = vmatpush1.bf16.msra.mxu0 %v10593_v10 }
 0x157   : > { %6253 = vmatprep.subr.bf16.mxu0 %v10601_v24  ;;  %v10661_v24 = vld [vmem:[%s15693_s11 + $0x5ac] ss:$40 sps:$4 sm:$0xff]  }
 0x158   : > { %6047 = vmatpush1.bf16.msra.mxu1 %v10590_v25  ;;  %v10658_v25 = vld [vmem:[%s15693_s11 + $0x5a4] ss:$40 sps:$4 sm:$0xff]  }
 0x159   : > { %6048 = vmatprep.subr.bf16.mxu1 %v10598_v11 }
 0x15a   : > { %6254 = vmatpush1.bf16.msra.mxu0 %v10599_v62 }
 0x15b   : > { %6255 = vmatprep.subr.bf16.mxu0 %v10607_v59 }
 0x15c   : > { %6049 = vmatpush1.bf16.msra.mxu1 %v10596_v45 }
 0x15d   : > { %6050 = vmatprep.subr.bf16.mxu1 %v10604_v47  ;;  %v10656_v47 = vld [vmem:[%s15693_s11 + $0x5a0] ss:$40 sps:$4 sm:$0xff]  }
 0x15e   : > { %6256 = vmatpush1.bf16.msra.mxu0 %v10605_v46  ;;  %v10659_v46 = vld [vmem:[%s15693_s11 + $0x5a8] ss:$40 sps:$4 sm:$0xff]  }
 0x15f   : > { %6257 = vmatprep.subr.bf16.mxu0 %v10613_v30  ;;  %v10667_v30 = vld [vmem:[%s15693_s11 + $0x5fc] ss:$40 sps:$4 sm:$0xff]  }
 0x160   : > { %6051 = vmatpush1.bf16.msra.mxu1 %v10602_v60  ;;  %v10664_v60 = vld [vmem:[%s15693_s11 + $0x5f4] ss:$40 sps:$4 sm:$0xff]  }
 0x161   : > { %6052 = vmatprep.subr.bf16.mxu1 %v10610_v31  ;;  %v10662_v31 = vld [vmem:[%s15693_s11 + $0x5f0] ss:$40 sps:$4 sm:$0xff]  }
 0x162   : > { %6258 = vmatpush1.bf16.msra.mxu0 %v10611_v49  ;;  %v10665_v49 = vld [vmem:[%s15693_s11 + $0x5f8] ss:$40 sps:$4 sm:$0xff]  }
 0x163   : > { %6259 = vmatprep.subr.bf16.mxu0 %v10619_v55  ;;  %v10673_v55 = vld [vmem:[%s15693_s11 + $0x64c] ss:$40 sps:$4 sm:$0xff]  }
 0x164   : > { %6053 = vmatpush1.bf16.msra.mxu1 %v10608_v39  ;;  %v10670_v39 = vld [vmem:[%s15693_s11 + $0x644] ss:$40 sps:$4 sm:$0xff]  }
 0x165   : > { %6054 = vmatprep.subr.bf16.mxu1 %v10616_v52  ;;  %v10668_v52 = vld [vmem:[%s15693_s11 + $0x640] ss:$40 sps:$4 sm:$0xff]  }
 0x166   : > { %6260 = vmatpush1.bf16.msra.mxu0 %v10617_v58  ;;  %v10671_v58 = vld [vmem:[%s15693_s11 + $0x648] ss:$40 sps:$4 sm:$0xff]  }
 0x167   : > { %6261 = vmatprep.subr.bf16.mxu0 %v10625_v34  ;;  %v10679_v34 = vld [vmem:[%s15693_s11 + $0x69c] ss:$40 sps:$4 sm:$0xff]  }
 0x168   : > { %6055 = vmatpush1.bf16.msra.mxu1 %v10614_v16  ;;  %v10676_v16 = vld [vmem:[%s15693_s11 + $0x694] ss:$40 sps:$4 sm:$0xff]  }
 0x169   : > { %6056 = vmatprep.subr.bf16.mxu1 %v10622_v22 }
 0x16a   : > { %6262 = vmatpush1.bf16.msra.mxu0 %v10623_v0  ;;  %v10674_v0 = vld [vmem:[%s15693_s11 + $0x690] ss:$40 sps:$4 sm:$0xff]  }
 0x16b   : > { %6263 = vmatprep.subr.bf16.mxu0 %v10631_v29 }
 0x16c   : > { %6057 = vmatpush1.bf16.msra.mxu1 %v10620_v23  ;;  %v10677_v23 = vld [vmem:[%s15693_s11 + $0x698] ss:$40 sps:$4 sm:$0xff]  }
 0x16d   : > { %6058 = vmatprep.subr.bf16.mxu1 %v10628_v2  ;;  %v10682_v2 = vld [vmem:[%s15693_s11 + $0x6e4] ss:$40 sps:$4 sm:$0xff]  }
 0x16e   : > { %6264 = vmatpush1.bf16.msra.mxu0 %v10629_v1  ;;  %v10685_v1 = vld [vmem:[%s15693_s11 + $0x6ec] ss:$40 sps:$4 sm:$0xff]  }
 0x16f   : > { %6265 = vmatprep.subr.bf16.mxu0 %v10637_v63  ;;  %v10680_v63 = vld [vmem:[%s15693_s11 + $0x6e0] ss:$40 sps:$4 sm:$0xff]  }
 0x170   : > { %6059 = vmatpush1.bf16.msra.mxu1 %v10626_v27 }
 0x171   : > { %6060 = vmatprep.subr.bf16.mxu1 %v10634_v19  ;;  %v10683_v19 = vld [vmem:[%s15693_s11 + $0x6e8] ss:$40 sps:$4 sm:$0xff]  }
 0x172   : > { %6266 = vmatpush1.bf16.msra.mxu0 %v10635_v6  ;;  %v10688_v6 = vld [vmem:[%s15693_s11 + $0x734] ss:$40 sps:$4 sm:$0xff]  }
 0x173   : > { %6267 = vmatprep.subr.bf16.mxu0 %v10643_v4 }
 0x174   : > { %6061 = vmatpush1.bf16.msra.mxu1 %v10632_v40  ;;  %v10691_v40 = vld [vmem:[%s15693_s11 + $0x73c] ss:$40 sps:$4 sm:$0xff]  }
 0x175   : > { %6062 = vmatprep.subr.bf16.mxu1 %v10640_v41  ;;  %v10686_v41 = vld [vmem:[%s15693_s11 + $0x730] ss:$40 sps:$4 sm:$0xff]  }
 0x176   : > { %6268 = vmatpush1.bf16.msra.mxu0 %v10641_v43  ;;  %v10689_v43 = vld [vmem:[%s15693_s11 + $0x738] ss:$40 sps:$4 sm:$0xff]  }
 0x177   : > { %6278 = vmatprep.subr.bf16.mxu0 %v10649_v13  ;;  %v10694_v13 = vld [vmem:[%s15693_s11 + $0x784] ss:$40 sps:$4 sm:$0xff]  }
 0x178   : > { %6063 = vmatpush1.bf16.msra.mxu1 %v10638_v57  ;;  %v10697_v57 = vld [vmem:[%s15693_s11 + $0x78c] ss:$40 sps:$4 sm:$0xff]  }
 0x179   : > { %6073 = vmatprep.subr.bf16.mxu1 %v10646_v38  ;;  %v10692_v38 = vld [vmem:[%s15693_s11 + $0x780] ss:$40 sps:$4 sm:$0xff]  }
 0x1a6   : > { %v1826_v5 = vpop.f32.mrb[0].mxu0 }
 0x1a7   : > { %v1828_v18 = vpop.f32.mrb[1].mxu0  ;;  %v1827_v26 = vadd.f32 %v1826_v5, %v12992_v48  ;;  %v10695_v5 = vld [vmem:[%s15693_s11 + $0x788] ss:$40 sps:$4 sm:$0xff]  }
 0x1a8   : > { %v1829_v15 = vadd.f32 %v1828_v18, %v12992_v48  ;;  %v1830_v32 = vpop.f32.mrb[2].mxu0 }
 0x1a9   : > { %v1831_v54 = vpop.f32.mrb[3].mxu0  ;;  %v9390_v33 = vmul.f32 -1.442695, %v1827_v26 }
 0x1aa   : > { %v9391_v21 = vmul.f32 -1.442695, %v1829_v15 }
 0x1ab   : > { %11637 = vpow2.f32 %v9390_v33 }
 0x1ac   : > { %11639 = vpow2.f32 %v9391_v21  ;;  %v10698_v21 = vld [vmem:[%s15693_s11 + $0x7d0] ss:$40 sps:$4 sm:$0xff]  }
 0x1b5   : > { %v11638_v3 = vpop.eup %11637 }
 0x1b6   : > { %v11640_v12 = vpop.eup %11639  ;;  %v2023_v20 = vadd.f32 1.0, %v11638_v3  ;;  %v10701_v3 = vld [vmem:[%s15693_s11 + $0x7d8] ss:$40 sps:$4 sm:$0xff]  }
 0x1b7   : > { %v2024_v35 = vadd.f32 1.0, %v11640_v12 }
 0x1b8   : > { %11641 = vrcp.f32 %v2023_v20  ;;  %v10706_v20 = vld [vmem:[%s15693_s11 + $0x824] ss:$40 sps:$4 sm:$0xff]  }
 0x1b9   : > { %11643 = vrcp.f32 %v2024_v35  ;;  %v10709_v35 = vld [vmem:[%s15693_s11 + $0x82c] ss:$40 sps:$4 sm:$0xff]  }
 0x1c2   : > { %v11642_v9 = vpop.eup %11641 }
 0x1c3   : > { %v11644_v8 = vpop.eup %11643  ;;  %v2050_v14 = vmul.f32 %v11642_v9, %v1827_v26  ;;  %v10700_v26 = vld [vmem:[%s15693_s11 + $0x7d4] ss:$40 sps:$4 sm:$0xff]  }
 0x1c4   : > { %v2051_v7 = vmul.f32 %v11644_v8, %v1829_v15  ;;  %v10703_v15 = vld [vmem:[%s15693_s11 + $0x7dc] ss:$40 sps:$4 sm:$0xff]  }
 0x1c5   : > { %v13004_v28 = vpack.c.bf16 %v2050_v14, %v2050_v14 }
 0x1c6   : > { %v12996_v53 = vpack.c.bf16 %v2051_v7, %v2051_v7 }
 0x1c8   : > { %6064 = vmatprep.mubr.bf16.mxu1 %v12996_v53  ;;  %6269 = vmatprep.mubr.bf16.mxu0 %v12996_v53 }
 0x1c9   : > { %6065 = vmatmul.mubr.bf16.vlgmr.msra.gmra.mrb[8].mxu1 %v13004_v28  ;;  %6270 = vmatmul.mubr.bf16.vlgmr.msra.gmra.mrb[12].mxu0 %v13004_v28 }
 0x1ca   : > { %6074 = vmatpush1.bf16.msra.mxu1 %v10644_v44  ;;  %6279 = vmatpush1.bf16.msra.mxu0 %v10647_v17  ;;  %v1867_v61 = vpop.f32.mrb[0].mxu1  ;;  %v10704_v44 = vld [vmem:[%s15693_s11 + $0x820] ss:$40 sps:$4 sm:$0xff]  }
 0x1cb   : > { %v1869_v10 = vpop.f32.mrb[1].mxu1  ;;  %6075 = vmatprep.subr.bf16.mxu1 %v10652_v37  ;;  %6280 = vmatprep.subr.bf16.mxu0 %v10655_v56  ;;  %v13081_v27 = vadd.f32 %v1867_v61, %v12992_v48  ;;  %v10707_v17 = vld [vmem:[%s15693_s11 + $0x828] ss:$40 sps:$4 sm:$0xff]   ;;  %v10712_v56 = vld [vmem:[%s15693_s11 + $0x874] ss:$40 sps:$4 sm:$0xff]  }
 0x1cc   : > { %v13029_v11 = vadd.f32 %v1869_v10, %v12992_v48  ;;  %v1871_v62 = vpop.f32.mrb[2].mxu1  ;;  %v10715_v61 = vld [vmem:[%s15693_s11 + $0x87c] ss:$40 sps:$4 sm:$0xff]   ;;  %v10713_v10 = vld [vmem:[%s15693_s11 + $0x878] ss:$40 sps:$4 sm:$0xff]  }
 0x1cd   : > { %v1872_v45 = vpop.f32.mrb[3].mxu1  ;;  %v9392_v4 = vmul.f32 -1.442695, %v13081_v27  ;;  %v10719_v62 = vld [vmem:[%s15693_s11 + $0x8c8] ss:$40 sps:$4 sm:$0xff]  }
 0x1ce   : > { %v9393_v59 = vmul.f32 -1.442695, %v13029_v11  ;;  %6076 = vmatpush1.bf16.msra.mxu1 %v10650_v42  ;;  %6281 = vmatpush1.bf16.msra.mxu0 %v10653_v50  ;;  %v10710_v50 = vld [vmem:[%s15693_s11 + $0x870] ss:$40 sps:$4 sm:$0xff]   ;;  %v10724_v45 = vld [vmem:[%s15693_s11 + $0x914] ss:$40 sps:$4 sm:$0xff]  }
 0x1cf   : > { %6077 = vmatprep.subr.bf16.mxu1 %v10658_v25  ;;  %6282 = vmatprep.subr.bf16.mxu0 %v10661_v24  ;;  %v10718_v25 = vld [vmem:[%s15693_s11 + $0x8c4] ss:$40 sps:$4 sm:$0xff]  }
 0x1d0   : > { %11645 = vpow2.f32 %v9393_v59  ;;  %v10721_v24 = vld [vmem:[%s15693_s11 + $0x8cc] ss:$40 sps:$4 sm:$0xff]   ;;  %v10727_v59 = vld [vmem:[%s15693_s11 + $0x91c] ss:$40 sps:$4 sm:$0xff]  }
 0x1d2   : > { %6078 = vmatpush1.bf16.msra.mxu1 %v10656_v47  ;;  %6283 = vmatpush1.bf16.msra.mxu0 %v10659_v46  ;;  %v10722_v46 = vld [vmem:[%s15693_s11 + $0x910] ss:$40 sps:$4 sm:$0xff]  }
 0x1d3   : > { %6079 = vmatprep.subr.bf16.mxu1 %v10664_v60  ;;  %6284 = vmatprep.subr.bf16.mxu0 %v10667_v30  ;;  %v10725_v60 = vld [vmem:[%s15693_s11 + $0x918] ss:$40 sps:$4 sm:$0xff]  }
 0x1d6   : > { %6080 = vmatpush1.bf16.msra.mxu1 %v10662_v31  ;;  %6285 = vmatpush1.bf16.msra.mxu0 %v10665_v49  ;;  %v10730_v31 = vld [vmem:[%s15693_s11 + $0x964] ss:$40 sps:$4 sm:$0xff]  }
 0x1d7   : > { %6081 = vmatprep.subr.bf16.mxu1 %v10670_v39  ;;  %6286 = vmatprep.subr.bf16.mxu0 %v10673_v55  ;;  %v10733_v49 = vld [vmem:[%s15693_s11 + $0x96c] ss:$40 sps:$4 sm:$0xff]   ;;  %v10728_v39 = vld [vmem:[%s15693_s11 + $0x960] ss:$40 sps:$4 sm:$0xff]  }
 0x1d8   : > { %v10731_v55 = vld [vmem:[%s15693_s11 + $0x968] ss:$40 sps:$4 sm:$0xff]  }
 0x1da   : > { %v11646_v22 = vpop.eup %11645  ;;  %6082 = vmatpush1.bf16.msra.mxu1 %v10668_v52  ;;  %6287 = vmatpush1.bf16.msra.mxu0 %v10671_v58  ;;  %v10736_v52 = vld [vmem:[%s15693_s11 + $0x9b4] ss:$40 sps:$4 sm:$0xff]  }
 0x1db   : > { %v2026_v29 = vadd.f32 1.0, %v11646_v22  ;;  %6083 = vmatprep.subr.bf16.mxu1 %v10676_v16  ;;  %6288 = vmatprep.subr.bf16.mxu0 %v10679_v34  ;;  %v10739_v58 = vld [vmem:[%s15693_s11 + $0x9bc] ss:$40 sps:$4 sm:$0xff]   ;;  %v10734_v34 = vld [vmem:[%s15693_s11 + $0x9b0] ss:$40 sps:$4 sm:$0xff]  }
 0x1dc   : > { %v10737_v22 = vld [vmem:[%s15693_s11 + $0x9b8] ss:$40 sps:$4 sm:$0xff]  }
 0x1dd   : > { %11647 = vrcp.f32 %v2026_v29  ;;  %v10745_v29 = vld [vmem:[%s15693_s11 + $0xa0c] ss:$40 sps:$4 sm:$0xff]  }
 0x1de   : > { %6084 = vmatpush1.bf16.msra.mxu1 %v10674_v0  ;;  %6289 = vmatpush1.bf16.msra.mxu0 %v10677_v23  ;;  %11649 = vpow2.f32 %v9392_v4  ;;  %v10742_v23 = vld [vmem:[%s15693_s11 + $0xa04] ss:$40 sps:$4 sm:$0xff]  }
 0x1df   : > { %6085 = vmatprep.subr.bf16.mxu1 %v10682_v2  ;;  %6290 = vmatprep.subr.bf16.mxu0 %v10685_v1  ;;  %v10740_v2 = vld [vmem:[%s15693_s11 + $0xa00] ss:$40 sps:$4 sm:$0xff]  }
 0x1e0   : > { %v10743_v1 = vld [vmem:[%s15693_s11 + $0xa08] ss:$40 sps:$4 sm:$0xff]  }
 0x1e2   : > { %6086 = vmatpush1.bf16.msra.mxu1 %v10680_v63  ;;  %6291 = vmatpush1.bf16.msra.mxu0 %v10683_v19  ;;  %v10748_v19 = vld [vmem:[%s15693_s11 + $0xa54] ss:$40 sps:$4 sm:$0xff]  }
 0x1e3   : > { %6087 = vmatprep.subr.bf16.mxu1 %v10688_v6  ;;  %6292 = vmatprep.subr.bf16.mxu0 %v10691_v40  ;;  %v10751_v6 = vld [vmem:[%s15693_s11 + $0xa5c] ss:$40 sps:$4 sm:$0xff]  }
 0x1e6   : > { %6088 = vmatpush1.bf16.msra.mxu1 %v10686_v41  ;;  %6293 = vmatpush1.bf16.msra.mxu0 %v10689_v43  ;;  %v10746_v41 = vld [vmem:[%s15693_s11 + $0xa50] ss:$40 sps:$4 sm:$0xff]  }
 0x1e7   : > { %v11648_v18 = vpop.eup %11647  ;;  %6089 = vmatprep.subr.bf16.mxu1 %v10694_v13  ;;  %6294 = vmatprep.subr.bf16.mxu0 %v10697_v57  ;;  %v10749_v43 = vld [vmem:[%s15693_s11 + $0xa58] ss:$40 sps:$4 sm:$0xff]   ;;  %v10754_v13 = vld [vmem:[%s15693_s11 + $0xaa4] ss:$40 sps:$4 sm:$0xff]  }
 0x1e8   : > { %v2053_v32 = vmul.f32 %v11648_v18, %v13029_v11  ;;  %v11650_v37 = vpop.eup %11649  ;;  %v10716_v11 = vld [vmem:[%s15693_s11 + $0x8c0] ss:$40 sps:$4 sm:$0xff]   ;;  %v10757_v57 = vld [vmem:[%s15693_s11 + $0xaac] ss:$40 sps:$4 sm:$0xff]  }
 0x1e9   : > { %v2025_v42 = vadd.f32 1.0, %v11650_v37  ;;  %v10767_v37 = vld [vmem:[%s15693_s11 + $0xb48] ss:$40 sps:$4 sm:$0xff]  }
 0x1ea   : > { %v13121_v54 = vpack.c.bf16 %v2053_v32, %v2053_v32  ;;  %6090 = vmatpush1.bf16.msra.mxu1 %v10692_v38  ;;  %6295 = vmatpush1.bf16.msra.mxu0 %v10695_v5 }
 0x1eb   : > { %v13123_v33 = vpop.f32.mrb[4].mxu0  ;;  %6091 = vmatprep.subr.bf16.mxu1 %v10700_v26  ;;  %6296 = vmatprep.subr.bf16.mxu0 %v10703_v15  ;;  %v10752_v26 = vld [vmem:[%s15693_s11 + $0xaa0] ss:$40 sps:$4 sm:$0xff]  }
 0x1ec   : > { %v1910_v12 = vpop.f32.mrb[5].mxu0  ;;  %6105 = vmatprep.mubr.bf16.mxu1 %v13121_v54  ;;  %6310 = vmatprep.mubr.bf16.mxu0 %v13121_v54  ;;  %v10755_v15 = vld [vmem:[%s15693_s11 + $0xaa8] ss:$40 sps:$4 sm:$0xff]  }
 0x1ed   : > { %v13138_v9 = vadd.f32 %v1910_v12, %v12992_v48  ;;  %v1912_v8 = vpop.f32.mrb[6].mxu0  ;;  %v10763_v12 = vld [vmem:[%s15693_s11 + $0xafc] ss:$40 sps:$4 sm:$0xff]  }
 0x1ee   : > { %v1913_v14 = vpop.f32.mrb[7].mxu0  ;;  %6092 = vmatpush1.bf16.msra.mxu1 %v10698_v21  ;;  %6297 = vmatpush1.bf16.msra.mxu0 %v10701_v3  ;;  %v10760_v3 = vld [vmem:[%s15693_s11 + $0xaf4] ss:$40 sps:$4 sm:$0xff]   ;;  %v10758_v8 = vld [vmem:[%s15693_s11 + $0xaf0] ss:$40 sps:$4 sm:$0xff]  }
 0x1ef   : > { %v9395_v7 = vmul.f32 -1.442695, %v13138_v9  ;;  %6093 = vmatprep.subr.bf16.mxu1 %v10706_v20  ;;  %6298 = vmatprep.subr.bf16.mxu0 %v10709_v35  ;;  %v10761_v14 = vld [vmem:[%s15693_s11 + $0xaf8] ss:$40 sps:$4 sm:$0xff]  }
 0x1f1   : > { %11651 = vpow2.f32 %v9395_v7  ;;  %v10766_v7 = vld [vmem:[%s15693_s11 + $0xb44] ss:$40 sps:$4 sm:$0xff]  }
 0x1f2   : > { %6094 = vmatpush1.bf16.msra.mxu1 %v10704_v44  ;;  %6299 = vmatpush1.bf16.msra.mxu0 %v10707_v17  ;;  %11653 = vrcp.f32 %v2025_v42  ;;  %v10769_v44 = vld [vmem:[%s15693_s11 + $0xb4c] ss:$40 sps:$4 sm:$0xff]   ;;  %v10764_v17 = vld [vmem:[%s15693_s11 + $0xb40] ss:$40 sps:$4 sm:$0xff]   ;;  %v10770_v42 = vld [vmem:[%s15693_s11 + $0xb90] ss:$40 sps:$4 sm:$0xff]  }
 0x1f3   : > { %6095 = vmatprep.subr.bf16.mxu1 %v10712_v56  ;;  %6300 = vmatprep.subr.bf16.mxu0 %v10715_v61  ;;  %v10772_v56 = vld [vmem:[%s15693_s11 + $0xb94] ss:$40 sps:$4 sm:$0xff]  }
 0x1f4   : > { %v10775_v61 = vld [vmem:[%s15693_s11 + $0xb9c] ss:$40 sps:$4 sm:$0xff]  }
 0x1f6   : > { %6096 = vmatpush1.bf16.msra.mxu1 %v10710_v50  ;;  %6301 = vmatpush1.bf16.msra.mxu0 %v10713_v10  ;;  %v10773_v50 = vld [vmem:[%s15693_s11 + $0xb98] ss:$40 sps:$4 sm:$0xff]   ;;  %v10778_v10 = vld [vmem:[%s15693_s11 + $0xbe4] ss:$40 sps:$4 sm:$0xff]  }
 0x1f7   : > { %6097 = vmatprep.subr.bf16.mxu1 %v10718_v25  ;;  %6302 = vmatprep.subr.bf16.mxu0 %v10721_v24  ;;  %v10781_v25 = vld [vmem:[%s15693_s11 + $0xbec] ss:$40 sps:$4 sm:$0xff]   ;;  %v13303_v24 = vadd.f32 %v13123_v33, %v12992_v48 }
 0x1f8   : > { %v10784_v33 = vld [vmem:[%s15693_s11 + $0xc34] ss:$40 sps:$4 sm:$0xff]  }
 0x1fa   : > { %6098 = vmatpush1.bf16.msra.mxu1 %v10716_v11  ;;  %6303 = vmatpush1.bf16.msra.mxu0 %v10719_v62  ;;  %v10776_v62 = vld [vmem:[%s15693_s11 + $0xbe0] ss:$40 sps:$4 sm:$0xff]  }
 0x1fb   : > { %v11652_v47 = vpop.eup %11651  ;;  %6099 = vmatprep.subr.bf16.mxu1 %v10724_v45  ;;  %6304 = vmatprep.subr.bf16.mxu0 %v10727_v59  ;;  %v10779_v45 = vld [vmem:[%s15693_s11 + $0xbe8] ss:$40 sps:$4 sm:$0xff]   ;;  %v10787_v59 = vld [vmem:[%s15693_s11 + $0xc3c] ss:$40 sps:$4 sm:$0xff]  }
 0x1fc   : > { %v2028_v30 = vadd.f32 1.0, %v11652_v47  ;;  %v11654_v16 = vpop.eup %11653  ;;  %v9394_v47 = vmul.f32 -1.442695, %v13303_v24 }
 0x1fd   : > { %v2052_v0 = vmul.f32 %v11654_v16, %v13081_v27  ;;  %v10794_v16 = vld [vmem:[%s15693_s11 + $0xcd0] ss:$40 sps:$4 sm:$0xff]  }
 0x1fe   : > { %11655 = vrcp.f32 %v2028_v30  ;;  %6100 = vmatpush1.bf16.msra.mxu1 %v10722_v46  ;;  %6305 = vmatpush1.bf16.msra.mxu0 %v10725_v60  ;;  %v10782_v60 = vld [vmem:[%s15693_s11 + $0xc30] ss:$40 sps:$4 sm:$0xff]  }
 0x1ff   : > { %6101 = vmatprep.subr.bf16.mxu1 %v10730_v31  ;;  %6306 = vmatprep.subr.bf16.mxu0 %v10733_v49  ;;  %v13222_v63 = vpack.c.bf16 %v2052_v0, %v2052_v0  ;;  %v10785_v30 = vld [vmem:[%s15693_s11 + $0xc38] ss:$40 sps:$4 sm:$0xff]   ;;  %v10790_v31 = vld [vmem:[%s15693_s11 + $0xc84] ss:$40 sps:$4 sm:$0xff]   ;;  %11657 = vpow2.f32 %v9394_v47 }
 0x200   : > { %v10793_v49 = vld [vmem:[%s15693_s11 + $0xc8c] ss:$40 sps:$4 sm:$0xff]  }
 0x201   : > { %v10805_v0 = vld [vmem:[%s15693_s11 + $0xd2c] ss:$40 sps:$4 sm:$0xff]  }
 0x202   : > { %6102 = vmatpush1.bf16.msra.mxu1 %v10728_v39  ;;  %6307 = vmatpush1.bf16.msra.mxu0 %v10731_v55  ;;  %v10788_v39 = vld [vmem:[%s15693_s11 + $0xc80] ss:$40 sps:$4 sm:$0xff]   ;;  %v10850_v47 = vld [vmem:[%s15693_s11 + $0xfa4] ss:$40 sps:$4 sm:$0xff]  }
 0x203   : > { %6103 = vmatprep.subr.bf16.mxu1 %v10736_v52  ;;  %6308 = vmatprep.subr.bf16.mxu0 %v10739_v58  ;;  %v10791_v55 = vld [vmem:[%s15693_s11 + $0xc88] ss:$40 sps:$4 sm:$0xff]   ;;  %v10796_v52 = vld [vmem:[%s15693_s11 + $0xcd4] ss:$40 sps:$4 sm:$0xff]  }
 0x204   : > { %v10799_v58 = vld [vmem:[%s15693_s11 + $0xcdc] ss:$40 sps:$4 sm:$0xff]  }
 0x206   : > { %6104 = vmatpush1.bf16.msra.mxu1 %v10734_v34  ;;  %6309 = vmatpush1.bf16.msra.mxu0 %v10737_v22  ;;  %v10797_v34 = vld [vmem:[%s15693_s11 + $0xcd8] ss:$40 sps:$4 sm:$0xff]   ;;  %v10802_v22 = vld [vmem:[%s15693_s11 + $0xd24] ss:$40 sps:$4 sm:$0xff]  }
 0x207   : > { %6114 = vmatprep.subr.bf16.mxu1 %v10742_v23  ;;  %6319 = vmatprep.subr.bf16.mxu0 %v10745_v29  ;;  %v10800_v23 = vld [vmem:[%s15693_s11 + $0xd20] ss:$40 sps:$4 sm:$0xff]  }
 0x208   : > { %v11656_v27 = vpop.eup %11655  ;;  %v10803_v29 = vld [vmem:[%s15693_s11 + $0xd28] ss:$40 sps:$4 sm:$0xff]  }
 0x209   : > { %v2055_v40 = vmul.f32 %v11656_v27, %v13138_v9  ;;  %6106 = vmatmul.mubr.bf16.vlgmr.msra.gmra.mrb[8].mxu1 %v13222_v63  ;;  %6311 = vmatmul.mubr.bf16.vlgmr.msra.gmra.mrb[12].mxu0 %v13222_v63  ;;  %v10811_v27 = vld [vmem:[%s15693_s11 + $0xd7c] ss:$40 sps:$4 sm:$0xff]  }
 0x20a   : > { %6115 = vmatpush1.bf16.msra.mxu1 %v10740_v2  ;;  %6320 = vmatpush1.bf16.msra.mxu0 %v10743_v1  ;;  %v11658_v2 = vpop.eup %11657  ;;  %v10808_v1 = vld [vmem:[%s15693_s11 + $0xd74] ss:$40 sps:$4 sm:$0xff]  }
 0x20b   : > { %v13233_v4 = vpack.c.bf16 %v2055_v40, %v2055_v40  ;;  %6116 = vmatprep.subr.bf16.mxu1 %v10748_v19  ;;  %6321 = vmatprep.subr.bf16.mxu0 %v10751_v6  ;;  %v2027_v6 = vadd.f32 1.0, %v11658_v2  ;;  %v10806_v40 = vld [vmem:[%s15693_s11 + $0xd70] ss:$40 sps:$4 sm:$0xff]   ;;  %v10874_v2 = vld [vmem:[%s15693_s11 + $0x10e4] ss:$40 sps:$4 sm:$0xff]  }
 0x20c   : > { %v13247_v38 = vpop.f32.mrb[8].mxu0 }
 0x20d   : > { %6146 = vmatprep.mubr.bf16.mxu1 %v13233_v4  ;;  %6351 = vmatprep.mubr.bf16.mxu0 %v13233_v4  ;;  %v10308_v5 = vpop.f32.mrb[9].mxu0 }
 0x20e   : > { %6117 = vmatpush1.bf16.msra.mxu1 %v10746_v41  ;;  %6322 = vmatpush1.bf16.msra.mxu0 %v10749_v43  ;;  %v13251_v18 = vpop.f32.mrb[4].mxu1  ;;  %v1993_v32 = vpop.f32.mrb[10].mxu0  ;;  %v10809_v41 = vld [vmem:[%s15693_s11 + $0xd78] ss:$40 sps:$4 sm:$0xff]  }
 0x20f   : > { %v1951_v21 = vpop.f32.mrb[5].mxu1  ;;  %6118 = vmatprep.subr.bf16.mxu1 %v10754_v13  ;;  %6323 = vmatprep.subr.bf16.mxu0 %v10757_v57  ;;  %v10309_v20 = vpop.f32.mrb[11].mxu0  ;;  %v10814_v13 = vld [vmem:[%s15693_s11 + $0xdc4] ss:$40 sps:$4 sm:$0xff]   ;;  %v10812_v5 = vld [vmem:[%s15693_s11 + $0xdc0] ss:$40 sps:$4 sm:$0xff]  }
 0x210   : > { %v1953_v35 = vpop.f32.mrb[6].mxu1  ;;  %v13306_v11 = vadd.f32 %v1951_v21, %v12992_v48  ;;  %v10817_v57 = vld [vmem:[%s15693_s11 + $0xdcc] ss:$40 sps:$4 sm:$0xff]   ;;  %v10823_v32 = vld [vmem:[%s15693_s11 + $0xe1c] ss:$40 sps:$4 sm:$0xff]  }
 0x211   : > { %v1954_v9 = vpop.f32.mrb[7].mxu1  ;;  %v10818_v21 = vld [vmem:[%s15693_s11 + $0xe10] ss:$40 sps:$4 sm:$0xff]   ;;  %v10829_v20 = vld [vmem:[%s15693_s11 + $0xe6c] ss:$40 sps:$4 sm:$0xff]  }
 0x212   : > { %6119 = vmatpush1.bf16.msra.mxu1 %v10752_v26  ;;  %6324 = vmatpush1.bf16.msra.mxu0 %v10755_v15  ;;  %v9397_v46 = vmul.f32 -1.442695, %v13306_v11  ;;  %v10815_v26 = vld [vmem:[%s15693_s11 + $0xdc8] ss:$40 sps:$4 sm:$0xff]   ;;  %v10820_v15 = vld [vmem:[%s15693_s11 + $0xe14] ss:$40 sps:$4 sm:$0xff]  }
 0x213   : > { %6120 = vmatprep.subr.bf16.mxu1 %v10760_v3  ;;  %6325 = vmatprep.subr.bf16.mxu0 %v10763_v12  ;;  %v10821_v3 = vld [vmem:[%s15693_s11 + $0xe18] ss:$40 sps:$4 sm:$0xff]   ;;  %v10826_v12 = vld [vmem:[%s15693_s11 + $0xe64] ss:$40 sps:$4 sm:$0xff]   ;;  %v10827_v9 = vld [vmem:[%s15693_s11 + $0xe68] ss:$40 sps:$4 sm:$0xff]  }
 0x214   : > { %11659 = vpow2.f32 %v9397_v46  ;;  %v10824_v35 = vld [vmem:[%s15693_s11 + $0xe60] ss:$40 sps:$4 sm:$0xff]   ;;  %v10853_v46 = vld [vmem:[%s15693_s11 + $0xfac] ss:$40 sps:$4 sm:$0xff]  }
 0x215   : > { %11661 = vrcp.f32 %v2027_v6  ;;  %v10875_v6 = vld [vmem:[%s15693_s11 + $0x10e8] ss:$40 sps:$4 sm:$0xff]  }
 0x216   : > { %6121 = vmatpush1.bf16.msra.mxu1 %v10758_v8  ;;  %6326 = vmatpush1.bf16.msra.mxu0 %v10761_v14  ;;  %v10832_v8 = vld [vmem:[%s15693_s11 + $0xeb4] ss:$40 sps:$4 sm:$0xff]  }
 0x217   : > { %6122 = vmatprep.subr.bf16.mxu1 %v10766_v7  ;;  %6327 = vmatprep.subr.bf16.mxu0 %v10769_v44  ;;  %v10835_v14 = vld [vmem:[%s15693_s11 + $0xebc] ss:$40 sps:$4 sm:$0xff]  }
 0x21a   : > { %6123 = vmatpush1.bf16.msra.mxu1 %v10764_v17  ;;  %6328 = vmatpush1.bf16.msra.mxu0 %v10767_v37  ;;  %v10830_v17 = vld [vmem:[%s15693_s11 + $0xeb0] ss:$40 sps:$4 sm:$0xff]  }
 0x21b   : > { %6124 = vmatprep.subr.bf16.mxu1 %v10772_v56  ;;  %6329 = vmatprep.subr.bf16.mxu0 %v10775_v61  ;;  %v10833_v37 = vld [vmem:[%s15693_s11 + $0xeb8] ss:$40 sps:$4 sm:$0xff]   ;;  %v10838_v61 = vld [vmem:[%s15693_s11 + $0xf04] ss:$40 sps:$4 sm:$0xff]  }
 0x21e   : > { %6125 = vmatpush1.bf16.msra.mxu1 %v10770_v42  ;;  %6330 = vmatpush1.bf16.msra.mxu0 %v10773_v50  ;;  %v11660_v19 = vpop.eup %11659  ;;  %v10841_v42 = vld [vmem:[%s15693_s11 + $0xf0c] ss:$40 sps:$4 sm:$0xff]  }
 0x21f   : > { %6126 = vmatprep.subr.bf16.mxu1 %v10778_v10  ;;  %6331 = vmatprep.subr.bf16.mxu0 %v10781_v25  ;;  %v2030_v43 = vadd.f32 1.0, %v11660_v19  ;;  %v11662_v7 = vpop.eup %11661  ;;  %v10836_v10 = vld [vmem:[%s15693_s11 + $0xf00] ss:$40 sps:$4 sm:$0xff]  }
 0x220   : > { %v2054_v56 = vmul.f32 %v11662_v7, %v13303_v24  ;;  %v10839_v24 = vld [vmem:[%s15693_s11 + $0xf08] ss:$40 sps:$4 sm:$0xff]   ;;  %v10904_v7 = vld [vmem:[%s15693_s11 + $0x1274] ss:$40 sps:$4 sm:$0xff]  }
 0x221   : > { %11663 = vrcp.f32 %v2030_v43  ;;  %v10872_v19 = vld [vmem:[%s15693_s11 + $0x10e0] ss:$40 sps:$4 sm:$0xff]   ;;  %v10878_v43 = vld [vmem:[%s15693_s11 + $0x1130] ss:$40 sps:$4 sm:$0xff]  }
 0x222   : > { %6127 = vmatpush1.bf16.msra.mxu1 %v10776_v62  ;;  %6332 = vmatpush1.bf16.msra.mxu0 %v10779_v45  ;;  %v13435_v25 = vpack.c.bf16 %v2054_v56, %v2054_v56  ;;  %v10847_v45 = vld [vmem:[%s15693_s11 + $0xf5c] ss:$40 sps:$4 sm:$0xff]   ;;  %v10905_v56 = vld [vmem:[%s15693_s11 + $0x1278] ss:$40 sps:$4 sm:$0xff]  }
 0x223   : > { %6128 = vmatprep.subr.bf16.mxu1 %v10784_v33  ;;  %6333 = vmatprep.subr.bf16.mxu0 %v10787_v59  ;;  %v10842_v33 = vld [vmem:[%s15693_s11 + $0xf50] ss:$40 sps:$4 sm:$0xff]  }
 0x224   : > { %v10845_v59 = vld [vmem:[%s15693_s11 + $0xf58] ss:$40 sps:$4 sm:$0xff]  }
 0x226   : > { %6129 = vmatpush1.bf16.msra.mxu1 %v10782_v60  ;;  %6334 = vmatpush1.bf16.msra.mxu0 %v10785_v30  ;;  %v10848_v60 = vld [vmem:[%s15693_s11 + $0xfa0] ss:$40 sps:$4 sm:$0xff]  }
 0x227   : > { %6130 = vmatprep.subr.bf16.mxu1 %v10790_v31  ;;  %6335 = vmatprep.subr.bf16.mxu0 %v10793_v49  ;;  %v10851_v30 = vld [vmem:[%s15693_s11 + $0xfa8] ss:$40 sps:$4 sm:$0xff]   ;;  %v10856_v31 = vld [vmem:[%s15693_s11 + $0xff4] ss:$40 sps:$4 sm:$0xff]  }
 0x228   : > { %v10859_v49 = vld [vmem:[%s15693_s11 + $0xffc] ss:$40 sps:$4 sm:$0xff]  }
 0x22a   : > { %6131 = vmatpush1.bf16.msra.mxu1 %v10788_v39  ;;  %6336 = vmatpush1.bf16.msra.mxu0 %v10791_v55  ;;  %v10854_v39 = vld [vmem:[%s15693_s11 + $0xff0] ss:$40 sps:$4 sm:$0xff]  }
 0x22b   : > { %6132 = vmatprep.subr.bf16.mxu1 %v10796_v52  ;;  %6337 = vmatprep.subr.bf16.mxu0 %v10799_v58  ;;  %v11664_v44 = vpop.eup %11663  ;;  %v10857_v55 = vld [vmem:[%s15693_s11 + $0xff8] ss:$40 sps:$4 sm:$0xff]   ;;  %v10862_v52 = vld [vmem:[%s15693_s11 + $0x1044] ss:$40 sps:$4 sm:$0xff]  }
 0x22c   : > { %v2057_v50 = vmul.f32 %v11664_v44, %v13306_v11  ;;  %v10844_v11 = vld [vmem:[%s15693_s11 + $0xf54] ss:$40 sps:$4 sm:$0xff]  }
 0x22d   : > { %v10865_v58 = vld [vmem:[%s15693_s11 + $0x104c] ss:$40 sps:$4 sm:$0xff]   ;;  %v10907_v44 = vld [vmem:[%s15693_s11 + $0x127c] ss:$40 sps:$4 sm:$0xff]  }
 0x22e   : > { %6133 = vmatpush1.bf16.msra.mxu1 %v10794_v16  ;;  %6338 = vmatpush1.bf16.msra.mxu0 %v10797_v34  ;;  %v13440_v62 = vpack.c.bf16 %v2057_v50, %v2057_v50  ;;  %v10860_v16 = vld [vmem:[%s15693_s11 + $0x1040] ss:$40 sps:$4 sm:$0xff]  }
 0x22f   : > { %6134 = vmatprep.subr.bf16.mxu1 %v10802_v22  ;;  %6339 = vmatprep.subr.bf16.mxu0 %v10805_v0  ;;  %v10863_v34 = vld [vmem:[%s15693_s11 + $0x1048] ss:$40 sps:$4 sm:$0xff]   ;;  %v10868_v22 = vld [vmem:[%s15693_s11 + $0x1094] ss:$40 sps:$4 sm:$0xff]  }
 0x230   : > { %v10871_v0 = vld [vmem:[%s15693_s11 + $0x109c] ss:$40 sps:$4 sm:$0xff]   ;;  %v10908_v50 = vld [vmem:[%s15693_s11 + $0x12c0] ss:$40 sps:$4 sm:$0xff]  }
 0x232   : > { %6135 = vmatpush1.bf16.msra.mxu1 %v10800_v23  ;;  %6340 = vmatpush1.bf16.msra.mxu0 %v10803_v29  ;;  %v10866_v23 = vld [vmem:[%s15693_s11 + $0x1090] ss:$40 sps:$4 sm:$0xff]  }
 0x233   : > { %6136 = vmatprep.subr.bf16.mxu1 %v10808_v1  ;;  %6341 = vmatprep.subr.bf16.mxu0 %v10811_v27  ;;  %v10869_v29 = vld [vmem:[%s15693_s11 + $0x1098] ss:$40 sps:$4 sm:$0xff]   ;;  %v10877_v1 = vld [vmem:[%s15693_s11 + $0x10ec] ss:$40 sps:$4 sm:$0xff]   ;;  %v13514_v27 = vadd.f32 %v13251_v18, %v12992_v48  ;;  %v10883_v18 = vld [vmem:[%s15693_s11 + $0x113c] ss:$40 sps:$4 sm:$0xff]  }
 0x236   : > { %6137 = vmatpush1.bf16.msra.mxu1 %v10806_v40  ;;  %6342 = vmatpush1.bf16.msra.mxu0 %v10809_v41  ;;  %v10880_v40 = vld [vmem:[%s15693_s11 + $0x1134] ss:$40 sps:$4 sm:$0xff]   ;;  %v9396_v41 = vmul.f32 -1.442695, %v13514_v27 }
 0x237   : > { %6138 = vmatprep.subr.bf16.mxu1 %v10814_v13  ;;  %6343 = vmatprep.subr.bf16.mxu0 %v10817_v57  ;;  %v10881_v13 = vld [vmem:[%s15693_s11 + $0x1138] ss:$40 sps:$4 sm:$0xff]   ;;  %v10886_v57 = vld [vmem:[%s15693_s11 + $0x1184] ss:$40 sps:$4 sm:$0xff]  }
 0x238   : > { %11665 = vpow2.f32 %v9396_v41 }
 0x23a   : > { %6139 = vmatpush1.bf16.msra.mxu1 %v10812_v5  ;;  %6344 = vmatpush1.bf16.msra.mxu0 %v10815_v26  ;;  %v10889_v5 = vld [vmem:[%s15693_s11 + $0x118c] ss:$40 sps:$4 sm:$0xff]   ;;  %v10884_v26 = vld [vmem:[%s15693_s11 + $0x1180] ss:$40 sps:$4 sm:$0xff]  }
 0x23b   : > { %6140 = vmatprep.subr.bf16.mxu1 %v10820_v15  ;;  %6345 = vmatprep.subr.bf16.mxu0 %v10823_v32  ;;  %v10887_v15 = vld [vmem:[%s15693_s11 + $0x1188] ss:$40 sps:$4 sm:$0xff]   ;;  %v10892_v32 = vld [vmem:[%s15693_s11 + $0x11d4] ss:$40 sps:$4 sm:$0xff]  }
 0x23e   : > { %6141 = vmatpush1.bf16.msra.mxu1 %v10818_v21  ;;  %6346 = vmatpush1.bf16.msra.mxu0 %v10821_v3  ;;  %v10895_v21 = vld [vmem:[%s15693_s11 + $0x11dc] ss:$40 sps:$4 sm:$0xff]   ;;  %v13555_v3 = vadd.f32 %v13247_v38, %v12992_v48  ;;  %v10901_v48 = vld [vmem:[%s15693_s11 + $0x122c] ss:$40 sps:$4 sm:$0xff]  }
 0x23f   : > { %6142 = vmatprep.subr.bf16.mxu1 %v10826_v12  ;;  %6347 = vmatprep.subr.bf16.mxu0 %v10829_v20  ;;  %v10890_v12 = vld [vmem:[%s15693_s11 + $0x11d0] ss:$40 sps:$4 sm:$0xff]  }
 0x240   : > { %v10893_v20 = vld [vmem:[%s15693_s11 + $0x11d8] ss:$40 sps:$4 sm:$0xff]   ;;  %v9398_v38 = vmul.f32 -1.442695, %v13555_v3 }
 0x242   : > { %6143 = vmatpush1.bf16.msra.mxu1 %v10824_v35  ;;  %6348 = vmatpush1.bf16.msra.mxu0 %v10827_v9  ;;  %v10898_v35 = vld [vmem:[%s15693_s11 + $0x1224] ss:$40 sps:$4 sm:$0xff]   ;;  %v10896_v9 = vld [vmem:[%s15693_s11 + $0x1220] ss:$40 sps:$4 sm:$0xff]   ;;  %11667 = vpow2.f32 %v9398_v38 }
 0x243   : > { %6144 = vmatprep.subr.bf16.mxu1 %v10832_v8  ;;  %6349 = vmatprep.subr.bf16.mxu0 %v10835_v14  ;;  %v11666_v8 = vpop.eup %11665  ;;  %v10899_v14 = vld [vmem:[%s15693_s11 + $0x1228] ss:$40 sps:$4 sm:$0xff]  }
 0x244   : > { %v10962_v38 = vld [vmem:[%s15693_s11 + $0x100] ss:$40 sps:$4 sm:$0xff]  }
 0x246   : > { %6145 = vmatpush1.bf16.msra.mxu1 %v10830_v17  ;;  %6350 = vmatpush1.bf16.msra.mxu0 %v10833_v37  ;;  %v2029_v17 = vadd.f32 1.0, %v11666_v8  ;;  %v10902_v37 = vld [vmem:[%s15693_s11 + $0x1270] ss:$40 sps:$4 sm:$0xff]   ;;  %v10970_v8 = vld [vmem:[%s15693_s11 + $0x154] ss:$40 sps:$4 sm:$0xff]  }
 0x247   : > { %6155 = vmatprep.subr.bf16.mxu1 %v10838_v61  ;;  %6360 = vmatprep.subr.bf16.mxu0 %v10841_v42  ;;  %v10910_v61 = vld [vmem:[%s15693_s11 + $0x12c4] ss:$40 sps:$4 sm:$0xff]  }
 0x248   : > { %v10913_v42 = vld [vmem:[%s15693_s11 + $0x12cc] ss:$40 sps:$4 sm:$0xff]   ;;  %11669 = vrcp.f32 %v2029_v17 }
 0x249   : > { %6147 = vmatmul.mubr.bf16.vlgmr.msra.gmra.mrb[8].mxu1 %v13435_v25  ;;  %6352 = vmatmul.mubr.bf16.vlgmr.msra.gmra.mrb[12].mxu0 %v13435_v25  ;;  %v10976_v17 = vld [vmem:[%s15693_s11 + $0x1a4] ss:$40 sps:$4 sm:$0xff]  }
 0x24a   : > { %6156 = vmatpush1.bf16.msra.mxu1 %v10836_v10  ;;  %6187 = vmatprep.mubr.bf16.mxu1 %v13440_v62  ;;  %v10911_v10 = vld [vmem:[%s15693_s11 + $0x12c8] ss:$40 sps:$4 sm:$0xff]  }
 0x24b   : > { %6361 = vmatpush1.bf16.msra.mxu0 %v10839_v24  ;;  %6392 = vmatprep.mubr.bf16.mxu0 %v13440_v62  ;;  %v10916_v24 = vld [vmem:[%s15693_s11 + $0x1314] ss:$40 sps:$4 sm:$0xff]  }
 0x24c   : > { %6157 = vmatprep.subr.bf16.mxu1 %v10844_v11  ;;  %6362 = vmatprep.subr.bf16.mxu0 %v10847_v45  ;;  %v10919_v11 = vld [vmem:[%s15693_s11 + $0x131c] ss:$40 sps:$4 sm:$0xff]   ;;  %v10914_v45 = vld [vmem:[%s15693_s11 + $0x1310] ss:$40 sps:$4 sm:$0xff]  }
 0x24e   : > { %6158 = vmatpush1.bf16.msra.mxu1 %v10842_v33  ;;  %v11668_v33 = vpop.eup %11667 }
 0x24f   : > { %6363 = vmatpush1.bf16.msra.mxu0 %v10845_v59  ;;  %6159 = vmatprep.subr.bf16.mxu1 %v10850_v47  ;;  %v10917_v59 = vld [vmem:[%s15693_s11 + $0x1318] ss:$40 sps:$4 sm:$0xff]   ;;  %v10922_v47 = vld [vmem:[%s15693_s11 + $0x1364] ss:$40 sps:$4 sm:$0xff]  }
 0x250   : > { %6364 = vmatprep.subr.bf16.mxu0 %v10853_v46  ;;  %v10925_v46 = vld [vmem:[%s15693_s11 + $0x136c] ss:$40 sps:$4 sm:$0xff]  }
 0x252   : > { %6160 = vmatpush1.bf16.msra.mxu1 %v10848_v60  ;;  %v2031_v60 = vadd.f32 1.0, %v11668_v33  ;;  %v10986_v33 = vld [vmem:[%s15693_s11 + $0x240] ss:$40 sps:$4 sm:$0xff]  }
 0x253   : > { %6365 = vmatpush1.bf16.msra.mxu0 %v10851_v30  ;;  %6161 = vmatprep.subr.bf16.mxu1 %v10856_v31  ;;  %v10920_v30 = vld [vmem:[%s15693_s11 + $0x1360] ss:$40 sps:$4 sm:$0xff]  }
 0x254   : > { %6366 = vmatprep.subr.bf16.mxu0 %v10859_v49  ;;  %v10923_v31 = vld [vmem:[%s15693_s11 + $0x1368] ss:$40 sps:$4 sm:$0xff]   ;;  %v10928_v49 = vld [vmem:[%s15693_s11 + $0x13b4] ss:$40 sps:$4 sm:$0xff]   ;;  %11671 = vrcp.f32 %v2031_v60 }
 0x255   : > { %v10992_v60 = vld [vmem:[%s15693_s11 + $0x290] ss:$40 sps:$4 sm:$0xff]  }
 0x256   : > { %6162 = vmatpush1.bf16.msra.mxu1 %v10854_v39  ;;  %v11670_v39 = vpop.eup %11669 }
 0x257   : > { %6367 = vmatpush1.bf16.msra.mxu0 %v10857_v55  ;;  %6163 = vmatprep.subr.bf16.mxu1 %v10862_v52  ;;  %v10931_v55 = vld [vmem:[%s15693_s11 + $0x13bc] ss:$40 sps:$4 sm:$0xff]   ;;  %v10926_v52 = vld [vmem:[%s15693_s11 + $0x13b0] ss:$40 sps:$4 sm:$0xff]  }
 0x258   : > { %6368 = vmatprep.subr.bf16.mxu0 %v10865_v58  ;;  %v2056_v58 = vmul.f32 %v11670_v39, %v13514_v27  ;;  %v10938_v27 = vld [vmem:[%s15693_s11 + $0x1450] ss:$40 sps:$4 sm:$0xff]   ;;  %v10998_v39 = vld [vmem:[%s15693_s11 + $0x2e0] ss:$40 sps:$4 sm:$0xff]  }
 0x25a   : > { %6164 = vmatpush1.bf16.msra.mxu1 %v10860_v16  ;;  %v10929_v16 = vld [vmem:[%s15693_s11 + $0x13b8] ss:$40 sps:$4 sm:$0xff]  }
 0x25b   : > { %6369 = vmatpush1.bf16.msra.mxu0 %v10863_v34  ;;  %6165 = vmatprep.subr.bf16.mxu1 %v10868_v22  ;;  %v10934_v34 = vld [vmem:[%s15693_s11 + $0x1404] ss:$40 sps:$4 sm:$0xff]  }
 0x25c   : > { %6370 = vmatprep.subr.bf16.mxu0 %v10871_v0  ;;  %v10937_v22 = vld [vmem:[%s15693_s11 + $0x140c] ss:$40 sps:$4 sm:$0xff]   ;;  %v10932_v0 = vld [vmem:[%s15693_s11 + $0x1400] ss:$40 sps:$4 sm:$0xff]  }
 0x25e   : > { %6166 = vmatpush1.bf16.msra.mxu1 %v10866_v23  ;;  %v13646_v23 = vpack.c.bf16 %v2056_v58, %v2056_v58  ;;  %v11009_v58 = vld [vmem:[%s15693_s11 + $0x33c] ss:$40 sps:$4 sm:$0xff]  }
 0x25f   : > { %6371 = vmatpush1.bf16.msra.mxu0 %v10869_v29  ;;  %6167 = vmatprep.subr.bf16.mxu1 %v10874_v2  ;;  %v10935_v29 = vld [vmem:[%s15693_s11 + $0x1408] ss:$40 sps:$4 sm:$0xff]   ;;  %v10940_v2 = vld [vmem:[%s15693_s11 + $0x1454] ss:$40 sps:$4 sm:$0xff]  }
 0x260   : > { %6372 = vmatprep.subr.bf16.mxu0 %v10877_v1  ;;  %v10943_v1 = vld [vmem:[%s15693_s11 + $0x145c] ss:$40 sps:$4 sm:$0xff]  }
 0x262   : > { %6168 = vmatpush1.bf16.msra.mxu1 %v10872_v19  ;;  %v10941_v19 = vld [vmem:[%s15693_s11 + $0x1458] ss:$40 sps:$4 sm:$0xff]  }
 0x263   : > { %6373 = vmatpush1.bf16.msra.mxu0 %v10875_v6  ;;  %6169 = vmatprep.subr.bf16.mxu1 %v10880_v40  ;;  %v10946_v6 = vld [vmem:[%s15693_s11 + $0x14] ss:$40 sps:$4 sm:$0xff]   ;;  %v11672_v40 = vpop.eup %11671 }
 0x264   : > { %6374 = vmatprep.subr.bf16.mxu0 %v10883_v18  ;;  %v10949_v18 = vld [vmem:[%s15693_s11 + $0x1c] ss:$40 sps:$4 sm:$0xff]   ;;  %v2058_v41 = vmul.f32 %v11672_v40, %v13555_v3 }
 0x265   : > { %v10961_v3 = vld [vmem:[%s15693_s11 + $0xbc] ss:$40 sps:$4 sm:$0xff]  }
 0x266   : > { %6170 = vmatpush1.bf16.msra.mxu1 %v10878_v43  ;;  %v10944_v43 = vld [vmem:[%s15693_s11 + $0x10] ss:$40 sps:$4 sm:$0xff]   ;;  %v11024_v40 = vld [vmem:[%s15693_s11 + $0x424] ss:$40 sps:$4 sm:$0xff]  }
 0x267   : > { %6375 = vmatpush1.bf16.msra.mxu0 %v10881_v13  ;;  %6171 = vmatprep.subr.bf16.mxu1 %v10886_v57  ;;  %v13677_v13 = vpack.c.bf16 %v2058_v41, %v2058_v41  ;;  %v10947_v57 = vld [vmem:[%s15693_s11 + $0x18] ss:$40 sps:$4 sm:$0xff]  }
 0x268   : > { %6376 = vmatprep.subr.bf16.mxu0 %v10889_v5  ;;  %v10952_v5 = vld [vmem:[%s15693_s11 + $0x64] ss:$40 sps:$4 sm:$0xff]   ;;  %v11022_v41 = vld [vmem:[%s15693_s11 + $0x420] ss:$40 sps:$4 sm:$0xff]  }
 0x26a   : > { %6172 = vmatpush1.bf16.msra.mxu1 %v10884_v26  ;;  %v10955_v26 = vld [vmem:[%s15693_s11 + $0x6c] ss:$40 sps:$4 sm:$0xff]  }
 0x26b   : > { %6377 = vmatpush1.bf16.msra.mxu0 %v10887_v15  ;;  %6173 = vmatprep.subr.bf16.mxu1 %v10892_v32  ;;  %v10950_v15 = vld [vmem:[%s15693_s11 + $0x60] ss:$40 sps:$4 sm:$0xff]  }
 0x26c   : > { %6378 = vmatprep.subr.bf16.mxu0 %v10895_v21  ;;  %v10953_v32 = vld [vmem:[%s15693_s11 + $0x68] ss:$40 sps:$4 sm:$0xff]   ;;  %v10958_v21 = vld [vmem:[%s15693_s11 + $0xb4] ss:$40 sps:$4 sm:$0xff]  }
 0x26e   : > { %6174 = vmatpush1.bf16.msra.mxu1 %v10890_v12  ;;  %v10956_v12 = vld [vmem:[%s15693_s11 + $0xb0] ss:$40 sps:$4 sm:$0xff]  }
 0x26f   : > { %6379 = vmatpush1.bf16.msra.mxu0 %v10893_v20  ;;  %6175 = vmatprep.subr.bf16.mxu1 %v10898_v35  ;;  %v10959_v20 = vld [vmem:[%s15693_s11 + $0xb8] ss:$40 sps:$4 sm:$0xff]   ;;  %v10964_v35 = vld [vmem:[%s15693_s11 + $0x104] ss:$40 sps:$4 sm:$0xff]  }
 0x270   : > { %6380 = vmatprep.subr.bf16.mxu0 %v10901_v48  ;;  %v10967_v48 = vld [vmem:[%s15693_s11 + $0x10c] ss:$40 sps:$4 sm:$0xff]  }
 0x272   : > { %6176 = vmatpush1.bf16.msra.mxu1 %v10896_v9  ;;  %v10965_v9 = vld [vmem:[%s15693_s11 + $0x108] ss:$40 sps:$4 sm:$0xff]  }
 0x273   : > { %6381 = vmatpush1.bf16.msra.mxu0 %v10899_v14  ;;  %6177 = vmatprep.subr.bf16.mxu1 %v10904_v7  ;;  %v10973_v14 = vld [vmem:[%s15693_s11 + $0x15c] ss:$40 sps:$4 sm:$0xff]   ;;  %v10968_v7 = vld [vmem:[%s15693_s11 + $0x150] ss:$40 sps:$4 sm:$0xff]  }
 0x274   : > { %6382 = vmatprep.subr.bf16.mxu0 %v10907_v44  ;;  %v10971_v44 = vld [vmem:[%s15693_s11 + $0x158] ss:$40 sps:$4 sm:$0xff]  }
 0x276   : > { %6178 = vmatpush1.bf16.msra.mxu1 %v10902_v37  ;;  %v10979_v37 = vld [vmem:[%s15693_s11 + $0x1ac] ss:$40 sps:$4 sm:$0xff]  }
 0x277   : > { %6383 = vmatpush1.bf16.msra.mxu0 %v10905_v56  ;;  %6179 = vmatprep.subr.bf16.mxu1 %v10910_v61  ;;  %v10974_v56 = vld [vmem:[%s15693_s11 + $0x1a0] ss:$40 sps:$4 sm:$0xff]  }
 0x278   : > { %6384 = vmatprep.subr.bf16.mxu0 %v10913_v42  ;;  %v10977_v61 = vld [vmem:[%s15693_s11 + $0x1a8] ss:$40 sps:$4 sm:$0xff]   ;;  %v10982_v42 = vld [vmem:[%s15693_s11 + $0x1f4] ss:$40 sps:$4 sm:$0xff]  }
 0x27a   : > { %6180 = vmatpush1.bf16.msra.mxu1 %v10908_v50  ;;  %v10985_v50 = vld [vmem:[%s15693_s11 + $0x1fc] ss:$40 sps:$4 sm:$0xff]  }
 0x27b   : > { %6385 = vmatpush1.bf16.msra.mxu0 %v10911_v10  ;;  %6181 = vmatprep.subr.bf16.mxu1 %v10916_v24  ;;  %v10980_v10 = vld [vmem:[%s15693_s11 + $0x1f0] ss:$40 sps:$4 sm:$0xff]  }
 0x27c   : > { %6386 = vmatprep.subr.bf16.mxu0 %v10919_v11  ;;  %v10983_v24 = vld [vmem:[%s15693_s11 + $0x1f8] ss:$40 sps:$4 sm:$0xff]   ;;  %v10988_v11 = vld [vmem:[%s15693_s11 + $0x244] ss:$40 sps:$4 sm:$0xff]  }
 0x27e   : > { %6182 = vmatpush1.bf16.msra.mxu1 %v10914_v45  ;;  %v10991_v45 = vld [vmem:[%s15693_s11 + $0x24c] ss:$40 sps:$4 sm:$0xff]  }
 0x27f   : > { %6387 = vmatpush1.bf16.msra.mxu0 %v10917_v59  ;;  %6183 = vmatprep.subr.bf16.mxu1 %v10922_v47  ;;  %v10989_v59 = vld [vmem:[%s15693_s11 + $0x248] ss:$40 sps:$4 sm:$0xff]   ;;  %v10994_v47 = vld [vmem:[%s15693_s11 + $0x294] ss:$40 sps:$4 sm:$0xff]  }
 0x280   : > { %6388 = vmatprep.subr.bf16.mxu0 %v10925_v46  ;;  %v10997_v46 = vld [vmem:[%s15693_s11 + $0x29c] ss:$40 sps:$4 sm:$0xff]  }
 0x282   : > { %6184 = vmatpush1.bf16.msra.mxu1 %v10920_v30  ;;  %v10995_v30 = vld [vmem:[%s15693_s11 + $0x298] ss:$40 sps:$4 sm:$0xff]  }
 0x283   : > { %6389 = vmatpush1.bf16.msra.mxu0 %v10923_v31  ;;  %6185 = vmatprep.subr.bf16.mxu1 %v10928_v49  ;;  %v11000_v31 = vld [vmem:[%s15693_s11 + $0x2e4] ss:$40 sps:$4 sm:$0xff]  }
 0x284   : > { %6390 = vmatprep.subr.bf16.mxu0 %v10931_v55  ;;  %v11003_v49 = vld [vmem:[%s15693_s11 + $0x2ec] ss:$40 sps:$4 sm:$0xff]   ;;  %v11001_v55 = vld [vmem:[%s15693_s11 + $0x2e8] ss:$40 sps:$4 sm:$0xff]  }
 0x286   : > { %6186 = vmatpush1.bf16.msra.mxu1 %v10926_v52  ;;  %v11006_v52 = vld [vmem:[%s15693_s11 + $0x334] ss:$40 sps:$4 sm:$0xff]  }
 0x287   : > { %6391 = vmatpush1.bf16.msra.mxu0 %v10929_v16  ;;  %6196 = vmatprep.subr.bf16.mxu1 %v10934_v34  ;;  %v11004_v16 = vld [vmem:[%s15693_s11 + $0x330] ss:$40 sps:$4 sm:$0xff]  }
 0x288   : > { %6401 = vmatprep.subr.bf16.mxu0 %v10937_v22  ;;  %v11007_v34 = vld [vmem:[%s15693_s11 + $0x338] ss:$40 sps:$4 sm:$0xff]   ;;  %v11012_v22 = vld [vmem:[%s15693_s11 + $0x384] ss:$40 sps:$4 sm:$0xff]  }
 0x289   : > { %6188 = vmatmul.mubr.bf16.vlgmr.msra.gmra.mrb[8].mxu1 %v13646_v23 }
 0x28a   : > { %6393 = vmatmul.mubr.bf16.vlgmr.msra.gmra.mrb[12].mxu0 %v13646_v23  ;;  %6197 = vmatpush1.bf16.msra.mxu1 %v10932_v0  ;;  %v11015_v0 = vld [vmem:[%s15693_s11 + $0x38c] ss:$40 sps:$4 sm:$0xff]  }
 0x28b   : > { %6402 = vmatpush1.bf16.msra.mxu0 %v10935_v29  ;;  %6198 = vmatprep.subr.bf16.mxu1 %v10940_v2  ;;  %v11010_v29 = vld [vmem:[%s15693_s11 + $0x380] ss:$40 sps:$4 sm:$0xff]  }
 0x28c   : > { %6403 = vmatprep.subr.bf16.mxu0 %v10943_v1  ;;  %6228 = vmatprep.mubr.bf16.mxu1 %v11804_v51  ;;  %v11013_v2 = vld [vmem:[%s15693_s11 + $0x388] ss:$40 sps:$4 sm:$0xff]   ;;  %v11018_v1 = vld [vmem:[%s15693_s11 + $0x3d4] ss:$40 sps:$4 sm:$0xff]  }
 0x28d   : > { %6433 = vmatprep.mubr.bf16.mxu0 %v11804_v51 }
 0x28e   : > { %6199 = vmatpush1.bf16.msra.mxu1 %v10938_v27  ;;  %v11021_v27 = vld [vmem:[%s15693_s11 + $0x3dc] ss:$40 sps:$4 sm:$0xff]  }
 0x28f   : > { %6404 = vmatpush1.bf16.msra.mxu0 %v10941_v19  ;;  %6442 = vmatprep.subr.bf16.mxu1 %v10946_v6  ;;  %v11016_v19 = vld [vmem:[%s15693_s11 + $0x3d0] ss:$40 sps:$4 sm:$0xff]  }
 0x290   : > { %6647 = vmatprep.subr.bf16.mxu0 %v10949_v18  ;;  %v11019_v6 = vld [vmem:[%s15693_s11 + $0x3d8] ss:$40 sps:$4 sm:$0xff]   ;;  %v11027_v18 = vld [vmem:[%s15693_s11 + $0x42c] ss:$40 sps:$4 sm:$0xff]  }
 0x295   : > { %10059 = vmatmul.mubr.msk.bf16.vlgmr.msra.gmra.mrb[8].mxu1 %vm6028_vm2, %v13677_v13 }
 0x296   : > { %10060 = vmatmul.mubr.msk.bf16.vlgmr.msra.gmra.mrb[12].mxu0 %vm6028_vm2, %v13677_v13  ;;  %6443 = vmatpush1.bf16.msra.mxu1 %v10944_v43  ;;  %v11025_v43 = vld [vmem:[%s15693_s11 + $0x428] ss:$40 sps:$4 sm:$0xff]  }
 0x297   : > { %6648 = vmatpush1.bf16.msra.mxu0 %v10947_v57  ;;  %6474 = vmatprep.mubr.bf16.mxu1 %v12996_v53  ;;  %v11030_v57 = vld [vmem:[%s15693_s11 + $0x474] ss:$40 sps:$4 sm:$0xff]  }
 0x298   : > { %6679 = vmatprep.mubr.bf16.mxu0 %v12996_v53  ;;  %6444 = vmatprep.subr.bf16.mxu1 %v10952_v5  ;;  %v11033_v5 = vld [vmem:[%s15693_s11 + $0x47c] ss:$40 sps:$4 sm:$0xff]  }
 0x299   : > { %6649 = vmatprep.subr.bf16.mxu0 %v10955_v26  ;;  %v11028_v26 = vld [vmem:[%s15693_s11 + $0x470] ss:$40 sps:$4 sm:$0xff]  }
 0x29a   : > { %6445 = vmatpush1.bf16.msra.mxu1 %v10950_v15  ;;  %v11031_v15 = vld [vmem:[%s15693_s11 + $0x478] ss:$40 sps:$4 sm:$0xff]  }
 0x29b   : > { %6650 = vmatpush1.bf16.msra.mxu0 %v10953_v32  ;;  %6446 = vmatprep.subr.bf16.mxu1 %v10958_v21  ;;  %v11036_v32 = vld [vmem:[%s15693_s11 + $0x4c4] ss:$40 sps:$4 sm:$0xff]  }
 0x29c   : > { %6651 = vmatprep.subr.bf16.mxu0 %v10961_v3  ;;  %v11039_v21 = vld [vmem:[%s15693_s11 + $0x4cc] ss:$40 sps:$4 sm:$0xff]   ;;  %v11034_v3 = vld [vmem:[%s15693_s11 + $0x4c0] ss:$40 sps:$4 sm:$0xff]  }
 0x29e   : > { %6447 = vmatpush1.bf16.msra.mxu1 %v10956_v12  ;;  %v11037_v12 = vld [vmem:[%s15693_s11 + $0x4c8] ss:$40 sps:$4 sm:$0xff]  }
 0x29f   : > { %6652 = vmatpush1.bf16.msra.mxu0 %v10959_v20  ;;  %6448 = vmatprep.subr.bf16.mxu1 %v10964_v35  ;;  %v11042_v20 = vld [vmem:[%s15693_s11 + $0x514] ss:$40 sps:$4 sm:$0xff]  }
 0x2a0   : > { %6653 = vmatprep.subr.bf16.mxu0 %v10967_v48  ;;  %v11045_v35 = vld [vmem:[%s15693_s11 + $0x51c] ss:$40 sps:$4 sm:$0xff]   ;;  %v11040_v48 = vld [vmem:[%s15693_s11 + $0x510] ss:$40 sps:$4 sm:$0xff]  }
 0x2a2   : > { %6449 = vmatpush1.bf16.msra.mxu1 %v10962_v38  ;;  %v11043_v38 = vld [vmem:[%s15693_s11 + $0x518] ss:$40 sps:$4 sm:$0xff]  }
 0x2a3   : > { %6654 = vmatpush1.bf16.msra.mxu0 %v10965_v9  ;;  %6450 = vmatprep.subr.bf16.mxu1 %v10970_v8  ;;  %v11048_v9 = vld [vmem:[%s15693_s11 + $0x564] ss:$40 sps:$4 sm:$0xff]  }
 0x2a4   : > { %6655 = vmatprep.subr.bf16.mxu0 %v10973_v14  ;;  %v11051_v8 = vld [vmem:[%s15693_s11 + $0x56c] ss:$40 sps:$4 sm:$0xff]   ;;  %v11046_v14 = vld [vmem:[%s15693_s11 + $0x560] ss:$40 sps:$4 sm:$0xff]  }
 0x2a6   : > { %6451 = vmatpush1.bf16.msra.mxu1 %v10968_v7  ;;  %v11049_v7 = vld [vmem:[%s15693_s11 + $0x568] ss:$40 sps:$4 sm:$0xff]  }
 0x2a7   : > { %6656 = vmatpush1.bf16.msra.mxu0 %v10971_v44  ;;  %6452 = vmatprep.subr.bf16.mxu1 %v10976_v17  ;;  %v11054_v44 = vld [vmem:[%s15693_s11 + $0x5b4] ss:$40 sps:$4 sm:$0xff]  }
 0x2a8   : > { %6657 = vmatprep.subr.bf16.mxu0 %v10979_v37  ;;  %v11057_v17 = vld [vmem:[%s15693_s11 + $0x5bc] ss:$40 sps:$4 sm:$0xff]   ;;  %v11052_v37 = vld [vmem:[%s15693_s11 + $0x5b0] ss:$40 sps:$4 sm:$0xff]  }
 0x2aa   : > { %6453 = vmatpush1.bf16.msra.mxu1 %v10974_v56  ;;  %v11055_v56 = vld [vmem:[%s15693_s11 + $0x5b8] ss:$40 sps:$4 sm:$0xff]  }
 0x2ab   : > { %6658 = vmatpush1.bf16.msra.mxu0 %v10977_v61  ;;  %6454 = vmatprep.subr.bf16.mxu1 %v10982_v42  ;;  %v11060_v61 = vld [vmem:[%s15693_s11 + $0x604] ss:$40 sps:$4 sm:$0xff]  }
 0x2ac   : > { %6659 = vmatprep.subr.bf16.mxu0 %v10985_v50  ;;  %v11063_v42 = vld [vmem:[%s15693_s11 + $0x60c] ss:$40 sps:$4 sm:$0xff]   ;;  %v11058_v50 = vld [vmem:[%s15693_s11 + $0x600] ss:$40 sps:$4 sm:$0xff]  }
 0x2ae   : > { %6455 = vmatpush1.bf16.msra.mxu1 %v10980_v10  ;;  %v11061_v10 = vld [vmem:[%s15693_s11 + $0x608] ss:$40 sps:$4 sm:$0xff]  }
 0x2af   : > { %6660 = vmatpush1.bf16.msra.mxu0 %v10983_v24  ;;  %6456 = vmatprep.subr.bf16.mxu1 %v10988_v11  ;;  %v11066_v24 = vld [vmem:[%s15693_s11 + $0x654] ss:$40 sps:$4 sm:$0xff]  }
 0x2b0   : > { %6661 = vmatprep.subr.bf16.mxu0 %v10991_v45  ;;  %v11069_v11 = vld [vmem:[%s15693_s11 + $0x65c] ss:$40 sps:$4 sm:$0xff]   ;;  %v11064_v45 = vld [vmem:[%s15693_s11 + $0x650] ss:$40 sps:$4 sm:$0xff]  }
 0x2b2   : > { %6457 = vmatpush1.bf16.msra.mxu1 %v10986_v33  ;;  %v11067_v33 = vld [vmem:[%s15693_s11 + $0x658] ss:$40 sps:$4 sm:$0xff]  }
 0x2b3   : > { %6662 = vmatpush1.bf16.msra.mxu0 %v10989_v59  ;;  %6458 = vmatprep.subr.bf16.mxu1 %v10994_v47  ;;  %v11072_v59 = vld [vmem:[%s15693_s11 + $0x6a4] ss:$40 sps:$4 sm:$0xff]  }
 0x2b4   : > { %6663 = vmatprep.subr.bf16.mxu0 %v10997_v46  ;;  %v11075_v47 = vld [vmem:[%s15693_s11 + $0x6ac] ss:$40 sps:$4 sm:$0xff]   ;;  %v11070_v46 = vld [vmem:[%s15693_s11 + $0x6a0] ss:$40 sps:$4 sm:$0xff]  }
 0x2b6   : > { %6459 = vmatpush1.bf16.msra.mxu1 %v10992_v60  ;;  %v11073_v60 = vld [vmem:[%s15693_s11 + $0x6a8] ss:$40 sps:$4 sm:$0xff]  }
 0x2b7   : > { %6664 = vmatpush1.bf16.msra.mxu0 %v10995_v30  ;;  %6460 = vmatprep.subr.bf16.mxu1 %v11000_v31  ;;  %v11078_v30 = vld [vmem:[%s15693_s11 + $0x6f4] ss:$40 sps:$4 sm:$0xff]  }
 0x2b8   : > { %6665 = vmatprep.subr.bf16.mxu0 %v11003_v49  ;;  %v11081_v31 = vld [vmem:[%s15693_s11 + $0x6fc] ss:$40 sps:$4 sm:$0xff]   ;;  %v11076_v49 = vld [vmem:[%s15693_s11 + $0x6f0] ss:$40 sps:$4 sm:$0xff]  }
 0x2ba   : > { %6461 = vmatpush1.bf16.msra.mxu1 %v10998_v39  ;;  %v11079_v39 = vld [vmem:[%s15693_s11 + $0x6f8] ss:$40 sps:$4 sm:$0xff]  }
 0x2bb   : > { %6666 = vmatpush1.bf16.msra.mxu0 %v11001_v55  ;;  %6462 = vmatprep.subr.bf16.mxu1 %v11006_v52  ;;  %v11084_v55 = vld [vmem:[%s15693_s11 + $0x744] ss:$40 sps:$4 sm:$0xff]  }
 0x2bc   : > { %6667 = vmatprep.subr.bf16.mxu0 %v11009_v58  ;;  %v11087_v52 = vld [vmem:[%s15693_s11 + $0x74c] ss:$40 sps:$4 sm:$0xff]   ;;  %v11082_v58 = vld [vmem:[%s15693_s11 + $0x740] ss:$40 sps:$4 sm:$0xff]  }
 0x2be   : > { %6463 = vmatpush1.bf16.msra.mxu1 %v11004_v16  ;;  %v11085_v16 = vld [vmem:[%s15693_s11 + $0x748] ss:$40 sps:$4 sm:$0xff]  }
 0x2bf   : > { %6668 = vmatpush1.bf16.msra.mxu0 %v11007_v34  ;;  %6464 = vmatprep.subr.bf16.mxu1 %v11012_v22  ;;  %v11090_v34 = vld [vmem:[%s15693_s11 + $0x794] ss:$40 sps:$4 sm:$0xff]  }
 0x2c0   : > { %6669 = vmatprep.subr.bf16.mxu0 %v11015_v0  ;;  %v11093_v22 = vld [vmem:[%s15693_s11 + $0x79c] ss:$40 sps:$4 sm:$0xff]   ;;  %v11088_v0 = vld [vmem:[%s15693_s11 + $0x790] ss:$40 sps:$4 sm:$0xff]  }
 0x2c2   : > { %6465 = vmatpush1.bf16.msra.mxu1 %v11010_v29  ;;  %v11091_v29 = vld [vmem:[%s15693_s11 + $0x798] ss:$40 sps:$4 sm:$0xff]  }
 0x2c3   : > { %6670 = vmatpush1.bf16.msra.mxu0 %v11013_v2  ;;  %6466 = vmatprep.subr.bf16.mxu1 %v11018_v1  ;;  %v11096_v2 = vld [vmem:[%s15693_s11 + $0x7e4] ss:$40 sps:$4 sm:$0xff]  }
 0x2c4   : > { %6671 = vmatprep.subr.bf16.mxu0 %v11021_v27  ;;  %v11099_v1 = vld [vmem:[%s15693_s11 + $0x7ec] ss:$40 sps:$4 sm:$0xff]   ;;  %v11094_v27 = vld [vmem:[%s15693_s11 + $0x7e0] ss:$40 sps:$4 sm:$0xff]  }
 0x2c6   : > { %6467 = vmatpush1.bf16.msra.mxu1 %v11016_v19  ;;  %v11097_v19 = vld [vmem:[%s15693_s11 + $0x7e8] ss:$40 sps:$4 sm:$0xff]  }
 0x2c7   : > { %6672 = vmatpush1.bf16.msra.mxu0 %v11019_v6  ;;  %6468 = vmatprep.subr.bf16.mxu1 %v11024_v40  ;;  %v11102_v6 = vld [vmem:[%s15693_s11 + $0x834] ss:$40 sps:$4 sm:$0xff]  }
 0x2c8   : > { %6673 = vmatprep.subr.bf16.mxu0 %v11027_v18  ;;  %v11105_v40 = vld [vmem:[%s15693_s11 + $0x83c] ss:$40 sps:$4 sm:$0xff]   ;;  %v11100_v18 = vld [vmem:[%s15693_s11 + $0x830] ss:$40 sps:$4 sm:$0xff]  }
 0x2ca   : > { %6469 = vmatpush1.bf16.msra.mxu1 %v11022_v41  ;;  %v11103_v41 = vld [vmem:[%s15693_s11 + $0x838] ss:$40 sps:$4 sm:$0xff]  }
 0x2cb   : > { %6674 = vmatpush1.bf16.msra.mxu0 %v11025_v43  ;;  %6470 = vmatprep.subr.bf16.mxu1 %v11030_v57  ;;  %v11108_v43 = vld [vmem:[%s15693_s11 + $0x884] ss:$40 sps:$4 sm:$0xff]  }
 0x2cc   : > { %6675 = vmatprep.subr.bf16.mxu0 %v11033_v5  ;;  %v11111_v57 = vld [vmem:[%s15693_s11 + $0x88c] ss:$40 sps:$4 sm:$0xff]   ;;  %v11106_v5 = vld [vmem:[%s15693_s11 + $0x880] ss:$40 sps:$4 sm:$0xff]  }
 0x2ce   : > { %6471 = vmatpush1.bf16.msra.mxu1 %v11028_v26  ;;  %v11109_v26 = vld [vmem:[%s15693_s11 + $0x888] ss:$40 sps:$4 sm:$0xff]  }
 0x2cf   : > { %6676 = vmatpush1.bf16.msra.mxu0 %v11031_v15  ;;  %6472 = vmatprep.subr.bf16.mxu1 %v11036_v32  ;;  %v11114_v15 = vld [vmem:[%s15693_s11 + $0x8d4] ss:$40 sps:$4 sm:$0xff]  }
 0x2d0   : > { %6677 = vmatprep.subr.bf16.mxu0 %v11039_v21  ;;  %v11117_v32 = vld [vmem:[%s15693_s11 + $0x8dc] ss:$40 sps:$4 sm:$0xff]   ;;  %v11112_v21 = vld [vmem:[%s15693_s11 + $0x8d0] ss:$40 sps:$4 sm:$0xff]  }
 0x2d2   : > { %6473 = vmatpush1.bf16.msra.mxu1 %v11034_v3  ;;  %v11115_v3 = vld [vmem:[%s15693_s11 + $0x8d8] ss:$40 sps:$4 sm:$0xff]  }
 0x2d3   : > { %6678 = vmatpush1.bf16.msra.mxu0 %v11037_v12  ;;  %6483 = vmatprep.subr.bf16.mxu1 %v11042_v20  ;;  %v11120_v12 = vld [vmem:[%s15693_s11 + $0x924] ss:$40 sps:$4 sm:$0xff]  }
 0x2d4   : > { %6688 = vmatprep.subr.bf16.mxu0 %v11045_v35  ;;  %v11123_v20 = vld [vmem:[%s15693_s11 + $0x92c] ss:$40 sps:$4 sm:$0xff]   ;;  %v11118_v35 = vld [vmem:[%s15693_s11 + $0x920] ss:$40 sps:$4 sm:$0xff]  }
 0x2d5   : > { %6475 = vmatmul.mubr.bf16.vlgmr.msra.gmra.mrb[12].mxu1 %v13004_v28 }
 0x2d6   : > { %6680 = vmatmul.mubr.bf16.vlgmr.msra.gmra.mrb[16].mxu0 %v13004_v28  ;;  %6484 = vmatpush1.bf16.msra.mxu1 %v11040_v48  ;;  %v11121_v48 = vld [vmem:[%s15693_s11 + $0x928] ss:$40 sps:$4 sm:$0xff]  }
 0x2d7   : > { %6515 = vmatprep.mubr.bf16.mxu1 %v13121_v54  ;;  %6689 = vmatpush1.bf16.msra.mxu0 %v11043_v38  ;;  %v11126_v38 = vld [vmem:[%s15693_s11 + $0x974] ss:$40 sps:$4 sm:$0xff]  }
 0x2d8   : > { %6720 = vmatprep.mubr.bf16.mxu0 %v13121_v54  ;;  %6485 = vmatprep.subr.bf16.mxu1 %v11048_v9  ;;  %v11129_v9 = vld [vmem:[%s15693_s11 + $0x97c] ss:$40 sps:$4 sm:$0xff]  }
 0x2d9   : > { %6690 = vmatprep.subr.bf16.mxu0 %v11051_v8  ;;  %v11124_v8 = vld [vmem:[%s15693_s11 + $0x970] ss:$40 sps:$4 sm:$0xff]  }
 0x2da   : > { %6486 = vmatpush1.bf16.msra.mxu1 %v11046_v14  ;;  %v11127_v14 = vld [vmem:[%s15693_s11 + $0x978] ss:$40 sps:$4 sm:$0xff]  }
 0x2db   : > { %6691 = vmatpush1.bf16.msra.mxu0 %v11049_v7  ;;  %6487 = vmatprep.subr.bf16.mxu1 %v11054_v44  ;;  %v11132_v7 = vld [vmem:[%s15693_s11 + $0x9c4] ss:$40 sps:$4 sm:$0xff]  }
 0x2dc   : > { %6692 = vmatprep.subr.bf16.mxu0 %v11057_v17  ;;  %v11135_v44 = vld [vmem:[%s15693_s11 + $0x9cc] ss:$40 sps:$4 sm:$0xff]   ;;  %v11130_v17 = vld [vmem:[%s15693_s11 + $0x9c0] ss:$40 sps:$4 sm:$0xff]  }
 0x2de   : > { %6488 = vmatpush1.bf16.msra.mxu1 %v11052_v37  ;;  %v11133_v37 = vld [vmem:[%s15693_s11 + $0x9c8] ss:$40 sps:$4 sm:$0xff]  }
 0x2df   : > { %6693 = vmatpush1.bf16.msra.mxu0 %v11055_v56  ;;  %6489 = vmatprep.subr.bf16.mxu1 %v11060_v61  ;;  %v11138_v56 = vld [vmem:[%s15693_s11 + $0xa14] ss:$40 sps:$4 sm:$0xff]  }
 0x2e0   : > { %6694 = vmatprep.subr.bf16.mxu0 %v11063_v42  ;;  %v11141_v61 = vld [vmem:[%s15693_s11 + $0xa1c] ss:$40 sps:$4 sm:$0xff]   ;;  %v11136_v42 = vld [vmem:[%s15693_s11 + $0xa10] ss:$40 sps:$4 sm:$0xff]  }
 0x2e2   : > { %6490 = vmatpush1.bf16.msra.mxu1 %v11058_v50  ;;  %v11139_v50 = vld [vmem:[%s15693_s11 + $0xa18] ss:$40 sps:$4 sm:$0xff]  }
 0x2e3   : > { %6695 = vmatpush1.bf16.msra.mxu0 %v11061_v10  ;;  %6491 = vmatprep.subr.bf16.mxu1 %v11066_v24  ;;  %v11144_v10 = vld [vmem:[%s15693_s11 + $0xa64] ss:$40 sps:$4 sm:$0xff]  }
 0x2e4   : > { %6696 = vmatprep.subr.bf16.mxu0 %v11069_v11  ;;  %v11147_v24 = vld [vmem:[%s15693_s11 + $0xa6c] ss:$40 sps:$4 sm:$0xff]   ;;  %v11142_v11 = vld [vmem:[%s15693_s11 + $0xa60] ss:$40 sps:$4 sm:$0xff]  }
 0x2e6   : > { %6492 = vmatpush1.bf16.msra.mxu1 %v11064_v45  ;;  %v11145_v45 = vld [vmem:[%s15693_s11 + $0xa68] ss:$40 sps:$4 sm:$0xff]  }
 0x2e7   : > { %6697 = vmatpush1.bf16.msra.mxu0 %v11067_v33  ;;  %6493 = vmatprep.subr.bf16.mxu1 %v11072_v59  ;;  %v11150_v33 = vld [vmem:[%s15693_s11 + $0xab4] ss:$40 sps:$4 sm:$0xff]  }
 0x2e8   : > { %6698 = vmatprep.subr.bf16.mxu0 %v11075_v47  ;;  %v11153_v59 = vld [vmem:[%s15693_s11 + $0xabc] ss:$40 sps:$4 sm:$0xff]   ;;  %v11148_v47 = vld [vmem:[%s15693_s11 + $0xab0] ss:$40 sps:$4 sm:$0xff]  }
 0x2ea   : > { %6494 = vmatpush1.bf16.msra.mxu1 %v11070_v46  ;;  %v11151_v46 = vld [vmem:[%s15693_s11 + $0xab8] ss:$40 sps:$4 sm:$0xff]  }
 0x2eb   : > { %6699 = vmatpush1.bf16.msra.mxu0 %v11073_v60  ;;  %6495 = vmatprep.subr.bf16.mxu1 %v11078_v30  ;;  %v11156_v60 = vld [vmem:[%s15693_s11 + $0xb04] ss:$40 sps:$4 sm:$0xff]  }
 0x2ec   : > { %6700 = vmatprep.subr.bf16.mxu0 %v11081_v31  ;;  %v11159_v30 = vld [vmem:[%s15693_s11 + $0xb0c] ss:$40 sps:$4 sm:$0xff]   ;;  %v11154_v31 = vld [vmem:[%s15693_s11 + $0xb00] ss:$40 sps:$4 sm:$0xff]  }
 0x2ee   : > { %6496 = vmatpush1.bf16.msra.mxu1 %v11076_v49  ;;  %v11157_v49 = vld [vmem:[%s15693_s11 + $0xb08] ss:$40 sps:$4 sm:$0xff]  }
 0x2ef   : > { %6701 = vmatpush1.bf16.msra.mxu0 %v11079_v39  ;;  %6497 = vmatprep.subr.bf16.mxu1 %v11084_v55  ;;  %v11162_v39 = vld [vmem:[%s15693_s11 + $0xb54] ss:$40 sps:$4 sm:$0xff]  }
 0x2f0   : > { %6702 = vmatprep.subr.bf16.mxu0 %v11087_v52  ;;  %v11165_v55 = vld [vmem:[%s15693_s11 + $0xb5c] ss:$40 sps:$4 sm:$0xff]   ;;  %v11160_v52 = vld [vmem:[%s15693_s11 + $0xb50] ss:$40 sps:$4 sm:$0xff]  }
 0x2f2   : > { %6498 = vmatpush1.bf16.msra.mxu1 %v11082_v58  ;;  %v11163_v58 = vld [vmem:[%s15693_s11 + $0xb58] ss:$40 sps:$4 sm:$0xff]  }
 0x2f3   : > { %6703 = vmatpush1.bf16.msra.mxu0 %v11085_v16  ;;  %6499 = vmatprep.subr.bf16.mxu1 %v11090_v34  ;;  %v11168_v16 = vld [vmem:[%s15693_s11 + $0xba4] ss:$40 sps:$4 sm:$0xff]  }
 0x2f4   : > { %6704 = vmatprep.subr.bf16.mxu0 %v11093_v22  ;;  %v11171_v34 = vld [vmem:[%s15693_s11 + $0xbac] ss:$40 sps:$4 sm:$0xff]   ;;  %v11166_v22 = vld [vmem:[%s15693_s11 + $0xba0] ss:$40 sps:$4 sm:$0xff]  }
 0x2f6   : > { %6500 = vmatpush1.bf16.msra.mxu1 %v11088_v0  ;;  %v11169_v0 = vld [vmem:[%s15693_s11 + $0xba8] ss:$40 sps:$4 sm:$0xff]  }
 0x2f7   : > { %6705 = vmatpush1.bf16.msra.mxu0 %v11091_v29  ;;  %6501 = vmatprep.subr.bf16.mxu1 %v11096_v2  ;;  %v11174_v29 = vld [vmem:[%s15693_s11 + $0xbf4] ss:$40 sps:$4 sm:$0xff]  }
 0x2f8   : > { %6706 = vmatprep.subr.bf16.mxu0 %v11099_v1  ;;  %v11177_v2 = vld [vmem:[%s15693_s11 + $0xbfc] ss:$40 sps:$4 sm:$0xff]   ;;  %v11172_v1 = vld [vmem:[%s15693_s11 + $0xbf0] ss:$40 sps:$4 sm:$0xff]  }
 0x2fa   : > { %6502 = vmatpush1.bf16.msra.mxu1 %v11094_v27  ;;  %v11175_v27 = vld [vmem:[%s15693_s11 + $0xbf8] ss:$40 sps:$4 sm:$0xff]  }
 0x2fb   : > { %6707 = vmatpush1.bf16.msra.mxu0 %v11097_v19  ;;  %6503 = vmatprep.subr.bf16.mxu1 %v11102_v6  ;;  %v11180_v19 = vld [vmem:[%s15693_s11 + $0xc44] ss:$40 sps:$4 sm:$0xff]  }
 0x2fc   : > { %6708 = vmatprep.subr.bf16.mxu0 %v11105_v40  ;;  %v11183_v6 = vld [vmem:[%s15693_s11 + $0xc4c] ss:$40 sps:$4 sm:$0xff]   ;;  %v11178_v40 = vld [vmem:[%s15693_s11 + $0xc40] ss:$40 sps:$4 sm:$0xff]  }
 0x2fe   : > { %6504 = vmatpush1.bf16.msra.mxu1 %v11100_v18  ;;  %v11181_v18 = vld [vmem:[%s15693_s11 + $0xc48] ss:$40 sps:$4 sm:$0xff]  }
 0x2ff   : > { %6709 = vmatpush1.bf16.msra.mxu0 %v11103_v41  ;;  %6505 = vmatprep.subr.bf16.mxu1 %v11108_v43  ;;  %v11186_v41 = vld [vmem:[%s15693_s11 + $0xc94] ss:$40 sps:$4 sm:$0xff]  }
 0x300   : > { %6710 = vmatprep.subr.bf16.mxu0 %v11111_v57  ;;  %v11189_v43 = vld [vmem:[%s15693_s11 + $0xc9c] ss:$40 sps:$4 sm:$0xff]   ;;  %v11184_v57 = vld [vmem:[%s15693_s11 + $0xc90] ss:$40 sps:$4 sm:$0xff]  }
 0x302   : > { %6506 = vmatpush1.bf16.msra.mxu1 %v11106_v5  ;;  %v11187_v5 = vld [vmem:[%s15693_s11 + $0xc98] ss:$40 sps:$4 sm:$0xff]  }
 0x303   : > { %6711 = vmatpush1.bf16.msra.mxu0 %v11109_v26  ;;  %6507 = vmatprep.subr.bf16.mxu1 %v11114_v15  ;;  %v11192_v26 = vld [vmem:[%s15693_s11 + $0xce4] ss:$40 sps:$4 sm:$0xff]  }
 0x304   : > { %6712 = vmatprep.subr.bf16.mxu0 %v11117_v32  ;;  %v11195_v15 = vld [vmem:[%s15693_s11 + $0xcec] ss:$40 sps:$4 sm:$0xff]   ;;  %v11190_v32 = vld [vmem:[%s15693_s11 + $0xce0] ss:$40 sps:$4 sm:$0xff]  }
 0x306   : > { %6508 = vmatpush1.bf16.msra.mxu1 %v11112_v21  ;;  %v11193_v21 = vld [vmem:[%s15693_s11 + $0xce8] ss:$40 sps:$4 sm:$0xff]  }
 0x307   : > { %6713 = vmatpush1.bf16.msra.mxu0 %v11115_v3  ;;  %6509 = vmatprep.subr.bf16.mxu1 %v11120_v12  ;;  %v11198_v3 = vld [vmem:[%s15693_s11 + $0xd34] ss:$40 sps:$4 sm:$0xff]  }
 0x308   : > { %6714 = vmatprep.subr.bf16.mxu0 %v11123_v20  ;;  %v11201_v12 = vld [vmem:[%s15693_s11 + $0xd3c] ss:$40 sps:$4 sm:$0xff]   ;;  %v11196_v20 = vld [vmem:[%s15693_s11 + $0xd30] ss:$40 sps:$4 sm:$0xff]  }
 0x30a   : > { %6510 = vmatpush1.bf16.msra.mxu1 %v11118_v35  ;;  %v11199_v35 = vld [vmem:[%s15693_s11 + $0xd38] ss:$40 sps:$4 sm:$0xff]  }
 0x30b   : > { %6715 = vmatpush1.bf16.msra.mxu0 %v11121_v48  ;;  %6511 = vmatprep.subr.bf16.mxu1 %v11126_v38  ;;  %v11204_v48 = vld [vmem:[%s15693_s11 + $0xd84] ss:$40 sps:$4 sm:$0xff]  }
 0x30c   : > { %6716 = vmatprep.subr.bf16.mxu0 %v11129_v9  ;;  %v11207_v38 = vld [vmem:[%s15693_s11 + $0xd8c] ss:$40 sps:$4 sm:$0xff]   ;;  %v11202_v9 = vld [vmem:[%s15693_s11 + $0xd80] ss:$40 sps:$4 sm:$0xff]  }
 0x30e   : > { %6512 = vmatpush1.bf16.msra.mxu1 %v11124_v8  ;;  %v11205_v8 = vld [vmem:[%s15693_s11 + $0xd88] ss:$40 sps:$4 sm:$0xff]  }
 0x30f   : > { %6717 = vmatpush1.bf16.msra.mxu0 %v11127_v14  ;;  %6513 = vmatprep.subr.bf16.mxu1 %v11132_v7  ;;  %v11210_v14 = vld [vmem:[%s15693_s11 + $0xdd4] ss:$40 sps:$4 sm:$0xff]  }
 0x310   : > { %6718 = vmatprep.subr.bf16.mxu0 %v11135_v44  ;;  %v11213_v7 = vld [vmem:[%s15693_s11 + $0xddc] ss:$40 sps:$4 sm:$0xff]   ;;  %v11208_v44 = vld [vmem:[%s15693_s11 + $0xdd0] ss:$40 sps:$4 sm:$0xff]  }
 0x312   : > { %6514 = vmatpush1.bf16.msra.mxu1 %v11130_v17  ;;  %v11211_v17 = vld [vmem:[%s15693_s11 + $0xdd8] ss:$40 sps:$4 sm:$0xff]  }
 0x313   : > { %6719 = vmatpush1.bf16.msra.mxu0 %v11133_v37  ;;  %6524 = vmatprep.subr.bf16.mxu1 %v11138_v56  ;;  %v11216_v37 = vld [vmem:[%s15693_s11 + $0xe24] ss:$40 sps:$4 sm:$0xff]  }
 0x314   : > { %6729 = vmatprep.subr.bf16.mxu0 %v11141_v61  ;;  %v11219_v56 = vld [vmem:[%s15693_s11 + $0xe2c] ss:$40 sps:$4 sm:$0xff]   ;;  %v11214_v61 = vld [vmem:[%s15693_s11 + $0xe20] ss:$40 sps:$4 sm:$0xff]  }
 0x315   : > { %6516 = vmatmul.mubr.bf16.vlgmr.msra.gmra.mrb[12].mxu1 %v13222_v63 }
 0x316   : > { %6721 = vmatmul.mubr.bf16.vlgmr.msra.gmra.mrb[16].mxu0 %v13222_v63  ;;  %6525 = vmatpush1.bf16.msra.mxu1 %v11136_v42  ;;  %v11217_v42 = vld [vmem:[%s15693_s11 + $0xe28] ss:$40 sps:$4 sm:$0xff]  }
 0x317   : > { %6556 = vmatprep.mubr.bf16.mxu1 %v13233_v4  ;;  %6730 = vmatpush1.bf16.msra.mxu0 %v11139_v50  ;;  %v11222_v50 = vld [vmem:[%s15693_s11 + $0xe74] ss:$40 sps:$4 sm:$0xff]  }
 0x318   : > { %6761 = vmatprep.mubr.bf16.mxu0 %v13233_v4  ;;  %6526 = vmatprep.subr.bf16.mxu1 %v11144_v10  ;;  %v11225_v10 = vld [vmem:[%s15693_s11 + $0xe7c] ss:$40 sps:$4 sm:$0xff]  }
 0x319   : > { %6731 = vmatprep.subr.bf16.mxu0 %v11147_v24  ;;  %v11220_v24 = vld [vmem:[%s15693_s11 + $0xe70] ss:$40 sps:$4 sm:$0xff]  }
 0x31a   : > { %6527 = vmatpush1.bf16.msra.mxu1 %v11142_v11  ;;  %v11223_v11 = vld [vmem:[%s15693_s11 + $0xe78] ss:$40 sps:$4 sm:$0xff]  }
 0x31b   : > { %6732 = vmatpush1.bf16.msra.mxu0 %v11145_v45  ;;  %6528 = vmatprep.subr.bf16.mxu1 %v11150_v33  ;;  %v11228_v45 = vld [vmem:[%s15693_s11 + $0xec4] ss:$40 sps:$4 sm:$0xff]  }
 0x31c   : > { %6733 = vmatprep.subr.bf16.mxu0 %v11153_v59  ;;  %v11231_v33 = vld [vmem:[%s15693_s11 + $0xecc] ss:$40 sps:$4 sm:$0xff]   ;;  %v11226_v59 = vld [vmem:[%s15693_s11 + $0xec0] ss:$40 sps:$4 sm:$0xff]  }
 0x31e   : > { %6529 = vmatpush1.bf16.msra.mxu1 %v11148_v47  ;;  %v11229_v47 = vld [vmem:[%s15693_s11 + $0xec8] ss:$40 sps:$4 sm:$0xff]  }
 0x31f   : > { %6734 = vmatpush1.bf16.msra.mxu0 %v11151_v46  ;;  %6530 = vmatprep.subr.bf16.mxu1 %v11156_v60  ;;  %v11234_v46 = vld [vmem:[%s15693_s11 + $0xf14] ss:$40 sps:$4 sm:$0xff]  }
 0x320   : > { %6735 = vmatprep.subr.bf16.mxu0 %v11159_v30  ;;  %v11237_v60 = vld [vmem:[%s15693_s11 + $0xf1c] ss:$40 sps:$4 sm:$0xff]   ;;  %v11232_v30 = vld [vmem:[%s15693_s11 + $0xf10] ss:$40 sps:$4 sm:$0xff]  }
 0x322   : > { %6531 = vmatpush1.bf16.msra.mxu1 %v11154_v31  ;;  %v11235_v31 = vld [vmem:[%s15693_s11 + $0xf18] ss:$40 sps:$4 sm:$0xff]  }
 0x323   : > { %6736 = vmatpush1.bf16.msra.mxu0 %v11157_v49  ;;  %6532 = vmatprep.subr.bf16.mxu1 %v11162_v39  ;;  %v11240_v49 = vld [vmem:[%s15693_s11 + $0xf64] ss:$40 sps:$4 sm:$0xff]  }
 0x324   : > { %6737 = vmatprep.subr.bf16.mxu0 %v11165_v55  ;;  %v11243_v39 = vld [vmem:[%s15693_s11 + $0xf6c] ss:$40 sps:$4 sm:$0xff]   ;;  %v11238_v55 = vld [vmem:[%s15693_s11 + $0xf60] ss:$40 sps:$4 sm:$0xff]  }
 0x326   : > { %6533 = vmatpush1.bf16.msra.mxu1 %v11160_v52  ;;  %v11241_v52 = vld [vmem:[%s15693_s11 + $0xf68] ss:$40 sps:$4 sm:$0xff]  }
 0x327   : > { %6738 = vmatpush1.bf16.msra.mxu0 %v11163_v58  ;;  %6534 = vmatprep.subr.bf16.mxu1 %v11168_v16  ;;  %v11246_v58 = vld [vmem:[%s15693_s11 + $0xfb4] ss:$40 sps:$4 sm:$0xff]  }
 0x328   : > { %6739 = vmatprep.subr.bf16.mxu0 %v11171_v34  ;;  %v11249_v16 = vld [vmem:[%s15693_s11 + $0xfbc] ss:$40 sps:$4 sm:$0xff]   ;;  %v11244_v34 = vld [vmem:[%s15693_s11 + $0xfb0] ss:$40 sps:$4 sm:$0xff]  }
 0x32a   : > { %6535 = vmatpush1.bf16.msra.mxu1 %v11166_v22  ;;  %v11247_v22 = vld [vmem:[%s15693_s11 + $0xfb8] ss:$40 sps:$4 sm:$0xff]  }
 0x32b   : > { %6740 = vmatpush1.bf16.msra.mxu0 %v11169_v0  ;;  %6536 = vmatprep.subr.bf16.mxu1 %v11174_v29  ;;  %v11252_v0 = vld [vmem:[%s15693_s11 + $0x1004] ss:$40 sps:$4 sm:$0xff]  }
 0x32c   : > { %6741 = vmatprep.subr.bf16.mxu0 %v11177_v2  ;;  %v11255_v29 = vld [vmem:[%s15693_s11 + $0x100c] ss:$40 sps:$4 sm:$0xff]   ;;  %v11250_v2 = vld [vmem:[%s15693_s11 + $0x1000] ss:$40 sps:$4 sm:$0xff]  }
 0x32e   : > { %6537 = vmatpush1.bf16.msra.mxu1 %v11172_v1  ;;  %v11253_v1 = vld [vmem:[%s15693_s11 + $0x1008] ss:$40 sps:$4 sm:$0xff]  }
 0x32f   : > { %6742 = vmatpush1.bf16.msra.mxu0 %v11175_v27  ;;  %6538 = vmatprep.subr.bf16.mxu1 %v11180_v19  ;;  %v11258_v27 = vld [vmem:[%s15693_s11 + $0x1054] ss:$40 sps:$4 sm:$0xff]  }
 0x330   : > { %6743 = vmatprep.subr.bf16.mxu0 %v11183_v6  ;;  %v11261_v19 = vld [vmem:[%s15693_s11 + $0x105c] ss:$40 sps:$4 sm:$0xff]   ;;  %v11256_v6 = vld [vmem:[%s15693_s11 + $0x1050] ss:$40 sps:$4 sm:$0xff]  }
 0x332   : > { %6539 = vmatpush1.bf16.msra.mxu1 %v11178_v40  ;;  %v11259_v40 = vld [vmem:[%s15693_s11 + $0x1058] ss:$40 sps:$4 sm:$0xff]  }
 0x333   : > { %6744 = vmatpush1.bf16.msra.mxu0 %v11181_v18  ;;  %6540 = vmatprep.subr.bf16.mxu1 %v11186_v41  ;;  %v11264_v18 = vld [vmem:[%s15693_s11 + $0x10a4] ss:$40 sps:$4 sm:$0xff]  }
 0x334   : > { %6745 = vmatprep.subr.bf16.mxu0 %v11189_v43  ;;  %v11267_v41 = vld [vmem:[%s15693_s11 + $0x10ac] ss:$40 sps:$4 sm:$0xff]   ;;  %v11262_v43 = vld [vmem:[%s15693_s11 + $0x10a0] ss:$40 sps:$4 sm:$0xff]  }
 0x336   : > { %6541 = vmatpush1.bf16.msra.mxu1 %v11184_v57  ;;  %v11265_v57 = vld [vmem:[%s15693_s11 + $0x10a8] ss:$40 sps:$4 sm:$0xff]  }
 0x337   : > { %6746 = vmatpush1.bf16.msra.mxu0 %v11187_v5  ;;  %6542 = vmatprep.subr.bf16.mxu1 %v11192_v26  ;;  %v11270_v26 = vld [vmem:[%s15693_s11 + $0x10f4] ss:$40 sps:$4 sm:$0xff]  }
 0x338   : > { %6747 = vmatprep.subr.bf16.mxu0 %v11195_v15 }
 0x33a   : > { %6543 = vmatpush1.bf16.msra.mxu1 %v11190_v32 }
 0x33b   : > { %6748 = vmatpush1.bf16.msra.mxu0 %v11193_v21  ;;  %6544 = vmatprep.subr.bf16.mxu1 %v11198_v3  ;;  %v11273_v3 = vld [vmem:[%s15693_s11 + $0x10fc] ss:$40 sps:$4 sm:$0xff]  }
 0x33c   : > { %6749 = vmatprep.subr.bf16.mxu0 %v11201_v12 }
 0x33e   : > { %6545 = vmatpush1.bf16.msra.mxu1 %v11196_v20 }
 0x33f   : > { %6750 = vmatpush1.bf16.msra.mxu0 %v11199_v35  ;;  %6546 = vmatprep.subr.bf16.mxu1 %v11204_v48 }
 0x340   : > { %6751 = vmatprep.subr.bf16.mxu0 %v11207_v38  ;;  %v11268_v38 = vld [vmem:[%s15693_s11 + $0x10f0] ss:$40 sps:$4 sm:$0xff]  }
 0x342   : > { %6547 = vmatpush1.bf16.msra.mxu1 %v11202_v9 }
 0x343   : > { %6752 = vmatpush1.bf16.msra.mxu0 %v11205_v8  ;;  %6548 = vmatprep.subr.bf16.mxu1 %v11210_v14  ;;  %v11271_v14 = vld [vmem:[%s15693_s11 + $0x10f8] ss:$40 sps:$4 sm:$0xff]  }
 0x344   : > { %6753 = vmatprep.subr.bf16.mxu0 %v11213_v7 }
 0x346   : > { %6549 = vmatpush1.bf16.msra.mxu1 %v11208_v44  ;;  %v11276_v44 = vld [vmem:[%s15693_s11 + $0x1144] ss:$40 sps:$4 sm:$0xff]  }
 0x347   : > { %6754 = vmatpush1.bf16.msra.mxu0 %v11211_v17  ;;  %6550 = vmatprep.subr.bf16.mxu1 %v11216_v37  ;;  %v11279_v17 = vld [vmem:[%s15693_s11 + $0x114c] ss:$40 sps:$4 sm:$0xff]   ;;  %v11274_v37 = vld [vmem:[%s15693_s11 + $0x1140] ss:$40 sps:$4 sm:$0xff]  }
 0x348   : > { %6755 = vmatprep.subr.bf16.mxu0 %v11219_v56  ;;  %v11277_v56 = vld [vmem:[%s15693_s11 + $0x1148] ss:$40 sps:$4 sm:$0xff]  }
 0x34a   : > { %6551 = vmatpush1.bf16.msra.mxu1 %v11214_v61  ;;  %v11282_v61 = vld [vmem:[%s15693_s11 + $0x1194] ss:$40 sps:$4 sm:$0xff]  }
 0x34b   : > { %6756 = vmatpush1.bf16.msra.mxu0 %v11217_v42  ;;  %6552 = vmatprep.subr.bf16.mxu1 %v11222_v50  ;;  %v11285_v42 = vld [vmem:[%s15693_s11 + $0x119c] ss:$40 sps:$4 sm:$0xff]  }
 0x34c   : > { %6757 = vmatprep.subr.bf16.mxu0 %v11225_v10  ;;  %v11280_v10 = vld [vmem:[%s15693_s11 + $0x1190] ss:$40 sps:$4 sm:$0xff]  }
 0x34e   : > { %6553 = vmatpush1.bf16.msra.mxu1 %v11220_v24  ;;  %v11283_v24 = vld [vmem:[%s15693_s11 + $0x1198] ss:$40 sps:$4 sm:$0xff]  }
 0x34f   : > { %6758 = vmatpush1.bf16.msra.mxu0 %v11223_v11  ;;  %6554 = vmatprep.subr.bf16.mxu1 %v11228_v45  ;;  %v11288_v11 = vld [vmem:[%s15693_s11 + $0x11e4] ss:$40 sps:$4 sm:$0xff]  }
 0x350   : > { %6759 = vmatprep.subr.bf16.mxu0 %v11231_v33  ;;  %v11291_v45 = vld [vmem:[%s15693_s11 + $0x11ec] ss:$40 sps:$4 sm:$0xff]  }
 0x352   : > { %6555 = vmatpush1.bf16.msra.mxu1 %v11226_v59  ;;  %v11286_v59 = vld [vmem:[%s15693_s11 + $0x11e0] ss:$40 sps:$4 sm:$0xff]  }
 0x353   : > { %6760 = vmatpush1.bf16.msra.mxu0 %v11229_v47  ;;  %6565 = vmatprep.subr.bf16.mxu1 %v11234_v46  ;;  %v11289_v47 = vld [vmem:[%s15693_s11 + $0x11e8] ss:$40 sps:$4 sm:$0xff]   ;;  %v11294_v46 = vld [vmem:[%s15693_s11 + $0x1234] ss:$40 sps:$4 sm:$0xff]  }
 0x354   : > { %6770 = vmatprep.subr.bf16.mxu0 %v11237_v60  ;;  %v11297_v60 = vld [vmem:[%s15693_s11 + $0x123c] ss:$40 sps:$4 sm:$0xff]  }
 0x355   : > { %6557 = vmatmul.mubr.bf16.vlgmr.msra.gmra.mrb[12].mxu1 %v13435_v25 }
 0x356   : > { %6762 = vmatmul.mubr.bf16.vlgmr.msra.gmra.mrb[16].mxu0 %v13435_v25  ;;  %6566 = vmatpush1.bf16.msra.mxu1 %v11232_v30 }
 0x357   : > { %6597 = vmatprep.mubr.bf16.mxu1 %v13440_v62  ;;  %6771 = vmatpush1.bf16.msra.mxu0 %v11235_v31  ;;  %v11292_v31 = vld [vmem:[%s15693_s11 + $0x1230] ss:$40 sps:$4 sm:$0xff]  }
 0x358   : > { %6802 = vmatprep.mubr.bf16.mxu0 %v13440_v62  ;;  %6567 = vmatprep.subr.bf16.mxu1 %v11240_v49  ;;  %v11295_v49 = vld [vmem:[%s15693_s11 + $0x1238] ss:$40 sps:$4 sm:$0xff]  }
 0x359   : > { %6772 = vmatprep.subr.bf16.mxu0 %v11243_v39  ;;  %v11300_v39 = vld [vmem:[%s15693_s11 + $0x1284] ss:$40 sps:$4 sm:$0xff]  }
 0x35a   : > { %6568 = vmatpush1.bf16.msra.mxu1 %v11238_v55  ;;  %v11303_v55 = vld [vmem:[%s15693_s11 + $0x128c] ss:$40 sps:$4 sm:$0xff]  }
 0x35b   : > { %6773 = vmatpush1.bf16.msra.mxu0 %v11241_v52  ;;  %6569 = vmatprep.subr.bf16.mxu1 %v11246_v58  ;;  %v11298_v52 = vld [vmem:[%s15693_s11 + $0x1280] ss:$40 sps:$4 sm:$0xff]  }
 0x35c   : > { %6774 = vmatprep.subr.bf16.mxu0 %v11249_v16  ;;  %v11301_v58 = vld [vmem:[%s15693_s11 + $0x1288] ss:$40 sps:$4 sm:$0xff]   ;;  %v11306_v16 = vld [vmem:[%s15693_s11 + $0x12d4] ss:$40 sps:$4 sm:$0xff]  }
 0x35e   : > { %6570 = vmatpush1.bf16.msra.mxu1 %v11244_v34  ;;  %v11309_v34 = vld [vmem:[%s15693_s11 + $0x12dc] ss:$40 sps:$4 sm:$0xff]  }
 0x35f   : > { %6775 = vmatpush1.bf16.msra.mxu0 %v11247_v22  ;;  %6571 = vmatprep.subr.bf16.mxu1 %v11252_v0  ;;  %v11304_v22 = vld [vmem:[%s15693_s11 + $0x12d0] ss:$40 sps:$4 sm:$0xff]  }
 0x360   : > { %6776 = vmatprep.subr.bf16.mxu0 %v11255_v29  ;;  %v11307_v0 = vld [vmem:[%s15693_s11 + $0x12d8] ss:$40 sps:$4 sm:$0xff]   ;;  %v11312_v29 = vld [vmem:[%s15693_s11 + $0x1324] ss:$40 sps:$4 sm:$0xff]  }
 0x362   : > { %6572 = vmatpush1.bf16.msra.mxu1 %v11250_v2  ;;  %v11315_v2 = vld [vmem:[%s15693_s11 + $0x132c] ss:$40 sps:$4 sm:$0xff]  }
 0x363   : > { %6777 = vmatpush1.bf16.msra.mxu0 %v11253_v1  ;;  %6573 = vmatprep.subr.bf16.mxu1 %v11258_v27  ;;  %v11310_v1 = vld [vmem:[%s15693_s11 + $0x1320] ss:$40 sps:$4 sm:$0xff]  }
 0x364   : > { %6778 = vmatprep.subr.bf16.mxu0 %v11261_v19  ;;  %v11313_v27 = vld [vmem:[%s15693_s11 + $0x1328] ss:$40 sps:$4 sm:$0xff]   ;;  %v11318_v19 = vld [vmem:[%s15693_s11 + $0x1374] ss:$40 sps:$4 sm:$0xff]  }
 0x366   : > { %6574 = vmatpush1.bf16.msra.mxu1 %v11256_v6  ;;  %v11321_v6 = vld [vmem:[%s15693_s11 + $0x137c] ss:$40 sps:$4 sm:$0xff]  }
 0x367   : > { %6779 = vmatpush1.bf16.msra.mxu0 %v11259_v40  ;;  %6575 = vmatprep.subr.bf16.mxu1 %v11264_v18  ;;  %v11316_v40 = vld [vmem:[%s15693_s11 + $0x1370] ss:$40 sps:$4 sm:$0xff]  }
 0x368   : > { %v6230_v5 = vpop.f32.mrb[8].mxu1  ;;  %6780 = vmatprep.subr.bf16.mxu0 %v11267_v41  ;;  %v11319_v18 = vld [vmem:[%s15693_s11 + $0x1378] ss:$40 sps:$4 sm:$0xff]   ;;  %v11324_v41 = vld [vmem:[%s15693_s11 + $0x13c4] ss:$40 sps:$4 sm:$0xff]  }
 0x369   : > { %v14339_v15 = vpack.c.bf16 %v6230_v5, %v6230_v5  ;;  %v6435_v32 = vpop.f32.mrb[12].mxu0  ;;  %v6232_v21 = vpop.f32.mrb[9].mxu1  ;;  %v11325_v5 = vld [vmem:[%s15693_s11 + $0x13c8] ss:$40 sps:$4 sm:$0xff]  }
 0x36a   : > { %v14344_v12 = vpack.c.bf16 %v6435_v32, %v6435_v32  ;;  %v14346_v20 = vpack.c.bf16 %v6232_v21, %v6232_v21  ;;  %v6437_v35 = vpop.f32.mrb[13].mxu0  ;;  %6576 = vmatpush1.bf16.msra.mxu1 %v11262_v43  ;;  %v6234_v48 = vpop.f32.mrb[10].mxu1  ;;  %v11327_v43 = vld [vmem:[%s15693_s11 + $0x13cc] ss:$40 sps:$4 sm:$0xff]   ;;  %v11333_v32 = vld [vmem:[%s15693_s11 + $0x141c] ss:$40 sps:$4 sm:$0xff]  }
 0x36b   : > { %7067 = vst [vmem:[#allocation2] sm:$0xf] %v14339_v15  ;;  %6781 = vmatpush1.bf16.msra.mxu0 %v11265_v57  ;;  %v6439_v9 = vpop.f32.mrb[14].mxu0  ;;  %7095 = vrot.lane.b32.xlu1 %v14339_v15, %s15731_s6  ;;  %v6235_v8 = vpop.f32.mrb[11].mxu1  ;;  %v7060_v33 = vpack.c.bf16 %v6437_v35, %v6437_v35  ;;  %v11322_v57 = vld [vmem:[%s15693_s11 + $0x13c0] ss:$40 sps:$4 sm:$0xff]  }
 0x36c   : > { %7068 = vst [vmem:[#allocation2 + $0x8] sm:$0xf] %v14346_v20  ;;  %7099 = vrot.lane.b32.xlu0 %v14344_v12, %s15731_s6  ;;  %v6440_v7 = vpop.f32.mrb[15].mxu0  ;;  %6577 = vmatprep.subr.bf16.mxu1 %v11270_v26  ;;  %7070 = vst.msk [vmem:[#allocation2 + $0x10] sm:$0xf] %vm7069_vm13, %v14344_v12  ;;  %v7074_v50 = vrot.slane %v14344_v12, 4 }
 0x36d   : > { %6782 = vmatprep.subr.bf16.mxu0 %v11273_v3  ;;  %v7075_v30 = vrot.slane %v7060_v33, 4  ;;  %v11330_v26 = vld [vmem:[%s15693_s11 + $0x1414] ss:$40 sps:$4 sm:$0xff]   ;;  %v11328_v21 = vld [vmem:[%s15693_s11 + $0x1410] ss:$40 sps:$4 sm:$0xff]  }
 0x36e   : > { %6578 = vmatpush1.bf16.msra.mxu1 %v11268_v38  ;;  %v11331_v3 = vld [vmem:[%s15693_s11 + $0x1418] ss:$40 sps:$4 sm:$0xff]   ;;  %v11336_v35 = vld [vmem:[%s15693_s11 + $0x1464] ss:$40 sps:$4 sm:$0xff]   ;;  %v11337_v9 = vld [vmem:[%s15693_s11 + $0x1468] ss:$40 sps:$4 sm:$0xff]  }
 0x36f   : > { %6783 = vmatpush1.bf16.msra.mxu0 %v11271_v14  ;;  %7161 = vrot.lane.b32.xlu1 %v14339_v15, %s11808_s25  ;;  %v11339_v48 = vld [vmem:[%s15693_s11 + $0x146c] ss:$40 sps:$4 sm:$0xff]   ;;  %v11334_v38 = vld [vmem:[%s15693_s11 + $0x1460] ss:$40 sps:$4 sm:$0xff]  }
 0x370   : > { %7165 = vrot.lane.b32.xlu0 %v14344_v12, %s11808_s25  ;;  %6579 = vmatprep.subr.bf16.mxu1 %v11276_v44  ;;  %v11342_v8 = vld [vmem:[%s15693_s11 + $0x24] ss:$40 sps:$4 sm:$0xff]   ;;  %v11340_v14 = vld [vmem:[%s15693_s11 + $0x20] ss:$40 sps:$4 sm:$0xff]   ;;  %v11345_v7 = vld [vmem:[%s15693_s11 + $0x74] ss:$40 sps:$4 sm:$0xff]  }
 0x371   : > { %6784 = vmatprep.subr.bf16.mxu0 %v11279_v17  ;;  %v11343_v44 = vld [vmem:[%s15693_s11 + $0x70] ss:$40 sps:$4 sm:$0xff]   ;;  %v11348_v17 = vld [vmem:[%s15693_s11 + $0xc4] ss:$40 sps:$4 sm:$0xff]   ;;  %v11363_v33 = vld [vmem:[%s15693_s11 + $0x254] ss:$40 sps:$4 sm:$0xff]  }
 0x372   : > { %6580 = vmatpush1.bf16.msra.mxu1 %v11274_v37  ;;  %v11346_v37 = vld [vmem:[%s15693_s11 + $0xc0] ss:$40 sps:$4 sm:$0xff]  }
 0x373   : > { %6785 = vmatpush1.bf16.msra.mxu0 %v11277_v56  ;;  %7097 = vrot.lane.b32.xlu1 %v14346_v20, %s15731_s6  ;;  %v11351_v56 = vld [vmem:[%s15693_s11 + $0x114] ss:$40 sps:$4 sm:$0xff]   ;;  %s11811_s6 = smov 106  }
 0x374   : > { %7077 = vrot.lane.b32.xlu0 %v7074_v50, %s11809_s1  ;;  %6581 = vmatprep.subr.bf16.mxu1 %v11282_v61  ;;  %v11354_v61 = vld [vmem:[%s15693_s11 + $0x164] ss:$40 sps:$4 sm:$0xff]  }
 0x375   : > { %6786 = vmatprep.subr.bf16.mxu0 %v11285_v42  ;;  %v11352_v42 = vld [vmem:[%s15693_s11 + $0x160] ss:$40 sps:$4 sm:$0xff]  }
 0x376   : > { %6582 = vmatpush1.bf16.msra.mxu1 %v11280_v10  ;;  %v11357_v10 = vld [vmem:[%s15693_s11 + $0x1b4] ss:$40 sps:$4 sm:$0xff]  }
 0x377   : > { %6787 = vmatpush1.bf16.msra.mxu0 %v11283_v24  ;;  %7163 = vrot.lane.b32.xlu1 %v14346_v20, %s11808_s25  ;;  %v11355_v24 = vld [vmem:[%s15693_s11 + $0x1b0] ss:$40 sps:$4 sm:$0xff]   ;;  %s15828_s25 = smov 127  }
 0x378   : > { %6583 = vmatprep.subr.bf16.mxu1 %v11288_v11  ;;  %6788 = vmatprep.subr.bf16.mxu0 %v11291_v45  ;;  %v11360_v11 = vld [vmem:[%s15693_s11 + $0x204] ss:$40 sps:$4 sm:$0xff]   ;;  %v11358_v45 = vld [vmem:[%s15693_s11 + $0x200] ss:$40 sps:$4 sm:$0xff]  }
 0x37a   : > { %6584 = vmatpush1.bf16.msra.mxu1 %v11286_v59  ;;  %v11361_v59 = vld [vmem:[%s15693_s11 + $0x250] ss:$40 sps:$4 sm:$0xff]  }
 0x37b   : > { %6789 = vmatpush1.bf16.msra.mxu0 %v11289_v47  ;;  %7079 = vrot.lane.b32.xlu1 %v7075_v30, %s11809_s1  ;;  %v11366_v47 = vld [vmem:[%s15693_s11 + $0x2a4] ss:$40 sps:$4 sm:$0xff]  }
 0x37c   : > { %6585 = vmatprep.subr.bf16.mxu1 %v11294_v46  ;;  %6790 = vmatprep.subr.bf16.mxu0 %v11297_v60  ;;  %v11364_v46 = vld [vmem:[%s15693_s11 + $0x2a0] ss:$40 sps:$4 sm:$0xff]   ;;  %v11369_v60 = vld [vmem:[%s15693_s11 + $0x2f4] ss:$40 sps:$4 sm:$0xff]  }
 0x37e   : > { %6586 = vmatpush1.bf16.msra.mxu1 %v11292_v31  ;;  %v11372_v31 = vld [vmem:[%s15693_s11 + $0x344] ss:$40 sps:$4 sm:$0xff]  }
 0x37f   : > { %6791 = vmatpush1.bf16.msra.mxu0 %v11295_v49  ;;  %7178 = vrot.lane.b32.xlu1 %v7075_v30, %s11810_s0  ;;  %v11367_v30 = vld [vmem:[%s15693_s11 + $0x2f0] ss:$40 sps:$4 sm:$0xff]   ;;  %v11370_v49 = vld [vmem:[%s15693_s11 + $0x340] ss:$40 sps:$4 sm:$0xff]  }
 0x380   : > { %6587 = vmatprep.subr.bf16.mxu1 %v11300_v39  ;;  %6792 = vmatprep.subr.bf16.mxu0 %v11303_v55  ;;  %v11375_v39 = vld [vmem:[%s15693_s11 + $0x394] ss:$40 sps:$4 sm:$0xff]   ;;  %v11373_v55 = vld [vmem:[%s15693_s11 + $0x390] ss:$40 sps:$4 sm:$0xff]  }
 0x382   : > { %6588 = vmatpush1.bf16.msra.mxu1 %v11298_v52  ;;  %v11378_v52 = vld [vmem:[%s15693_s11 + $0x3e4] ss:$40 sps:$4 sm:$0xff]  }
 0x383   : > { %6793 = vmatpush1.bf16.msra.mxu0 %v11301_v58  ;;  %6589 = vmatprep.subr.bf16.mxu1 %v11306_v16  ;;  %v11376_v58 = vld [vmem:[%s15693_s11 + $0x3e0] ss:$40 sps:$4 sm:$0xff]   ;;  %v11381_v16 = vld [vmem:[%s15693_s11 + $0x434] ss:$40 sps:$4 sm:$0xff]  }
 0x384   : > { %6794 = vmatprep.subr.bf16.mxu0 %v11309_v34  ;;  %v11379_v34 = vld [vmem:[%s15693_s11 + $0x430] ss:$40 sps:$4 sm:$0xff]  }
 0x386   : > { %6590 = vmatpush1.bf16.msra.mxu1 %v11304_v22  ;;  %v11384_v22 = vld [vmem:[%s15693_s11 + $0x484] ss:$40 sps:$4 sm:$0xff]  }
 0x387   : > { %6795 = vmatpush1.bf16.msra.mxu0 %v11307_v0  ;;  %6591 = vmatprep.subr.bf16.mxu1 %v11312_v29  ;;  %v11382_v0 = vld [vmem:[%s15693_s11 + $0x480] ss:$40 sps:$4 sm:$0xff]   ;;  %v11387_v29 = vld [vmem:[%s15693_s11 + $0x4d4] ss:$40 sps:$4 sm:$0xff]  }
 0x388   : > { %6796 = vmatprep.subr.bf16.mxu0 %v11315_v2  ;;  %v11385_v2 = vld [vmem:[%s15693_s11 + $0x4d0] ss:$40 sps:$4 sm:$0xff]  }
 0x38a   : > { %6592 = vmatpush1.bf16.msra.mxu1 %v11310_v1  ;;  %v11390_v1 = vld [vmem:[%s15693_s11 + $0x524] ss:$40 sps:$4 sm:$0xff]  }
 0x38b   : > { %6797 = vmatpush1.bf16.msra.mxu0 %v11313_v27  ;;  %6593 = vmatprep.subr.bf16.mxu1 %v11318_v19 }
 0x38c   : > { %6798 = vmatprep.subr.bf16.mxu0 %v11321_v6  ;;  %v11388_v6 = vld [vmem:[%s15693_s11 + $0x520] ss:$40 sps:$4 sm:$0xff]  }
 0x38e   : > { %6594 = vmatpush1.bf16.msra.mxu1 %v11316_v40  ;;  %v11393_v40 = vld [vmem:[%s15693_s11 + $0x574] ss:$40 sps:$4 sm:$0xff]  }
 0x38f   : > { %6799 = vmatpush1.bf16.msra.mxu0 %v11319_v18  ;;  %6595 = vmatprep.subr.bf16.mxu1 %v11324_v41 }
 0x390   : > { %6800 = vmatprep.subr.bf16.mxu0 %v11327_v43  ;;  %v11391_v43 = vld [vmem:[%s15693_s11 + $0x570] ss:$40 sps:$4 sm:$0xff]  }
 0x392   : > { %6596 = vmatpush1.bf16.msra.mxu1 %v11322_v57  ;;  %v11396_v57 = vld [vmem:[%s15693_s11 + $0x5c4] ss:$40 sps:$4 sm:$0xff]  }
 0x393   : > { %6801 = vmatpush1.bf16.msra.mxu0 %v11325_v5  ;;  %6606 = vmatprep.subr.bf16.mxu1 %v11330_v26 }
 0x394   : > { %6811 = vmatprep.subr.bf16.mxu0 %v11333_v32  ;;  %v11399_v32 = vld [vmem:[%s15693_s11 + $0x614] ss:$40 sps:$4 sm:$0xff]  }
 0x395   : > { %6598 = vmatmul.mubr.bf16.vlgmr.msra.gmra.mrb[12].mxu1 %v13646_v23 }
 0x396   : > { %6803 = vmatmul.mubr.bf16.vlgmr.msra.gmra.mrb[16].mxu0 %v13646_v23  ;;  %6607 = vmatpush1.bf16.msra.mxu1 %v11328_v21 }
 0x397   : > { %6812 = vmatpush1.bf16.msra.mxu0 %v11331_v3  ;;  %6608 = vmatprep.subr.bf16.mxu1 %v11336_v35 }
 0x398   : > { %6813 = vmatprep.subr.bf16.mxu0 %v11339_v48  ;;  %6638 = vmatprep.mubr.bf16.mxu1 %v11804_v51  ;;  %v11397_v48 = vld [vmem:[%s15693_s11 + $0x610] ss:$40 sps:$4 sm:$0xff]  }
 0x399   : > { %6843 = vmatprep.mubr.bf16.mxu0 %v11804_v51 }
 0x39a   : > { %6609 = vmatpush1.bf16.msra.mxu1 %v11334_v38  ;;  %v11402_v38 = vld [vmem:[%s15693_s11 + $0x664] ss:$40 sps:$4 sm:$0xff]  }
 0x39b   : > { %6814 = vmatpush1.bf16.msra.mxu0 %v11337_v9  ;;  %6852 = vmatprep.subr.bf16.mxu1 %v11342_v8 }
 0x3a1   : > { %10061 = vmatmul.mubr.msk.bf16.vlgmr.msra.gmra.mrb[12].mxu1 %vm6028_vm2, %v13677_v13 }
 0x3a2   : > { %10062 = vmatmul.mubr.msk.bf16.vlgmr.msra.gmra.mrb[16].mxu0 %vm6028_vm2, %v13677_v13  ;;  %6853 = vmatpush1.bf16.msra.mxu1 %v11340_v14 }
 0x3a3   : > { %6884 = vmatprep.mubr.bf16.mxu1 %v12996_v53  ;;  %6854 = vmatprep.subr.bf16.mxu1 %v11345_v7  ;;  %v11349_v53 = vld [vmem:[%s15693_s11 + $0x110] ss:$40 sps:$4 sm:$0xff]   ;;  %v11400_v7 = vld [vmem:[%s15693_s11 + $0x660] ss:$40 sps:$4 sm:$0xff]  }
 0x3a4   : > { %7286 = vmatprep.mubr.bf16.mxu0 %v11804_v51 }
 0x3a6   : > { %6855 = vmatpush1.bf16.msra.mxu1 %v11343_v44  ;;  %v11405_v44 = vld [vmem:[%s15693_s11 + $0x6b4] ss:$40 sps:$4 sm:$0xff]  }
 0x3a7   : > { %6856 = vmatprep.subr.bf16.mxu1 %v11348_v17  ;;  %v11403_v17 = vld [vmem:[%s15693_s11 + $0x6b0] ss:$40 sps:$4 sm:$0xff]  }
 0x3aa   : > { %6857 = vmatpush1.bf16.msra.mxu1 %v11346_v37  ;;  %v11408_v37 = vld [vmem:[%s15693_s11 + $0x704] ss:$40 sps:$4 sm:$0xff]  }
 0x3ab   : > { %6858 = vmatprep.subr.bf16.mxu1 %v11351_v56  ;;  %v11406_v56 = vld [vmem:[%s15693_s11 + $0x700] ss:$40 sps:$4 sm:$0xff]  }
 0x3ae   : > { %6859 = vmatpush1.bf16.msra.mxu1 %v11349_v53  ;;  %v11411_v53 = vld [vmem:[%s15693_s11 + $0x754] ss:$40 sps:$4 sm:$0xff]  }
 0x3af   : > { %6860 = vmatprep.subr.bf16.mxu1 %v11354_v61  ;;  %v11409_v61 = vld [vmem:[%s15693_s11 + $0x750] ss:$40 sps:$4 sm:$0xff]  }
 0x3b2   : > { %6861 = vmatpush1.bf16.msra.mxu1 %v11352_v42  ;;  %v11414_v42 = vld [vmem:[%s15693_s11 + $0x7a4] ss:$40 sps:$4 sm:$0xff]  }
 0x3b3   : > { %6862 = vmatprep.subr.bf16.mxu1 %v11357_v10  ;;  %v11412_v10 = vld [vmem:[%s15693_s11 + $0x7a0] ss:$40 sps:$4 sm:$0xff]  }
 0x3b6   : > { %6863 = vmatpush1.bf16.msra.mxu1 %v11355_v24  ;;  %v11417_v24 = vld [vmem:[%s15693_s11 + $0x7f4] ss:$40 sps:$4 sm:$0xff]  }
 0x3b7   : > { %6864 = vmatprep.subr.bf16.mxu1 %v11360_v11  ;;  %v11415_v11 = vld [vmem:[%s15693_s11 + $0x7f0] ss:$40 sps:$4 sm:$0xff]  }
 0x3ba   : > { %6865 = vmatpush1.bf16.msra.mxu1 %v11358_v45  ;;  %v11420_v45 = vld [vmem:[%s15693_s11 + $0x844] ss:$40 sps:$4 sm:$0xff]  }
 0x3bb   : > { %6866 = vmatprep.subr.bf16.mxu1 %v11363_v33  ;;  %v11418_v33 = vld [vmem:[%s15693_s11 + $0x840] ss:$40 sps:$4 sm:$0xff]  }
 0x3be   : > { %6867 = vmatpush1.bf16.msra.mxu1 %v11361_v59  ;;  %v11423_v59 = vld [vmem:[%s15693_s11 + $0x894] ss:$40 sps:$4 sm:$0xff]  }
 0x3bf   : > { %6868 = vmatprep.subr.bf16.mxu1 %v11366_v47  ;;  %v11421_v47 = vld [vmem:[%s15693_s11 + $0x890] ss:$40 sps:$4 sm:$0xff]  }
 0x3c2   : > { %6869 = vmatpush1.bf16.msra.mxu1 %v11364_v46  ;;  %v11426_v46 = vld [vmem:[%s15693_s11 + $0x8e4] ss:$40 sps:$4 sm:$0xff]  }
 0x3c3   : > { %6870 = vmatprep.subr.bf16.mxu1 %v11369_v60  ;;  %v11424_v60 = vld [vmem:[%s15693_s11 + $0x8e0] ss:$40 sps:$4 sm:$0xff]  }
 0x3c6   : > { %6871 = vmatpush1.bf16.msra.mxu1 %v11367_v30  ;;  %v11429_v30 = vld [vmem:[%s15693_s11 + $0x934] ss:$40 sps:$4 sm:$0xff]  }
 0x3c7   : > { %6872 = vmatprep.subr.bf16.mxu1 %v11372_v31  ;;  %v11427_v31 = vld [vmem:[%s15693_s11 + $0x930] ss:$40 sps:$4 sm:$0xff]  }
 0x3ca   : > { %6873 = vmatpush1.bf16.msra.mxu1 %v11370_v49  ;;  %v11432_v49 = vld [vmem:[%s15693_s11 + $0x984] ss:$40 sps:$4 sm:$0xff]  }
 0x3cb   : > { %6874 = vmatprep.subr.bf16.mxu1 %v11375_v39  ;;  %v11430_v39 = vld [vmem:[%s15693_s11 + $0x980] ss:$40 sps:$4 sm:$0xff]  }
 0x3ce   : > { %6875 = vmatpush1.bf16.msra.mxu1 %v11373_v55  ;;  %v11435_v55 = vld [vmem:[%s15693_s11 + $0x9d4] ss:$40 sps:$4 sm:$0xff]  }
 0x3cf   : > { %6876 = vmatprep.subr.bf16.mxu1 %v11378_v52  ;;  %v11433_v52 = vld [vmem:[%s15693_s11 + $0x9d0] ss:$40 sps:$4 sm:$0xff]  }
 0x3d2   : > { %6877 = vmatpush1.bf16.msra.mxu1 %v11376_v58  ;;  %v11438_v58 = vld [vmem:[%s15693_s11 + $0xa24] ss:$40 sps:$4 sm:$0xff]  }
 0x3d3   : > { %6878 = vmatprep.subr.bf16.mxu1 %v11381_v16  ;;  %v11436_v16 = vld [vmem:[%s15693_s11 + $0xa20] ss:$40 sps:$4 sm:$0xff]  }
 0x3d6   : > { %6879 = vmatpush1.bf16.msra.mxu1 %v11379_v34  ;;  %v11441_v34 = vld [vmem:[%s15693_s11 + $0xa74] ss:$40 sps:$4 sm:$0xff]  }
 0x3d7   : > { %6880 = vmatprep.subr.bf16.mxu1 %v11384_v22  ;;  %v11439_v22 = vld [vmem:[%s15693_s11 + $0xa70] ss:$40 sps:$4 sm:$0xff]  }
 0x3da   : > { %6881 = vmatpush1.bf16.msra.mxu1 %v11382_v0  ;;  %v11444_v0 = vld [vmem:[%s15693_s11 + $0xac4] ss:$40 sps:$4 sm:$0xff]  }
 0x3db   : > { %6882 = vmatprep.subr.bf16.mxu1 %v11387_v29  ;;  %v11442_v29 = vld [vmem:[%s15693_s11 + $0xac0] ss:$40 sps:$4 sm:$0xff]  }
 0x3dd   : > { %v7096_v27 = vpop.permute.xlu1 %7095 }
 0x3de   : > { %6883 = vmatpush1.bf16.msra.mxu1 %v11385_v2  ;;  %v7100_v19 = vpop.permute.xlu0 %7099  ;;  %v11450_v2 = vld [vmem:[%s15693_s11 + $0xb64] ss:$40 sps:$4 sm:$0xff]  }
 0x3df   : > { %6893 = vmatprep.subr.bf16.mxu1 %v11390_v1  ;;  %7108 = vst.msk [vmem:[#allocation2 + $0x58] sm:$0xf] %vm7069_vm13, %v7100_v19  ;;  %v11448_v1 = vld [vmem:[%s15693_s11 + $0xb60] ss:$40 sps:$4 sm:$0xff]  }
 0x3e1   : > { %6885 = vmatmul.mubr.bf16.vlgmr.msra.gmra.mrb[16].mxu1 %v13004_v28  ;;  %v7162_v18 = vpop.permute.xlu1 %7161 }
 0x3e2   : > { %6894 = vmatpush1.bf16.msra.mxu1 %v11388_v6  ;;  %6925 = vmatprep.mubr.bf16.mxu1 %v13121_v54  ;;  %v7166_v41 = vpop.permute.xlu0 %7165  ;;  %v11394_v54 = vld [vmem:[%s15693_s11 + $0x5c0] ss:$40 sps:$4 sm:$0xff]   ;;  %v11456_v6 = vld [vmem:[%s15693_s11 + $0xc04] ss:$40 sps:$4 sm:$0xff]  }
 0x3e3   : > { %7175 = vst.msk [vmem:[#allocation2 + $0xe8] sm:$0xf] %vm7069_vm13, %v7166_v41  ;;  %6895 = vmatprep.subr.bf16.mxu1 %v11393_v40  ;;  %v11454_v40 = vld [vmem:[%s15693_s11 + $0xc00] ss:$40 sps:$4 sm:$0xff]  }
 0x3e5   : > { %v7098_v5 = vpop.permute.xlu1 %7097 }
 0x3e6   : > { %6896 = vmatpush1.bf16.msra.mxu1 %v11391_v43  ;;  %v7101_v28 = vsel %vm15822_vm6, %v7096_v27, %v7098_v5  ;;  %v7102_v26 = vsel %vm15823_vm5, %v7098_v5, %v7100_v19  ;;  %v7078_v9 = vpop.permute.xlu0 %7077  ;;  %v11453_v27 = vld [vmem:[%s15693_s11 + $0xbb4] ss:$40 sps:$4 sm:$0xff]   ;;  %v11451_v19 = vld [vmem:[%s15693_s11 + $0xbb0] ss:$40 sps:$4 sm:$0xff]   ;;  %v11462_v43 = vld [vmem:[%s15693_s11 + $0xca4] ss:$40 sps:$4 sm:$0xff]  }
 0x3e7   : > { %7106 = vst [vmem:[#allocation2 + $0x48] sm:$0xf] %v7101_v28  ;;  %7107 = vst [vmem:[#allocation2 + $0x50] sm:$0xf] %v7102_v26  ;;  %6897 = vmatprep.subr.bf16.mxu1 %v11396_v57  ;;  %v11460_v57 = vld [vmem:[%s15693_s11 + $0xca0] ss:$40 sps:$4 sm:$0xff]  }
 0x3e8   : > { %v11465_v5 = vld [vmem:[%s15693_s11 + $0xcf4] ss:$40 sps:$4 sm:$0xff]   ;;  %v11463_v28 = vld [vmem:[%s15693_s11 + $0xcf0] ss:$40 sps:$4 sm:$0xff]   ;;  %v11468_v26 = vld [vmem:[%s15693_s11 + $0xd44] ss:$40 sps:$4 sm:$0xff]  }
 0x3e9   : > { %v7164_v21 = vpop.permute.xlu1 %7163  ;;  %vm7905_vm6 = vcmask 310272   ;;  %vm7934_vm5 = vcmask 236544  }
 0x3ea   : > { %6898 = vmatpush1.bf16.msra.mxu1 %v11394_v54  ;;  %v7168_v3 = vsel %vm7167_vm1, %v7162_v18, %v7164_v21  ;;  %v7169_v35 = vsel %vm7167_vm1, %v7164_v21, %v7166_v41  ;;  %v11459_v18 = vld [vmem:[%s15693_s11 + $0xc54] ss:$40 sps:$4 sm:$0xff]   ;;  %v11457_v41 = vld [vmem:[%s15693_s11 + $0xc50] ss:$40 sps:$4 sm:$0xff]   ;;  %v11466_v54 = vld [vmem:[%s15693_s11 + $0xd40] ss:$40 sps:$4 sm:$0xff]  }
 0x3eb   : > { %7173 = vst [vmem:[#allocation2 + $0xd8] sm:$0xf] %v7168_v3  ;;  %7174 = vst [vmem:[#allocation2 + $0xe0] sm:$0xf] %v7169_v35  ;;  %6899 = vmatprep.subr.bf16.mxu1 %v11399_v32  ;;  %v11471_v32 = vld [vmem:[%s15693_s11 + $0xd94] ss:$40 sps:$4 sm:$0xff]  }
 0x3ec   : > { %v11469_v21 = vld [vmem:[%s15693_s11 + $0xd90] ss:$40 sps:$4 sm:$0xff]   ;;  %v11474_v3 = vld [vmem:[%s15693_s11 + $0xde4] ss:$40 sps:$4 sm:$0xff]   ;;  %v11472_v35 = vld [vmem:[%s15693_s11 + $0xde0] ss:$40 sps:$4 sm:$0xff]  }
 0x3ed   : > { %v14644_v8 = vpop.permute.xlu1 %7079  ;;  %vm15832_vm1 = vcmask 1041408  }
 0x3ee   : > { %6900 = vmatpush1.bf16.msra.mxu1 %v11397_v48  ;;  %v7084_v14 = vsel %vm7083_vm12, %v7078_v9, %v14644_v8  ;;  %v11477_v48 = vld [vmem:[%s15693_s11 + $0xe34] ss:$40 sps:$4 sm:$0xff]   ;;  %v11480_v9 = vld [vmem:[%s15693_s11 + $0xe84] ss:$40 sps:$4 sm:$0xff]  }
 0x3ef   : > { %7089 = vst [vmem:[#allocation2] sm:$0xf0] %v7084_v14  ;;  %6901 = vmatprep.subr.bf16.mxu1 %v11402_v38  ;;  %v11475_v38 = vld [vmem:[%s15693_s11 + $0xe30] ss:$40 sps:$4 sm:$0xff]   ;;  %v11478_v14 = vld [vmem:[%s15693_s11 + $0xe80] ss:$40 sps:$4 sm:$0xff]  }
 0x3f2   : > { %6902 = vmatpush1.bf16.msra.mxu1 %v11400_v7  ;;  %v11483_v7 = vld [vmem:[%s15693_s11 + $0xed4] ss:$40 sps:$4 sm:$0xff]  }
 0x3f3   : > { %6903 = vmatprep.subr.bf16.mxu1 %v11405_v44  ;;  %v11481_v44 = vld [vmem:[%s15693_s11 + $0xed0] ss:$40 sps:$4 sm:$0xff]  }
 0x3f6   : > { %6904 = vmatpush1.bf16.msra.mxu1 %v11403_v17  ;;  %v11486_v17 = vld [vmem:[%s15693_s11 + $0xf24] ss:$40 sps:$4 sm:$0xff]  }
 0x3f7   : > { %6905 = vmatprep.subr.bf16.mxu1 %v11408_v37  ;;  %v11484_v37 = vld [vmem:[%s15693_s11 + $0xf20] ss:$40 sps:$4 sm:$0xff]  }
 0x3fa   : > { %6906 = vmatpush1.bf16.msra.mxu1 %v11406_v56  ;;  %v11489_v56 = vld [vmem:[%s15693_s11 + $0xf74] ss:$40 sps:$4 sm:$0xff]  }
 0x3fb   : > { %6907 = vmatprep.subr.bf16.mxu1 %v11411_v53  ;;  %v11487_v53 = vld [vmem:[%s15693_s11 + $0xf70] ss:$40 sps:$4 sm:$0xff]  }
 0x3fe   : > { %6908 = vmatpush1.bf16.msra.mxu1 %v11409_v61  ;;  %v11492_v61 = vld [vmem:[%s15693_s11 + $0xfc4] ss:$40 sps:$4 sm:$0xff]  }
 0x3ff   : > { %6909 = vmatprep.subr.bf16.mxu1 %v11414_v42  ;;  %v11490_v42 = vld [vmem:[%s15693_s11 + $0xfc0] ss:$40 sps:$4 sm:$0xff]  }
 0x402   : > { %6910 = vmatpush1.bf16.msra.mxu1 %v11412_v10  ;;  %v11498_v10 = vld [vmem:[%s15693_s11 + $0x1064] ss:$40 sps:$4 sm:$0xff]  }
 0x403   : > { %6911 = vmatprep.subr.bf16.mxu1 %v11417_v24  ;;  %v11496_v24 = vld [vmem:[%s15693_s11 + $0x1060] ss:$40 sps:$4 sm:$0xff]  }
 0x406   : > { %6912 = vmatpush1.bf16.msra.mxu1 %v11415_v11  ;;  %v11501_v11 = vld [vmem:[%s15693_s11 + $0x10b4] ss:$40 sps:$4 sm:$0xff]  }
 0x407   : > { %6913 = vmatprep.subr.bf16.mxu1 %v11420_v45  ;;  %v11499_v45 = vld [vmem:[%s15693_s11 + $0x10b0] ss:$40 sps:$4 sm:$0xff]  }
 0x40a   : > { %6914 = vmatpush1.bf16.msra.mxu1 %v11418_v33  ;;  %v11504_v33 = vld [vmem:[%s15693_s11 + $0x1104] ss:$40 sps:$4 sm:$0xff]  }
 0x40b   : > { %6915 = vmatprep.subr.bf16.mxu1 %v11423_v59 }
 0x40e   : > { %6916 = vmatpush1.bf16.msra.mxu1 %v11421_v47 }
 0x40f   : > { %6917 = vmatprep.subr.bf16.mxu1 %v11426_v46 }
 0x412   : > { %6918 = vmatpush1.bf16.msra.mxu1 %v11424_v60 }
 0x413   : > { %6919 = vmatprep.subr.bf16.mxu1 %v11429_v30 }
 0x416   : > { %6920 = vmatpush1.bf16.msra.mxu1 %v11427_v31 }
 0x417   : > { %6921 = vmatprep.subr.bf16.mxu1 %v11432_v49  ;;  %v11502_v49 = vld [vmem:[%s15693_s11 + $0x1100] ss:$40 sps:$4 sm:$0xff]  }
 0x41a   : > { %6922 = vmatpush1.bf16.msra.mxu1 %v11430_v39 }
 0x41b   : > { %6923 = vmatprep.subr.bf16.mxu1 %v11435_v55 }
 0x41e   : > { %6924 = vmatpush1.bf16.msra.mxu1 %v11433_v52 }
 0x41f   : > { %6934 = vmatprep.subr.bf16.mxu1 %v11438_v58 }
 0x421   : > { %6926 = vmatmul.mubr.bf16.vlgmr.msra.gmra.mrb[16].mxu1 %v13222_v63  ;;  %v11447_v63 = vld [vmem:[%s15693_s11 + $0xb14] ss:$40 sps:$4 sm:$0xff]  }
 0x422   : > { %6935 = vmatpush1.bf16.msra.mxu1 %v11436_v16  ;;  %6966 = vmatprep.mubr.bf16.mxu1 %v13233_v4  ;;  %v11445_v4 = vld [vmem:[%s15693_s11 + $0xb10] ss:$40 sps:$4 sm:$0xff]   ;;  %v11507_v16 = vld [vmem:[%s15693_s11 + $0x1154] ss:$40 sps:$4 sm:$0xff]  }
 0x423   : > { %6936 = vmatprep.subr.bf16.mxu1 %v11441_v34 }
 0x426   : > { %6937 = vmatpush1.bf16.msra.mxu1 %v11439_v22 }
 0x427   : > { %6938 = vmatprep.subr.bf16.mxu1 %v11444_v0  ;;  %v11505_v0 = vld [vmem:[%s15693_s11 + $0x1150] ss:$40 sps:$4 sm:$0xff]  }
 0x42a   : > { %6939 = vmatpush1.bf16.msra.mxu1 %v11442_v29 }
 0x42b   : > { %6940 = vmatprep.subr.bf16.mxu1 %v11447_v63 }
 0x42e   : > { %6941 = vmatpush1.bf16.msra.mxu1 %v11445_v4  ;;  %v11510_v4 = vld [vmem:[%s15693_s11 + $0x11a4] ss:$40 sps:$4 sm:$0xff]  }
 0x42f   : > { %6942 = vmatprep.subr.bf16.mxu1 %v11450_v2  ;;  %v11508_v2 = vld [vmem:[%s15693_s11 + $0x11a0] ss:$40 sps:$4 sm:$0xff]  }
 0x432   : > { %6943 = vmatpush1.bf16.msra.mxu1 %v11448_v1 }
 0x433   : > { %6944 = vmatprep.subr.bf16.mxu1 %v11453_v27  ;;  %v11513_v27 = vld [vmem:[%s15693_s11 + $0x11f4] ss:$40 sps:$4 sm:$0xff]  }
 0x436   : > { %6945 = vmatpush1.bf16.msra.mxu1 %v11451_v19  ;;  %v11511_v19 = vld [vmem:[%s15693_s11 + $0x11f0] ss:$40 sps:$4 sm:$0xff]  }
 0x437   : > { %6946 = vmatprep.subr.bf16.mxu1 %v11456_v6  ;;  %v11516_v6 = vld [vmem:[%s15693_s11 + $0x1244] ss:$40 sps:$4 sm:$0xff]  }
 0x43a   : > { %6947 = vmatpush1.bf16.msra.mxu1 %v11454_v40  ;;  %v11514_v40 = vld [vmem:[%s15693_s11 + $0x1240] ss:$40 sps:$4 sm:$0xff]  }
 0x43b   : > { %6948 = vmatprep.subr.bf16.mxu1 %v11459_v18  ;;  %v11519_v18 = vld [vmem:[%s15693_s11 + $0x1294] ss:$40 sps:$4 sm:$0xff]  }
 0x43e   : > { %6949 = vmatpush1.bf16.msra.mxu1 %v11457_v41  ;;  %v11517_v41 = vld [vmem:[%s15693_s11 + $0x1290] ss:$40 sps:$4 sm:$0xff]  }
 0x43f   : > { %6950 = vmatprep.subr.bf16.mxu1 %v11462_v43  ;;  %v11522_v43 = vld [vmem:[%s15693_s11 + $0x12e4] ss:$40 sps:$4 sm:$0xff]  }
 0x442   : > { %6951 = vmatpush1.bf16.msra.mxu1 %v11460_v57  ;;  %v11520_v57 = vld [vmem:[%s15693_s11 + $0x12e0] ss:$40 sps:$4 sm:$0xff]  }
 0x443   : > { %6952 = vmatprep.subr.bf16.mxu1 %v11465_v5  ;;  %v11525_v5 = vld [vmem:[%s15693_s11 + $0x1334] ss:$40 sps:$4 sm:$0xff]  }
 0x446   : > { %6953 = vmatpush1.bf16.msra.mxu1 %v11463_v28  ;;  %v11523_v28 = vld [vmem:[%s15693_s11 + $0x1330] ss:$40 sps:$4 sm:$0xff]  }
 0x447   : > { %6954 = vmatprep.subr.bf16.mxu1 %v11468_v26  ;;  %v11528_v26 = vld [vmem:[%s15693_s11 + $0x1384] ss:$40 sps:$4 sm:$0xff]  }
 0x44a   : > { %6955 = vmatpush1.bf16.msra.mxu1 %v11466_v54  ;;  %v11526_v54 = vld [vmem:[%s15693_s11 + $0x1380] ss:$40 sps:$4 sm:$0xff]  }
 0x44b   : > { %6956 = vmatprep.subr.bf16.mxu1 %v11471_v32  ;;  %v11531_v32 = vld [vmem:[%s15693_s11 + $0x13d4] ss:$40 sps:$4 sm:$0xff]  }
 0x44e   : > { %6957 = vmatpush1.bf16.msra.mxu1 %v11469_v21  ;;  %v11529_v21 = vld [vmem:[%s15693_s11 + $0x13d0] ss:$40 sps:$4 sm:$0xff]  }
 0x44f   : > { %6958 = vmatprep.subr.bf16.mxu1 %v11474_v3  ;;  %v11534_v3 = vld [vmem:[%s15693_s11 + $0x1424] ss:$40 sps:$4 sm:$0xff]  }
 0x452   : > { %6959 = vmatpush1.bf16.msra.mxu1 %v11472_v35  ;;  %v11532_v35 = vld [vmem:[%s15693_s11 + $0x1420] ss:$40 sps:$4 sm:$0xff]  }
 0x453   : > { %6960 = vmatprep.subr.bf16.mxu1 %v11477_v48  ;;  %v11537_v48 = vld [vmem:[%s15693_s11 + $0x1474] ss:$40 sps:$4 sm:$0xff]  }
 0x456   : > { %6961 = vmatpush1.bf16.msra.mxu1 %v11475_v38  ;;  %v11535_v38 = vld [vmem:[%s15693_s11 + $0x1470] ss:$40 sps:$4 sm:$0xff]  }
 0x457   : > { %6962 = vmatprep.subr.bf16.mxu1 %v11480_v9  ;;  %v14932_v9 = vpop.permute.xlu1 %7178 }
 0x45a   : > { %6963 = vmatpush1.bf16.msra.mxu1 %v11478_v14 }
 0x45b   : > { %6964 = vmatprep.subr.bf16.mxu1 %v11483_v7 }
 0x45e   : > { %6965 = vmatpush1.bf16.msra.mxu1 %v11481_v44 }
 0x45f   : > { %6975 = vmatprep.subr.bf16.mxu1 %v11486_v17 }
 0x461   : > { %6967 = vmatmul.mubr.bf16.vlgmr.msra.gmra.mrb[16].mxu1 %v13435_v25  ;;  %v11495_v25 = vld [vmem:[%s15693_s11 + $0x1014] ss:$40 sps:$4 sm:$0xff]  }
 0x462   : > { %6976 = vmatpush1.bf16.msra.mxu1 %v11484_v37  ;;  %7007 = vmatprep.mubr.bf16.mxu1 %v13440_v62  ;;  %v11493_v62 = vld [vmem:[%s15693_s11 + $0x1010] ss:$40 sps:$4 sm:$0xff]  }
 0x463   : > { %6977 = vmatprep.subr.bf16.mxu1 %v11489_v56 }
 0x466   : > { %6978 = vmatpush1.bf16.msra.mxu1 %v11487_v53 }
 0x467   : > { %6979 = vmatprep.subr.bf16.mxu1 %v11492_v61 }
 0x46a   : > { %6980 = vmatpush1.bf16.msra.mxu1 %v11490_v42 }
 0x46b   : > { %6981 = vmatprep.subr.bf16.mxu1 %v11495_v25 }
 0x46e   : > { %6982 = vmatpush1.bf16.msra.mxu1 %v11493_v62 }
 0x46f   : > { %6983 = vmatprep.subr.bf16.mxu1 %v11498_v10  ;;  %v7208_v10 = vld [vmem:[#allocation2] sm:$0xff] }
 0x472   : > { %6984 = vmatpush1.bf16.msra.mxu1 %v11496_v24 }
 0x473   : > { %6985 = vmatprep.subr.bf16.mxu1 %v11501_v11 }
 0x474   : > { %v6640_v59 = vpop.f32.mrb[12].mxu1 }
 0x475   : > { %v6845_v47 = vpop.f32.mrb[16].mxu0  ;;  %v6642_v46 = vpop.f32.mrb[13].mxu1  ;;  %v7061_v39 = vpack.c.bf16 %v6640_v59, %v6640_v59 }
 0x476   : > { %v7063_v60 = vpack.c.bf16 %v6845_v47, %v6845_v47  ;;  %v6847_v30 = vpop.f32.mrb[17].mxu0  ;;  %6986 = vmatpush1.bf16.msra.mxu1 %v11499_v45  ;;  %v6644_v31 = vpop.f32.mrb[14].mxu1  ;;  %v7062_v63 = vpack.c.bf16 %v6642_v46, %v6642_v46 }
 0x477   : > { %v7064_v55 = vpack.c.bf16 %v6847_v30, %v6847_v30  ;;  %v6849_v52 = vpop.f32.mrb[18].mxu0  ;;  %v6645_v58 = vpop.f32.mrb[15].mxu1  ;;  %6987 = vmatprep.subr.bf16.mxu1 %v11504_v33  ;;  %v7076_v29 = vrot.slane %v7061_v39, 4  ;;  %v7224_v39 = vld [vmem:[%s15826_s24 + $0x8] sm:$0xff] }
 0x478   : > { %v7112_v34 = vrot.slane %v7063_v60, 4  ;;  %v6850_v22 = vpop.f32.mrb[19].mxu0  ;;  %v7111_v1 = vrot.slane %v7062_v63, 4 }
 0x479   : > { %7131 = vrot.lane.b32.xlu1 %v7064_v55, %s11811_s6 }
 0x47a   : > { %7117 = vrot.lane.b32.xlu0 %v7112_v34, %s11812_s5  ;;  %6988 = vmatpush1.bf16.msra.mxu1 %v11502_v49  ;;  %v7223_v49 = vld [vmem:[%s15826_s24] sm:$0xff] }
 0x47b   : > { %6989 = vmatprep.subr.bf16.mxu1 %v11507_v16 }
 0x47d   : > { %7081 = vrot.lane.b32.xlu1 %v7076_v29, %s11809_s1  ;;  %s15829_s1 = sld [smem:[#allocation10_spill]] }
 0x47e   : > { %6990 = vmatpush1.bf16.msra.mxu1 %v11505_v0  ;;  %7113 = vrot.lane.b32.xlu0 %v7076_v29, %s11812_s5 }
 0x47f   : > { %6991 = vmatprep.subr.bf16.mxu1 %v11510_v4 }
 0x481   : > { %7115 = vrot.lane.b32.xlu1 %v7111_v1, %s11812_s5  ;;  %s11816_s5 = smov 76  }
 0x482   : > { %6992 = vmatpush1.bf16.msra.mxu1 %v11508_v2  ;;  %7150 = vrot.lane.b32.xlu0 %v7112_v34, %s11813_s26 }
 0x483   : > { %6993 = vmatprep.subr.bf16.mxu1 %v11513_v27 }
 0x485   : > { %7148 = vrot.lane.b32.xlu1 %v7111_v1, %s11813_s26 }
 0x486   : > { %6994 = vmatpush1.bf16.msra.mxu1 %v11511_v19  ;;  %7146 = vrot.lane.b32.xlu0 %v7076_v29, %s11813_s26  ;;  %s11820_s26 = smov 114  }
 0x487   : > { %6995 = vmatprep.subr.bf16.mxu1 %v11516_v6  ;;  %v11538_v6 = vld [vmem:[%s15827_s7] sm:$0xff]   ;;  %s15830_s7 = sld [smem:[#allocation9_spill]] }
 0x48a   : > { %6996 = vmatpush1.bf16.msra.mxu1 %v11514_v40  ;;  %7180 = vrot.lane.b32.xlu0 %v7076_v29, %s11810_s0 }
 0x48b   : > { %6997 = vmatprep.subr.bf16.mxu1 %v11519_v18 }
 0x48e   : > { %6998 = vmatpush1.bf16.msra.mxu1 %v11517_v41 }
 0x48f   : > { %6999 = vmatprep.subr.bf16.mxu1 %v11522_v43 }
 0x492   : > { %7000 = vmatpush1.bf16.msra.mxu1 %v11520_v57 }
 0x493   : > { %7001 = vmatprep.subr.bf16.mxu1 %v11525_v5  ;;  %v11541_v5 = vld [vmem:[%s15694_s12 + $0x4] ss:$12 sps:$4 sm:$0xff]  }
 0x496   : > { %7002 = vmatpush1.bf16.msra.mxu1 %v11523_v28 }
 0x497   : > { %7003 = vmatprep.subr.bf16.mxu1 %v11528_v26  ;;  %v11539_v26 = vld [vmem:[%s15694_s12] ss:$12 sps:$4 sm:$0xff]  }
 0x49a   : > { %7004 = vmatpush1.bf16.msra.mxu1 %v11526_v54  ;;  %v11544_v54 = vld [vmem:[%s15694_s12 + $0x1c] ss:$12 sps:$4 sm:$0xff]  }
 0x49b   : > { %7005 = vmatprep.subr.bf16.mxu1 %v11531_v32  ;;  %v11542_v32 = vld [vmem:[%s15694_s12 + $0x18] ss:$12 sps:$4 sm:$0xff]  }
 0x49e   : > { %7006 = vmatpush1.bf16.msra.mxu1 %v11529_v21  ;;  %v11547_v21 = vld [vmem:[%s15694_s12 + $0x34] ss:$12 sps:$4 sm:$0xff]  }
 0x49f   : > { %7016 = vmatprep.subr.bf16.mxu1 %v11534_v3  ;;  %v11545_v3 = vld [vmem:[%s15694_s12 + $0x30] ss:$12 sps:$4 sm:$0xff]  }
 0x4a1   : > { %7008 = vmatmul.mubr.bf16.vlgmr.msra.gmra.mrb[16].mxu1 %v13646_v23 }
 0x4a2   : > { %7017 = vmatpush1.bf16.msra.mxu1 %v11532_v35  ;;  %7048 = vmatprep.mubr.bf16.mxu1 %v11804_v51  ;;  %v11550_v35 = vld [vmem:[%s15694_s12 + $0x4c] ss:$12 sps:$4 sm:$0xff]  }
 0x4a3   : > { %7018 = vmatprep.subr.bf16.mxu1 %v11537_v48  ;;  %v11548_v48 = vld [vmem:[%s15694_s12 + $0x48] ss:$12 sps:$4 sm:$0xff]  }
 0x4a6   : > { %7019 = vmatpush1.bf16.msra.mxu1 %v11535_v38  ;;  %v11553_v38 = vld [vmem:[%s15694_s12 + $0x64] ss:$12 sps:$4 sm:$0xff]  }
 0x4ad   : > { %10063 = vmatmul.mubr.msk.bf16.vlgmr.msra.gmra.mrb[16].mxu1 %vm6028_vm2, %v13677_v13 }
 0x4eb   : > { %v7132_v14 = vpop.permute.xlu1 %7131 }
 0x4ec   : > { %v7118_v7 = vpop.permute.xlu0 %7117 }
 0x4ed   : > { %7127 = vst.msk [vmem:[#allocation2 + $0x58] sm:$0xf0] %vm7091_vm10, %v7118_v7 }
 0x4ef   : > { %v7082_v23 = vpop.permute.xlu1 %7081 }
 0x4f0   : > { %v7085_v44 = vsel %vm7083_vm12, %v14644_v8, %v7082_v23  ;;  %7092 = vst.msk [vmem:[#allocation2 + $0x10] sm:$0xf0] %vm7091_vm10, %v7082_v23  ;;  %v7114_v17 = vpop.permute.xlu0 %7113  ;;  %v11559_v23 = vld [vmem:[%s15694_s12 + $0x94] ss:$12 sps:$4 sm:$0xff]   ;;  %vm15833_vm12 = vmmov %vm15832_vm1 }
 0x4f1   : > { %7090 = vst [vmem:[#allocation2 + $0x8] sm:$0xf0] %v7085_v44  ;;  %v11557_v44 = vld [vmem:[%s15694_s12 + $0x90] ss:$12 sps:$4 sm:$0xff]  }
 0x4f3   : > { %v7116_v37 = vpop.permute.xlu1 %7115 }
 0x4f4   : > { %v7120_v56 = vsel %vm7119_vm4, %v7114_v17, %v7116_v37  ;;  %v7121_v53 = vsel %vm7119_vm4, %v7116_v37, %v7118_v7  ;;  %v7151_v13 = vpop.permute.xlu0 %7150  ;;  %v7213_v18 = vld [vmem:[#allocation2 + $0x58] sm:$0xff]  ;;  %v11560_v37 = vld [vmem:[%s15694_s12 + $0xa8] ss:$12 sps:$4 sm:$0xff]   ;;  %vm8744_vm4 = vcmask 583680  }
 0x4f5   : > { %7125 = vst [vmem:[#allocation2 + $0x48] sm:$0xf0] %v7120_v56  ;;  %7126 = vst [vmem:[#allocation2 + $0x50] sm:$0xf0] %v7121_v53  ;;  %v11554_v7 = vld [vmem:[%s15694_s12 + $0x78] ss:$12 sps:$4 sm:$0xff]  }
 0x4f6   : > { %7160 = vst.msk [vmem:[#allocation2 + $0xa0] sm:$0xf0] %vm7091_vm10, %v7151_v13  ;;  %v11562_v17 = vld [vmem:[%s15694_s12 + $0xac] ss:$12 sps:$4 sm:$0xff]   ;;  %v11565_v56 = vld [vmem:[%s15694_s12 + $0xc4] ss:$12 sps:$4 sm:$0xff]  }
 0x4f7   : > { %v7149_v61 = vpop.permute.xlu1 %7148  ;;  %v7210_v40 = vld [vmem:[#allocation2 + $0x10] sm:$0xff]  ;;  %v11563_v53 = vld [vmem:[%s15694_s12 + $0xc0] ss:$12 sps:$4 sm:$0xff]  }
 0x4f8   : > { %v7154_v42 = vsel %vm15824_vm9, %v7149_v61, %v7151_v13  ;;  %v7147_v25 = vpop.permute.xlu0 %7146  ;;  %v7209_v62 = vld [vmem:[#allocation2 + $0x8] sm:$0xff]  ;;  %vm8921_vm9 = vcmask 748096  }
 0x4f9   : > { %7159 = vst [vmem:[#allocation2 + $0x98] sm:$0xf0] %v7154_v42  ;;  %v7153_v8 = vsel %vm15825_vm8, %v7147_v25, %v7149_v61  ;;  %7254 = vmatprep.subr.bf16.mxu0 %v7209_v62  ;;  %v11568_v13 = vld [vmem:[%s15694_s12 + $0xdc] ss:$12 sps:$4 sm:$0xff]   ;;  %v11566_v61 = vld [vmem:[%s15694_s12 + $0xd8] ss:$12 sps:$4 sm:$0xff]  }
 0x4fa   : > { %7158 = vst [vmem:[#allocation2 + $0x90] sm:$0xf0] %v7153_v8  ;;  %7255 = vmatpush1.bf16.msra.mxu0 %v7208_v10  ;;  %v11571_v42 = vld [vmem:[%s15694_s12 + $0xf4] ss:$12 sps:$4 sm:$0xff]   ;;  %v11569_v25 = vld [vmem:[%s15694_s12 + $0xf0] ss:$12 sps:$4 sm:$0xff]  }
 0x4fb   : > { %v11574_v62 = vld [vmem:[%s15694_s12 + $0x10c] ss:$12 sps:$4 sm:$0xff]   ;;  %v11572_v8 = vld [vmem:[%s15694_s12 + $0x108] ss:$12 sps:$4 sm:$0xff]   ;;  %v11577_v10 = vld [vmem:[%s15694_s12 + $0x124] ss:$12 sps:$4 sm:$0xff]  }
 0x4fc   : > { %v7181_v24 = vpop.permute.xlu0 %7180  ;;  %v7212_v11 = vld [vmem:[#allocation2 + $0x50] sm:$0xff]  ;;  %v7211_v45 = vld [vmem:[#allocation2 + $0x48] sm:$0xff]  ;;  %vm9156_vm8 = vcmask 802528  }
 0x4fd   : > { %v7184_v33 = vsel %vm7182_vm14, %v14932_v9, %v7181_v24  ;;  %7190 = vst.msk [vmem:[#allocation2 + $0xe8] sm:$0xf0] %vm7091_vm10, %v7181_v24  ;;  %7256 = vmatprep.subr.bf16.mxu0 %v7212_v11  ;;  %v11575_v24 = vld [vmem:[%s15694_s12 + $0x120] ss:$12 sps:$4 sm:$0xff]   ;;  %v11580_v11 = vld [vmem:[%s15694_s12 + $0x13c] ss:$12 sps:$4 sm:$0xff]  }
 0x4fe   : > { %7189 = vst [vmem:[#allocation2 + $0xe0] sm:$0xf0] %v7184_v33  ;;  %7257 = vmatpush1.bf16.msra.mxu0 %v7211_v45  ;;  %v11578_v45 = vld [vmem:[%s15694_s12 + $0x138] ss:$12 sps:$4 sm:$0xff]   ;;  %v11583_v33 = vld [vmem:[%s15694_s12 + $0x154] ss:$12 sps:$4 sm:$0xff]  }
 0x4ff   : > { %vm8365_vm10 = vcmask 48128  }
 0x504   : > { %v7219_v43 = vld [vmem:[#allocation2 + $0xe8] sm:$0xff] }
 0x505   : > { %v7218_v4 = vld [vmem:[#allocation2 + $0xe0] sm:$0xff] }
 0x580   : > { %v7050_v59 = vpop.f32.mrb[16].mxu1 }
 0x581   : > { %v7065_v47 = vpack.c.bf16 %v7050_v59, %v7050_v59  ;;  %v7052_v46 = vpop.f32.mrb[17].mxu1  ;;  %v11581_v59 = vld [vmem:[%s15694_s12 + $0x150] ss:$12 sps:$4 sm:$0xff]  }
 0x582   : > { %v7066_v60 = vpack.c.bf16 %v7052_v46, %v7052_v46  ;;  %v7054_v30 = vpop.f32.mrb[18].mxu1  ;;  %v11584_v46 = vld [vmem:[%s15694_s12 + $0x168] ss:$12 sps:$4 sm:$0xff]  }
 0x583   : > { %7133 = vrot.lane.b32.xlu1 %v7065_v47, %s11811_s6  ;;  %v7055_v31 = vpop.f32.mrb[19].mxu1  ;;  %v11586_v47 = vld [vmem:[%s15694_s12 + $0x16c] ss:$12 sps:$4 sm:$0xff]  }
 0x584   : > { %7135 = vrot.lane.b32.xlu0 %v7066_v60, %s11811_s6  ;;  %v11589_v60 = vld [vmem:[%s15694_s12 + $0x184] ss:$12 sps:$4 sm:$0xff]   ;;  %s11823_s6 = smov 68  }
 0x587   : > { %7191 = vrot.lane.b32.xlu1 %v14339_v15, %s11814_s29 }
 0x588   : > { %7176 = vrot.lane.b32.xlu0 %v7074_v50, %s11810_s0  ;;  %s11819_s0 = smov 118  }
 0x58b   : > { %7195 = vrot.lane.b32.xlu1 %v14344_v12, %s11814_s29 }
 0x58c   : > { %7193 = vrot.lane.b32.xlu0 %v14346_v20, %s11814_s29  ;;  %s11815_s29 = smov 38  }
 0x58f   : > { %7232 = vperm.xlu1 %10539, %v7224_v39  }
 0x590   : > { %7227 = vperm.xlu0 %10538, %v7223_v49  }
 0x5f5   : > { %v7134_v15 = vpop.permute.xlu1 %7133 }
 0x5f6   : > { %v7138_v55 = vsel %vm7137_vm11, %v7132_v14, %v7134_v15  ;;  %v7136_v52 = vpop.permute.xlu0 %7135  ;;  %v11556_v14 = vld [vmem:[%s15694_s12 + $0x7c] ss:$12 sps:$4 sm:$0xff]  }
 0x5f7   : > { %7143 = vst [vmem:[#allocation2 + $0x90] sm:$0xf] %v7138_v55  ;;  %v7139_v50 = vsel %vm7137_vm11, %v7134_v15, %v7136_v52  ;;  %7145 = vst.msk [vmem:[#allocation2 + $0xa0] sm:$0xf] %vm7069_vm13, %v7136_v52 }
 0x5f8   : > { %7144 = vst [vmem:[#allocation2 + $0x98] sm:$0xf] %v7139_v50 }
 0x5f9   : > { %v7192_v12 = vpop.permute.xlu1 %7191 }
 0x5fa   : > { %v7177_v20 = vpop.permute.xlu0 %7176 }
 0x5fb   : > { %v7183_v58 = vsel %vm7182_vm14, %v7177_v20, %v14932_v9  ;;  %v11551_v9 = vld [vmem:[%s15694_s12 + $0x60] ss:$12 sps:$4 sm:$0xff]   ;;  %vm9160_vm14 = vcmask 797408  }
 0x5fc   : > { %7188 = vst [vmem:[#allocation2 + $0xd8] sm:$0xf0] %v7183_v58 }
 0x5fd   : > { %v7196_v16 = vpop.permute.xlu1 %7195 }
 0x5fe   : > { %7205 = vst.msk [vmem:[#allocation2 + $0x130] sm:$0xf] %vm7069_vm13, %v7196_v16  ;;  %v7194_v34 = vpop.permute.xlu0 %7193  ;;  %v7214_v63 = vld [vmem:[#allocation2 + $0x90] sm:$0xff]  ;;  %v7216_v41 = vld [vmem:[#allocation2 + $0xa0] sm:$0xff]  ;;  %vm7723_vm13 = vcmask 130048  }
 0x5ff   : > { %v7198_v22 = vsel %vm7197_vm7, %v7192_v12, %v7194_v34  ;;  %v7199_v0 = vsel %vm7197_vm7, %v7194_v34, %v7196_v16  ;;  %v7215_v29 = vld [vmem:[#allocation2 + $0x98] sm:$0xff] }
 0x600   : > { %7203 = vst [vmem:[#allocation2 + $0x120] sm:$0xf] %v7198_v22  ;;  %7204 = vst [vmem:[#allocation2 + $0x128] sm:$0xf] %v7199_v0  ;;  %7258 = vmatprep.subr.bf16.mxu0 %v7215_v29 }
 0x601   : > { %7259 = vmatpush1.bf16.msra.mxu0 %v7214_v63 }
 0x602   : > { %7260 = vmatprep.subr.bf16.mxu0 %v7218_v4 }
 0x603   : > { %v7217_v2 = vld [vmem:[#allocation2 + $0xd8] sm:$0xff] }
 0x605   : > { %7261 = vmatpush1.bf16.msra.mxu0 %v7217_v2  ;;  %v7222_v57 = vld [vmem:[#allocation2 + $0x130] sm:$0xf] }
 0x606   : > { %v7252_v28 = vsel %vm7244_vm15, %v7222_v57, 0 }
 0x607   : > { %v7221_v1 = vld [vmem:[#allocation2 + $0x128] sm:$0xf]  ;;  %v7220_v27 = vld [vmem:[#allocation2 + $0x120] sm:$0xf] }
 0x608   : > { %10065 = vmatprep.subr.msk.bf16.mxu0 %vm7244_vm15, %v7221_v1  ;;  %v7246_v19 = vsel %vm7244_vm15, %v7220_v27, 0 }
 0x609   : > { %7263 = vmatpush1.bf16.msra.mxu0 %v7246_v19 }
 0x60a   : > { %10310 = vmatprep.subr.bf16.mxu0 %v11806_v36 }
 0x60c   : > { %10066 = vmatmul.mubr.msk.bf16.vlgmr.msra.gmra.mrb[20].mxu0 %vm7240_vm3, %v11538_v6 }
 0x60d   : > { %10311 = vmatpush3.bf16.msra.mxu0 %v7210_v40  ;;  %10320 = vmatprep.mubr.msk.bf16.mxu0 %vm11807_vm0, %v11806_v36 }
 0x60e   : > { %10312 = vmatprep.subr.bf16.mxu0 %v11806_v36  ;;  %v7233_v49 = vpop.permute.xlu1 %7232 }
 0x60f   : > { %v7228_v30 = vpop.permute.xlu0 %7227 }
 0x611   : > { %10313 = vmatpush3.bf16.msra.mxu0 %v7213_v18 }
 0x612   : > { %10314 = vmatprep.subr.bf16.mxu0 %v11806_v36 }
 0x615   : > { %10315 = vmatpush3.bf16.msra.mxu0 %v7216_v41 }
 0x616   : > { %10316 = vmatprep.subr.bf16.mxu0 %v11806_v36 }
 0x619   : > { %10317 = vmatpush3.bf16.msra.mxu0 %v7219_v43 }
 0x61a   : > { %10318 = vmatprep.subr.bf16.mxu0 %v11806_v36 }
 0x61d   : > { %10319 = vmatpush3.bf16.msra.mxu0 %v7252_v28 }
 0x61e   : > { %7727 = vmatprep.subr.bf16.mxu0 %v11541_v5 }
 0x620   : > { %10321 = vmatmul.mubr.msk.bf16.vlgmr.msra.gmra.mrb[24].mxu0 %vm7240_vm3, %v11538_v6 }
 0x621   : > { %7728 = vmatpush1.bf16.msra.mxu0 %v11539_v26 }
 0x622   : > { %7729 = vmatprep.subr.bf16.mxu0 %v11544_v54 }
 0x625   : > { %7730 = vmatpush1.bf16.msra.mxu0 %v11542_v32 }
 0x626   : > { %7731 = vmatprep.subr.bf16.mxu0 %v11547_v21 }
 0x629   : > { %7732 = vmatpush1.bf16.msra.mxu0 %v11545_v3 }
 0x62a   : > { %7733 = vmatprep.subr.bf16.mxu0 %v11550_v35 }
 0x62d   : > { %7734 = vmatpush1.bf16.msra.mxu0 %v11548_v48 }
 0x62e   : > { %7735 = vmatprep.subr.bf16.mxu0 %v11553_v38 }
 0x631   : > { %7736 = vmatpush1.bf16.msra.mxu0 %v11551_v9 }
 0x632   : > { %7737 = vmatprep.subr.bf16.mxu0 %v11556_v14 }
 0x635   : > { %7738 = vmatpush1.bf16.msra.mxu0 %v11554_v7  ;;  %v11587_v7 = vld [vmem:[%s15694_s12 + $0x180] ss:$12 sps:$4 sm:$0xff]  }
 0x636   : > { %7739 = vmatprep.subr.bf16.mxu0 %v11559_v23 }
 0x639   : > { %7740 = vmatpush1.bf16.msra.mxu0 %v11557_v44  ;;  %v11590_v44 = vld [vmem:[%s15694_s12 + $0xc8] ss:$12 sps:$4 sm:$0xff]  }
 0x63a   : > { %7741 = vmatprep.subr.bf16.mxu0 %v11562_v17 }
 0x63d   : > { %7742 = vmatpush1.bf16.msra.mxu0 %v11560_v37 }
 0x63e   : > { %7743 = vmatprep.subr.bf16.mxu0 %v11565_v56 }
 0x641   : > { %7744 = vmatpush1.bf16.msra.mxu0 %v11563_v53 }
 0x642   : > { %7745 = vmatprep.subr.bf16.mxu0 %v11568_v13 }
 0x645   : > { %7746 = vmatpush1.bf16.msra.mxu0 %v11566_v61 }
 0x646   : > { %7747 = vmatprep.subr.bf16.mxu0 %v11571_v42 }
 0x649   : > { %7748 = vmatpush1.bf16.msra.mxu0 %v11569_v25  ;;  %v11591_v25 = vld [vmem:[%s15694_s12 + $0x8] ss:$12 sps:$4 sm:$0xff]  }
 0x64a   : > { %7749 = vmatprep.subr.bf16.mxu0 %v11574_v62 }
 0x64d   : > { %7750 = vmatpush1.bf16.msra.mxu0 %v11572_v8  ;;  %v11592_v8 = vld [vmem:[%s15694_s12 + $0xe0] ss:$12 sps:$4 sm:$0xff]  }
 0x64e   : > { %7751 = vmatprep.subr.bf16.mxu0 %v11577_v10  ;;  %v11593_v10 = vld [vmem:[%s15694_s12 + $0x20] ss:$12 sps:$4 sm:$0xff]  }
 0x651   : > { %7752 = vmatpush1.bf16.msra.mxu0 %v11575_v24  ;;  %v11594_v24 = vld [vmem:[%s15694_s12 + $0xf8] ss:$12 sps:$4 sm:$0xff]  }
 0x652   : > { %7753 = vmatprep.subr.bf16.mxu0 %v11580_v11  ;;  %v11595_v11 = vld [vmem:[%s15694_s12 + $0x38] ss:$12 sps:$4 sm:$0xff]  }
 0x655   : > { %7754 = vmatpush1.bf16.msra.mxu0 %v11578_v45  ;;  %v11596_v45 = vld [vmem:[%s15694_s12 + $0x110] ss:$12 sps:$4 sm:$0xff]  }
 0x656   : > { %7755 = vmatprep.subr.bf16.mxu0 %v11583_v33  ;;  %v11597_v33 = vld [vmem:[%s15694_s12 + $0x50] ss:$12 sps:$4 sm:$0xff]  }
 0x659   : > { %7756 = vmatpush1.bf16.msra.mxu0 %v11581_v59  ;;  %v11598_v59 = vld [vmem:[%s15694_s12 + $0x128] ss:$12 sps:$4 sm:$0xff]  }
 0x65a   : > { %7757 = vmatprep.subr.bf16.mxu0 %v11586_v47  ;;  %v11599_v47 = vld [vmem:[%s15694_s12 + $0x68] ss:$12 sps:$4 sm:$0xff]  }
 0x65d   : > { %7758 = vmatpush1.bf16.msra.mxu0 %v11584_v46  ;;  %v11600_v46 = vld [vmem:[%s15694_s12 + $0x140] ss:$12 sps:$4 sm:$0xff]  }
 0x65e   : > { %7770 = vmatprep.subr.bf16.mxu0 %v11589_v60  ;;  %v11601_v60 = vld [vmem:[%s15694_s12 + $0x80] ss:$12 sps:$4 sm:$0xff]  }
 0x6df   : > { %v7288_v31 = vpop.f32.mrb[20].mxu0 }
 0x6e0   : > { %v7289_v39 = vadd.f32 %v7288_v31, %v7228_v30  ;;  %v7290_v15 = vpop.f32.mrb[21].mxu0  ;;  %v11603_v31 = vld [vmem:[%s15694_s12 + $0x98] ss:$12 sps:$4 sm:$0xff]  }
 0x6e1   : > { %v7291_v55 = vadd.f32 %v7290_v15, %v7228_v30  ;;  %v7292_v52 = vpop.f32.mrb[22].mxu0  ;;  %v11606_v15 = vld [vmem:[%s15694_s12 + $0x188] ss:$12 sps:$4 sm:$0xff]  }
 0x6e2   : > { %v10068_v50 = vmul.f32 -1.442695, %v7289_v39  ;;  %v7293_v12 = vadd.f32 %v7292_v52, %v7233_v49  ;;  %v7294_v20 = vpop.f32.mrb[23].mxu0 }
 0x6e3   : > { %v10069_v58 = vmul.f32 -1.442695, %v7291_v55  ;;  %v7295_v16 = vadd.f32 %v7294_v20, %v7233_v49 }
 0x6e4   : > { %11673 = vpow2.f32 %v10068_v50  ;;  %v10071_v34 = vmul.f32 -1.442695, %v7293_v12 }
 0x6e5   : > { %11675 = vpow2.f32 %v10069_v58  ;;  %v10072_v22 = vmul.f32 -1.442695, %v7295_v16 }
 0x6e6   : > { %11677 = vpow2.f32 %v10071_v34  ;;  %v7954_v34 = vld [vmem:[%s15829_s1 + $0x8] sm:$0xff] }
 0x6e7   : > { %11679 = vpow2.f32 %v10072_v22 }
 0x6ee   : > { %v11674_v0 = vpop.eup %11673 }
 0x6ef   : > { %v11676_v29 = vpop.eup %11675  ;;  %v7356_v63 = vadd.f32 1.0, %v11674_v0 }
 0x6f0   : > { %v11678_v4 = vpop.eup %11677  ;;  %v7357_v2 = vadd.f32 1.0, %v11676_v29 }
 0x6f1   : > { %v11680_v1 = vpop.eup %11679  ;;  %11681 = vrcp.f32 %v7356_v63  ;;  %v7359_v27 = vadd.f32 1.0, %v11678_v4 }
 0x6f2   : > { %11683 = vrcp.f32 %v7357_v2  ;;  %v7360_v19 = vadd.f32 1.0, %v11680_v1 }
 0x6f3   : > { %11685 = vrcp.f32 %v7359_v27  ;;  %v7331_v6 = vpop.f32.mrb[24].mxu0 }
 0x6f4   : > { %11687 = vrcp.f32 %v7360_v19  ;;  %v7332_v40 = vadd.f32 %v7331_v6, %v7228_v30  ;;  %v10322_v18 = vpop.f32.mrb[25].mxu0  ;;  %v11602_v30 = vld [vmem:[%s15694_s12 + $0x158] ss:$12 sps:$4 sm:$0xff]  }
 0x6f5   : > { %v7334_v41 = vpop.f32.mrb[26].mxu0 }
 0x6f6   : > { %v10070_v43 = vmul.f32 -1.442695, %v7332_v40  ;;  %v7335_v57 = vadd.f32 %v7334_v41, %v7233_v49  ;;  %v10323_v5 = vpop.f32.mrb[27].mxu0  ;;  %v11604_v49 = vld [vmem:[%s15694_s12 + $0x170] ss:$12 sps:$4 sm:$0xff]  }
 0x6f8   : > { %11689 = vpow2.f32 %v10070_v43  ;;  %v10073_v28 = vmul.f32 -1.442695, %v7335_v57  ;;  %v7953_v43 = vld [vmem:[%s15829_s1] sm:$0xff]  ;;  %s15735_s1 = smov 92  }
 0x6fa   : > { %11691 = vpow2.f32 %v10073_v28 }
 0x6fb   : > { %v11682_v26 = vpop.eup %11681 }
 0x6fc   : > { %v11684_v54 = vpop.eup %11683  ;;  %v7374_v3 = vmul.f32 %v11682_v26, %v7289_v39  ;;  %v11605_v39 = vld [vmem:[%s15694_s12 + $0xb0] ss:$12 sps:$4 sm:$0xff]  }
 0x6fd   : > { %v11686_v32 = vpop.eup %11685  ;;  %v7375_v48 = vmul.f32 %v11684_v54, %v7291_v55 }
 0x6fe   : > { %v11688_v21 = vpop.eup %11687  ;;  %v7377_v35 = vmul.f32 %v11686_v32, %v7293_v12 }
 0x6ff   : > { %v7378_v38 = vmul.f32 %v11688_v21, %v7295_v16 }
 0x700   : > { %v7380_v9 = vpack.c.bf16 %v7377_v35, %v7374_v3 }
 0x701   : > { %v7381_v14 = vpack.c.bf16 %v7378_v38, %v7375_v48 }
 0x702   : > { %v11690_v23 = vpop.eup %11689 }
 0x703   : > { %v7358_v17 = vadd.f32 1.0, %v11690_v23  ;;  %7759 = vmatprep.mubr.bf16.mxu0 %v7381_v14 }
 0x704   : > { %v11692_v37 = vpop.eup %11691  ;;  %7760 = vmatmul.mubr.bf16.vlgmr.msra.gmra.mrb[28].mxu0 %v7380_v9 }
 0x705   : > { %11693 = vrcp.f32 %v7358_v17  ;;  %v7361_v56 = vadd.f32 1.0, %v11692_v37  ;;  %7771 = vmatpush1.bf16.msra.mxu0 %v11587_v7  ;;  %7802 = vmatprep.mubr.bf16.mxu0 %v11804_v51 }
 0x706   : > { %10225 = vmatprep.subr.bf16.mxu0 %v11590_v44 }
 0x707   : > { %11695 = vrcp.f32 %v7361_v56 }
 0x70f   : > { %v11694_v53 = vpop.eup %11693 }
 0x710   : > { %v7376_v61 = vmul.f32 %v11694_v53, %v7332_v40 }
 0x711   : > { %v11696_v13 = vpop.eup %11695 }
 0x712   : > { %v7379_v42 = vmul.f32 %v11696_v13, %v7335_v57  ;;  %v11607_v57 = vld [vmem:[%s15830_s7 + $0x4] ss:$8 sps:$4 sm:$0xff]  }
 0x714   : > { %v7382_v62 = vpack.c.bf16 %v7379_v42, %v7376_v61  ;;  %v11609_v61 = vld [vmem:[%s15830_s7] ss:$8 sps:$4 sm:$0xff]  }
 0x715   : > { %v11610_v42 = vld [vmem:[%s15695_s13] sm:$0xff]  }
 0x716   : > { %10125 = vmatmul.mubr.msk.bf16.vlgmr.msra.gmra.mrb[28].mxu0 %vm7723_vm13, %v7382_v62 }
 0x717   : > { %10226 = vmatpush3.bf16.msra.mxu0 %v11591_v25  ;;  %7845 = vmatprep.mubr.bf16.mxu0 %v7381_v14  ;;  %v11611_v25 = vld [vmem:[%s15695_s13 + $0x8] sm:$0xff]  }
 0x718   : > { %10227 = vmatprep.subr.bf16.mxu0 %v11592_v8  ;;  %v11613_v8 = vld [vmem:[%s15695_s13 + $0x18] sm:$0xff]  }
 0x71b   : > { %10228 = vmatpush3.bf16.msra.mxu0 %v11593_v10  ;;  %v11614_v10 = vld [vmem:[%s15695_s13 + $0x20] ss:$0 sps:$4 sm:$0xff]  }
 0x71c   : > { %10229 = vmatprep.subr.bf16.mxu0 %v11594_v24  ;;  %v8073_v24 = vsel %vm7244_vm15, %v11614_v10, 0 }
 0x71f   : > { %10230 = vmatpush3.bf16.msra.mxu0 %v11595_v11 }
 0x720   : > { %10231 = vmatprep.subr.bf16.mxu0 %v11596_v45 }
 0x723   : > { %10232 = vmatpush3.bf16.msra.mxu0 %v11597_v33 }
 0x724   : > { %10233 = vmatprep.subr.bf16.mxu0 %v11598_v59 }
 0x727   : > { %10234 = vmatpush3.bf16.msra.mxu0 %v11599_v47 }
 0x728   : > { %10235 = vmatprep.subr.bf16.mxu0 %v11600_v46 }
 0x72b   : > { %10236 = vmatpush3.bf16.msra.mxu0 %v11601_v60 }
 0x72c   : > { %10237 = vmatprep.subr.bf16.mxu0 %v11602_v30 }
 0x72f   : > { %10238 = vmatpush3.bf16.msra.mxu0 %v11603_v31 }
 0x730   : > { %10239 = vmatprep.subr.bf16.mxu0 %v11604_v49 }
 0x733   : > { %10240 = vmatpush3.bf16.msra.mxu0 %v11605_v39 }
 0x734   : > { %10324 = vmatprep.subr.bf16.mxu0 %v11806_v36 }
 0x736   : > { %7846 = vmatmul.mubr.bf16.vlgmr.msra.gmra.mrb[32].mxu0 %v7380_v9 }
 0x737   : > { %10325 = vmatpush3.bf16.msra.mxu0 %v11606_v15  ;;  %10326 = vmatprep.mubr.msk.bf16.mxu0 %vm11807_vm0, %v11806_v36 }
 0x738   : > { %7977 = vmatprep.subr.bf16.mxu0 %v11804_v51 }
 0x73e   : > { %10327 = vmatmul.mubr.msk.bf16.vlgmr.msra.gmra.mrb[36].mxu0 %vm7723_vm13, %v7382_v62  ;;  %v11612_v62 = vld [vmem:[%s15695_s13 + $0x10] sm:$0xff]  }
 0x73f   : > { %10129 = vmatprep.mubr.msk.bf16.mxu0 %vm7723_vm13, %v11607_v57 }
 0x7e9   : > { %v7804_v55 = vpop.f32.mrb[28].mxu0 }
 0x7ea   : > { %v7806_v52 = vpop.f32.mrb[29].mxu0 }
 0x7eb   : > { %v7808_v50 = vpop.f32.mrb[30].mxu0 }
 0x7ec   : > { %v7895_v12 = vpack.c.bf16 %v7808_v50, %v7804_v55  ;;  %v7810_v20 = vpop.f32.mrb[31].mxu0 }
 0x7ed   : > { %v7896_v58 = vpack.c.bf16 %v7810_v20, %v7806_v52 }
 0x7ee   : > { %7898 = vst.msk [vmem:[#allocation2] sm:$0xff] %vm7240_vm3, %v7895_v12  ;;  %7901 = vrot.lane.b32.xlu0 %v7895_v12, %s11815_s29 }
 0x7ef   : > { %7903 = vrot.lane.b32.xlu1 %v7896_v58, %s11815_s29 }
 0x7f2   : > { %7909 = vrot.lane.b32.xlu0 %v7895_v12, %s15828_s25 }
 0x7f3   : > { %7913 = vrot.lane.b32.xlu1 %v7896_v58, %s11816_s5  ;;  %s11827_s5 = smov 93  }
 0x7f5   : > { %v7944_v16 = vld [vmem:[#allocation2] sm:$0xff] }
 0x7f6   : > { %7978 = vmatpush1.bf16.msra.mxu0 %v7944_v16 }
 0x7f7   : > { %7922 = vrot.lane.b32.xlu1 %v7896_v58, %s11817_s3  ;;  %7979 = vmatprep.subr.bf16.mxu0 %v11804_v51  ;;  %s15831_s3 = sld [smem:[#allocation11_spill]] }
 0x7fb   : > { %7930 = vrot.lane.b32.xlu1 %v7895_v12, %s11818_s27 }
 0x7ff   : > { %7938 = vrot.lane.b32.xlu1 %v7895_v12, %s11819_s0  ;;  %s11822_s0 = smov 98  }
 0x803   : > { %7962 = vperm.xlu1 %10539, %v7954_v34  }
 0x809   : > { %v10241_v22 = vpop.f32.mrb[32].mxu0 }
 0x80a   : > { %v10242_v0 = vpop.f32.mrb[33].mxu0 }
 0x80b   : > { %v10243_v29 = vadd.f32 %v10242_v0, %v10241_v22  ;;  %v10244_v63 = vpop.f32.mrb[34].mxu0 }
 0x80c   : > { %v10245_v4 = vpop.f32.mrb[35].mxu0 }
 0x80d   : > { %v10246_v2 = vadd.f32 %v10245_v4, %v10244_v63  ;;  %v8166_v4 = vld [vmem:[%s15690_s8 + $0x8] sm:$0xff] }
 0x811   : > { %v7888_v1 = vpop.f32.mrb[36].mxu0 }
 0x812   : > { %v7889_v27 = vadd.f32 %v10243_v29, %v7888_v1  ;;  %v10328_v19 = vpop.f32.mrb[37].mxu0  ;;  %v8168_v1 = vld [vmem:[%s15690_s8 + $0x18] sm:$0xff] }
 0x813   : > { %v7891_v6 = vpop.f32.mrb[38].mxu0  ;;  %v11615_v19 = vld [vmem:[%s15831_s3 + $0x4] ss:$8 sps:$4 sm:$0xff]  }
 0x814   : > { %v7892_v40 = vadd.f32 %v10246_v2, %v7891_v6  ;;  %v10329_v18 = vpop.f32.mrb[39].mxu0  ;;  %v8165_v2 = vld [vmem:[%s15690_s8] sm:$0xff] }
 0x816   : > { %v7897_v41 = vpack.c.bf16 %v7892_v40, %v7889_v27  ;;  %v8167_v27 = vld [vmem:[%s15690_s8 + $0x10] sm:$0xff] }
 0x818   : > { %7918 = vrot.lane.b32.xlu0 %v7897_v41, %s11820_s26  ;;  %s11825_s26 = smov 67  }
 0x81c   : > { %7926 = vrot.lane.b32.xlu0 %v7895_v12, %s11821_s28  ;;  %s11826_s28 = smov 122  }
 0x820   : > { %7932 = vrot.lane.b32.xlu0 %v7896_v58, %s11818_s27  ;;  %s11824_s27 = smov 123  }
 0x824   : > { %7957 = vperm.xlu0 %10538, %v7953_v43  }
 0x860   : > { %v7902_v5 = vpop.permute.xlu0 %7901 }
 0x861   : > { %v7904_v28 = vpop.permute.xlu1 %7903 }
 0x862   : > { %v7906_v26 = vsel %vm7905_vm6, %v7902_v5, %v7904_v28 }
 0x863   : > { %7908 = vst.msk [vmem:[#allocation2 + $0x48] sm:$0xff] %vm7240_vm3, %v7906_v26 }
 0x864   : > { %v7910_v54 = vpop.permute.xlu0 %7909 }
 0x865   : > { %7912 = vst.msk [vmem:[#allocation2 + $0x90] sm:$0xff] %vm7240_vm3, %v7910_v54  ;;  %v7914_v32 = vpop.permute.xlu1 %7913 }
 0x866   : > { %7916 = vst.msk [vmem:[#allocation2 + $0xd8] sm:$0xff] %vm7240_vm3, %v7914_v32 }
 0x869   : > { %v7923_v21 = vpop.permute.xlu1 %7922 }
 0x86a   : > { %7925 = vst.msk [vmem:[#allocation2 + $0x168] sm:$0xff] %vm7240_vm3, %v7923_v21  ;;  %v7945_v3 = vld [vmem:[#allocation2 + $0x48] sm:$0xff] }
 0x86b   : > { %7980 = vmatpush1.bf16.msra.mxu0 %v7945_v3 }
 0x86c   : > { %7981 = vmatprep.subr.bf16.mxu0 %v11804_v51  ;;  %v7946_v48 = vld [vmem:[#allocation2 + $0x90] sm:$0xff] }
 0x86d   : > { %v7931_v35 = vpop.permute.xlu1 %7930  ;;  %v7947_v9 = vld [vmem:[#allocation2 + $0xd8] sm:$0xff] }
 0x86f   : > { %7982 = vmatpush1.bf16.msra.mxu0 %v7946_v48 }
 0x870   : > { %7983 = vmatprep.subr.bf16.mxu0 %v11804_v51 }
 0x871   : > { %v7939_v38 = vpop.permute.xlu1 %7938  ;;  %v7949_v37 = vld [vmem:[#allocation2 + $0x168] sm:$0xff] }
 0x872   : > { %7941 = vst.msk [vmem:[#allocation2 + $0x240] sm:$0xff] %vm7240_vm3, %v7939_v38 }
 0x873   : > { %7984 = vmatpush1.bf16.msra.mxu0 %v7947_v9  ;;  %v11617_v9 = vld [vmem:[%s15831_s3] ss:$8 sps:$4 sm:$0xff]  }
 0x874   : > { %7985 = vmatprep.subr.bf16.mxu0 %v11804_v51 }
 0x879   : > { %v7952_v13 = vld [vmem:[#allocation2 + $0x240] sm:$0xff] }
 0x882   : > { %v7963_v47 = vpop.permute.xlu1 %7962 }
 0x88a   : > { %v7919_v14 = vpop.permute.xlu0 %7918 }
 0x88b   : > { %7921 = vst.msk [vmem:[#allocation2 + $0x120] sm:$0xff] %vm7240_vm3, %v7919_v14  ;;  %v11618_v14 = vld [vmem:[%s15831_s3 + $0x14] ss:$8 sps:$4 sm:$0xff]  }
 0x88e   : > { %v7927_v7 = vpop.permute.xlu0 %7926 }
 0x88f   : > { %7929 = vst.msk [vmem:[#allocation2 + $0x1b0] sm:$0xff] %vm7240_vm3, %v7927_v7  ;;  %v11620_v7 = vld [vmem:[%s15831_s3 + $0x10] ss:$8 sps:$4 sm:$0xff]  }
 0x892   : > { %v7933_v23 = vpop.permute.xlu0 %7932  ;;  %v7948_v44 = vld [vmem:[#allocation2 + $0x120] sm:$0xff] }
 0x893   : > { %v7935_v17 = vsel %vm7934_vm5, %v7931_v35, %v7933_v23  ;;  %7986 = vmatpush1.bf16.msra.mxu0 %v7948_v44  ;;  %v11622_v23 = vld [vmem:[%s15696_s14 + $0x8] ss:$0 sps:$4 sm:$0x33]  }
 0x894   : > { %7937 = vst.msk [vmem:[#allocation2 + $0x1f8] sm:$0xff] %vm7240_vm3, %v7935_v17  ;;  %7987 = vmatprep.subr.bf16.mxu0 %v11804_v51  ;;  %v8312_v44 = vsel %vm15833_vm12, %v11622_v23, 0 }
 0x896   : > { %v7950_v56 = vld [vmem:[#allocation2 + $0x1b0] sm:$0xff] }
 0x897   : > { %7988 = vmatpush1.bf16.msra.mxu0 %v7949_v37 }
 0x898   : > { %7989 = vmatprep.subr.bf16.mxu0 %v11804_v51 }
 0x89b   : > { %7990 = vmatpush1.bf16.msra.mxu0 %v7950_v56  ;;  %v7951_v53 = vld [vmem:[#allocation2 + $0x1f8] sm:$0xff] }
 0x89c   : > { %7991 = vmatprep.subr.bf16.mxu0 %v11804_v51 }
 0x89f   : > { %7992 = vmatpush1.bf16.msra.mxu0 %v7951_v53 }
 0x8a0   : > { %7993 = vmatprep.subr.bf16.mxu0 %v11804_v51 }
 0x8a3   : > { %7994 = vmatpush1.bf16.msra.mxu0 %v7952_v13  ;;  %v7958_v11 = vpop.permute.xlu0 %7957 }
 0x8a4   : > { %10330 = vmatprep.subr.bf16.mxu0 %v11806_v36 }
 0x8a6   : > { %8010 = vmatmul.mubr.bf16.vlgmr.msra.gmra.mrb[40].mxu0 %v11609_v61 }
 0x8a7   : > { %10340 = vmatprep.mubr.msk.bf16.mxu0 %vm11807_vm0, %v11806_v36  ;;  %10331 = vmatpush3.bf16.msra.mxu0 %v11610_v42  ;;  %vm8117_vm0 = vcmask 162816  }
 0x8a8   : > { %10332 = vmatprep.subr.bf16.mxu0 %v11806_v36 }
 0x8ab   : > { %10333 = vmatpush3.bf16.msra.mxu0 %v11611_v25 }
 0x8ac   : > { %10334 = vmatprep.subr.bf16.mxu0 %v11806_v36 }
 0x8af   : > { %10335 = vmatpush3.bf16.msra.mxu0 %v11612_v62 }
 0x8b0   : > { %10336 = vmatprep.subr.bf16.mxu0 %v11806_v36 }
 0x8b3   : > { %10337 = vmatpush3.bf16.msra.mxu0 %v11613_v8 }
 0x8b4   : > { %10338 = vmatprep.subr.bf16.mxu0 %v11806_v36 }
 0x8b7   : > { %10339 = vmatpush3.bf16.msra.mxu0 %v8073_v24 }
 0x8b8   : > { %8213 = vmatprep.subr.bf16.mxu0 %v11804_v51 }
 0x979   : > { %v8011_v45 = vpop.f32.mrb[40].mxu0 }
 0x97a   : > { %v8012_v33 = vadd.f32 %v8011_v45, %v7958_v11  ;;  %v8013_v59 = vpop.f32.mrb[41].mxu0 }
 0x97b   : > { %v8014_v46 = vpop.f32.mrb[42].mxu0 }
 0x97c   : > { %v10130_v60 = vmul.f32 -1.442695, %v8012_v33  ;;  %v8015_v30 = vadd.f32 %v8014_v46, %v7963_v47  ;;  %v8016_v31 = vpop.f32.mrb[43].mxu0 }
 0x97e   : > { %11697 = vpow2.f32 %v10130_v60  ;;  %v10131_v36 = vmul.f32 -1.442695, %v8015_v30 }
 0x980   : > { %11699 = vpow2.f32 %v10131_v36 }
 0x988   : > { %v11698_v49 = vpop.eup %11697 }
 0x989   : > { %v8024_v39 = vadd.f32 1.0, %v11698_v49 }
 0x98a   : > { %v11700_v15 = vpop.eup %11699 }
 0x98b   : > { %11701 = vrcp.f32 %v8024_v39  ;;  %v8025_v55 = vadd.f32 1.0, %v11700_v15 }
 0x98d   : > { %11703 = vrcp.f32 %v8025_v55 }
 0x995   : > { %v11702_v52 = vpop.eup %11701 }
 0x996   : > { %v8030_v12 = vmul.f32 %v11702_v52, %v8012_v33 }
 0x997   : > { %v11704_v50 = vpop.eup %11703 }
 0x998   : > { %v8031_v20 = vmul.f32 %v11704_v50, %v8015_v30 }
 0x99a   : > { %v15194_v58 = vpack.c.bf16 %v8031_v20, %v8030_v12 }
 0x99c   : > { %10341 = vmatmul.mubr.msk.bf16.vlgmr.msra.gmra.mrb[44].mxu0 %vm7240_vm3, %v15194_v58 }
 0x99d   : > { %10142 = vmatprep.mubr.msk.bf16.mxu0 %vm7723_vm13, %v11615_v19 }
 0xa6f   : > { %v8109_v16 = vpop.f32.mrb[44].mxu0 }
 0xa70   : > { %v10342_v34 = vpop.f32.mrb[45].mxu0 }
 0xa71   : > { %v8112_v22 = vpop.f32.mrb[46].mxu0 }
 0xa72   : > { %v8116_v0 = vpack.c.bf16 %v8112_v22, %v8109_v16  ;;  %v10343_v29 = vpop.f32.mrb[47].mxu0 }
 0xa74   : > { %8124 = vrot.lane.b32.xlu1 %v8116_v0, %s15828_s25  ;;  %8120 = vrot.lane.b32.xlu0 %v8116_v0, %s11822_s0  ;;  %8118 = vst.msk [vmem:[#allocation2] sm:$0xff] %vm8117_vm0, %v8116_v0  ;;  %s11829_s0 = smov 116  }
 0xa78   : > { %8132 = vrot.lane.b32.xlu1 %v8116_v0, %s11815_s29  ;;  %8128 = vrot.lane.b32.xlu0 %v8116_v0, %s11823_s6  ;;  %s11830_s29 = smov 103   ;;  %s15834_s6 = smov 125  }
 0xa7b   : > { %v8156_v63 = vld [vmem:[#allocation2] sm:$0xff] }
 0xa7c   : > { %8140 = vrot.lane.b32.xlu1 %v8116_v0, %s11824_s27  ;;  %8136 = vrot.lane.b32.xlu0 %v8116_v0, %s11825_s26  ;;  %s11831_s27 = smov 104   ;;  %s11832_s26 = smov 113  }
 0xa7d   : > { %8214 = vmatpush1.bf16.msra.mxu0 %v8156_v63 }
 0xa7e   : > { %8215 = vmatprep.subr.bf16.mxu0 %v11804_v51 }
 0xa80   : > { %8148 = vrot.lane.b32.xlu1 %v8116_v0, %s11826_s28  ;;  %8144 = vrot.lane.b32.xlu0 %v8116_v0, %s11827_s5  ;;  %s11834_s28 = smov 56  }
 0xa84   : > { %8176 = vperm.xlu1 %10539, %v8166_v4   ;;  %8171 = vperm.xlu0 %10538, %v8165_v2  }
 0xa88   : > { %8186 = vperm.xlu1 %10539, %v8168_v1   ;;  %8181 = vperm.xlu0 %10538, %v8167_v27  }
 0xae6   : > { %v8125_v6 = vpop.permute.xlu1 %8124  ;;  %v8121_v40 = vpop.permute.xlu0 %8120 }
 0xae7   : > { %8127 = vst.msk [vmem:[#allocation2 + $0x90] sm:$0xff] %vm8117_vm0, %v8125_v6  ;;  %8123 = vst.msk [vmem:[#allocation2 + $0x48] sm:$0xff] %vm8117_vm0, %v8121_v40 }
 0xaea   : > { %v8133_v18 = vpop.permute.xlu1 %8132  ;;  %v8129_v41 = vpop.permute.xlu0 %8128 }
 0xaeb   : > { %8135 = vst.msk [vmem:[#allocation2 + $0x120] sm:$0xff] %vm8117_vm0, %v8133_v18  ;;  %8131 = vst.msk [vmem:[#allocation2 + $0xd8] sm:$0xff] %vm8117_vm0, %v8129_v41  ;;  %v11625_v41 = vld [vmem:[%s15691_s9 + $0x4] ss:$12 sps:$4 sm:$0xff]  }
 0xaec   : > { %8552 = vmatprep.mubr.bf16.mxu1 %v11625_v41 }
 0xaee   : > { %v8141_v43 = vpop.permute.xlu1 %8140  ;;  %v8137_v57 = vpop.permute.xlu0 %8136  ;;  %v8157_v5 = vld [vmem:[#allocation2 + $0x48] sm:$0xff]  ;;  %v8158_v54 = vld [vmem:[#allocation2 + $0x90] sm:$0xff] }
 0xaef   : > { %8143 = vst.msk [vmem:[#allocation2 + $0x1b0] sm:$0xff] %vm8117_vm0, %v8141_v43  ;;  %8139 = vst.msk [vmem:[#allocation2 + $0x168] sm:$0xff] %vm8117_vm0, %v8137_v57  ;;  %8216 = vmatpush1.bf16.msra.mxu0 %v8157_v5  ;;  %v8461_v43 = vld [vmem:[%s15692_s10 + $0x8] sm:$0xff]  ;;  %v8460_v57 = vld [vmem:[%s15692_s10] sm:$0xff] }
 0xaf0   : > { %8217 = vmatprep.subr.bf16.mxu0 %v11804_v51  ;;  %v11626_v5 = vld [vmem:[%s15691_s9 + $0x8] ss:$12 sps:$4 sm:$0xff]  }
 0xaf2   : > { %v8149_v28 = vpop.permute.xlu1 %8148  ;;  %v8145_v26 = vpop.permute.xlu0 %8144  ;;  %v8159_v32 = vld [vmem:[#allocation2 + $0xd8] sm:$0xff]  ;;  %v8160_v21 = vld [vmem:[#allocation2 + $0x120] sm:$0xff] }
 0xaf3   : > { %8151 = vst.msk [vmem:[#allocation2 + $0x240] sm:$0xff] %vm8117_vm0, %v8149_v28  ;;  %8147 = vst.msk [vmem:[#allocation2 + $0x1f8] sm:$0xff] %vm8117_vm0, %v8145_v26  ;;  %8218 = vmatpush1.bf16.msra.mxu0 %v8158_v54  ;;  %v8463_v28 = vld [vmem:[%s15692_s10 + $0x18] sm:$0xff]  ;;  %v8462_v26 = vld [vmem:[%s15692_s10 + $0x10] sm:$0xff] }
 0xaf4   : > { %8219 = vmatprep.subr.bf16.mxu0 %v11804_v51  ;;  %v8813_v54 = vld [vmem:[%s15700_s18 + $0x8] sm:$0xff] }
 0xaf6   : > { %v8161_v3 = vld [vmem:[#allocation2 + $0x168] sm:$0xff]  ;;  %v8162_v35 = vld [vmem:[#allocation2 + $0x1b0] sm:$0xff] }
 0xaf7   : > { %8220 = vmatpush1.bf16.msra.mxu0 %v8159_v32  ;;  %v8812_v32 = vld [vmem:[%s15700_s18] sm:$0xff] }
 0xaf8   : > { %8221 = vmatprep.subr.bf16.mxu0 %v11804_v51 }
 0xafa   : > { %v8163_v48 = vld [vmem:[#allocation2 + $0x1f8] sm:$0xff]  ;;  %v8164_v38 = vld [vmem:[#allocation2 + $0x240] sm:$0xff] }
 0xafb   : > { %8222 = vmatpush1.bf16.msra.mxu0 %v8160_v21  ;;  %v8815_v21 = vld [vmem:[%s15700_s18 + $0x18] sm:$0x7] }
 0xafc   : > { %8223 = vmatprep.subr.bf16.mxu0 %v11804_v51 }
 0xaff   : > { %8224 = vmatpush1.bf16.msra.mxu0 %v8161_v3  ;;  %v8814_v3 = vld [vmem:[%s15700_s18 + $0x10] sm:$0xff] }
 0xb00   : > { %8225 = vmatprep.subr.bf16.mxu0 %v11804_v51 }
 0xb03   : > { %8226 = vmatpush1.bf16.msra.mxu0 %v8162_v35  ;;  %v8172_v17 = vpop.permute.xlu0 %8171  ;;  %v8177_v13 = vpop.permute.xlu1 %8176  ;;  %v9052_v35 = vld [vmem:[%s15702_s20 + $0x8] sm:$0xff] }
 0xb04   : > { %8227 = vmatprep.subr.bf16.mxu0 %v11804_v51 }
 0xb07   : > { %8228 = vmatpush1.bf16.msra.mxu0 %v8163_v48  ;;  %v8182_v10 = vpop.permute.xlu0 %8181  ;;  %v8187_v33 = vpop.permute.xlu1 %8186  ;;  %v9051_v48 = vld [vmem:[%s15702_s20] sm:$0xff] }
 0xb08   : > { %8229 = vmatprep.subr.bf16.mxu0 %v11804_v51  ;;  %v11621_v51 = vld [vmem:[%s15696_s14] sm:$0xff]  }
 0xb0b   : > { %8230 = vmatpush1.bf16.msra.mxu0 %v8164_v38  ;;  %v9054_v38 = vld [vmem:[%s15702_s20 + $0x18] sm:$0x7] }
 0xb0c   : > { %10344 = vmatprep.subr.bf16.mxu0 %v11621_v51 }
 0xb0e   : > { %8246 = vmatmul.mubr.bf16.vlgmr.msra.gmra.mrb[48].mxu0 %v11617_v9  ;;  %v9053_v9 = vld [vmem:[%s15702_s20 + $0x10] sm:$0xff] }
 0xb0f   : > { %10143 = vmatprep.mubr.msk.bf16.mxu0 %vm7723_vm13, %v11618_v14  ;;  %10345 = vmatpush3.bf16.msra.mxu0 %v11621_v51  ;;  %v15313_v14 = vld [vmem:[%s15703_s21 + $0x8] sm:$0xff]  ;;  %v8950_v51 = vld [vmem:[%s15703_s21 + $0x18] sm:$0x7] }
 0xb10   : > { %10466 = vmatprep.subr.msk.bf16.mxu0 %vm15832_vm1, %v11622_v23  ;;  %v15330_v23 = vld [vmem:[%s15703_s21 + $0x10] sm:$0xff] }
 0xb13   : > { %10347 = vmatpush3.bf16.msra.mxu0 %v8312_v44  ;;  %v15338_v44 = vld [vmem:[%s15703_s21 + $0x28] sm:$0xff] }
 0xb16   : > { %8254 = vmatmul.mubr.bf16.gmra.mrb[52].mxu0 %v11620_v7  ;;  %v15318_v7 = vld [vmem:[%s15703_s21] sm:$0xff] }
 0xbe1   : > { %v8247_v37 = vpop.f32.mrb[48].mxu0 }
 0xbe2   : > { %v8248_v56 = vadd.f32 %v8247_v37, %v8172_v17  ;;  %v8249_v53 = vpop.f32.mrb[49].mxu0  ;;  %v15343_v17 = vld [vmem:[%s15703_s21 + $0x20] sm:$0xff]  ;;  %v10191_v37 = vld [vmem:[%s15703_s21 + $0x38] sm:$0x7] }
 0xbe3   : > { %v8250_v61 = vpop.f32.mrb[50].mxu0  ;;  %v9189_v53 = vld [vmem:[%s15703_s21 + $0x18] sm:$0x7] }
 0xbe4   : > { %v10144_v42 = vmul.f32 -1.442695, %v8248_v56  ;;  %v8251_v25 = vadd.f32 %v8250_v61, %v8177_v13  ;;  %v8252_v62 = vpop.f32.mrb[51].mxu0  ;;  %v10207_v13 = vld [vmem:[%s15703_s21 + $0x38] sm:$0x7]  ;;  %v15375_v61 = vld [vmem:[%s15703_s21 + $0x48] sm:$0xff] }
 0xbe5   : > { %v15392_v62 = vld [vmem:[%s15703_s21 + $0x50] sm:$0xff] }
 0xbe6   : > { %11705 = vpow2.f32 %v10144_v42  ;;  %v10145_v8 = vmul.f32 -1.442695, %v8251_v25  ;;  %v15380_v42 = vld [vmem:[%s15703_s21 + $0x40] sm:$0xff] }
 0xbe8   : > { %11707 = vpow2.f32 %v10145_v8  ;;  %v10211_v8 = vld [vmem:[%s15703_s21 + $0x58] sm:$0x7] }
 0xbe9   : > { %v8255_v24 = vpop.f32.mrb[52].mxu0 }
 0xbea   : > { %v8256_v11 = vadd.f32 %v8255_v24, %v8182_v10  ;;  %v8257_v45 = vpop.f32.mrb[53].mxu0  ;;  %v8653_v10 = vld [vmem:[%s15698_s16 + $0x8] sm:$0xff]  ;;  %v8652_v24 = vld [vmem:[%s15698_s16] sm:$0xff] }
 0xbeb   : > { %v8258_v59 = vpop.f32.mrb[54].mxu0  ;;  %v8654_v45 = vld [vmem:[%s15698_s16 + $0x10] sm:$0xff] }
 0xbec   : > { %v10146_v47 = vmul.f32 -1.442695, %v8256_v11  ;;  %v8259_v46 = vadd.f32 %v8258_v59, %v8187_v33  ;;  %v8260_v60 = vpop.f32.mrb[55].mxu0 }
 0xbee   : > { %11709 = vpow2.f32 %v10146_v47  ;;  %v10147_v30 = vmul.f32 -1.442695, %v8259_v46 }
 0xbf0   : > { %v11706_v31 = vpop.eup %11705  ;;  %11711 = vpow2.f32 %v10147_v30 }
 0xbf1   : > { %v8274_v36 = vadd.f32 1.0, %v11706_v31 }
 0xbf2   : > { %v11708_v49 = vpop.eup %11707 }
 0xbf3   : > { %11713 = vrcp.f32 %v8274_v36  ;;  %v8275_v39 = vadd.f32 1.0, %v11708_v49 }
 0xbf5   : > { %11715 = vrcp.f32 %v8275_v39 }
 0xbf8   : > { %v11710_v15 = vpop.eup %11709 }
 0xbf9   : > { %v8276_v55 = vadd.f32 1.0, %v11710_v15 }
 0xbfa   : > { %v11712_v52 = vpop.eup %11711 }
 0xbfb   : > { %11717 = vrcp.f32 %v8276_v55  ;;  %v8277_v50 = vadd.f32 1.0, %v11712_v52 }
 0xbfd   : > { %v11714_v12 = vpop.eup %11713  ;;  %11719 = vrcp.f32 %v8277_v50 }
 0xbfe   : > { %v8286_v16 = vmul.f32 %v11714_v12, %v8248_v56  ;;  %v15355_v56 = vld [vmem:[%s15703_s21 + $0x30] sm:$0xff] }
 0xbff   : > { %v11716_v20 = vpop.eup %11715 }
 0xc00   : > { %v8287_v34 = vmul.f32 %v11716_v20, %v8251_v25  ;;  %v10195_v25 = vld [vmem:[%s15703_s21 + $0x58] sm:$0x7] }
 0xc02   : > { %v15251_v22 = vpack.c.bf16 %v8287_v34, %v8286_v16 }
 0xc04   : > { %10348 = vmatprep.mubr.msk.bf16.mxu0 %vm8117_vm0, %v15251_v22 }
 0xc05   : > { %v11718_v0 = vpop.eup %11717 }
 0xc06   : > { %v8288_v63 = vmul.f32 %v11718_v0, %v8256_v11  ;;  %v8655_v11 = vld [vmem:[%s15698_s16 + $0x18] sm:$0x7] }
 0xc07   : > { %v11720_v29 = vpop.eup %11719 }
 0xc08   : > { %v8289_v4 = vmul.f32 %v11720_v29, %v8259_v46 }
 0xc0a   : > { %v15255_v2 = vpack.c.bf16 %v8289_v4, %v8288_v63 }
 0xc0c   : > { %10349 = vmatmul.mubr.msk.bf16.vlgmr.msra.gmra.mrb[56].mxu0 %vm8117_vm0, %v15255_v2 }
 0xc0d   : > { %10356 = vmatprep.mubr.msk.bf16.mxu0 %vm6028_vm2, %v11626_v5 }
 0xcdf   : > { %v10350_v1 = vpop.f32.mrb[56].mxu0 }
 0xce0   : > { %v8348_v27 = vpop.f32.mrb[57].mxu0 }
 0xce1   : > { %v10351_v19 = vpop.f32.mrb[58].mxu0 }
 0xce2   : > { %v8364_v6 = vpack.c.bf16 %v10351_v19, %v10350_v1  ;;  %v8351_v40 = vpop.f32.mrb[59].mxu0 }
 0xce3   : > { %v8363_v18 = vpack.c.bf16 %v8351_v40, %v8348_v27 }
 0xce4   : > { %8396 = vrot.lane.b32.xlu1 %v8364_v6, %s15735_s1  ;;  %8367 = vst.msk [vmem:[#allocation2 + $0x48] sm:$0xff] %vm8365_vm10, %v8364_v6 }
 0xce5   : > { %8394 = vrot.lane.b32.xlu0 %v8363_v18, %s15735_s1  ;;  %8366 = vst.msk [vmem:[#allocation2] sm:$0xff] %vm8365_vm10, %v8363_v18 }
 0xce8   : > { %8370 = vrot.lane.b32.xlu1 %v8363_v18, %s11829_s0 }
 0xce9   : > { %8402 = vrot.lane.b32.xlu0 %v8363_v18, %s11830_s29 }
 0xceb   : > { %v8443_v55 = vld [vmem:[#allocation2 + $0x48] sm:$0xff] }
 0xcec   : > { %8372 = vrot.lane.b32.xlu1 %v8364_v6, %s11829_s0  ;;  %s11835_s0 = smov 36   ;;  %v8442_v36 = vld [vmem:[#allocation2] sm:$0xff] }
 0xced   : > { %8404 = vrot.lane.b32.xlu0 %v8364_v6, %s11830_s29 }
 0xcf0   : > { %8378 = vrot.lane.b32.xlu1 %v8363_v18, %s15828_s25 }
 0xcf1   : > { %8410 = vrot.lane.b32.xlu0 %v8363_v18, %s15834_s6 }
 0xcf4   : > { %8380 = vrot.lane.b32.xlu1 %v8364_v6, %s15828_s25 }
 0xcf5   : > { %8412 = vrot.lane.b32.xlu0 %v8364_v6, %s15834_s6 }
 0xcf8   : > { %8386 = vrot.lane.b32.xlu1 %v8363_v18, %s11831_s27 }
 0xcf9   : > { %8418 = vrot.lane.b32.xlu0 %v8363_v18, %s11832_s26 }
 0xcfc   : > { %8388 = vrot.lane.b32.xlu1 %v8364_v6, %s11831_s27 }
 0xcfd   : > { %8420 = vrot.lane.b32.xlu0 %v8364_v6, %s11832_s26 }
 0xd00   : > { %8428 = vrot.lane.b32.xlu1 %v8364_v6, %s11833_s2 }
 0xd01   : > { %8426 = vrot.lane.b32.xlu0 %v8363_v18, %s11833_s2 }
 0xd04   : > { %8471 = vperm.xlu1 %10539, %v8461_v43  }
 0xd05   : > { %8466 = vperm.xlu0 %10538, %v8460_v57  }
 0xd08   : > { %8481 = vperm.xlu1 %10539, %v8463_v28  }
 0xd09   : > { %8476 = vperm.xlu0 %10538, %v8462_v26   ;;  %v11623_v26 = vld [vmem:[%s15691_s9] ss:$12 sps:$4 sm:$0xff]  }
 0xd0c   : > { %8823 = vperm.xlu1 %10539, %v8813_v54  }
 0xd0d   : > { %8818 = vperm.xlu0 %10538, %v8812_v32   ;;  %v11628_v32 = vld [vmem:[%s15691_s9 + $0x1c] ss:$12 sps:$4 sm:$0xff]  }
 0xd10   : > { %8833 = vperm.xlu1 %10539, %v8815_v21   ;;  %v11627_v21 = vld [vmem:[%s15691_s9 + $0x20] ss:$12 sps:$4 sm:$0xff]  }
 0xd11   : > { %8828 = vperm.xlu0 %10538, %v8814_v3   ;;  %v11631_v3 = vld [vmem:[%s15697_s15] sm:$0xff]  }
 0xd14   : > { %9062 = vperm.xlu1 %10539, %v9052_v35   ;;  %v11630_v35 = vld [vmem:[%s15691_s9 + $0x18] ss:$12 sps:$4 sm:$0xff]  }
 0xd15   : > { %9057 = vperm.xlu0 %10538, %v9051_v48   ;;  %v11632_v48 = vld [vmem:[%s15697_s15 + $0x8] sm:$0x3f]  }
 0xd18   : > { %9072 = vperm.xlu1 %10539, %v9054_v38   ;;  %v11633_v38 = vld [vmem:[%s15699_s17] sm:$0xff]  }
 0xd19   : > { %9067 = vperm.xlu0 %10538, %v9053_v9  }
 0xd1c   : > { %8969 = vrot.lane.b32.xlu1 %v15313_v14, %s11834_s28 }
 0xd1d   : > { %8967 = vrot.lane.b32.xlu0 %v15318_v7, %s11834_s28 }
 0xd20   : > { %8973 = vrot.lane.b32.xlu1 %v8950_v51, %s11834_s28 }
 0xd21   : > { %8971 = vrot.lane.b32.xlu0 %v15330_v23, %s11834_s28 }
 0xd24   : > { %8989 = vrot.lane.b32.xlu1 %v15338_v44, %s11834_s28 }
 0xd25   : > { %8987 = vrot.lane.b32.xlu0 %v15343_v17, %s11834_s28 }
 0xd28   : > { %8993 = vrot.lane.b32.xlu1 %v10191_v37, %s11834_s28 }
 0xd29   : > { %8991 = vrot.lane.b32.xlu0 %v15355_v56, %s11834_s28 }
 0xd2c   : > { %9208 = vrot.lane.b32.xlu1 %v15313_v14, %s11835_s0 }
 0xd2d   : > { %9206 = vrot.lane.b32.xlu0 %v15318_v7, %s11835_s0 }
 0xd30   : > { %9212 = vrot.lane.b32.xlu1 %v9189_v53, %s11835_s0 }
 0xd31   : > { %9210 = vrot.lane.b32.xlu0 %v15330_v23, %s11835_s0 }
 0xd34   : > { %9228 = vrot.lane.b32.xlu1 %v15338_v44, %s11835_s0 }
 0xd35   : > { %9226 = vrot.lane.b32.xlu0 %v15343_v17, %s11835_s0 }
 0xd38   : > { %9232 = vrot.lane.b32.xlu1 %v10207_v13, %s11835_s0 }
 0xd39   : > { %9230 = vrot.lane.b32.xlu0 %v15355_v56, %s11835_s0 }
 0xd3c   : > { %9013 = vrot.lane.b32.xlu1 %v15375_v61, %s11834_s28 }
 0xd3d   : > { %9011 = vrot.lane.b32.xlu0 %v15380_v42, %s11834_s28 }
 0xd40   : > { %9017 = vrot.lane.b32.xlu1 %v10195_v25, %s11834_s28 }
 0xd41   : > { %9015 = vrot.lane.b32.xlu0 %v15392_v62, %s11834_s28  ;;  %s10214_s28 = sshll.u32 %s15839_s30, 5 }
 0xd42   : > { %s15550_s29 = scalar_lea.vmem %s15704_s22, %s10214_s28  ;;  %s15595_s3 = scalar_lea.vmem %s15705_s23, %s10214_s28 }
 0xd43   : > { %s15836_s28 = smov 92  }
 0xd44   : > { %9252 = vrot.lane.b32.xlu1 %v15375_v61, %s11835_s0 }
 0xd45   : > { %9250 = vrot.lane.b32.xlu0 %v15380_v42, %s11835_s0 }
 0xd48   : > { %9256 = vrot.lane.b32.xlu1 %v10211_v8, %s11835_s0 }
 0xd49   : > { %9254 = vrot.lane.b32.xlu0 %v15392_v62, %s11835_s0  ;;  %s11836_s0 = smov 72  }
 0xd4c   : > { %8663 = vperm.xlu1 %10539, %v8653_v10  }
 0xd4d   : > { %8658 = vperm.xlu0 %10538, %v8652_v24  }
 0xd50   : > { %8673 = vperm.xlu1 %10539, %v8655_v11  }
 0xd51   : > { %8668 = vperm.xlu0 %10538, %v8654_v45  }
 0xd56   : > { %v8397_v33 = vpop.permute.xlu1 %8396 }
 0xd57   : > { %8401 = vst.msk [vmem:[#allocation2 + $0x288] sm:$0xff] %vm8365_vm10, %v8397_v33  ;;  %v8395_v59 = vpop.permute.xlu0 %8394 }
 0xd58   : > { %8400 = vst.msk [vmem:[#allocation2 + $0x240] sm:$0xff] %vm8365_vm10, %v8395_v59 }
 0xd5a   : > { %v8371_v47 = vpop.permute.xlu1 %8370 }
 0xd5b   : > { %8376 = vst.msk [vmem:[#allocation2 + $0x90] sm:$0xff] %vm8365_vm10, %v8371_v47  ;;  %v8403_v46 = vpop.permute.xlu0 %8402 }
 0xd5c   : > { %8408 = vst.msk [vmem:[#allocation2 + $0x2d0] sm:$0xff] %vm8365_vm10, %v8403_v46 }
 0xd5e   : > { %v8373_v60 = vpop.permute.xlu1 %8372  ;;  %v8451_v49 = vld [vmem:[#allocation2 + $0x288] sm:$0xff] }
 0xd5f   : > { %8377 = vst.msk [vmem:[#allocation2 + $0xd8] sm:$0xff] %vm8365_vm10, %v8373_v60  ;;  %v8405_v30 = vpop.permute.xlu0 %8404  ;;  %v8450_v31 = vld [vmem:[#allocation2 + $0x240] sm:$0xff] }
 0xd60   : > { %8409 = vst.msk [vmem:[#allocation2 + $0x318] sm:$0xff] %vm8365_vm10, %v8405_v30  ;;  %10259 = vmatprep.subr.bf16.mxu1 %v8450_v31 }
 0xd61   : > { %10260 = vmatpush3.bf16.msra.mxu1 %v8442_v36 }
 0xd62   : > { %v8379_v39 = vpop.permute.xlu1 %8378  ;;  %10261 = vmatprep.subr.bf16.mxu1 %v8451_v49  ;;  %v8444_v20 = vld [vmem:[#allocation2 + $0x90] sm:$0xff] }
 0xd63   : > { %8384 = vst.msk [vmem:[#allocation2 + $0x120] sm:$0xff] %vm8365_vm10, %v8379_v39  ;;  %v8411_v15 = vpop.permute.xlu0 %8410  ;;  %v8452_v52 = vld [vmem:[#allocation2 + $0x2d0] sm:$0xff] }
 0xd64   : > { %8416 = vst.msk [vmem:[#allocation2 + $0x360] sm:$0xff] %vm8365_vm10, %v8411_v15 }
 0xd65   : > { %10262 = vmatpush3.bf16.msra.mxu1 %v8443_v55 }
 0xd66   : > { %v8381_v50 = vpop.permute.xlu1 %8380  ;;  %10263 = vmatprep.subr.bf16.mxu1 %v8452_v52  ;;  %v8445_v29 = vld [vmem:[#allocation2 + $0xd8] sm:$0xff] }
 0xd67   : > { %8385 = vst.msk [vmem:[#allocation2 + $0x168] sm:$0xff] %vm8365_vm10, %v8381_v50  ;;  %v8413_v12 = vpop.permute.xlu0 %8412  ;;  %v8453_v16 = vld [vmem:[#allocation2 + $0x318] sm:$0xff] }
 0xd68   : > { %8417 = vst.msk [vmem:[#allocation2 + $0x3a8] sm:$0xff] %vm8365_vm10, %v8413_v12 }
 0xd69   : > { %10264 = vmatpush3.bf16.msra.mxu1 %v8444_v20 }
 0xd6a   : > { %v8387_v34 = vpop.permute.xlu1 %8386  ;;  %10265 = vmatprep.subr.bf16.mxu1 %v8453_v16  ;;  %v8446_v27 = vld [vmem:[#allocation2 + $0x120] sm:$0xff] }
 0xd6b   : > { %8392 = vst.msk [vmem:[#allocation2 + $0x1b0] sm:$0xff] %vm8365_vm10, %v8387_v34  ;;  %v8419_v0 = vpop.permute.xlu0 %8418  ;;  %v8454_v63 = vld [vmem:[#allocation2 + $0x360] sm:$0xff] }
 0xd6c   : > { %8424 = vst.msk [vmem:[#allocation2 + $0x3f0] sm:$0xff] %vm8365_vm10, %v8419_v0 }
 0xd6d   : > { %10266 = vmatpush3.bf16.msra.mxu1 %v8445_v29 }
 0xd6e   : > { %v8389_v4 = vpop.permute.xlu1 %8388  ;;  %10267 = vmatprep.subr.bf16.mxu1 %v8454_v63  ;;  %v8447_v18 = vld [vmem:[#allocation2 + $0x168] sm:$0xff] }
 0xd6f   : > { %8393 = vst.msk [vmem:[#allocation2 + $0x1f8] sm:$0xff] %vm8365_vm10, %v8389_v4  ;;  %v8421_v1 = vpop.permute.xlu0 %8420  ;;  %v8455_v19 = vld [vmem:[#allocation2 + $0x3a8] sm:$0xff] }
 0xd70   : > { %8425 = vst.msk [vmem:[#allocation2 + $0x438] sm:$0xff] %vm8365_vm10, %v8421_v1 }
 0xd71   : > { %10268 = vmatpush3.bf16.msra.mxu1 %v8446_v27 }
 0xd72   : > { %v8429_v6 = vpop.permute.xlu1 %8428  ;;  %10269 = vmatprep.subr.bf16.mxu1 %v8455_v19  ;;  %v8448_v43 = vld [vmem:[#allocation2 + $0x1b0] sm:$0xff] }
 0xd73   : > { %8433 = vst.msk [vmem:[#allocation2 + $0x4c8] sm:$0xff] %vm8365_vm10, %v8429_v6  ;;  %v8427_v40 = vpop.permute.xlu0 %8426  ;;  %v8456_v41 = vld [vmem:[#allocation2 + $0x3f0] sm:$0xff] }
 0xd74   : > { %8432 = vst.msk [vmem:[#allocation2 + $0x480] sm:$0xff] %vm8365_vm10, %v8427_v40 }
 0xd75   : > { %10270 = vmatpush3.bf16.msra.mxu1 %v8447_v18 }
 0xd76   : > { %10271 = vmatprep.subr.bf16.mxu1 %v8456_v41  ;;  %v8449_v28 = vld [vmem:[#allocation2 + $0x1f8] sm:$0xff] }
 0xd77   : > { %v8457_v57 = vld [vmem:[#allocation2 + $0x438] sm:$0xff] }
 0xd79   : > { %10272 = vmatpush3.bf16.msra.mxu1 %v8448_v43 }
 0xd7a   : > { %10273 = vmatprep.subr.bf16.mxu1 %v8457_v57  ;;  %v8459_v54 = vld [vmem:[#allocation2 + $0x4c8] sm:$0xff] }
 0xd7b   : > { %v8458_v5 = vld [vmem:[#allocation2 + $0x480] sm:$0xff] }
 0xd7c   : > { %10352 = vmatprep.subr.bf16.mxu0 %v8458_v5 }
 0xd7d   : > { %10274 = vmatpush3.bf16.msra.mxu1 %v8449_v28  ;;  %10353 = vmatpush3.bf16.msra.mxu0 %v8458_v5 }
 0xd7e   : > { %10354 = vmatprep.subr.bf16.mxu0 %v8459_v54 }
 0xd80   : > { %8553 = vmatmul.mubr.bf16.vlgmr.msra.gmra.mrb[20].mxu1 %v11623_v26 }
 0xd81   : > { %10355 = vmatpush3.bf16.msra.mxu0 %v8459_v54  ;;  %8560 = vmatprep.mubr.bf16.mxu1 %v11628_v32 }
 0xd82   : > { %10360 = vmatprep.subr.bf16.mxu0 %v15194_v58 }
 0xd83   : > { %v8472_v51 = vpop.permute.xlu1 %8471 }
 0xd84   : > { %10357 = vmatmul.mubr.msk.bf16.vlgmr.msra.gmra.mrb[60].mxu0 %vm6028_vm2, %v11627_v21  ;;  %v8467_v9 = vpop.permute.xlu0 %8466 }
 0xd85   : > { %10361 = vmatpush3.bf16.msra.mxu0 %v15194_v58  ;;  %10362 = vmatprep.mubr.msk.bf16.mxu0 %vm7723_vm13, %v11631_v3  ;;  %v11634_v58 = vld [vmem:[%s15699_s17 + $0x8] sm:$0x3f]  }
 0xd86   : > { %10366 = vmatprep.subr.bf16.mxu0 %v15251_v22 }
 0xd87   : > { %v15468_v53 = vpop.permute.xlu1 %8481 }
 0xd88   : > { %8561 = vmatmul.mubr.bf16.gmra.mrb[24].mxu1 %v11630_v35  ;;  %v15466_v37 = vpop.permute.xlu0 %8476 }
 0xd8c   : > { %10363 = vmatmul.mubr.msk.bf16.vlgmr.msra.gmra.mrb[64].mxu0 %vm7723_vm13, %v11632_v48  ;;  %v15470_v13 = vpop.permute.xlu0 %8818 }
 0xd8d   : > { %10367 = vmatpush3.bf16.msra.mxu0 %v15251_v22  ;;  %10370 = vmatprep.mubr.msk.bf16.mxu0 %vm6028_vm2, %v11633_v38  ;;  %v15472_v22 = vpop.permute.xlu1 %8823 }
 0xd8e   : > { %10368 = vmatprep.subr.bf16.mxu0 %v15255_v2 }
 0xd90   : > { %v15474_v25 = vpop.permute.xlu0 %8828 }
 0xd91   : > { %10369 = vmatpush3.bf16.msra.mxu0 %v15255_v2  ;;  %v15476_v8 = vpop.permute.xlu1 %8833  ;;  %v11635_v2 = vld [vmem:[%s15701_s19] sm:$0xff]  }
 0xd94   : > { %10371 = vmatmul.mubr.msk.bf16.vlgmr.msra.gmra.mrb[68].mxu0 %vm6028_vm2, %v11634_v58  ;;  %v15481_v10 = vpop.permute.xlu0 %9057 }
 0xd95   : > { %10378 = vmatprep.mubr.msk.bf16.mxu0 %vm6028_vm2, %v11635_v2  ;;  %v15484_v24 = vpop.permute.xlu1 %9062 }
 0xd98   : > { %v15486_v11 = vpop.permute.xlu0 %9067 }
 0xd99   : > { %v15488_v45 = vpop.permute.xlu1 %9072 }
 0xd9c   : > { %v15490_v33 = vpop.permute.xlu0 %8967 }
 0xd9d   : > { %v15492_v59 = vpop.permute.xlu1 %8969 }
 0xda0   : > { %v15494_v47 = vpop.permute.xlu0 %8971 }
 0xda1   : > { %v15496_v46 = vpop.permute.xlu1 %8973 }
 0xda4   : > { %v15498_v60 = vpop.permute.xlu0 %8987 }
 0xda5   : > { %v15500_v30 = vpop.permute.xlu1 %8989 }
 0xda8   : > { %v15502_v31 = vpop.permute.xlu0 %8991 }
 0xda9   : > { %v15504_v36 = vpop.permute.xlu1 %8993 }
 0xdac   : > { %v15506_v49 = vpop.permute.xlu0 %9206 }
 0xdad   : > { %v15508_v39 = vpop.permute.xlu1 %9208 }
 0xdb0   : > { %v15510_v15 = vpop.permute.xlu0 %9210 }
 0xdb1   : > { %v15512_v55 = vpop.permute.xlu1 %9212 }
 0xdb4   : > { %v15514_v52 = vpop.permute.xlu0 %9226 }
 0xdb5   : > { %v15516_v50 = vpop.permute.xlu1 %9228 }
 0xdb8   : > { %v15518_v12 = vpop.permute.xlu0 %9230 }
 0xdb9   : > { %v15520_v20 = vpop.permute.xlu1 %9232 }
 0xdbc   : > { %v15522_v16 = vpop.permute.xlu0 %9011 }
 0xdbd   : > { %v15524_v34 = vpop.permute.xlu1 %9013 }
 0xdc0   : > { %v15526_v0 = vpop.permute.xlu0 %9015 }
 0xdc1   : > { %v15528_v29 = vpop.permute.xlu1 %9017 }
 0xdc4   : > { %v15530_v63 = vpop.permute.xlu0 %9250 }
 0xdc5   : > { %v15532_v4 = vpop.permute.xlu1 %9252 }
 0xdc8   : > { %v15534_v1 = vpop.permute.xlu0 %9254 }
 0xdc9   : > { %v15536_v6 = vpop.permute.xlu1 %9256 }
 0xdca   : > { %15835 = vst [vmem:[#allocation3_spill] sm:$0xff] %v15536_v6 }
 0xdcc   : > { %v8659_v26 = vpop.permute.xlu0 %8658 }
 0xdcd   : > { %v8664_v35 = vpop.permute.xlu1 %8663 }
 0xe53   : > { %v10275_v27 = vpop.f32.mrb[20].mxu1 }
 0xe54   : > { %v10276_v19 = vpop.f32.mrb[21].mxu1 }
 0xe55   : > { %v10277_v40 = vadd.f32 %v10276_v19, %v10275_v27  ;;  %v10278_v18 = vpop.f32.mrb[22].mxu1 }
 0xe56   : > { %v10279_v41 = vpop.f32.mrb[23].mxu1 }
 0xe57   : > { %v10280_v43 = vadd.f32 %v10279_v41, %v10278_v18  ;;  %v10358_v57 = vpop.f32.mrb[60].mxu0  ;;  %v8555_v5 = vadd.f32 %v10277_v40, %v8467_v9 }
 0xe58   : > { %v8603_v28 = vpop.f32.mrb[61].mxu0 }
 0xe59   : > { %v15538_v54 = vadd.f32 %v8603_v28, %v8555_v5  ;;  %v10359_v32 = vpop.f32.mrb[62].mxu0  ;;  %v8558_v21 = vadd.f32 %v10280_v43, %v8472_v51  ;;  %v8669_v51 = vpop.permute.xlu0 %8668 }
 0xe5a   : > { %v8606_v3 = vpop.f32.mrb[63].mxu0 }
 0xe5b   : > { %v10160_v48 = vmul.f32 -1.442695, %v15538_v54  ;;  %v15541_v38 = vadd.f32 %v8606_v3, %v8558_v21  ;;  %v10281_v58 = vpop.f32.mrb[24].mxu1  ;;  %v8674_v21 = vpop.permute.xlu1 %8673 }
 0xe5c   : > { %v10282_v2 = vpop.f32.mrb[25].mxu1 }
 0xe5d   : > { %11721 = vpow2.f32 %v10160_v48  ;;  %v10161_v27 = vmul.f32 -1.442695, %v15541_v38  ;;  %v10283_v9 = vadd.f32 %v10282_v2, %v10281_v58  ;;  %v10284_v19 = vpop.f32.mrb[26].mxu1 }
 0xe5e   : > { %v10285_v40 = vpop.f32.mrb[27].mxu1 }
 0xe5f   : > { %11723 = vpow2.f32 %v10161_v27  ;;  %v8563_v18 = vadd.f32 %v10283_v9, %v15466_v37  ;;  %v10286_v41 = vadd.f32 %v10285_v40, %v10284_v19  ;;  %v10364_v43 = vpop.f32.mrb[64].mxu0 }
 0xe60   : > { %v8735_v5 = vadd.f32 %v10364_v43, %v8669_v51  ;;  %v8726_v28 = vpop.f32.mrb[65].mxu0 }
 0xe61   : > { %v15553_v3 = vadd.f32 %v10358_v57, %v8563_v18  ;;  %v8566_v48 = vadd.f32 %v10286_v41, %v15468_v53  ;;  %v8727_v58 = vadd.f32 %v8726_v28, %v8659_v26  ;;  %v10365_v2 = vpop.f32.mrb[66].mxu0 }
 0xe62   : > { %8743 = vst.msk [vmem:[%s15550_s29 + $0x10] sm:$0xff] %vm7240_vm3, %v8735_v5  ;;  %v10170_v27 = vmul.f32 -1.442695, %v8735_v5  ;;  %v8738_v6 = vadd.f32 %v10365_v2, %v8674_v21  ;;  %v8729_v37 = vpop.f32.mrb[67].mxu0 }
 0xe63   : > { %v10162_v9 = vmul.f32 -1.442695, %v15553_v3  ;;  %v15559_v19 = vadd.f32 %v10359_v32, %v8566_v48  ;;  %8741 = vst.msk [vmem:[%s15550_s29] sm:$0xff] %vm7240_vm3, %v8727_v58  ;;  %v10168_v40 = vmul.f32 -1.442695, %v8727_v58  ;;  %v8730_v57 = vadd.f32 %v8729_v37, %v8664_v35 }
 0xe64   : > { %11725 = vpow2.f32 %v10170_v27  ;;  %8745 = vst.msk [vmem:[%s15550_s29 + $0x18] sm:$0x7] %vm8744_vm4, %v8738_v6  ;;  %v10171_v53 = vmul.f32 -1.442695, %v8738_v6 }
 0xe65   : > { %11727 = vpow2.f32 %v10162_v9  ;;  %v10163_v26 = vmul.f32 -1.442695, %v15559_v19  ;;  %8742 = vst.msk [vmem:[%s15550_s29 + $0x8] sm:$0xff] %vm7240_vm3, %v8730_v57  ;;  %v10169_v51 = vmul.f32 -1.442695, %v8730_v57 }
 0xe66   : > { %11729 = vpow2.f32 %v10168_v40 }
 0xe67   : > { %v11722_v18 = vpop.eup %11721  ;;  %11731 = vpow2.f32 %v10163_v26  ;;  %v10372_v41 = vpop.f32.mrb[68].mxu0 }
 0xe68   : > { %v8630_v32 = vadd.f32 1.0, %v11722_v18  ;;  %11733 = vpow2.f32 %v10171_v53  ;;  %v8895_v43 = vadd.f32 %v10372_v41, %v15474_v25  ;;  %v8886_v5 = vpop.f32.mrb[69].mxu0 }
 0xe69   : > { %v11724_v35 = vpop.eup %11723  ;;  %11735 = vpow2.f32 %v10169_v51  ;;  %v8887_v28 = vadd.f32 %v8886_v5, %v15470_v13  ;;  %v10373_v6 = vpop.f32.mrb[70].mxu0 }
 0xe6a   : > { %11737 = vrcp.f32 %v8630_v32  ;;  %v8631_v21 = vadd.f32 1.0, %v11724_v35  ;;  %v10186_v48 = vmul.f32 -1.442695, %v8895_v43  ;;  %v8898_v58 = vadd.f32 %v10373_v6, %v15476_v8  ;;  %v8889_v2 = vpop.f32.mrb[71].mxu0  ;;  %8909 = vrot.lane.b32.xlu0 %v8895_v43, %s11836_s0 }
 0xe6b   : > { %v10184_v27 = vmul.f32 -1.442695, %v8887_v28  ;;  %v8890_v37 = vadd.f32 %v8889_v2, %v15472_v22 }
 0xe6c   : > { %11739 = vrcp.f32 %v8631_v21  ;;  %v10187_v25 = vmul.f32 -1.442695, %v8898_v58  ;;  %8911 = vrot.lane.b32.xlu1 %v8898_v58, %s11836_s0 }
 0xe6d   : > { %11741 = vpow2.f32 %v10186_v48  ;;  %v10185_v9 = vmul.f32 -1.442695, %v8890_v37 }
 0xe6e   : > { %v11726_v13 = vpop.eup %11725  ;;  %11743 = vpow2.f32 %v10184_v27  ;;  %8905 = vrot.lane.b32.xlu0 %v8887_v28, %s11836_s0 }
 0xe6f   : > { %v11728_v40 = vpop.eup %11727  ;;  %v8760_v57 = vadd.f32 1.0, %v11726_v13  ;;  %11745 = vpow2.f32 %v10187_v25 }
 0xe70   : > { %v11730_v8 = vpop.eup %11729  ;;  %v8632_v53 = vadd.f32 1.0, %v11728_v40  ;;  %11747 = vpow2.f32 %v10185_v9  ;;  %8907 = vrot.lane.b32.xlu1 %v8890_v37, %s11836_s0 }
 0xe71   : > { %v11732_v26 = vpop.eup %11731  ;;  %11749 = vrcp.f32 %v8760_v57  ;;  %v8758_v22 = vadd.f32 1.0, %v11730_v8 }
 0xe72   : > { %v11734_v51 = vpop.eup %11733  ;;  %11751 = vrcp.f32 %v8632_v53  ;;  %v8633_v18 = vadd.f32 1.0, %v11732_v26 }
 0xe73   : > { %v11736_v41 = vpop.eup %11735  ;;  %11753 = vrcp.f32 %v8758_v22  ;;  %v8761_v32 = vadd.f32 1.0, %v11734_v51 }
 0xe74   : > { %v11738_v43 = vpop.eup %11737  ;;  %11755 = vrcp.f32 %v8633_v18  ;;  %v8759_v5 = vadd.f32 1.0, %v11736_v41 }
 0xe75   : > { %11757 = vrcp.f32 %v8761_v32  ;;  %v8642_v6 = vmul.f32 %v11738_v43, %v15538_v54  ;;  %v8773_v32 = vld [vmem:[%s15703_s21 + $0x18] sm:$0x7] }
 0xe76   : > { %v11740_v35 = vpop.eup %11739  ;;  %11759 = vrcp.f32 %v8759_v5  ;;  %v10175_v43 = vld [vmem:[%s15703_s21 + $0x38] sm:$0x7] }
 0xe77   : > { %v11742_v28 = vpop.eup %11741  ;;  %v8643_v21 = vmul.f32 %v11740_v35, %v15541_v38 }
 0xe78   : > { %v11744_v48 = vpop.eup %11743  ;;  %v8937_v58 = vadd.f32 1.0, %v11742_v28 }
 0xe79   : > { %v11746_v2 = vpop.eup %11745  ;;  %v8935_v27 = vadd.f32 1.0, %v11744_v48  ;;  %v8646_v37 = vpack.c.bf16 %v8643_v21, %v8642_v6 }
 0xe7a   : > { %v11748_v25 = vpop.eup %11747  ;;  %11761 = vrcp.f32 %v8937_v58  ;;  %v8938_v9 = vadd.f32 1.0, %v11746_v2 }
 0xe7b   : > { %v11750_v13 = vpop.eup %11749  ;;  %11763 = vrcp.f32 %v8935_v27  ;;  %v8936_v40 = vadd.f32 1.0, %v11748_v25  ;;  %10374 = vmatprep.subr.bf16.mxu0 %v8646_v37 }
 0xe7c   : > { %v11752_v57 = vpop.eup %11751  ;;  %v8786_v8 = vmul.f32 %v11750_v13, %v11750_v13  ;;  %11765 = vrcp.f32 %v8938_v9  ;;  %10375 = vmatpush3.bf16.msra.mxu0 %v8646_v37  ;;  %v8794_v22 = vmul.f32 %v11750_v13, %v15355_v56 }
 0xe7d   : > { %v11754_v53 = vpop.eup %11753  ;;  %11767 = vrcp.f32 %v8936_v40  ;;  %v8644_v18 = vmul.f32 %v11752_v57, %v15553_v3 }
 0xe7e   : > { %v11756_v54 = vpop.eup %11755  ;;  %v8784_v38 = vmul.f32 %v11754_v53, %v11754_v53  ;;  %v8790_v26 = vmul.f32 %v15330_v23, %v8786_v8  ;;  %v8792_v56 = vmul.f32 %v11754_v53, %v15343_v17  ;;  %v10179_v17 = vld [vmem:[%s15703_s21 + $0x58] sm:$0x7] }
 0xe7f   : > { %v11758_v51 = vpop.eup %11757  ;;  %v8645_v41 = vmul.f32 %v11756_v54, %v15559_v19 }
 0xe80   : > { %v11760_v5 = vpop.eup %11759  ;;  %v8787_v35 = vmul.f32 %v11758_v51, %v11758_v51  ;;  %v8798_v28 = vadd.f32 %v8794_v22, %v8790_v26  ;;  %v8788_v23 = vmul.f32 %v15318_v7, %v8784_v38  ;;  %v8795_v48 = vmul.f32 %v11758_v51, %v10175_v43  ;;  %v11636_v7 = vld [vmem:[%s15701_s19 + $0x8] sm:$0x3f]  }
 0xe81   : > { %v8785_v3 = vmul.f32 %v11760_v5, %v11760_v5  ;;  %v8647_v19 = vpack.c.bf16 %v8645_v41, %v8644_v18  ;;  %v8793_v27 = vmul.f32 %v11760_v5, %v15338_v44 }
 0xe82   : > { %v8802_v6 = vadd.f32 %v15392_v62, %v8798_v28  ;;  %v8791_v21 = vmul.f32 %v8787_v35, %v8773_v32  ;;  %v8796_v58 = vadd.f32 %v8792_v56, %v8788_v23 }
 0xe83   : > { %10376 = vmatprep.subr.bf16.mxu0 %v8647_v19  ;;  %v8789_v2 = vmul.f32 %v15313_v14, %v8785_v3 }
 0xe84   : > { %v11762_v37 = vpop.eup %11761  ;;  %10377 = vmatpush3.bf16.msra.mxu0 %v8647_v19  ;;  %8806 = vst.msk [vmem:[%s15595_s3 + $0x10] sm:$0xff] %vm7240_vm3, %v8802_v6  ;;  %v8799_v62 = vadd.f32 %v8795_v48, %v8791_v21  ;;  %v8800_v25 = vadd.f32 %v15380_v42, %v8796_v58 }
 0xe85   : > { %v11764_v9 = vpop.eup %11763  ;;  %v8961_v13 = vmul.f32 %v11762_v37, %v11762_v37  ;;  %v8797_v40 = vadd.f32 %v8793_v27, %v8789_v2  ;;  %v9001_v54 = vmul.f32 %v11762_v37, %v15502_v31 }
 0xe86   : > { %v11766_v57 = vpop.eup %11765  ;;  %v8959_v8 = vmul.f32 %v11764_v9, %v11764_v9  ;;  %v8803_v53 = vadd.f32 %v10179_v17, %v8799_v62  ;;  %8804 = vst.msk [vmem:[%s15595_s3] sm:$0xff] %vm7240_vm3, %v8800_v25  ;;  %v8999_v22 = vmul.f32 %v11764_v9, %v15498_v60 }
 0xe87   : > { %v11768_v14 = vpop.eup %11767  ;;  %10379 = vmatmul.mubr.msk.bf16.vlgmr.msra.gmra.mrb[72].mxu0 %vm6028_vm2, %v11636_v7  ;;  %v8981_v44 = vmul.f32 %v15494_v47, %v8961_v13  ;;  %v8962_v38 = vmul.f32 %v11766_v57, %v11766_v57  ;;  %v8801_v42 = vadd.f32 %v15375_v61, %v8797_v40  ;;  %v9002_v32 = vmul.f32 %v11766_v57, %v15504_v36 }
 0xe88   : > { %v8979_v26 = vmul.f32 %v15490_v33, %v8959_v8  ;;  %v8960_v51 = vmul.f32 %v11768_v14, %v11768_v14  ;;  %8807 = vst.msk [vmem:[%s15595_s3 + $0x18] sm:$0x7] %vm8744_vm4, %v8803_v53  ;;  %v9000_v61 = vmul.f32 %v11768_v14, %v15500_v30  ;;  %vm8917_vm2 = vcmask 753216  }
 0xe89   : > { %v9005_v18 = vadd.f32 %v9001_v54, %v8981_v44  ;;  %v8982_v41 = vmul.f32 %v15496_v46, %v8962_v38  ;;  %8805 = vst.msk [vmem:[%s15595_s3 + $0x8] sm:$0xff] %vm7240_vm3, %v8801_v42 }
 0xe8a   : > { %v9003_v47 = vadd.f32 %v8999_v22, %v8979_v26  ;;  %v8980_v31 = vmul.f32 %v15492_v59, %v8960_v51 }
 0xe8b   : > { %v9025_v33 = vadd.f32 %v15526_v0, %v9005_v18  ;;  %v9006_v60 = vadd.f32 %v9002_v32, %v8982_v41 }
 0xe8c   : > { %v9023_v43 = vadd.f32 %v15522_v16, %v9003_v47  ;;  %v9004_v5 = vadd.f32 %v9000_v61, %v8980_v31 }
 0xe8d   : > { %9035 = vrot.lane.b32.xlu0 %v9025_v33, %s11836_s0  ;;  %v9026_v46 = vadd.f32 %v15528_v29, %v9006_v60 }
 0xe8e   : > { %v9024_v36 = vadd.f32 %v15524_v34, %v9004_v5 }
 0xe8f   : > { %9037 = vrot.lane.b32.xlu1 %v9026_v46, %s11836_s0 }
 0xe91   : > { %9031 = vrot.lane.b32.xlu0 %v9023_v43, %s11836_s0 }
 0xe93   : > { %9033 = vrot.lane.b32.xlu1 %v9024_v36, %s11836_s0 }
 0xedc   : > { %v8910_v59 = vpop.permute.xlu0 %8909 }
 0xedd   : > { %8920 = vst.msk [vmem:[%s15550_s29 + $0x10] sm:$0xff] %vm8917_vm2, %v8910_v59 }
 0xede   : > { %v8912_v30 = vpop.permute.xlu1 %8911 }
 0xedf   : > { %8922 = vst.msk [vmem:[%s15550_s29 + $0x18] sm:$0x7] %vm8921_vm9, %v8912_v30 }
 0xee0   : > { %v8906_v16 = vpop.permute.xlu0 %8905 }
 0xee1   : > { %8918 = vst.msk [vmem:[%s15550_s29] sm:$0xff] %vm8917_vm2, %v8906_v16 }
 0xee2   : > { %v8908_v34 = vpop.permute.xlu1 %8907 }
 0xee3   : > { %8919 = vst.msk [vmem:[%s15550_s29 + $0x8] sm:$0xff] %vm8917_vm2, %v8908_v34 }
 0xeff   : > { %v9036_v0 = vpop.permute.xlu0 %9035 }
 0xf00   : > { %9045 = vst.msk [vmem:[%s15595_s3 + $0x10] sm:$0xff] %vm8917_vm2, %v9036_v0 }
 0xf01   : > { %v9038_v29 = vpop.permute.xlu1 %9037 }
 0xf02   : > { %9046 = vst.msk [vmem:[%s15595_s3 + $0x18] sm:$0x7] %vm8921_vm9, %v9038_v29 }
 0xf03   : > { %v9032_v35 = vpop.permute.xlu0 %9031 }
 0xf04   : > { %9043 = vst.msk [vmem:[%s15595_s3] sm:$0xff] %vm8917_vm2, %v9032_v35 }
 0xf05   : > { %v9034_v28 = vpop.permute.xlu1 %9033 }
 0xf06   : > { %9044 = vst.msk [vmem:[%s15595_s3 + $0x8] sm:$0xff] %vm8917_vm2, %v9034_v28 }
 0xf5a   : > { %v10380_v23 = vpop.f32.mrb[72].mxu0 }
 0xf5b   : > { %v9134_v56 = vadd.f32 %v10380_v23, %v15486_v11  ;;  %v9125_v3 = vpop.f32.mrb[73].mxu0 }
 0xf5c   : > { %v9126_v19 = vadd.f32 %v9125_v3, %v15481_v10  ;;  %v10381_v6 = vpop.f32.mrb[74].mxu0 }
 0xf5d   : > { %v10202_v21 = vmul.f32 -1.442695, %v9134_v56  ;;  %v9137_v48 = vadd.f32 %v10381_v6, %v15488_v45  ;;  %9148 = vrot.lane.b32.xlu0 %v9134_v56, %s15836_s28  ;;  %v9128_v58 = vpop.f32.mrb[75].mxu0 }
 0xf5e   : > { %v10200_v7 = vmul.f32 -1.442695, %v9126_v19  ;;  %v9129_v17 = vadd.f32 %v9128_v58, %v15484_v24 }
 0xf5f   : > { %11769 = vpow2.f32 %v10202_v21  ;;  %v10203_v2 = vmul.f32 -1.442695, %v9137_v48  ;;  %9150 = vrot.lane.b32.xlu1 %v9137_v48, %s15836_s28 }
 0xf60   : > { %11771 = vpow2.f32 %v10200_v7  ;;  %v10201_v27 = vmul.f32 -1.442695, %v9129_v17 }
 0xf61   : > { %11773 = vpow2.f32 %v10203_v2  ;;  %9144 = vrot.lane.b32.xlu0 %v9126_v19, %s15836_s28 }
 0xf62   : > { %11775 = vpow2.f32 %v10201_v27 }
 0xf63   : > { %9146 = vrot.lane.b32.xlu1 %v9129_v17, %s15836_s28 }
 0xf69   : > { %v11770_v10 = vpop.eup %11769 }
 0xf6a   : > { %v11772_v11 = vpop.eup %11771  ;;  %v9176_v45 = vadd.f32 1.0, %v11770_v10 }
 0xf6b   : > { %v11774_v37 = vpop.eup %11773  ;;  %v9174_v62 = vadd.f32 1.0, %v11772_v11 }
 0xf6c   : > { %v11776_v25 = vpop.eup %11775  ;;  %11777 = vrcp.f32 %v9176_v45  ;;  %v9177_v24 = vadd.f32 1.0, %v11774_v37 }
 0xf6d   : > { %11779 = vrcp.f32 %v9174_v62  ;;  %v9175_v9 = vadd.f32 1.0, %v11776_v25 }
 0xf6e   : > { %11781 = vrcp.f32 %v9177_v24 }
 0xf6f   : > { %11783 = vrcp.f32 %v9175_v9 }
 0xf76   : > { %v11778_v13 = vpop.eup %11777 }
 0xf77   : > { %v11780_v40 = vpop.eup %11779  ;;  %v9200_v57 = vmul.f32 %v11778_v13, %v11778_v13  ;;  %v9240_v22 = vmul.f32 %v11778_v13, %v15518_v12 }
 0xf78   : > { %v11782_v8 = vpop.eup %11781  ;;  %v9198_v53 = vmul.f32 %v11780_v40, %v11780_v40  ;;  %v9238_v38 = vmul.f32 %v11780_v40, %v15514_v52 }
 0xf79   : > { %v11784_v14 = vpop.eup %11783  ;;  %v9201_v44 = vmul.f32 %v11782_v8, %v11782_v8  ;;  %v9220_v26 = vmul.f32 %v15510_v15, %v9200_v57  ;;  %v9241_v52 = vmul.f32 %v11782_v8, %v15520_v20 }
 0xf7a   : > { %v9218_v54 = vmul.f32 %v15506_v49, %v9198_v53  ;;  %v9199_v42 = vmul.f32 %v11784_v14, %v11784_v14  ;;  %v9239_v41 = vmul.f32 %v11784_v14, %v15516_v50 }
 0xf7b   : > { %v9221_v32 = vmul.f32 %v15512_v55, %v9201_v44  ;;  %v9244_v49 = vadd.f32 %v9240_v22, %v9220_v26  ;;  %v15837_v55 = vld [vmem:[#allocation3_spill] sm:$0xff] }
 0xf7c   : > { %v9242_v51 = vadd.f32 %v9238_v38, %v9218_v54  ;;  %v9219_v18 = vmul.f32 %v15508_v39, %v9199_v42 }
 0xf7d   : > { %v9245_v12 = vadd.f32 %v9241_v52, %v9221_v32  ;;  %v9264_v39 = vadd.f32 %v15534_v1, %v9244_v49 }
 0xf7e   : > { %v9262_v47 = vadd.f32 %v15530_v63, %v9242_v51  ;;  %v9243_v31 = vadd.f32 %v9239_v41, %v9219_v18 }
 0xf7f   : > { %v9265_v50 = vadd.f32 %v15837_v55, %v9245_v12 }
 0xf80   : > { %9270 = vrot.lane.b32.xlu0 %v9262_v47, %s15836_s28  ;;  %v9263_v15 = vadd.f32 %v15532_v4, %v9243_v31 }
 0xf82   : > { %9272 = vrot.lane.b32.xlu1 %v9263_v15, %s15836_s28 }
 0xf84   : > { %9274 = vrot.lane.b32.xlu0 %v9264_v39, %s15836_s28 }
 0xf86   : > { %9276 = vrot.lane.b32.xlu1 %v9265_v50, %s15836_s28 }
 0xfcf   : > { %v9149_v20 = vpop.permute.xlu0 %9148 }
 0xfd0   : > { %9159 = vst.msk [vmem:[%s15550_s29 + $0x10] sm:$0xff] %vm9156_vm8, %v9149_v20 }
 0xfd1   : > { %v9151_v63 = vpop.permute.xlu1 %9150 }
 0xfd2   : > { %9161 = vst.msk [vmem:[%s15550_s29 + $0x18] sm:$0x7] %vm9160_vm14, %v9151_v63 }
 0xfd3   : > { %v9145_v4 = vpop.permute.xlu0 %9144 }
 0xfd4   : > { %9157 = vst.msk [vmem:[%s15550_s29] sm:$0xff] %vm9156_vm8, %v9145_v4 }
 0xfd5   : > { %v9147_v61 = vpop.permute.xlu1 %9146 }
 0xfd6   : > { %9158 = vst.msk [vmem:[%s15550_s29 + $0x8] sm:$0xff] %vm9156_vm8, %v9147_v61 }
 0xff2   : > { %v9271_v1 = vpop.permute.xlu0 %9270 }
 0xff3   : > { %9282 = vst.msk [vmem:[%s15595_s3] sm:$0xff] %vm9156_vm8, %v9271_v1 }
 0xff4   : > { %v9273_v33 = vpop.permute.xlu1 %9272 }
 0xff5   : > { %9283 = vst.msk [vmem:[%s15595_s3 + $0x8] sm:$0xff] %vm9156_vm8, %v9273_v33 }
 0xff6   : > { %v9275_v60 = vpop.permute.xlu0 %9274 }
 0xff7   : > { %9284 = vst.msk [vmem:[%s15595_s3 + $0x10] sm:$0xff] %vm9156_vm8, %v9275_v60 }
 0xff8   : > { %v9277_v43 = vpop.permute.xlu1 %9276 }
 0xff9   : > { %9285 = vst.msk [vmem:[%s15595_s3 + $0x18] sm:$0x7] %vm9160_vm14, %v9277_v43 }
 0xffa PF: > { %s34_s4 = sadd.s32 1, %s11793_s4  }
 0xffb   : > { %p31_p4 = scmp.ge.s32.totalorder %s34_s4, 4  }
 0xffd   :  { %33 = sbr.rel (!%p31_p4) target bundleno = 9 (0x9), region = 152 }

</bundles_post_ra>
